<compile_context>
chip_gen: v7x
topology: tpu7x:2x2x1
jax: 0.10.0
libtpu: 0.0.40
codegen_flags: <defaults>
</compile_context>

<pallas_src>
import functools

import jax
import jax.numpy as jnp
from jax import lax
from jax.experimental import pallas as pl
from jax.experimental.pallas import tpu as pltpu


# --------------------------------------------------------------------------
# Fused MidBlock kernel: chain of ResnetBlocks on a resident (rows, C) tile
# --------------------------------------------------------------------------
def midblock_kernel(x_ref, gmat_ref, kp_ref, kn_ref,
                    g1_ref, b1_ref, w1_ref, c1b_ref,
                    g2_ref, b2_ref, w2_ref, c2b_ref,
                    o_ref, taps_ref, *, n_blocks, bt, L, C, cs, eps, skip_scale):
    rows = bt * L
    inv_L = 1.0 / float(L)
    inv_cs = 1.0 / float(cs)

    x = x_ref[...]
    if x.dtype != jnp.float32:
        x = x.astype(jnp.float32)
    gmat = gmat_ref[...]                                   # (C, C) bf16 0/1 group mask (exact)
    # Hoist the lane broadcasts of the boundary masks (JAX does not CSE broadcast_in_dim).
    kp = jnp.broadcast_to(kp_ref[...], (rows, C))          # zeros the x[l-1] tap at l == 0
    kn = jnp.broadcast_to(kn_ref[...], (rows, C))          # zeros the x[l+1] tap at l == L-1

    def group_norm_silu(h, gamma, beta):
        # Per-batch reductions over L on the XLU; per-group channel mixing as one tiny
        # default-precision bf16 MXU dot; per-batch stats broadcast back as (bt,1,C)
        # elementwise broadcasts (no M=bt / K=bt matmuls, no HIGHEST precision).
        h3 = h.reshape(bt, L, C)
        ch_mean = jnp.sum(h3, axis=1) * inv_L                                   # (bt, C) f32
        grp_mean = jnp.dot(ch_mean.astype(jnp.bfloat16), gmat,
                           preferred_element_type=jnp.float32) * inv_cs         # (bt, C)
        d3 = h3 - grp_mean[:, None, :]                                          # two-pass variance
        ch_var = jnp.sum(d3 * d3, axis=1) * inv_L                               # (bt, C)
        grp_var = jnp.dot(ch_var.astype(jnp.bfloat16), gmat,
                          preferred_element_type=jnp.float32) * inv_cs
        inv_std = lax.rsqrt(grp_var + eps)                                      # (bt, C)
        y = (d3 * inv_std[:, None, :]).reshape(rows, C) * gamma + beta
        return y * (1.0 / (1.0 + jnp.exp(-y)))                                  # SiLU (EUP exp)

    def conv1d_k3(h, w, bias):
        # Conv1d(k=3, pad=1) as ONE MXU matmul with K = 3C: the three shifted taps are
        # written into a persistent (rows, 3C) bf16 VMEM slab (no concatenate copy).
        # jnp.roll wraps across batch items / block edges; kp/kn zero those taps.
        taps_ref[:, :C] = (jnp.roll(h, 1, axis=0) * kp).astype(jnp.bfloat16)        # x[l-1]
        taps_ref[:, C:2 * C] = h.astype(jnp.bfloat16)                               # x[l]
        taps_ref[:, 2 * C:] = (jnp.roll(h, -1, axis=0) * kn).astype(jnp.bfloat16)   # x[l+1]
        y = jnp.dot(taps_ref[...], w, preferred_element_type=jnp.float32)
        return y + bias

    # MidBlock ResnetBlocks all have in_channels == out_channels -> identity shortcut.
    for layer in range(n_blocks):
        h = group_norm_silu(x, g1_ref[layer], b1_ref[layer])
        h = conv1d_k3(h, w1_ref[layer], c1b_ref[layer])
        h = group_norm_silu(h, g2_ref[layer], b2_ref[layer])
        h = conv1d_k3(h, w2_ref[layer], c2b_ref[layer])
        x = (h + x) * skip_scale

    o_ref[...] = x.astype(o_ref.dtype)


# --------------------------------------------------------------------------
# Wrapper: constants, BlockSpecs, pallas_call
# --------------------------------------------------------------------------
def _full_spec(shape):
    n = len(shape)
    return pl.BlockSpec(shape, lambda b, n=n: (0,) * n)   # grid-invariant -> fetched once


def _make_constants(C, groups, L, bt):
    cs = C // groups
    gid = jnp.arange(C) // cs
    gmat = (gid[:, None] == gid[None, :]).astype(jnp.bfloat16)   # 0/1 group mask, exact in bf16
    rows = bt * L
    l_idx = jnp.arange(rows) % L
    kp = (l_idx != 0).astype(jnp.float32)[:, None]        # (rows, 1)
    kn = (l_idx != L - 1).astype(jnp.float32)[:, None]    # (rows, 1)
    return gmat, kp, kn


def _pick_block_batch(B, L, *, max_rows=2048, min_grid=4):
    # Largest block-batch that keeps the grid >= min_grid steps (pipelining / v7x
    # two-core split) and the row block modest enough for v7x's smaller VMEM.
    best = 1
    for bt in range(1, B + 1):
        if B % bt:
            continue
        if bt * L > max_rows:
            break
        if B // bt >= min_grid or bt == 1:
            best = bt
    return best


def midblock_forward(x_ncl, params, *, groups=32, eps=1e-5, skip_scale=1.0,
                     block_batch=None):
    """MidBlock forward. x_ncl: (B, C, L) PyTorch layout; returns (B, C, L)."""
    B, C, L = x_ncl.shape
    assert C % groups == 0
    assert L % 8 == 0, "L must be a multiple of 8 (sublane-aligned per-batch blocks)"
    bt = block_batch if block_batch is not None else _pick_block_batch(B, L)
    assert B % bt == 0, "block_batch must divide the batch size"
    rows = bt * L
    cs = C // groups

    nets = params["nets"]
    n_blocks = len(nets)
    # Stack per-layer parameters on a leading axis so the whole MidBlock fuses
    # into one pallas_call (activations never round-trip through HBM per layer).
    stacked = tuple(jnp.stack([p[k] for p in nets])
                    for k in ("g1", "b1", "w1", "c1b", "g2", "b2", "w2", "c2b"))

    x2d = jnp.transpose(x_ncl, (0, 2, 1)).reshape(B * L, C)
    gmat, kp, kn = _make_constants(C, groups, L, bt)

    kernel = functools.partial(midblock_kernel, n_blocks=n_blocks, bt=bt, L=L, C=C,
                               cs=cs, eps=eps, skip_scale=skip_scale)

    out2d = pl.pallas_call(
        kernel,
        out_shape=jax.ShapeDtypeStruct((B * L, C), x2d.dtype),
        grid=(B // bt,),
        in_specs=[pl.BlockSpec((rows, C), lambda b: (b, 0)),
                  _full_spec(gmat.shape), _full_spec(kp.shape), _full_spec(kn.shape)]
                 + [_full_spec(s.shape) for s in stacked],
        out_specs=pl.BlockSpec((rows, C), lambda b: (b, 0)),
        scratch_shapes=[pltpu.VMEM((rows, 3 * C), jnp.bfloat16)],   # conv tap slab
        # Batch grid is embarrassingly parallel -> v7x's two TensorCores split it.
        compiler_params=pltpu.CompilerParams(dimension_semantics=("parallel",)),
    )(x2d, gmat, kp, kn, *stacked)

    return jnp.transpose(out2d.reshape(B, L, C), (0, 2, 1))


# --------------------------------------------------------------------------
# Deterministic parameter init (shapes per the PyTorch __init__)
# --------------------------------------------------------------------------
def init_resnet_params(key, C):
    ks = jax.random.split(key, 8)
    # Conv weights stacked along K: rows [0:C]=tap x[l-1], [C:2C]=x[l], [2C:3C]=x[l+1].
    conv_w = lambda k: (0.05 * jax.random.normal(k, (3 * C, C), jnp.float32)).astype(jnp.bfloat16)
    return {
        "g1": 1.0 + 0.1 * jax.random.normal(ks[0], (1, C), jnp.float32),
        "b1": 0.1 * jax.random.normal(ks[1], (1, C), jnp.float32),
        "w1": conv_w(ks[2]),
        "c1b": 0.05 * jax.random.normal(ks[3], (1, C), jnp.float32),
        "g2": 1.0 + 0.1 * jax.random.normal(ks[4], (1, C), jnp.float32),
        "b2": 0.1 * jax.random.normal(ks[5], (1, C), jnp.float32),
        "w2": conv_w(ks[6]),
        "c2b": 0.05 * jax.random.normal(ks[7], (1, C), jnp.float32),
    }


def init_midblock_params(key, C, num_layers):
    keys = jax.random.split(key, num_layers + 1)   # MidBlock = num_layers + 1 ResnetBlocks
    return {"nets": [init_resnet_params(k, C) for k in keys]}


# --------------------------------------------------------------------------
# Pure-JAX reference (numerical sanity check)
# --------------------------------------------------------------------------
def _ref_group_norm(x, gamma, beta, groups, eps):
    B, L, C = x.shape
    cs = C // groups
    xg = x.reshape(B, L, groups, cs)
    mean = xg.mean(axis=(1, 3), keepdims=True)
    var = ((xg - mean) ** 2).mean(axis=(1, 3), keepdims=True)
    xn = ((xg - mean) / jnp.sqrt(var + eps)).reshape(B, L, C)
    return xn * gamma.reshape(1, 1, C) + beta.reshape(1, 1, C)


def _ref_conv1d_k3(x, w_stacked, b):
    B, L, C = x.shape
    w3 = w_stacked.reshape(3, C, C)                      # (k, Cin, Cout), bf16
    y = lax.conv_general_dilated(x.astype(jnp.bfloat16), w3, window_strides=(1,),
                                 padding=((1, 1),),
                                 dimension_numbers=("NWC", "WIO", "NWC"),
                                 preferred_element_type=jnp.float32)
    return y + b.reshape(1, 1, C)


def _ref_resnet(x, p, groups, eps, skip_scale):
    h = _ref_group_norm(x, p["g1"], p["b1"], groups, eps)
    h = jax.nn.silu(h)
    h = _ref_conv1d_k3(h, p["w1"], p["c1b"])
    h = _ref_group_norm(h, p["g2"], p["b2"], groups, eps)
    h = jax.nn.silu(h)
    h = _ref_conv1d_k3(h, p["w2"], p["c2b"])
    return (h + x) * skip_scale


def _ref_midblock(x_ncl, params, groups, eps, skip_scale):
    x = jnp.transpose(x_ncl, (0, 2, 1))
    for p in params["nets"]:
        x = _ref_resnet(x, p, groups, eps, skip_scale)
    return jnp.transpose(x, (0, 2, 1))


# --------------------------------------------------------------------------
if __name__ == "__main__":
    B, C, L = 8, 128, 128              # C multiple of 128 -> lane-dense output blocks
    num_layers, groups, eps, skip_scale = 1, 32, 1e-5, 1.0

    key = jax.random.PRNGKey(0)
    k_x, k_p = jax.random.split(key)
    x = jax.random.normal(k_x, (B, C, L), jnp.float32)   # PyTorch NCL layout
    params = init_midblock_params(k_p, C, num_layers)

    out = midblock_forward(x, params, groups=groups, eps=eps, skip_scale=skip_scale)
    out = jax.block_until_ready(out)

    ref = jax.block_until_ready(_ref_midblock(x, params, groups, eps, skip_scale))

    assert out.shape == (B, C, L), out.shape
    max_diff = float(jnp.max(jnp.abs(out - ref)))
    assert max_diff < 5e-2, f"mismatch vs reference: {max_diff}"

    print("KERNEL_OK")
</pallas_src>

<mosaic_0001>
module attributes {stable_mosaic.version = 11 : i64} {
  func.func @midblock_kernel(%arg0: i32, %arg1: memref<256x128xf32, #tpu.memory_space<vmem>>, %arg2: memref<128x128xbf16, #tpu.memory_space<vmem>>, %arg3: memref<256x1xf32, #tpu.memory_space<vmem>>, %arg4: memref<256x1xf32, #tpu.memory_space<vmem>>, %arg5: memref<2x1x128xf32, #tpu.memory_space<vmem>>, %arg6: memref<2x1x128xf32, #tpu.memory_space<vmem>>, %arg7: memref<2x384x128xbf16, #tpu.memory_space<vmem>>, %arg8: memref<2x1x128xf32, #tpu.memory_space<vmem>>, %arg9: memref<2x1x128xf32, #tpu.memory_space<vmem>>, %arg10: memref<2x1x128xf32, #tpu.memory_space<vmem>>, %arg11: memref<2x384x128xbf16, #tpu.memory_space<vmem>>, %arg12: memref<2x1x128xf32, #tpu.memory_space<vmem>>, %arg13: memref<256x128xf32, #tpu.memory_space<vmem>>, %arg14: memref<256x384xbf16, #tpu.memory_space<vmem>>) attributes {dimension_semantics = [#tpu.dimension_semantics<parallel>], iteration_bounds = array<i64: 4>, scalar_prefetch = 0 : i64, scratch_operands = 1 : i64, tpu.core_type = #tpu.core_type<tc>, window_params = [{transform_indices = @transform_0, window_bounds = array<i64: 256, 128>}, {pipeline_mode = #tpu.pipeline_mode<synchronous>, transform_indices = @transform_1, window_bounds = array<i64: 128, 128>}, {pipeline_mode = #tpu.pipeline_mode<synchronous>, transform_indices = @transform_2, window_bounds = array<i64: 256, 1>}, {pipeline_mode = #tpu.pipeline_mode<synchronous>, transform_indices = @transform_3, window_bounds = array<i64: 256, 1>}, {pipeline_mode = #tpu.pipeline_mode<synchronous>, transform_indices = @transform_4, window_bounds = array<i64: 2, 1, 128>}, {pipeline_mode = #tpu.pipeline_mode<synchronous>, transform_indices = @transform_5, window_bounds = array<i64: 2, 1, 128>}, {pipeline_mode = #tpu.pipeline_mode<synchronous>, transform_indices = @transform_6, window_bounds = array<i64: 2, 384, 128>}, {pipeline_mode = #tpu.pipeline_mode<synchronous>, transform_indices = @transform_7, window_bounds = array<i64: 2, 1, 128>}, {pipeline_mode = #tpu.pipeline_mode<synchronous>, transform_indices = @transform_8, window_bounds = array<i64: 2, 1, 128>}, {pipeline_mode = #tpu.pipeline_mode<synchronous>, transform_indices = @transform_9, window_bounds = array<i64: 2, 1, 128>}, {pipeline_mode = #tpu.pipeline_mode<synchronous>, transform_indices = @transform_10, window_bounds = array<i64: 2, 384, 128>}, {pipeline_mode = #tpu.pipeline_mode<synchronous>, transform_indices = @transform_11, window_bounds = array<i64: 2, 1, 128>}, {transform_indices = @transform_12, window_bounds = array<i64: 256, 128>}]} {
    %c0 = arith.constant 0 : index
    %c0_0 = arith.constant 0 : index
    %0 = vector.load %arg1[%c0, %c0_0] : memref<256x128xf32, #tpu.memory_space<vmem>>, vector<256x128xf32>
    %c0_1 = arith.constant 0 : index
    %c0_2 = arith.constant 0 : index
    %1 = vector.load %arg2[%c0_1, %c0_2] : memref<128x128xbf16, #tpu.memory_space<vmem>>, vector<128x128xbf16>
    %c0_3 = arith.constant 0 : index
    %c0_4 = arith.constant 0 : index
    %2 = vector.load %arg3[%c0_3, %c0_4] : memref<256x1xf32, #tpu.memory_space<vmem>>, vector<256x1xf32>
    %3 = vector.shape_cast %2 : vector<256x1xf32> to vector<256x1xf32>
    %4 = vector.broadcast %3 : vector<256x1xf32> to vector<256x128xf32>
    %c0_5 = arith.constant 0 : index
    %c0_6 = arith.constant 0 : index
    %5 = vector.load %arg4[%c0_5, %c0_6] : memref<256x1xf32, #tpu.memory_space<vmem>>, vector<256x1xf32>
    %6 = vector.shape_cast %5 : vector<256x1xf32> to vector<256x1xf32>
    %7 = vector.broadcast %6 : vector<256x1xf32> to vector<256x128xf32>
    %c0_7 = arith.constant 0 : index
    %c0_8 = arith.constant 0 : index
    %c0_9 = arith.constant 0 : index
    %8 = vector.load %arg5[%c0_7, %c0_8, %c0_9] : memref<2x1x128xf32, #tpu.memory_space<vmem>>, vector<1x1x128xf32>
    %9 = vector.shape_cast %8 : vector<1x1x128xf32> to vector<1x128xf32>
    %c0_10 = arith.constant 0 : index
    %c0_11 = arith.constant 0 : index
    %c0_12 = arith.constant 0 : index
    %10 = vector.load %arg6[%c0_10, %c0_11, %c0_12] : memref<2x1x128xf32, #tpu.memory_space<vmem>>, vector<1x1x128xf32>
    %11 = vector.shape_cast %10 : vector<1x1x128xf32> to vector<1x128xf32>
    %12 = vector.shape_cast %0 : vector<256x128xf32> to vector<2x128x128xf32>
    %cst = arith.constant dense<0.000000e+00> : vector<2x128xf32>
    %13 = vector.multi_reduction <add>, %12, %cst [1] : vector<2x128x128xf32> to vector<2x128xf32>
    %cst_13 = arith.constant 7.812500e-03 : f32
    %14 = vector.broadcast %cst_13 : f32 to vector<2x128xf32>
    %15 = arith.mulf %13, %14 : vector<2x128xf32>
    %16 = arith.truncf %15 : vector<2x128xf32> to vector<2x128xbf16>
    %cst_14 = arith.constant dense<0.000000e+00> : vector<2x128xf32>
    %17 = tpu.matmul %16, %1, %cst_14 {dimension_numbers = #tpu.dot_dimension_numbers<[1], [0], [0], [1], [0, 0, 1, 1], [], []>} : vector<2x128xbf16>, vector<128x128xbf16>, vector<2x128xf32> -> vector<2x128xf32>
    %cst_15 = arith.constant 2.500000e-01 : f32
    %18 = vector.broadcast %cst_15 : f32 to vector<2x128xf32>
    %19 = arith.mulf %17, %18 : vector<2x128xf32>
    %20 = vector.shape_cast %19 : vector<2x128xf32> to vector<2x1x128xf32>
    %21 = vector.broadcast %20 : vector<2x1x128xf32> to vector<2x128x128xf32>
    %22 = arith.subf %12, %21 : vector<2x128x128xf32>
    %23 = arith.mulf %22, %22 : vector<2x128x128xf32>
    %cst_16 = arith.constant dense<0.000000e+00> : vector<2x128xf32>
    %24 = vector.multi_reduction <add>, %23, %cst_16 [1] : vector<2x128x128xf32> to vector<2x128xf32>
    %cst_17 = arith.constant 7.812500e-03 : f32
    %25 = vector.broadcast %cst_17 : f32 to vector<2x128xf32>
    %26 = arith.mulf %24, %25 : vector<2x128xf32>
    %27 = arith.truncf %26 : vector<2x128xf32> to vector<2x128xbf16>
    %cst_18 = arith.constant dense<0.000000e+00> : vector<2x128xf32>
    %28 = tpu.matmul %27, %1, %cst_18 {dimension_numbers = #tpu.dot_dimension_numbers<[1], [0], [0], [1], [0, 0, 1, 1], [], []>} : vector<2x128xbf16>, vector<128x128xbf16>, vector<2x128xf32> -> vector<2x128xf32>
    %cst_19 = arith.constant 2.500000e-01 : f32
    %29 = vector.broadcast %cst_19 : f32 to vector<2x128xf32>
    %30 = arith.mulf %28, %29 : vector<2x128xf32>
    %cst_20 = arith.constant 9.99999974E-6 : f32
    %31 = vector.broadcast %cst_20 : f32 to vector<2x128xf32>
    %32 = arith.addf %30, %31 : vector<2x128xf32>
    %33 = math.rsqrt %32 : vector<2x128xf32>
    %34 = vector.shape_cast %33 : vector<2x128xf32> to vector<2x1x128xf32>
    %35 = vector.broadcast %34 : vector<2x1x128xf32> to vector<2x128x128xf32>
    %36 = arith.mulf %22, %35 : vector<2x128x128xf32>
    %37 = vector.shape_cast %36 : vector<2x128x128xf32> to vector<256x128xf32>
    %38 = vector.broadcast %9 : vector<1x128xf32> to vector<256x128xf32>
    %39 = arith.mulf %37, %38 : vector<256x128xf32>
    %40 = vector.broadcast %11 : vector<1x128xf32> to vector<256x128xf32>
    %41 = arith.addf %39, %40 : vector<256x128xf32>
    %cst_21 = arith.constant 0.000000e+00 : f32
    %42 = vector.broadcast %cst_21 : f32 to vector<256x128xf32>
    %43 = arith.subf %42, %41 : vector<256x128xf32>
    %44 = math.exp %43 : vector<256x128xf32>
    %cst_22 = arith.constant 1.000000e+00 : f32
    %45 = vector.broadcast %cst_22 : f32 to vector<256x128xf32>
    %46 = arith.addf %45, %44 : vector<256x128xf32>
    %cst_23 = arith.constant 1.000000e+00 : f32
    %47 = vector.broadcast %cst_23 : f32 to vector<256x128xf32>
    %48 = arith.divf %47, %46 : vector<256x128xf32>
    %49 = arith.mulf %41, %48 : vector<256x128xf32>
    %c0_24 = arith.constant 0 : index
    %c0_25 = arith.constant 0 : index
    %c0_26 = arith.constant 0 : index
    %50 = vector.load %arg7[%c0_24, %c0_25, %c0_26] : memref<2x384x128xbf16, #tpu.memory_space<vmem>>, vector<1x384x128xbf16>
    %51 = vector.shape_cast %50 : vector<1x384x128xbf16> to vector<384x128xbf16>
    %c0_27 = arith.constant 0 : index
    %c0_28 = arith.constant 0 : index
    %c0_29 = arith.constant 0 : index
    %52 = vector.load %arg8[%c0_27, %c0_28, %c0_29] : memref<2x1x128xf32, #tpu.memory_space<vmem>>, vector<1x1x128xf32>
    %53 = vector.shape_cast %52 : vector<1x1x128xf32> to vector<1x128xf32>
    %54 = vector.extract_strided_slice %49 {offsets = [255, 0], sizes = [1, 128], strides = [1, 1]} : vector<256x128xf32> to vector<1x128xf32>
    %55 = vector.extract_strided_slice %49 {offsets = [0, 0], sizes = [255, 128], strides = [1, 1]} : vector<256x128xf32> to vector<255x128xf32>
    %56 = tpu.concatenate %54, %55 in 0 : vector<1x128xf32>, vector<255x128xf32> -> vector<256x128xf32>
    %57 = arith.mulf %56, %4 : vector<256x128xf32>
    %58 = arith.truncf %57 : vector<256x128xf32> to vector<256x128xbf16>
    %c0_30 = arith.constant 0 : index
    %c0_31 = arith.constant 0 : index
    %59 = vector.load %arg14[%c0_30, %c0_31] : memref<256x384xbf16, #tpu.memory_space<vmem>>, vector<256x128xbf16>
    tpu.vector_store %arg14[%c0_30, %c0_31], %58 {strides = array<i32>} : memref<256x384xbf16, #tpu.memory_space<vmem>>, vector<256x128xbf16>,
    %60 = arith.truncf %49 : vector<256x128xf32> to vector<256x128xbf16>
    %c0_32 = arith.constant 0 : index
    %c128 = arith.constant 128 : index
    %61 = vector.load %arg14[%c0_32, %c128] : memref<256x384xbf16, #tpu.memory_space<vmem>>, vector<256x128xbf16>
    tpu.vector_store %arg14[%c0_32, %c128], %60 {strides = array<i32>} : memref<256x384xbf16, #tpu.memory_space<vmem>>, vector<256x128xbf16>,
    %62 = vector.extract_strided_slice %49 {offsets = [1, 0], sizes = [255, 128], strides = [1, 1]} : vector<256x128xf32> to vector<255x128xf32>
    %63 = vector.extract_strided_slice %49 {offsets = [0, 0], sizes = [1, 128], strides = [1, 1]} : vector<256x128xf32> to vector<1x128xf32>
    %64 = tpu.concatenate %62, %63 in 0 : vector<255x128xf32>, vector<1x128xf32> -> vector<256x128xf32>
    %65 = arith.mulf %64, %7 : vector<256x128xf32>
    %66 = arith.truncf %65 : vector<256x128xf32> to vector<256x128xbf16>
    %c0_33 = arith.constant 0 : index
    %c256 = arith.constant 256 : index
    %67 = vector.load %arg14[%c0_33, %c256] : memref<256x384xbf16, #tpu.memory_space<vmem>>, vector<256x128xbf16>
    tpu.vector_store %arg14[%c0_33, %c256], %66 {strides = array<i32>} : memref<256x384xbf16, #tpu.memory_space<vmem>>, vector<256x128xbf16>,
    %c0_34 = arith.constant 0 : index
    %c0_35 = arith.constant 0 : index
    %68 = vector.load %arg14[%c0_34, %c0_35] : memref<256x384xbf16, #tpu.memory_space<vmem>>, vector<256x384xbf16>
    %cst_36 = arith.constant dense<0.000000e+00> : vector<256x128xf32>
    %69 = tpu.matmul %68, %51, %cst_36 {dimension_numbers = #tpu.dot_dimension_numbers<[1], [0], [0], [1], [0, 0, 1, 1], [], []>} : vector<256x384xbf16>, vector<384x128xbf16>, vector<256x128xf32> -> vector<256x128xf32>
    %70 = vector.broadcast %53 : vector<1x128xf32> to vector<256x128xf32>
    %71 = arith.addf %69, %70 : vector<256x128xf32>
    %c0_37 = arith.constant 0 : index
    %c0_38 = arith.constant 0 : index
    %c0_39 = arith.constant 0 : index
    %72 = vector.load %arg9[%c0_37, %c0_38, %c0_39] : memref<2x1x128xf32, #tpu.memory_space<vmem>>, vector<1x1x128xf32>
    %73 = vector.shape_cast %72 : vector<1x1x128xf32> to vector<1x128xf32>
    %c0_40 = arith.constant 0 : index
    %c0_41 = arith.constant 0 : index
    %c0_42 = arith.constant 0 : index
    %74 = vector.load %arg10[%c0_40, %c0_41, %c0_42] : memref<2x1x128xf32, #tpu.memory_space<vmem>>, vector<1x1x128xf32>
    %75 = vector.shape_cast %74 : vector<1x1x128xf32> to vector<1x128xf32>
    %76 = vector.shape_cast %71 : vector<256x128xf32> to vector<2x128x128xf32>
    %cst_43 = arith.constant dense<0.000000e+00> : vector<2x128xf32>
    %77 = vector.multi_reduction <add>, %76, %cst_43 [1] : vector<2x128x128xf32> to vector<2x128xf32>
    %cst_44 = arith.constant 7.812500e-03 : f32
    %78 = vector.broadcast %cst_44 : f32 to vector<2x128xf32>
    %79 = arith.mulf %77, %78 : vector<2x128xf32>
    %80 = arith.truncf %79 : vector<2x128xf32> to vector<2x128xbf16>
    %cst_45 = arith.constant dense<0.000000e+00> : vector<2x128xf32>
    %81 = tpu.matmul %80, %1, %cst_45 {dimension_numbers = #tpu.dot_dimension_numbers<[1], [0], [0], [1], [0, 0, 1, 1], [], []>} : vector<2x128xbf16>, vector<128x128xbf16>, vector<2x128xf32> -> vector<2x128xf32>
    %cst_46 = arith.constant 2.500000e-01 : f32
    %82 = vector.broadcast %cst_46 : f32 to vector<2x128xf32>
    %83 = arith.mulf %81, %82 : vector<2x128xf32>
    %84 = vector.shape_cast %83 : vector<2x128xf32> to vector<2x1x128xf32>
    %85 = vector.broadcast %84 : vector<2x1x128xf32> to vector<2x128x128xf32>
    %86 = arith.subf %76, %85 : vector<2x128x128xf32>
    %87 = arith.mulf %86, %86 : vector<2x128x128xf32>
    %cst_47 = arith.constant dense<0.000000e+00> : vector<2x128xf32>
    %88 = vector.multi_reduction <add>, %87, %cst_47 [1] : vector<2x128x128xf32> to vector<2x128xf32>
    %cst_48 = arith.constant 7.812500e-03 : f32
    %89 = vector.broadcast %cst_48 : f32 to vector<2x128xf32>
    %90 = arith.mulf %88, %89 : vector<2x128xf32>
    %91 = arith.truncf %90 : vector<2x128xf32> to vector<2x128xbf16>
    %cst_49 = arith.constant dense<0.000000e+00> : vector<2x128xf32>
    %92 = tpu.matmul %91, %1, %cst_49 {dimension_numbers = #tpu.dot_dimension_numbers<[1], [0], [0], [1], [0, 0, 1, 1], [], []>} : vector<2x128xbf16>, vector<128x128xbf16>, vector<2x128xf32> -> vector<2x128xf32>
    %cst_50 = arith.constant 2.500000e-01 : f32
    %93 = vector.broadcast %cst_50 : f32 to vector<2x128xf32>
    %94 = arith.mulf %92, %93 : vector<2x128xf32>
    %cst_51 = arith.constant 9.99999974E-6 : f32
    %95 = vector.broadcast %cst_51 : f32 to vector<2x128xf32>
    %96 = arith.addf %94, %95 : vector<2x128xf32>
    %97 = math.rsqrt %96 : vector<2x128xf32>
    %98 = vector.shape_cast %97 : vector<2x128xf32> to vector<2x1x128xf32>
    %99 = vector.broadcast %98 : vector<2x1x128xf32> to vector<2x128x128xf32>
    %100 = arith.mulf %86, %99 : vector<2x128x128xf32>
    %101 = vector.shape_cast %100 : vector<2x128x128xf32> to vector<256x128xf32>
    %102 = vector.broadcast %73 : vector<1x128xf32> to vector<256x128xf32>
    %103 = arith.mulf %101, %102 : vector<256x128xf32>
    %104 = vector.broadcast %75 : vector<1x128xf32> to vector<256x128xf32>
    %105 = arith.addf %103, %104 : vector<256x128xf32>
    %cst_52 = arith.constant 0.000000e+00 : f32
    %106 = vector.broadcast %cst_52 : f32 to vector<256x128xf32>
    %107 = arith.subf %106, %105 : vector<256x128xf32>
    %108 = math.exp %107 : vector<256x128xf32>
    %cst_53 = arith.constant 1.000000e+00 : f32
    %109 = vector.broadcast %cst_53 : f32 to vector<256x128xf32>
    %110 = arith.addf %109, %108 : vector<256x128xf32>
    %cst_54 = arith.constant 1.000000e+00 : f32
    %111 = vector.broadcast %cst_54 : f32 to vector<256x128xf32>
    %112 = arith.divf %111, %110 : vector<256x128xf32>
    %113 = arith.mulf %105, %112 : vector<256x128xf32>
    %c0_55 = arith.constant 0 : index
    %c0_56 = arith.constant 0 : index
    %c0_57 = arith.constant 0 : index
    %114 = vector.load %arg11[%c0_55, %c0_56, %c0_57] : memref<2x384x128xbf16, #tpu.memory_space<vmem>>, vector<1x384x128xbf16>
    %115 = vector.shape_cast %114 : vector<1x384x128xbf16> to vector<384x128xbf16>
    %c0_58 = arith.constant 0 : index
    %c0_59 = arith.constant 0 : index
    %c0_60 = arith.constant 0 : index
    %116 = vector.load %arg12[%c0_58, %c0_59, %c0_60] : memref<2x1x128xf32, #tpu.memory_space<vmem>>, vector<1x1x128xf32>
    %117 = vector.shape_cast %116 : vector<1x1x128xf32> to vector<1x128xf32>
    %118 = vector.extract_strided_slice %113 {offsets = [255, 0], sizes = [1, 128], strides = [1, 1]} : vector<256x128xf32> to vector<1x128xf32>
    %119 = vector.extract_strided_slice %113 {offsets = [0, 0], sizes = [255, 128], strides = [1, 1]} : vector<256x128xf32> to vector<255x128xf32>
    %120 = tpu.concatenate %118, %119 in 0 : vector<1x128xf32>, vector<255x128xf32> -> vector<256x128xf32>
    %121 = arith.mulf %120, %4 : vector<256x128xf32>
    %122 = arith.truncf %121 : vector<256x128xf32> to vector<256x128xbf16>
    %c0_61 = arith.constant 0 : index
    %c0_62 = arith.constant 0 : index
    %123 = vector.load %arg14[%c0_61, %c0_62] : memref<256x384xbf16, #tpu.memory_space<vmem>>, vector<256x128xbf16>
    tpu.vector_store %arg14[%c0_61, %c0_62], %122 {strides = array<i32>} : memref<256x384xbf16, #tpu.memory_space<vmem>>, vector<256x128xbf16>,
    %124 = arith.truncf %113 : vector<256x128xf32> to vector<256x128xbf16>
    %c0_63 = arith.constant 0 : index
    %c128_64 = arith.constant 128 : index
    %125 = vector.load %arg14[%c0_63, %c128_64] : memref<256x384xbf16, #tpu.memory_space<vmem>>, vector<256x128xbf16>
    tpu.vector_store %arg14[%c0_63, %c128_64], %124 {strides = array<i32>} : memref<256x384xbf16, #tpu.memory_space<vmem>>, vector<256x128xbf16>,
    %126 = vector.extract_strided_slice %113 {offsets = [1, 0], sizes = [255, 128], strides = [1, 1]} : vector<256x128xf32> to vector<255x128xf32>
    %127 = vector.extract_strided_slice %113 {offsets = [0, 0], sizes = [1, 128], strides = [1, 1]} : vector<256x128xf32> to vector<1x128xf32>
    %128 = tpu.concatenate %126, %127 in 0 : vector<255x128xf32>, vector<1x128xf32> -> vector<256x128xf32>
    %129 = arith.mulf %128, %7 : vector<256x128xf32>
    %130 = arith.truncf %129 : vector<256x128xf32> to vector<256x128xbf16>
    %c0_65 = arith.constant 0 : index
    %c256_66 = arith.constant 256 : index
    %131 = vector.load %arg14[%c0_65, %c256_66] : memref<256x384xbf16, #tpu.memory_space<vmem>>, vector<256x128xbf16>
    tpu.vector_store %arg14[%c0_65, %c256_66], %130 {strides = array<i32>} : memref<256x384xbf16, #tpu.memory_space<vmem>>, vector<256x128xbf16>,
    %c0_67 = arith.constant 0 : index
    %c0_68 = arith.constant 0 : index
    %132 = vector.load %arg14[%c0_67, %c0_68] : memref<256x384xbf16, #tpu.memory_space<vmem>>, vector<256x384xbf16>
    %cst_69 = arith.constant dense<0.000000e+00> : vector<256x128xf32>
    %133 = tpu.matmul %132, %115, %cst_69 {dimension_numbers = #tpu.dot_dimension_numbers<[1], [0], [0], [1], [0, 0, 1, 1], [], []>} : vector<256x384xbf16>, vector<384x128xbf16>, vector<256x128xf32> -> vector<256x128xf32>
    %134 = vector.broadcast %117 : vector<1x128xf32> to vector<256x128xf32>
    %135 = arith.addf %133, %134 : vector<256x128xf32>
    %136 = arith.addf %135, %0 : vector<256x128xf32>
    %cst_70 = arith.constant 1.000000e+00 : f32
    %137 = vector.broadcast %cst_70 : f32 to vector<256x128xf32>
    %138 = arith.mulf %136, %137 : vector<256x128xf32>
    %c1 = arith.constant 1 : index
    %c0_71 = arith.constant 0 : index
    %c0_72 = arith.constant 0 : index
    %139 = vector.load %arg5[%c1, %c0_71, %c0_72] : memref<2x1x128xf32, #tpu.memory_space<vmem>>, vector<1x1x128xf32>
    %140 = vector.shape_cast %139 : vector<1x1x128xf32> to vector<1x128xf32>
    %c1_73 = arith.constant 1 : index
    %c0_74 = arith.constant 0 : index
    %c0_75 = arith.constant 0 : index
    %141 = vector.load %arg6[%c1_73, %c0_74, %c0_75] : memref<2x1x128xf32, #tpu.memory_space<vmem>>, vector<1x1x128xf32>
    %142 = vector.shape_cast %141 : vector<1x1x128xf32> to vector<1x128xf32>
    %143 = vector.shape_cast %138 : vector<256x128xf32> to vector<2x128x128xf32>
    %cst_76 = arith.constant dense<0.000000e+00> : vector<2x128xf32>
    %144 = vector.multi_reduction <add>, %143, %cst_76 [1] : vector<2x128x128xf32> to vector<2x128xf32>
    %cst_77 = arith.constant 7.812500e-03 : f32
    %145 = vector.broadcast %cst_77 : f32 to vector<2x128xf32>
    %146 = arith.mulf %144, %145 : vector<2x128xf32>
    %147 = arith.truncf %146 : vector<2x128xf32> to vector<2x128xbf16>
    %cst_78 = arith.constant dense<0.000000e+00> : vector<2x128xf32>
    %148 = tpu.matmul %147, %1, %cst_78 {dimension_numbers = #tpu.dot_dimension_numbers<[1], [0], [0], [1], [0, 0, 1, 1], [], []>} : vector<2x128xbf16>, vector<128x128xbf16>, vector<2x128xf32> -> vector<2x128xf32>
    %cst_79 = arith.constant 2.500000e-01 : f32
    %149 = vector.broadcast %cst_79 : f32 to vector<2x128xf32>
    %150 = arith.mulf %148, %149 : vector<2x128xf32>
    %151 = vector.shape_cast %150 : vector<2x128xf32> to vector<2x1x128xf32>
    %152 = vector.broadcast %151 : vector<2x1x128xf32> to vector<2x128x128xf32>
    %153 = arith.subf %143, %152 : vector<2x128x128xf32>
    %154 = arith.mulf %153, %153 : vector<2x128x128xf32>
    %cst_80 = arith.constant dense<0.000000e+00> : vector<2x128xf32>
    %155 = vector.multi_reduction <add>, %154, %cst_80 [1] : vector<2x128x128xf32> to vector<2x128xf32>
    %cst_81 = arith.constant 7.812500e-03 : f32
    %156 = vector.broadcast %cst_81 : f32 to vector<2x128xf32>
    %157 = arith.mulf %155, %156 : vector<2x128xf32>
    %158 = arith.truncf %157 : vector<2x128xf32> to vector<2x128xbf16>
    %cst_82 = arith.constant dense<0.000000e+00> : vector<2x128xf32>
    %159 = tpu.matmul %158, %1, %cst_82 {dimension_numbers = #tpu.dot_dimension_numbers<[1], [0], [0], [1], [0, 0, 1, 1], [], []>} : vector<2x128xbf16>, vector<128x128xbf16>, vector<2x128xf32> -> vector<2x128xf32>
    %cst_83 = arith.constant 2.500000e-01 : f32
    %160 = vector.broadcast %cst_83 : f32 to vector<2x128xf32>
    %161 = arith.mulf %159, %160 : vector<2x128xf32>
    %cst_84 = arith.constant 9.99999974E-6 : f32
    %162 = vector.broadcast %cst_84 : f32 to vector<2x128xf32>
    %163 = arith.addf %161, %162 : vector<2x128xf32>
    %164 = math.rsqrt %163 : vector<2x128xf32>
    %165 = vector.shape_cast %164 : vector<2x128xf32> to vector<2x1x128xf32>
    %166 = vector.broadcast %165 : vector<2x1x128xf32> to vector<2x128x128xf32>
    %167 = arith.mulf %153, %166 : vector<2x128x128xf32>
    %168 = vector.shape_cast %167 : vector<2x128x128xf32> to vector<256x128xf32>
    %169 = vector.broadcast %140 : vector<1x128xf32> to vector<256x128xf32>
    %170 = arith.mulf %168, %169 : vector<256x128xf32>
    %171 = vector.broadcast %142 : vector<1x128xf32> to vector<256x128xf32>
    %172 = arith.addf %170, %171 : vector<256x128xf32>
    %cst_85 = arith.constant 0.000000e+00 : f32
    %173 = vector.broadcast %cst_85 : f32 to vector<256x128xf32>
    %174 = arith.subf %173, %172 : vector<256x128xf32>
    %175 = math.exp %174 : vector<256x128xf32>
    %cst_86 = arith.constant 1.000000e+00 : f32
    %176 = vector.broadcast %cst_86 : f32 to vector<256x128xf32>
    %177 = arith.addf %176, %175 : vector<256x128xf32>
    %cst_87 = arith.constant 1.000000e+00 : f32
    %178 = vector.broadcast %cst_87 : f32 to vector<256x128xf32>
    %179 = arith.divf %178, %177 : vector<256x128xf32>
    %180 = arith.mulf %172, %179 : vector<256x128xf32>
    %c1_88 = arith.constant 1 : index
    %c0_89 = arith.constant 0 : index
    %c0_90 = arith.constant 0 : index
    %181 = vector.load %arg7[%c1_88, %c0_89, %c0_90] : memref<2x384x128xbf16, #tpu.memory_space<vmem>>, vector<1x384x128xbf16>
    %182 = vector.shape_cast %181 : vector<1x384x128xbf16> to vector<384x128xbf16>
    %c1_91 = arith.constant 1 : index
    %c0_92 = arith.constant 0 : index
    %c0_93 = arith.constant 0 : index
    %183 = vector.load %arg8[%c1_91, %c0_92, %c0_93] : memref<2x1x128xf32, #tpu.memory_space<vmem>>, vector<1x1x128xf32>
    %184 = vector.shape_cast %183 : vector<1x1x128xf32> to vector<1x128xf32>
    %185 = vector.extract_strided_slice %180 {offsets = [255, 0], sizes = [1, 128], strides = [1, 1]} : vector<256x128xf32> to vector<1x128xf32>
    %186 = vector.extract_strided_slice %180 {offsets = [0, 0], sizes = [255, 128], strides = [1, 1]} : vector<256x128xf32> to vector<255x128xf32>
    %187 = tpu.concatenate %185, %186 in 0 : vector<1x128xf32>, vector<255x128xf32> -> vector<256x128xf32>
    %188 = arith.mulf %187, %4 : vector<256x128xf32>
    %189 = arith.truncf %188 : vector<256x128xf32> to vector<256x128xbf16>
    %c0_94 = arith.constant 0 : index
    %c0_95 = arith.constant 0 : index
    %190 = vector.load %arg14[%c0_94, %c0_95] : memref<256x384xbf16, #tpu.memory_space<vmem>>, vector<256x128xbf16>
    tpu.vector_store %arg14[%c0_94, %c0_95], %189 {strides = array<i32>} : memref<256x384xbf16, #tpu.memory_space<vmem>>, vector<256x128xbf16>,
    %191 = arith.truncf %180 : vector<256x128xf32> to vector<256x128xbf16>
    %c0_96 = arith.constant 0 : index
    %c128_97 = arith.constant 128 : index
    %192 = vector.load %arg14[%c0_96, %c128_97] : memref<256x384xbf16, #tpu.memory_space<vmem>>, vector<256x128xbf16>
    tpu.vector_store %arg14[%c0_96, %c128_97], %191 {strides = array<i32>} : memref<256x384xbf16, #tpu.memory_space<vmem>>, vector<256x128xbf16>,
    %193 = vector.extract_strided_slice %180 {offsets = [1, 0], sizes = [255, 128], strides = [1, 1]} : vector<256x128xf32> to vector<255x128xf32>
    %194 = vector.extract_strided_slice %180 {offsets = [0, 0], sizes = [1, 128], strides = [1, 1]} : vector<256x128xf32> to vector<1x128xf32>
    %195 = tpu.concatenate %193, %194 in 0 : vector<255x128xf32>, vector<1x128xf32> -> vector<256x128xf32>
    %196 = arith.mulf %195, %7 : vector<256x128xf32>
    %197 = arith.truncf %196 : vector<256x128xf32> to vector<256x128xbf16>
    %c0_98 = arith.constant 0 : index
    %c256_99 = arith.constant 256 : index
    %198 = vector.load %arg14[%c0_98, %c256_99] : memref<256x384xbf16, #tpu.memory_space<vmem>>, vector<256x128xbf16>
    tpu.vector_store %arg14[%c0_98, %c256_99], %197 {strides = array<i32>} : memref<256x384xbf16, #tpu.memory_space<vmem>>, vector<256x128xbf16>,
    %c0_100 = arith.constant 0 : index
    %c0_101 = arith.constant 0 : index
    %199 = vector.load %arg14[%c0_100, %c0_101] : memref<256x384xbf16, #tpu.memory_space<vmem>>, vector<256x384xbf16>
    %cst_102 = arith.constant dense<0.000000e+00> : vector<256x128xf32>
    %200 = tpu.matmul %199, %182, %cst_102 {dimension_numbers = #tpu.dot_dimension_numbers<[1], [0], [0], [1], [0, 0, 1, 1], [], []>} : vector<256x384xbf16>, vector<384x128xbf16>, vector<256x128xf32> -> vector<256x128xf32>
    %201 = vector.broadcast %184 : vector<1x128xf32> to vector<256x128xf32>
    %202 = arith.addf %200, %201 : vector<256x128xf32>
    %c1_103 = arith.constant 1 : index
    %c0_104 = arith.constant 0 : index
    %c0_105 = arith.constant 0 : index
    %203 = vector.load %arg9[%c1_103, %c0_104, %c0_105] : memref<2x1x128xf32, #tpu.memory_space<vmem>>, vector<1x1x128xf32>
    %204 = vector.shape_cast %203 : vector<1x1x128xf32> to vector<1x128xf32>
    %c1_106 = arith.constant 1 : index
    %c0_107 = arith.constant 0 : index
    %c0_108 = arith.constant 0 : index
    %205 = vector.load %arg10[%c1_106, %c0_107, %c0_108] : memref<2x1x128xf32, #tpu.memory_space<vmem>>, vector<1x1x128xf32>
    %206 = vector.shape_cast %205 : vector<1x1x128xf32> to vector<1x128xf32>
    %207 = vector.shape_cast %202 : vector<256x128xf32> to vector<2x128x128xf32>
    %cst_109 = arith.constant dense<0.000000e+00> : vector<2x128xf32>
    %208 = vector.multi_reduction <add>, %207, %cst_109 [1] : vector<2x128x128xf32> to vector<2x128xf32>
    %cst_110 = arith.constant 7.812500e-03 : f32
    %209 = vector.broadcast %cst_110 : f32 to vector<2x128xf32>
    %210 = arith.mulf %208, %209 : vector<2x128xf32>
    %211 = arith.truncf %210 : vector<2x128xf32> to vector<2x128xbf16>
    %cst_111 = arith.constant dense<0.000000e+00> : vector<2x128xf32>
    %212 = tpu.matmul %211, %1, %cst_111 {dimension_numbers = #tpu.dot_dimension_numbers<[1], [0], [0], [1], [0, 0, 1, 1], [], []>} : vector<2x128xbf16>, vector<128x128xbf16>, vector<2x128xf32> -> vector<2x128xf32>
    %cst_112 = arith.constant 2.500000e-01 : f32
    %213 = vector.broadcast %cst_112 : f32 to vector<2x128xf32>
    %214 = arith.mulf %212, %213 : vector<2x128xf32>
    %215 = vector.shape_cast %214 : vector<2x128xf32> to vector<2x1x128xf32>
    %216 = vector.broadcast %215 : vector<2x1x128xf32> to vector<2x128x128xf32>
    %217 = arith.subf %207, %216 : vector<2x128x128xf32>
    %218 = arith.mulf %217, %217 : vector<2x128x128xf32>
    %cst_113 = arith.constant dense<0.000000e+00> : vector<2x128xf32>
    %219 = vector.multi_reduction <add>, %218, %cst_113 [1] : vector<2x128x128xf32> to vector<2x128xf32>
    %cst_114 = arith.constant 7.812500e-03 : f32
    %220 = vector.broadcast %cst_114 : f32 to vector<2x128xf32>
    %221 = arith.mulf %219, %220 : vector<2x128xf32>
    %222 = arith.truncf %221 : vector<2x128xf32> to vector<2x128xbf16>
    %cst_115 = arith.constant dense<0.000000e+00> : vector<2x128xf32>
    %223 = tpu.matmul %222, %1, %cst_115 {dimension_numbers = #tpu.dot_dimension_numbers<[1], [0], [0], [1], [0, 0, 1, 1], [], []>} : vector<2x128xbf16>, vector<128x128xbf16>, vector<2x128xf32> -> vector<2x128xf32>
    %cst_116 = arith.constant 2.500000e-01 : f32
    %224 = vector.broadcast %cst_116 : f32 to vector<2x128xf32>
    %225 = arith.mulf %223, %224 : vector<2x128xf32>
    %cst_117 = arith.constant 9.99999974E-6 : f32
    %226 = vector.broadcast %cst_117 : f32 to vector<2x128xf32>
    %227 = arith.addf %225, %226 : vector<2x128xf32>
    %228 = math.rsqrt %227 : vector<2x128xf32>
    %229 = vector.shape_cast %228 : vector<2x128xf32> to vector<2x1x128xf32>
    %230 = vector.broadcast %229 : vector<2x1x128xf32> to vector<2x128x128xf32>
    %231 = arith.mulf %217, %230 : vector<2x128x128xf32>
    %232 = vector.shape_cast %231 : vector<2x128x128xf32> to vector<256x128xf32>
    %233 = vector.broadcast %204 : vector<1x128xf32> to vector<256x128xf32>
    %234 = arith.mulf %232, %233 : vector<256x128xf32>
    %235 = vector.broadcast %206 : vector<1x128xf32> to vector<256x128xf32>
    %236 = arith.addf %234, %235 : vector<256x128xf32>
    %cst_118 = arith.constant 0.000000e+00 : f32
    %237 = vector.broadcast %cst_118 : f32 to vector<256x128xf32>
    %238 = arith.subf %237, %236 : vector<256x128xf32>
    %239 = math.exp %238 : vector<256x128xf32>
    %cst_119 = arith.constant 1.000000e+00 : f32
    %240 = vector.broadcast %cst_119 : f32 to vector<256x128xf32>
    %241 = arith.addf %240, %239 : vector<256x128xf32>
    %cst_120 = arith.constant 1.000000e+00 : f32
    %242 = vector.broadcast %cst_120 : f32 to vector<256x128xf32>
    %243 = arith.divf %242, %241 : vector<256x128xf32>
    %244 = arith.mulf %236, %243 : vector<256x128xf32>
    %c1_121 = arith.constant 1 : index
    %c0_122 = arith.constant 0 : index
    %c0_123 = arith.constant 0 : index
    %245 = vector.load %arg11[%c1_121, %c0_122, %c0_123] : memref<2x384x128xbf16, #tpu.memory_space<vmem>>, vector<1x384x128xbf16>
    %246 = vector.shape_cast %245 : vector<1x384x128xbf16> to vector<384x128xbf16>
    %c1_124 = arith.constant 1 : index
    %c0_125 = arith.constant 0 : index
    %c0_126 = arith.constant 0 : index
    %247 = vector.load %arg12[%c1_124, %c0_125, %c0_126] : memref<2x1x128xf32, #tpu.memory_space<vmem>>, vector<1x1x128xf32>
    %248 = vector.shape_cast %247 : vector<1x1x128xf32> to vector<1x128xf32>
    %249 = vector.extract_strided_slice %244 {offsets = [255, 0], sizes = [1, 128], strides = [1, 1]} : vector<256x128xf32> to vector<1x128xf32>
    %250 = vector.extract_strided_slice %244 {offsets = [0, 0], sizes = [255, 128], strides = [1, 1]} : vector<256x128xf32> to vector<255x128xf32>
    %251 = tpu.concatenate %249, %250 in 0 : vector<1x128xf32>, vector<255x128xf32> -> vector<256x128xf32>
    %252 = arith.mulf %251, %4 : vector<256x128xf32>
    %253 = arith.truncf %252 : vector<256x128xf32> to vector<256x128xbf16>
    %c0_127 = arith.constant 0 : index
    %c0_128 = arith.constant 0 : index
    %254 = vector.load %arg14[%c0_127, %c0_128] : memref<256x384xbf16, #tpu.memory_space<vmem>>, vector<256x128xbf16>
    tpu.vector_store %arg14[%c0_127, %c0_128], %253 {strides = array<i32>} : memref<256x384xbf16, #tpu.memory_space<vmem>>, vector<256x128xbf16>,
    %255 = arith.truncf %244 : vector<256x128xf32> to vector<256x128xbf16>
    %c0_129 = arith.constant 0 : index
    %c128_130 = arith.constant 128 : index
    %256 = vector.load %arg14[%c0_129, %c128_130] : memref<256x384xbf16, #tpu.memory_space<vmem>>, vector<256x128xbf16>
    tpu.vector_store %arg14[%c0_129, %c128_130], %255 {strides = array<i32>} : memref<256x384xbf16, #tpu.memory_space<vmem>>, vector<256x128xbf16>,
    %257 = vector.extract_strided_slice %244 {offsets = [1, 0], sizes = [255, 128], strides = [1, 1]} : vector<256x128xf32> to vector<255x128xf32>
    %258 = vector.extract_strided_slice %244 {offsets = [0, 0], sizes = [1, 128], strides = [1, 1]} : vector<256x128xf32> to vector<1x128xf32>
    %259 = tpu.concatenate %257, %258 in 0 : vector<255x128xf32>, vector<1x128xf32> -> vector<256x128xf32>
    %260 = arith.mulf %259, %7 : vector<256x128xf32>
    %261 = arith.truncf %260 : vector<256x128xf32> to vector<256x128xbf16>
    %c0_131 = arith.constant 0 : index
    %c256_132 = arith.constant 256 : index
    %262 = vector.load %arg14[%c0_131, %c256_132] : memref<256x384xbf16, #tpu.memory_space<vmem>>, vector<256x128xbf16>
    tpu.vector_store %arg14[%c0_131, %c256_132], %261 {strides = array<i32>} : memref<256x384xbf16, #tpu.memory_space<vmem>>, vector<256x128xbf16>,
    %c0_133 = arith.constant 0 : index
    %c0_134 = arith.constant 0 : index
    %263 = vector.load %arg14[%c0_133, %c0_134] : memref<256x384xbf16, #tpu.memory_space<vmem>>, vector<256x384xbf16>
    %cst_135 = arith.constant dense<0.000000e+00> : vector<256x128xf32>
    %264 = tpu.matmul %263, %246, %cst_135 {dimension_numbers = #tpu.dot_dimension_numbers<[1], [0], [0], [1], [0, 0, 1, 1], [], []>} : vector<256x384xbf16>, vector<384x128xbf16>, vector<256x128xf32> -> vector<256x128xf32>
    %265 = vector.broadcast %248 : vector<1x128xf32> to vector<256x128xf32>
    %266 = arith.addf %264, %265 : vector<256x128xf32>
    %267 = arith.addf %266, %138 : vector<256x128xf32>
    %cst_136 = arith.constant 1.000000e+00 : f32
    %268 = vector.broadcast %cst_136 : f32 to vector<256x128xf32>
    %269 = arith.mulf %267, %268 : vector<256x128xf32>
    %c0_137 = arith.constant 0 : index
    %c0_138 = arith.constant 0 : index
    %270 = vector.load %arg13[%c0_137, %c0_138] : memref<256x128xf32, #tpu.memory_space<vmem>>, vector<256x128xf32>
    tpu.vector_store %arg13[%c0_137, %c0_138], %269 {strides = array<i32>} : memref<256x128xf32, #tpu.memory_space<vmem>>, vector<256x128xf32>,
    return
  }
  func.func @transform_0(%arg0: i32) -> (i32, i32) {
    %c0_i32 = arith.constant 0 : i32
    %c0_i32_0 = arith.constant 0 : i32
    return %arg0, %c0_i32 : i32, i32
  }
  func.func @transform_1(%arg0: i32) -> (i32, i32) {
    %c0_i32 = arith.constant 0 : i32
    %c0_i32_0 = arith.constant 0 : i32
    %c0_i32_1 = arith.constant 0 : i32
    return %c0_i32, %c0_i32_0 : i32, i32
  }
  func.func @transform_2(%arg0: i32) -> (i32, i32) {
    %c0_i32 = arith.constant 0 : i32
    %c0_i32_0 = arith.constant 0 : i32
    %c0_i32_1 = arith.constant 0 : i32
    return %c0_i32, %c0_i32_0 : i32, i32
  }
  func.func @transform_3(%arg0: i32) -> (i32, i32) {
    %c0_i32 = arith.constant 0 : i32
    %c0_i32_0 = arith.constant 0 : i32
    %c0_i32_1 = arith.constant 0 : i32
    return %c0_i32, %c0_i32_0 : i32, i32
  }
  func.func @transform_4(%arg0: i32) -> (i32, i32, i32) {
    %c0_i32 = arith.constant 0 : i32
    %c0_i32_0 = arith.constant 0 : i32
    %c0_i32_1 = arith.constant 0 : i32
    %c0_i32_2 = arith.constant 0 : i32
    return %c0_i32, %c0_i32_0, %c0_i32_1 : i32, i32, i32
  }
  func.func @transform_5(%arg0: i32) -> (i32, i32, i32) {
    %c0_i32 = arith.constant 0 : i32
    %c0_i32_0 = arith.constant 0 : i32
    %c0_i32_1 = arith.constant 0 : i32
    %c0_i32_2 = arith.constant 0 : i32
    return %c0_i32, %c0_i32_0, %c0_i32_1 : i32, i32, i32
  }
  func.func @transform_6(%arg0: i32) -> (i32, i32, i32) {
    %c0_i32 = arith.constant 0 : i32
    %c0_i32_0 = arith.constant 0 : i32
    %c0_i32_1 = arith.constant 0 : i32
    %c0_i32_2 = arith.constant 0 : i32
    return %c0_i32, %c0_i32_0, %c0_i32_1 : i32, i32, i32
  }
  func.func @transform_7(%arg0: i32) -> (i32, i32, i32) {
    %c0_i32 = arith.constant 0 : i32
    %c0_i32_0 = arith.constant 0 : i32
    %c0_i32_1 = arith.constant 0 : i32
    %c0_i32_2 = arith.constant 0 : i32
    return %c0_i32, %c0_i32_0, %c0_i32_1 : i32, i32, i32
  }
  func.func @transform_8(%arg0: i32) -> (i32, i32, i32) {
    %c0_i32 = arith.constant 0 : i32
    %c0_i32_0 = arith.constant 0 : i32
    %c0_i32_1 = arith.constant 0 : i32
    %c0_i32_2 = arith.constant 0 : i32
    return %c0_i32, %c0_i32_0, %c0_i32_1 : i32, i32, i32
  }
  func.func @transform_9(%arg0: i32) -> (i32, i32, i32) {
    %c0_i32 = arith.constant 0 : i32
    %c0_i32_0 = arith.constant 0 : i32
    %c0_i32_1 = arith.constant 0 : i32
    %c0_i32_2 = arith.constant 0 : i32
    return %c0_i32, %c0_i32_0, %c0_i32_1 : i32, i32, i32
  }
  func.func @transform_10(%arg0: i32) -> (i32, i32, i32) {
    %c0_i32 = arith.constant 0 : i32
    %c0_i32_0 = arith.constant 0 : i32
    %c0_i32_1 = arith.constant 0 : i32
    %c0_i32_2 = arith.constant 0 : i32
    return %c0_i32, %c0_i32_0, %c0_i32_1 : i32, i32, i32
  }
  func.func @transform_11(%arg0: i32) -> (i32, i32, i32) {
    %c0_i32 = arith.constant 0 : i32
    %c0_i32_0 = arith.constant 0 : i32
    %c0_i32_1 = arith.constant 0 : i32
    %c0_i32_2 = arith.constant 0 : i32
    return %c0_i32, %c0_i32_0, %c0_i32_1 : i32, i32, i32
  }
  func.func @transform_12(%arg0: i32) -> (i32, i32) {
    %c0_i32 = arith.constant 0 : i32
    %c0_i32_0 = arith.constant 0 : i32
    return %arg0, %c0_i32 : i32, i32
  }
}

</mosaic_0001>

<bundles_post_ra>
// kernel: tpu_custom_call.1
= control target key start
LH: loop header
LB: loop body
LE: loop exit
PB: predicated region body
PF: predicated region fallthrough
CT: control target
= control target key end

     0   :  { %s14845_s0 = inlined_call_operand.hbm [shape: f32[1024,128], index: 0, kind: input, shape index: {}]   ;;  %s14846_s1 = inlined_call_operand.vmem [shape: bf16[128,128], index: 1, kind: input, shape index: {}]   ;;  %s14847_s2 = inlined_call_operand.vmem [shape: f32[256,1], index: 2, kind: input, shape index: {}]   ;;  %s14848_s3 = inlined_call_operand.vmem [shape: f32[256,1], index: 3, kind: input, shape index: {}]   ;;  %s14849_s4 = inlined_call_operand.vmem [shape: f32[2,1,128], index: 4, kind: input, shape index: {}]   ;;  %s14850_s5 = inlined_call_operand.vmem [shape: f32[2,1,128], index: 5, kind: input, shape index: {}]   ;;  %s14851_s6 = inlined_call_operand.vmem [shape: bf16[2,384,128], index: 6, kind: input, shape index: {}]   ;;  %s14852_s7 = inlined_call_operand.vmem [shape: f32[2,1,128], index: 7, kind: input, shape index: {}]   ;;  %s14853_s8 = inlined_call_operand.vmem [shape: f32[2,1,128], index: 8, kind: input, shape index: {}]   ;;  %s14854_s9 = inlined_call_operand.vmem [shape: f32[2,1,128], index: 9, kind: input, shape index: {}]   ;;  %s14855_s10 = inlined_call_operand.hbm [shape: bf16[2,384,128], index: 10, kind: input, shape index: {}]   ;;  %s14856_s11 = inlined_call_operand.vmem [shape: f32[2,1,128], index: 11, kind: input, shape index: {}]   ;;  %s14857_s12 = inlined_call_operand.hbm [shape: f32[1024,128], index: 12, kind: output, shape index: {}]  }
   0x1   :  { %15049 = sst [smem:[#allocation118_spill]] %s14856_s11 }
   0x2   :  { %15050 = sst [smem:[#allocation119_spill]] %s14857_s12 }
   0x3   :  { %17 = vsyncpa [#allocation4], 0 }
   0x4   :  { %19 = vsyncpa [#allocation4 + $0x1], 0 }
   0x5   :  { %20 = vsyncpa [#allocation7], 0 }
   0x6   :  { %21 = vsyncpa [#allocation5], 0 }
   0x7   :  { %23 = vsyncpa [#allocation5 + $0x1], 0  ;;  %s9695_s21 = smov 0   ;;  %s9697_s22 = smov 0  }
   0x8   :  { %s9699_s23 = smov 0   ;;  %s9701_s24 = smov 0  }
   0x9 LB: > { %15051 = sst [smem:[#allocation12_spill]] %s9603_s21  ;;  %s9716_s25 = sadd.s32 4294967295, %s9615_s24   ;;  %s9615_s24 = sphi %s9701_s24, %s15549_s24   ;;  %s9611_s23 = sphi %s9699_s23, %s15552_s23   ;;  %s9607_s22 = sphi %s9697_s22, %s15551_s22   ;;  %s9603_s21 = sphi %s9695_s21, %s15550_s21  }
   0xa   : > { %s7570_s26 = sadd.s32 4294967294, %s9615_s24   ;;  %p49_p0 = scmp.ne.s32.totalorder %s9607_s22, %s9603_s21 }
   0xb   : > { %p14861_p1 = scmp.eq.s32.totalorder %s9716_s25, 0  ;;  %p310_p3 = scmp.eq.s32.totalorder %s7570_s26, 3 }
   0xc   : > { %p7571_p5 = scmp.ge.s32.totalorder %s9615_s24, 1  ;;  %p317_p7 = scmp.lt.s32.totalorder %s9615_s24, 5 }
   0xd   : > { %p9725_p4 = por %p14861_p1, %p49_p0  ;;  %p9730_p6 = por %p310_p3, %p49_p0 }
   0xe   : > { %p9735_p8 = pnand %p7571_p5, %p317_p7  ;;  %s9617_s30 = smov [#allocation6]  }
   0xf   : > { %s15052_s27 = scalar_select %p9725_p4, 1, 0 }
  0x10   : > { %s15053_s28 = scalar_select %p9730_p6, 1, 0 }
  0x11   : > { %s15055_s29 = scalar_select %p9735_p8, 1, 0 }
  0x12   : > { %15054 = sst [smem:[#allocation13_spill]] %s15053_s28  ;;  %s356_s13 = sshll.u32 %s9617_s30, 4  ;;  %s357_s13 = int_to_ptr.vmem [resolvable:$true] %s356_s13 }
  0x13   : > { %p8734_p9 = pneg %p9735_p8  ;;  %s9748_s15 = sadd.s32 1, %s9615_s24  }
  0x14   : > { %15057 = sst [smem:[#allocation14_spill]] %s9748_s15  ;;  %s36_s16 = sadd.s32 1, %s9611_s23 }
  0x15   : > { %p9743_p10 = pnand %p8734_p9, %p14861_p1  ;;  %s33_s17 = ssub.s32 %s9615_s24, %s9748_s15 }
  0x16   : > { %s9487_s20 = scalar_lea.hbm %s14855_s10, 6144 }
  0x17   : > { %p9488_p11 = scmp.ne.s32.totalorder %s14855_s10, %s9487_s20  ;;  %p9489_p12 = pneg %p9743_p10 }
  0x18   : > { %p9494_p3 = scmp.lt.u32.totalorder %s9487_s20, %s14855_s10 }
  0x19   : > { %p9490_p13 = pnand %p9489_p12, %p9488_p11 }
  0x1b   : > { %p9491_p0 = pneg %p9490_p13 }
  0x1d   : > { %p9496_p5 = pnand %p9494_p3, %p9491_p0 }
  0x1f   : > { %9499 = shalt.err (!%p9496_p5)
}
  0x20   : > { %s9500_s12 = scalar_lea.vmem %s357_s13, 6144  ;;  %p9508_p2 = scmp.lt.s32.totalorder %s357_s13, %s357_s13 }
  0x21   : > { %p9501_p7 = scmp.ne.s32.totalorder %s357_s13, %s9500_s12  ;;  %p9509_p6 = scmp.lt.s32.totalorder %s9500_s12, %s9500_s12 }
  0x23   : > { %p9503_p9 = pnand %p9501_p7, %p9489_p12  ;;  %p9510_p4 = por %p9509_p6, %p9508_p2 }
  0x25   : > { %p9504_p1 = pneg %p9503_p9 }
  0x27   : > { %p9511_p8 = pnand %p9510_p4, %p9504_p1 }
  0x29   : > { %9514 = shalt.err (!%p9511_p8)
}
  0x2a   : > { %s9618_s18 = smov 64   ;;  %s9619_s21 = smov 4  }
  0x2b   : > { %8737 = dma.hbm_to_vmem [thread:$0]  (!%p9743_p10), %s14855_s10, 6144, %s357_s13, [#allocation7], %s9618_s18, %s9618_s18, %s9619_s21  }
  0x2c   : > { %p34_p11 = scmp.eq.s32.totalorder %s33_s17, 0  ;;  %p43_p2 = scmp.ne.s32.totalorder %s9611_s23, %s9607_s22 }
  0x2d   : > { %p44_p1 = scmp.eq.s32.totalorder %s9615_s24, 0  ;;  %p8747_p4 = scmp.lt.s32.totalorder %s9615_s24, 4 }
  0x2e   : > { %s9774_s12 = scalar_select %p34_p11, %s9611_s23, %s36_s16  }
  0x2f   : > { %p45_p6 = por %p44_p1, %p43_p2  ;;  %p15058_p8 = scmp.eq.s32.totalorder %s9716_s25, 3 }
  0x30   : > { %s373_s26 = sand.u32 1, %s9611_s23   ;;  %s7756_s30 = sshll.u32 %s9615_s24, 12 }
  0x31   : > { %p9778_p12 = por %p15058_p8, %p43_p2  ;;  %s7574_s15 = sshll.u32 %s373_s26, 8 }
  0x32   : > { %s9787_s28 = scalar_lea.hbm %s14845_s0, %s7756_s30  ;;  %s377_s13 = scalar_lea.vmem [#allocation3], %s7574_s15 }
  0x33   : > { %s384_s16 = sshll.u32 %s377_s13, 4  ;;  %p9789_p10 = pnand %p8747_p4, %p45_p6  ;;  %s9793_s16 = int_to_ptr.vmem [resolvable:$true] %s384_s16 }
  0x34   : > { %s9795_s18 = scalar_lea.sflag [#allocation4], %s373_s26  ;;  %s9515_s21 = scalar_lea.hbm %s9787_s28, 4096 }
  0x35   : > { %p9516_p13 = scmp.ne.s32.totalorder %s9787_s28, %s9515_s21  ;;  %p9517_p0 = pneg %p9789_p10 }
  0x36   : > { %s9520_s19 = scalar_lea.hbm %s14845_s0, 16384  ;;  %p9521_p7 = scmp.lt.u32.totalorder %s9787_s28, %s14845_s0 }
  0x37   : > { %p9518_p3 = pnand %p9517_p0, %p9516_p13  ;;  %p9522_p9 = scmp.lt.u32.totalorder %s9520_s19, %s9515_s21 }
  0x38   : > { %p9524_p2 = scmp.lt.u32.totalorder %s9515_s21, %s9787_s28 }
  0x39   : > { %p9519_p5 = pneg %p9518_p3  ;;  %p9523_p11 = por %p9522_p9, %p9521_p7 }
  0x3b   : > { %p9525_p1 = por %p9524_p2, %p9523_p11 }
  0x3d   : > { %p9526_p4 = pnand %p9525_p1, %p9519_p5 }
  0x3f   : > { %9529 = shalt.err (!%p9526_p4)
}
  0x40   : > { %s9530_s26 = scalar_lea.vmem %s9793_s16, 4096  ;;  %s9620_s13 = smov [#allocation3]  }
  0x41   : > { %p9531_p6 = scmp.ne.s32.totalorder %s9793_s16, %s9530_s26  ;;  %s9535_s11 = sshll.u32 %s9620_s13, 4  ;;  %s9536_s11 = int_to_ptr.vmem [resolvable:$false] %s9535_s11 }
  0x42   : > { %s9537_s15 = scalar_lea.vmem %s9536_s11, 8192  ;;  %p9538_p3 = scmp.lt.s32.totalorder %s9793_s16, %s9536_s11 }
  0x43   : > { %p9533_p8 = pnand %p9531_p6, %p9517_p0  ;;  %p9539_p7 = scmp.lt.s32.totalorder %s9537_s15, %s9530_s26 }
  0x45   : > { %p9534_p13 = pneg %p9533_p8  ;;  %p9540_p9 = por %p9539_p7, %p9538_p3 }
  0x47   : > { %p9541_p11 = pnand %p9540_p9, %p9534_p13 }
  0x49   : > { %9544 = shalt.err (!%p9541_p11)
}
  0x4a   : > { %s9621_s21 = smov 128   ;;  %s9622_s19 = smov 8  }
  0x4b   : > { %8741 = dma.hbm_to_vmem [thread:$0]  (!%p9789_p10), %s9787_s28, 4096, %s9793_s16, %s9795_s18, %s9621_s21, %s9621_s21, %s9622_s19  }
  0x4c   : > { %p15061_p0 = scmp.ne.s32.totalorder %s15055_s29, 0 }
  0x4e   : > { %396 = sbr.rel (%p15061_p0) target bundleno = 3876 (0xf24), region = 68 }
  0x55   : > { %s9826_s30 = sand.u32 1, %s9607_s22   ;;  %p15062_p5 = scmp.ne.s32.totalorder %s15052_s27, 0 }
  0x56   : > { %s7578_s14 = sshll.u32 %s9826_s30, 8  ;;  %s399_s26 = scalar_lea.sflag [#allocation4], %s9826_s30 }
  0x57   : > { %s9832_s13 = scalar_lea.vmem [#allocation3], %s7578_s14 }
  0x58   : > { %9590 = dma.done.wait (%p15062_p5), %s399_s26, 4096  }
  0x59   : > { %9592 = vsyncadd (%p15062_p5), %s399_s26, 4294963200  ;;  %p15063_p10 = scmp.eq.s32.totalorder %s9716_s25, 0 }
  0x5b   : > { %9594 = dma.done.wait (%p15063_p10), [#allocation7], 6144   ;;  %p15064_p2 = pmov %p15063_p10 }
  0x5c   : > { %v14872_v0 = vmov 0.0   ;;  %vm9624_vm0 = vmmov 0   ;;  %v9848_v1 = vld [vmem:[%s14846_s1] sm:$0xff]   ;;  %v9854_v2 = vld [vmem:[%s14846_s1 + $0x8] sm:$0xff]   ;;  %v9861_v3 = vld [vmem:[%s14846_s1 + $0x10] sm:$0xff]   ;;  %vm934_vm1 = vcmask 1041409  }
  0x5d   : > { %9596 = vsyncadd (%p15064_p2), [#allocation7], 4294961152  ;;  %8374 = vmatprep.subr.bf16.mxu1 %v14872_v0  ;;  %8390 = vmatprep.mubr.msk.bf16.mxu1 %vm9624_vm0, %v14872_v0  ;;  %v9865_v4 = vld [vmem:[%s9832_s13] sm:$0xff]  ;;  %v9868_v5 = vld [vmem:[%s9832_s13 + $0x8] sm:$0xff]  ;;  %vm1860_vm2 = vcmask 1046528   ;;  %vm1668_vm3 = vcmask 1040384  }
  0x5e   : > { %8375 = vmatpush3.bf16.msra.mxu1 %v9848_v1  ;;  %v9871_v6 = vld [vmem:[%s9832_s13 + $0x10] sm:$0xff]  ;;  %v884_v7 = vadd.f32 %v9868_v5, %v9865_v4  ;;  %v9879_v8 = vld [vmem:[%s14846_s1 + $0x18] sm:$0xff]   ;;  %v9887_v11 = vld [vmem:[%s9832_s13 + $0x20] sm:$0xff]  ;;  %s15314_s18 = sld [smem:[#allocation118_spill]]  ;;  %s14679_s11 = scalar_lea.vmem [#allocation8], %s7578_s14 }
  0x5f   : > { %8376 = vmatprep.subr.bf16.mxu1 %v14872_v0  ;;  %v9882_v9 = vld [vmem:[%s9832_s13 + $0x18] sm:$0xff]  ;;  %v9890_v12 = vld [vmem:[%s9832_s13 + $0x80] sm:$0xff]  ;;  %v9893_v13 = vld [vmem:[%s9832_s13 + $0x88] sm:$0xff]  ;;  %s7757_s14 = sshll.u32 %s9716_s25, 12  ;;  %s7487_s15 = sshll.u32 %s14679_s11, 4  ;;  %s14799_s15 = int_to_ptr.vmem [resolvable:$true] %s7487_s15 }
  0x60   : > { %v885_v10 = vadd.f32 %v884_v7, %v9871_v6  ;;  %v9900_v15 = vld [vmem:[%s14846_s1 + $0x20] sm:$0xff]   ;;  %v9903_v16 = vld [vmem:[%s9832_s13 + $0x28] sm:$0xff]  ;;  %v9906_v17 = vld [vmem:[%s9832_s13 + $0x90] sm:$0xff]  ;;  %v905_v18 = vadd.f32 %v9893_v13, %v9890_v12  ;;  %s15544_s26 = sld [smem:[#allocation119_spill]]  ;;  %s7474_s25 = scalar_lea.sflag [#allocation5], %s9826_s30 }
  0x61   : > { %v9912_v19 = vld [vmem:[%s9832_s13 + $0x98] sm:$0xff]  ;;  %v9916_v21 = vld [vmem:[%s9832_s13 + $0x30] sm:$0xff]  ;;  %v9922_v23 = vld [vmem:[%s14846_s1 + $0x28] sm:$0xff]   ;;  %s9545_s27 = scalar_lea.vmem %s14799_s15, 4096  ;;  %s9627_s28 = smov [#allocation8]  }
  0x62   : > { %8377 = vmatpush3.bf16.msra.mxu1 %v9854_v2  ;;  %v886_v14 = vadd.f32 %v885_v10, %v9882_v9  ;;  %v906_v22 = vadd.f32 %v905_v18, %v9906_v17  ;;  %v9925_v24 = vld [vmem:[%s9832_s13 + $0x38] sm:$0xff]  ;;  %v9928_v25 = vld [vmem:[%s9832_s13 + $0xa0] sm:$0xff]  ;;  %v9936_v28 = vld [vmem:[%s9832_s13 + $0xa8] sm:$0xff]  ;;  %p9546_p1 = scmp.ne.s32.totalorder %s14799_s15, %s9545_s27  ;;  %s9549_s16 = sshll.u32 %s9627_s28, 4  ;;  %s9550_s16 = int_to_ptr.vmem [resolvable:$false] %s9549_s16 }
  0x63   : > { %8378 = vmatprep.subr.bf16.mxu1 %v14872_v0  ;;  %v9933_v27 = vld [vmem:[%s9832_s13 + $0x40] sm:$0xff]  ;;  %v9941_v30 = vld [vmem:[%s9832_s13 + $0xb0] sm:$0xff]  ;;  %v9950_v33 = vld [vmem:[%s9832_s13 + $0x48] sm:$0xff]  ;;  %s9551_s17 = scalar_lea.vmem %s9550_s16, 8192  ;;  %p9552_p8 = scmp.lt.s32.totalorder %s14799_s15, %s9550_s16 }
  0x64   : > { %v887_v20 = vadd.f32 %v886_v14, %v9887_v11  ;;  %v907_v29 = vadd.f32 %v906_v22, %v9912_v19  ;;  %v9947_v32 = vld [vmem:[%s14846_s1 + $0x30] sm:$0xff]   ;;  %v9954_v35 = vld [vmem:[%s9832_s13 + $0xb8] sm:$0xff]  ;;  %v9964_v39 = vld [vmem:[%s9832_s13 + $0xc0] sm:$0xff]  ;;  %p9547_p4 = pnand %p9546_p1, %p9778_p12  ;;  %p9553_p13 = scmp.lt.s32.totalorder %s9551_s17, %s9545_s27 }
  0x65   : > { %v9959_v37 = vld [vmem:[%s9832_s13 + $0x50] sm:$0xff]  ;;  %v9970_v41 = vld [vmem:[%s14846_s1 + $0x38] sm:$0xff]   ;;  %v9977_v44 = vld [vmem:[%s9832_s13 + $0xc8] sm:$0xff] }
  0x66   : > { %8379 = vmatpush3.bf16.msra.mxu1 %v9861_v3  ;;  %v888_v26 = vadd.f32 %v887_v20, %v9903_v16  ;;  %v908_v34 = vadd.f32 %v907_v29, %v9928_v25  ;;  %v9973_v42 = vld [vmem:[%s9832_s13 + $0x58] sm:$0xff]  ;;  %v9982_v46 = vld [vmem:[%s9832_s13 + $0x60] sm:$0xff]  ;;  %v9987_v48 = vld [vmem:[%s9832_s13 + $0xd0] sm:$0xff]  ;;  %s14797_s29 = scalar_lea.hbm %s15544_s26, %s7757_s14  ;;  %p9548_p6 = pneg %p9547_p4 }
  0x67   : > { %8380 = vmatprep.subr.bf16.mxu1 %v14872_v0  ;;  %v9991_v50 = vld [vmem:[%s9832_s13 + $0x68] sm:$0xff]  ;;  %v9995_v52 = vld [vmem:[%s9832_s13 + $0xd8] sm:$0xff]  ;;  %v10000_v54 = vld [vmem:[%s9832_s13 + $0x70] sm:$0xff]  ;;  %p9554_p3 = por %p9553_p13, %p9552_p8 }
  0x68   : > { %v889_v31 = vadd.f32 %v888_v26, %v9916_v21  ;;  %v909_v38 = vadd.f32 %v908_v34, %v9936_v28  ;;  %v10004_v56 = vld [vmem:[%s9832_s13 + $0xe0] sm:$0xff]  ;;  %v10009_v58 = vld [vmem:[%s9832_s13 + $0x78] sm:$0xff]  ;;  %v10013_v60 = vld [vmem:[%s9832_s13 + $0xe8] sm:$0xff] }
  0x69   : > { %v10018_v63 = vld [vmem:[%s9832_s13 + $0xf0] sm:$0xff]  ;;  %v10025_v20 = vld [vmem:[%s9832_s13 + $0xf8] sm:$0xff]  ;;  %p9555_p7 = pnand %p9554_p3, %p9548_p6 }
  0x6a   : > { %8381 = vmatpush3.bf16.msra.mxu1 %v9879_v8  ;;  %v890_v36 = vadd.f32 %v889_v31, %v9925_v24  ;;  %v910_v43 = vadd.f32 %v909_v38, %v9941_v30 }
  0x6b   : > { %8382 = vmatprep.subr.bf16.mxu1 %v14872_v0 }
  0x6c   : > { %v891_v40 = vadd.f32 %v890_v36, %v9933_v27  ;;  %v911_v47 = vadd.f32 %v910_v43, %v9954_v35 }
  0x6e   : > { %8383 = vmatpush3.bf16.msra.mxu1 %v9900_v15  ;;  %v892_v45 = vadd.f32 %v891_v40, %v9950_v33  ;;  %v912_v51 = vadd.f32 %v911_v47, %v9964_v39 }
  0x6f   : > { %8384 = vmatprep.subr.bf16.mxu1 %v14872_v0 }
  0x70   : > { %v893_v49 = vadd.f32 %v892_v45, %v9959_v37  ;;  %v913_v55 = vadd.f32 %v912_v51, %v9977_v44 }
  0x72   : > { %8385 = vmatpush3.bf16.msra.mxu1 %v9922_v23  ;;  %v894_v53 = vadd.f32 %v893_v49, %v9973_v42  ;;  %v914_v59 = vadd.f32 %v913_v55, %v9987_v48 }
  0x73   : > { %8386 = vmatprep.subr.bf16.mxu1 %v14872_v0 }
  0x74   : > { %v895_v57 = vadd.f32 %v894_v53, %v9982_v46  ;;  %v915_v62 = vadd.f32 %v914_v59, %v9995_v52 }
  0x76   : > { %8387 = vmatpush3.bf16.msra.mxu1 %v9947_v32  ;;  %v896_v61 = vadd.f32 %v895_v57, %v9991_v50  ;;  %v916_v10 = vadd.f32 %v915_v62, %v10004_v56 }
  0x77   : > { %8388 = vmatprep.subr.bf16.mxu1 %v14872_v0 }
  0x78   : > { %v897_v7 = vadd.f32 %v896_v61, %v10000_v54  ;;  %v917_v18 = vadd.f32 %v916_v10, %v10013_v60 }
  0x7a   : > { %8389 = vmatpush3.bf16.msra.mxu1 %v9970_v41  ;;  %v898_v14 = vadd.f32 %v897_v7, %v10009_v58  ;;  %v918_v26 = vadd.f32 %v917_v18, %v10018_v63  ;;  %v504_v18 = vld [vmem:[%s14847_s2 + $0x30] sm:$0xff] }
  0x7b   : > { %8394 = vmatprep.subr.bf16.mxu1 %v14872_v0 }
  0x7c   : > { %v899_v22 = vrot.slane %v898_v14, 4  ;;  %v919_v31 = vadd.f32 %v918_v26, %v10025_v20  ;;  %v506_v26 = vld [vmem:[%s14847_s2 + $0x40] sm:$0xff] }
  0x7e   : > { %v900_v29 = vadd.f32 %v899_v22, %v898_v14  ;;  %v920_v36 = vrot.slane %v919_v31, 4  ;;  %v507_v22 = vld [vmem:[%s14847_s2 + $0x48] sm:$0xff] }
  0x80   : > { %v901_v34 = vrot.slane %v900_v29, 2  ;;  %v921_v40 = vadd.f32 %v920_v36, %v919_v31  ;;  %v508_v31 = vld [vmem:[%s14847_s2 + $0x50] sm:$0xff]  ;;  %v510_v36 = vld [vmem:[%s14847_s2 + $0x60] sm:$0xff] }
  0x82   : > { %v902_v38 = vadd.f32 %v901_v34, %v900_v29  ;;  %v922_v45 = vrot.slane %v921_v40, 2  ;;  %v509_v29 = vld [vmem:[%s14847_s2 + $0x58] sm:$0xff]  ;;  %v511_v34 = vld [vmem:[%s14847_s2 + $0x68] sm:$0xff] }
  0x84   : > { %v903_v43 = vrot.slane %v902_v38, 1  ;;  %v923_v49 = vadd.f32 %v922_v45, %v921_v40  ;;  %v512_v40 = vld [vmem:[%s14847_s2 + $0x70] sm:$0xff]  ;;  %v690_v45 = vld [vmem:[%s14848_s3] sm:$0xff] }
  0x86   : > { %v904_v47 = vadd.f32 %v903_v43, %v902_v38  ;;  %v924_v53 = vrot.slane %v923_v49, 1  ;;  %v513_v38 = vld [vmem:[%s14847_s2 + $0x78] sm:$0xff]  ;;  %v691_v43 = vld [vmem:[%s14848_s3 + $0x8] sm:$0xff] }
  0x88   : > { %v926_v51 = vmul.f32 0.0078125, %v904_v47  ;;  %v925_v55 = vadd.f32 %v924_v53, %v923_v49  ;;  %v515_v47 = vld [vmem:[%s14847_s2 + $0x88] sm:$0xff]  ;;  %v514_v49 = vld [vmem:[%s14847_s2 + $0x80] sm:$0xff]  ;;  %v692_v53 = vld [vmem:[%s14848_s3 + $0x10] sm:$0xff] }
  0x8a   : > { %v928_v57 = vpack.c.bf16 %v926_v51, %v926_v51  ;;  %v927_v59 = vmul.f32 0.0078125, %v925_v55  ;;  %v693_v51 = vld [vmem:[%s14848_s3 + $0x18] sm:$0xff]  ;;  %v9626_v55 = vmov 1966171168  }
  0x8c   : > { %v929_v61 = vpack.c.bf16 %v927_v59, %v927_v59  ;;  %v932_v62 = vunpack.c.l.b16 %v928_v57  ;;  %v1029_v57 = vunpack.c.l.s4 %v9626_v55  ;;  %v1031_v59 = vlaneseq  ;;  %v702_v55 = vld [vmem:[%s14848_s3 + $0x60] sm:$0xff] }
  0x8e   : > { %v933_v7 = vunpack.c.l.b16 %v929_v61  ;;  %v695_v61 = vld [vmem:[%s14848_s3 + $0x28] sm:$0xff] }
  0x90   : > { %v935_v10 = vsel %vm934_vm1, %v933_v7, %v932_v62  ;;  %v694_v62 = vld [vmem:[%s14848_s3 + $0x20] sm:$0xff]  ;;  %v1030_v7 = vunpack.c.0.s8 %v1029_v57 }
  0x91   : > { %v936_v14 = vpack.c.b16 %v935_v10, %v935_v10  ;;  %v1032_v10 = vshrl.u32 %v1031_v59, 7 }
  0x93   : > { %8391 = vmatmul.mubr.bf16.vlgmr.msra.gmra.mrb[0].mxu1 %v936_v14  ;;  %v517_v14 = vld [vmem:[%s14847_s2 + $0x98] sm:$0xff] }
  0x94   : > { %8395 = vmatpush3.bf16.msra.mxu1 %v9848_v1  ;;  %8410 = vmatprep.mubr.msk.bf16.mxu1 %vm9624_vm0, %v14872_v0  ;;  %v500_v1 = vld [vmem:[%s14847_s2 + $0x10] sm:$0xff] }
  0x95   : > { %8396 = vmatprep.subr.bf16.mxu1 %v14872_v0 }
  0x98   : > { %8397 = vmatpush3.bf16.msra.mxu1 %v9854_v2  ;;  %v498_v2 = vld [vmem:[%s14847_s2] sm:$0xff] }
  0x99   : > { %8398 = vmatprep.subr.bf16.mxu1 %v14872_v0 }
  0x9c   : > { %8399 = vmatpush3.bf16.msra.mxu1 %v9861_v3  ;;  %v9625_v3 = vmov 0  }
  0x9d   : > { %8400 = vmatprep.subr.bf16.mxu1 %v14872_v0  ;;  %8794 = vset.pattern.permute.xlu1 %v9625_v3 }
  0x9e   : > { %8793 = vset.pattern.permute.xlu0 %v9625_v3  ;;  %542 = vperm.xlu1 %8794, %v500_v1   ;;  %v516_v1 = vld [vmem:[%s14847_s2 + $0x90] sm:$0xff]  ;;  %v697_v3 = vld [vmem:[%s14848_s3 + $0x38] sm:$0xff] }
  0x9f   : > { %532 = vperm.xlu0 %8793, %v498_v2   ;;  %v10125_v2 = vsub.s32 %v1030_v7, %v1032_v10  ;;  %v521_v7 = vld [vmem:[%s14847_s2 + $0xb8] sm:$0xff] }
  0xa0   : > { %8401 = vmatpush3.bf16.msra.mxu1 %v9879_v8  ;;  %v501_v8 = vld [vmem:[%s14847_s2 + $0x18] sm:$0xff] }
  0xa1   : > { %8402 = vmatprep.subr.bf16.mxu1 %v14872_v0  ;;  %15065 = vst [vmem:[#allocation15_spill] sm:$0xff] %v10125_v2 }
  0xa2   : > { %547 = vperm.xlu1 %8794, %v501_v8   ;;  %v696_v8 = vld [vmem:[%s14848_s3 + $0x30] sm:$0xff] }
  0xa4   : > { %8403 = vmatpush3.bf16.msra.mxu1 %v9900_v15  ;;  %v499_v15 = vld [vmem:[%s14847_s2 + $0x8] sm:$0xff] }
  0xa5   : > { %8404 = vmatprep.subr.bf16.mxu1 %v14872_v0  ;;  %537 = vperm.xlu0 %8793, %v499_v15  }
  0xa8   : > { %8405 = vmatpush3.bf16.msra.mxu1 %v9922_v23  ;;  %v503_v23 = vld [vmem:[%s14847_s2 + $0x28] sm:$0xff] }
  0xa9   : > { %8406 = vmatprep.subr.bf16.mxu1 %v14872_v0  ;;  %557 = vperm.xlu1 %8794, %v503_v23  }
  0xac   : > { %8407 = vmatpush3.bf16.msra.mxu1 %v9947_v32  ;;  %v502_v32 = vld [vmem:[%s14847_s2 + $0x20] sm:$0xff] }
  0xad   : > { %8408 = vmatprep.subr.bf16.mxu1 %v14872_v0  ;;  %552 = vperm.xlu0 %8793, %v502_v32  }
  0xb0   : > { %8409 = vmatpush3.bf16.msra.mxu1 %v9970_v41  ;;  %v505_v41 = vld [vmem:[%s14847_s2 + $0x38] sm:$0xff] }
  0xb1   : > { %567 = vperm.xlu1 %8794, %v505_v41   ;;  %562 = vperm.xlu0 %8793, %v504_v18  }
  0xb5   : > { %577 = vperm.xlu1 %8794, %v507_v22   ;;  %572 = vperm.xlu0 %8793, %v506_v26   ;;  %v699_v26 = vld [vmem:[%s14848_s3 + $0x48] sm:$0xff] }
  0xb9   : > { %587 = vperm.xlu1 %8794, %v509_v29   ;;  %582 = vperm.xlu0 %8793, %v508_v31   ;;  %v698_v29 = vld [vmem:[%s14848_s3 + $0x40] sm:$0xff] }
  0xbd   : > { %597 = vperm.xlu1 %8794, %v511_v34   ;;  %592 = vperm.xlu0 %8793, %v510_v36   ;;  %v519_v34 = vld [vmem:[%s14847_s2 + $0xa8] sm:$0xff]  ;;  %v518_v36 = vld [vmem:[%s14847_s2 + $0xa0] sm:$0xff] }
  0xc1   : > { %607 = vperm.xlu1 %8794, %v513_v38   ;;  %602 = vperm.xlu0 %8793, %v512_v40  }
  0xc5   : > { %729 = vperm.xlu1 %8794, %v691_v43   ;;  %724 = vperm.xlu0 %8793, %v690_v45   ;;  %v10148_v43 = vsub.s32 0, %v1032_v10  ;;  %v701_v45 = vld [vmem:[%s14848_s3 + $0x58] sm:$0xff] }
  0xc7   : > { %15066 = vst [vmem:[#allocation16_spill] sm:$0xff] %v10148_v43 }
  0xc9   : > { %617 = vperm.xlu1 %8794, %v515_v47   ;;  %612 = vperm.xlu0 %8793, %v514_v49   ;;  %v700_v47 = vld [vmem:[%s14848_s3 + $0x50] sm:$0xff] }
  0xcd   : > { %739 = vperm.xlu1 %8794, %v693_v51   ;;  %734 = vperm.xlu0 %8793, %v692_v53   ;;  %v703_v53 = vld [vmem:[%s14848_s3 + $0x68] sm:$0xff] }
  0xd1   : > { %749 = vperm.xlu1 %8794, %v695_v61   ;;  %744 = vperm.xlu0 %8793, %v694_v62  }
  0xd5   : > { %627 = vperm.xlu1 %8794, %v517_v14   ;;  %622 = vperm.xlu0 %8793, %v516_v1  }
  0xd9   : > { %759 = vperm.xlu1 %8794, %v697_v3   ;;  %754 = vperm.xlu0 %8793, %v696_v8   ;;  %v705_v3 = vld [vmem:[%s14848_s3 + $0x78] sm:$0xff] }
  0xdd   : > { %769 = vperm.xlu1 %8794, %v699_v26   ;;  %764 = vperm.xlu0 %8793, %v698_v29  }
  0xe1   : > { %637 = vperm.xlu1 %8794, %v519_v34   ;;  %632 = vperm.xlu0 %8793, %v518_v36   ;;  %v706_v34 = vld [vmem:[%s14848_s3 + $0x80] sm:$0xff] }
  0xe5   : > { %779 = vperm.xlu1 %8794, %v701_v45   ;;  %774 = vperm.xlu0 %8793, %v700_v47  }
  0xe9   : > { %789 = vperm.xlu1 %8794, %v703_v53   ;;  %784 = vperm.xlu0 %8793, %v702_v55  }
  0xed   : > { %647 = vperm.xlu1 %8794, %v521_v7  }
  0xf1   : > { %799 = vperm.xlu1 %8794, %v705_v3  }
 0x166   : > { %v1020_v15 = vpop.f32.mrb[0].mxu1 }
 0x167   : > { %v1026_v23 = vmul.f32 0.25, %v1020_v15  ;;  %v8392_v32 = vpop.f32.mrb[1].mxu1 }
 0x168   : > { %v1023_v41 = vpop.f32.mrb[2].mxu1 }
 0x169   : > { %v1034_v18 = vrot.slane %v1026_v23, %v10125_v2  ;;  %v8393_v22 = vpop.f32.mrb[3].mxu1 }
 0x16b   : > { %v1035_v31 = vcombine.high %v1034_v18, %v1034_v18  ;;  %v1042_v38 = vrot.slane %v1034_v18, %v10125_v2 }
 0x16d   : > { %v1049_v40 = vrot.slane %v1035_v31, %v10125_v2  ;;  %v10157_v49 = vrot.slane %v1042_v38, %v10148_v43  ;;  %v707_v31 = vld [vmem:[%s14848_s3 + $0x88] sm:$0xff] }
 0x16e   : > { %809 = vperm.xlu1 %8794, %v707_v31  }
 0x16f   : > { %v10160_v51 = vrot.slane %v1049_v40, %v10148_v43  ;;  %v10170_v57 = vsub.f32 %v9865_v4, %v10157_v49  ;;  %v10174_v59 = vsub.f32 %v9868_v5, %v10157_v49  ;;  %v10189_v4 = vsub.f32 %v9871_v6, %v10157_v49 }
 0x170   : > { %v10219_v8 = vsub.f32 %v9887_v11, %v10157_v49  ;;  %v10234_v11 = vsub.f32 %v9903_v16, %v10157_v49  ;;  %v10249_v16 = vsub.f32 %v9916_v21, %v10157_v49  ;;  %v10264_v21 = vsub.f32 %v9925_v24, %v10157_v49 }
 0x171   : > { %v10178_v61 = vsub.f32 %v9890_v12, %v10160_v51  ;;  %v10182_v62 = vsub.f32 %v9893_v13, %v10160_v51  ;;  %v10193_v5 = vsub.f32 %v9906_v17, %v10160_v51  ;;  %v520_v12 = vld [vmem:[%s14847_s2 + $0xb0] sm:$0xff]  ;;  %v1092_v13 = vmul.f32 %v10170_v57, %v10170_v57 }
 0x172   : > { %v1093_v10 = vmul.f32 %v10174_v59, %v10174_v59  ;;  %v10208_v17 = vsub.f32 %v9882_v9, %v10157_v49  ;;  %v10212_v1 = vsub.f32 %v9912_v19, %v10160_v51  ;;  %642 = vperm.xlu0 %8793, %v520_v12   ;;  %v10223_v15 = vsub.f32 %v9928_v25, %v10160_v51  ;;  %v704_v9 = vld [vmem:[%s14848_s3 + $0x70] sm:$0xff]  ;;  %v523_v12 = vld [vmem:[%s14847_s2 + $0xc8] sm:$0xff] }
 0x173   : > { %v1108_v14 = vmul.f32 %v10178_v61, %v10178_v61  ;;  %v1109_v6 = vmul.f32 %v10182_v62, %v10182_v62  ;;  %v1094_v19 = vmul.f32 %v10189_v4, %v10189_v4  ;;  %v1110_v23 = vmul.f32 %v10193_v5, %v10193_v5  ;;  %657 = vperm.xlu1 %8794, %v523_v12  }
 0x174   : > { %v1124_v32 = vadd.f32 %v1093_v10, %v1092_v13  ;;  %v10238_v25 = vsub.f32 %v9936_v28, %v10160_v51  ;;  %v1095_v18 = vmul.f32 %v10208_v17, %v10208_v17  ;;  %v1111_v22 = vmul.f32 %v10212_v1, %v10212_v1  ;;  %v522_v13 = vld [vmem:[%s14847_s2 + $0xc0] sm:$0xff] }
 0x175   : > { %v1145_v41 = vadd.f32 %v1109_v6, %v1108_v14  ;;  %v10253_v28 = vsub.f32 %v9941_v30, %v10160_v51  ;;  %v1096_v36 = vmul.f32 %v10219_v8, %v10219_v8  ;;  %v1112_v38 = vmul.f32 %v10223_v15, %v10223_v15 }
 0x176   : > { %v1125_v26 = vadd.f32 %v1124_v32, %v1094_v19  ;;  %794 = vperm.xlu0 %8793, %v704_v9   ;;  %v10268_v30 = vsub.f32 %v9954_v35, %v10160_v51  ;;  %v1097_v47 = vmul.f32 %v10234_v11, %v10234_v11  ;;  %v1113_v53 = vmul.f32 %v10238_v25, %v10238_v25 }
 0x177   : > { %v1146_v29 = vadd.f32 %v1145_v41, %v1110_v23  ;;  %v10279_v24 = vsub.f32 %v9933_v27, %v10157_v49  ;;  %v10283_v35 = vsub.f32 %v9964_v39, %v10160_v51  ;;  %v1098_v10 = vmul.f32 %v10249_v16, %v10249_v16  ;;  %v709_v41 = vld [vmem:[%s14848_s3 + $0x98] sm:$0xff] }
 0x178   : > { %v1126_v40 = vadd.f32 %v1125_v26, %v1095_v18  ;;  %v1114_v14 = vmul.f32 %v10253_v28, %v10253_v28  ;;  %v10294_v27 = vsub.f32 %v9950_v33, %v10157_v49  ;;  %v10298_v39 = vsub.f32 %v9977_v44, %v10160_v51  ;;  %v708_v18 = vld [vmem:[%s14848_s3 + $0x90] sm:$0xff]  ;;  %819 = vperm.xlu1 %8794, %v709_v41  }
 0x179   : > { %v1147_v45 = vadd.f32 %v1146_v29, %v1111_v22  ;;  %v1099_v9 = vmul.f32 %v10264_v21, %v10264_v21  ;;  %v1115_v19 = vmul.f32 %v10268_v30, %v10268_v30  ;;  %v10309_v33 = vsub.f32 %v9959_v37, %v10157_v49 }
 0x17a   : > { %v1127_v55 = vadd.f32 %v1126_v40, %v1096_v36  ;;  %804 = vperm.xlu0 %8793, %v706_v34   ;;  %v10313_v44 = vsub.f32 %v9987_v48, %v10160_v51  ;;  %v1100_v22 = vmul.f32 %v10279_v24, %v10279_v24  ;;  %v1116_v26 = vmul.f32 %v10283_v35, %v10283_v35 }
 0x17b   : > { %v1148_v7 = vadd.f32 %v1147_v45, %v1112_v38  ;;  %v10324_v37 = vsub.f32 %v9973_v42, %v10157_v49  ;;  %v10328_v48 = vsub.f32 %v9995_v52, %v10160_v51  ;;  %v1101_v34 = vmul.f32 %v10294_v27, %v10294_v27  ;;  %v711_v45 = vld [vmem:[%s14848_s3 + $0xa8] sm:$0xff] }
 0x17c   : > { %v1128_v6 = vadd.f32 %v1127_v55, %v1097_v47  ;;  %v1117_v36 = vmul.f32 %v10298_v39, %v10298_v39  ;;  %v10339_v42 = vsub.f32 %v9982_v46, %v10157_v49  ;;  %v10343_v52 = vsub.f32 %v10004_v56, %v10160_v51  ;;  %v710_v47 = vld [vmem:[%s14848_s3 + $0xa0] sm:$0xff]  ;;  %829 = vperm.xlu1 %8794, %v711_v45  }
 0x17d   : > { %v1149_v3 = vadd.f32 %v1148_v7, %v1113_v53  ;;  %v1102_v53 = vmul.f32 %v10309_v33, %v10309_v33  ;;  %v1118_v55 = vmul.f32 %v10313_v44, %v10313_v44  ;;  %v10354_v46 = vsub.f32 %v9991_v50, %v10157_v49 }
 0x17e   : > { %v1129_v23 = vadd.f32 %v1128_v6, %v1098_v10  ;;  %652 = vperm.xlu0 %8793, %v522_v13   ;;  %v10358_v56 = vsub.f32 %v10013_v60, %v10160_v51  ;;  %v1103_v13 = vmul.f32 %v10324_v37, %v10324_v37  ;;  %v1119_v10 = vmul.f32 %v10328_v48, %v10328_v48 }
 0x17f   : > { %v1150_v32 = vadd.f32 %v1149_v3, %v1114_v14  ;;  %v525_v3 = vld [vmem:[%s14847_s2 + $0xd8] sm:$0xff]  ;;  %v10369_v50 = vsub.f32 %v10000_v54, %v10157_v49  ;;  %v10373_v60 = vsub.f32 %v10018_v63, %v10160_v51  ;;  %v10384_v54 = vsub.f32 %v10009_v58, %v10157_v49  ;;  %v712_v58 = vld [vmem:[%s14848_s3 + $0xb0] sm:$0xff] }
 0x180   : > { %v1130_v29 = vadd.f32 %v1129_v23, %v1099_v9  ;;  %v524_v9 = vld [vmem:[%s14847_s2 + $0xd0] sm:$0xff]  ;;  %v1120_v23 = vmul.f32 %v10343_v52, %v10343_v52  ;;  %v10388_v63 = vsub.f32 %v10025_v20, %v10160_v51  ;;  %667 = vperm.xlu1 %8794, %v525_v3  }
 0x181   : > { %v1151_v31 = vadd.f32 %v1150_v32, %v1115_v19  ;;  %v1104_v19 = vmul.f32 %v10339_v42, %v10339_v42  ;;  %v1106_v20 = vmul.f32 %v10369_v50, %v10369_v50  ;;  %v1122_v49 = vmul.f32 %v10373_v60, %v10373_v60 }
 0x182   : > { %v1131_v38 = vadd.f32 %v1130_v29, %v1100_v22  ;;  %814 = vperm.xlu0 %8793, %v708_v18   ;;  %v1105_v18 = vmul.f32 %v10354_v46, %v10354_v46  ;;  %v1121_v22 = vmul.f32 %v10358_v56, %v10358_v56 }
 0x183   : > { %v1152_v40 = vadd.f32 %v1151_v31, %v1116_v26  ;;  %v713_v31 = vld [vmem:[%s14848_s3 + $0xb8] sm:$0xff] }
 0x184   : > { %v1132_v7 = vadd.f32 %v1131_v38, %v1101_v34  ;;  %839 = vperm.xlu1 %8794, %v713_v31   ;;  %v1123_v38 = vmul.f32 %v10388_v63, %v10388_v63  ;;  %v718_v31 = vld [vmem:[%s14848_s3 + $0xe0] sm:$0xff] }
 0x185   : > { %v1153_v12 = vadd.f32 %v1152_v40, %v1117_v36  ;;  %v1107_v36 = vmul.f32 %v10384_v54, %v10384_v54 }
 0x186   : > { %v1133_v14 = vadd.f32 %v1132_v7, %v1102_v53  ;;  %824 = vperm.xlu0 %8793, %v710_v47   ;;  %v715_v47 = vld [vmem:[%s14848_s3 + $0xc8] sm:$0xff]  ;;  %v714_v53 = vld [vmem:[%s14848_s3 + $0xc0] sm:$0xff] }
 0x187   : > { %v1154_v6 = vadd.f32 %v1153_v12, %v1118_v55 }
 0x188   : > { %v1134_v32 = vadd.f32 %v1133_v14, %v1103_v13  ;;  %849 = vperm.xlu1 %8794, %v715_v47   ;;  %v526_v14 = vld [vmem:[%s14847_s2 + $0xe0] sm:$0xff] }
 0x189   : > { %v1155_v41 = vadd.f32 %v1154_v6, %v1119_v10  ;;  %v527_v10 = vld [vmem:[%s14847_s2 + $0xe8] sm:$0xff] }
 0x18a   : > { %v1135_v26 = vadd.f32 %v1134_v32, %v1104_v19  ;;  %662 = vperm.xlu0 %8793, %v524_v9   ;;  %v716_v32 = vld [vmem:[%s14848_s3 + $0xd0] sm:$0xff] }
 0x18b   : > { %v1156_v29 = vadd.f32 %v1155_v41, %v1120_v23  ;;  %v717_v23 = vld [vmem:[%s14848_s3 + $0xd8] sm:$0xff] }
 0x18c   : > { %v1136_v51 = vadd.f32 %v1135_v26, %v1105_v18  ;;  %677 = vperm.xlu1 %8794, %v527_v10   ;;  %v8803_v10 = vld [vmem:[%s14851_s6 + $0x80] sm:$0xff]  }
 0x18d   : > { %v1157_v34 = vadd.f32 %v1156_v29, %v1121_v22  ;;  %v719_v29 = vld [vmem:[%s14848_s3 + $0xe8] sm:$0xff]  ;;  %8414 = vmatprep.subr.bf16.mxu1 %v8803_v10 }
 0x18e   : > { %v1137_v40 = vadd.f32 %v1136_v51, %v1106_v20  ;;  %834 = vperm.xlu0 %8793, %v712_v58  }
 0x18f   : > { %v1158_v45 = vadd.f32 %v1157_v34, %v1122_v49  ;;  %v529_v34 = vld [vmem:[%s14847_s2 + $0xf8] sm:$0xff] }
 0x190   : > { %v1138_v55 = vadd.f32 %v1137_v40, %v1107_v36  ;;  %859 = vperm.xlu1 %8794, %v717_v23   ;;  %v528_v36 = vld [vmem:[%s14847_s2 + $0xf0] sm:$0xff] }
 0x191   : > { %v1159_v7 = vadd.f32 %v1158_v45, %v1123_v38 }
 0x192   : > { %v1139_v12 = vrot.slane %v1138_v55, 4  ;;  %844 = vperm.xlu0 %8793, %v714_v53   ;;  %v721_v53 = vld [vmem:[%s14848_s3 + $0xf8] sm:$0xff] }
 0x193   : > { %v1160_v13 = vrot.slane %v1159_v7, 4 }
 0x194   : > { %v1140_v6 = vadd.f32 %v1139_v12, %v1138_v55  ;;  %869 = vperm.xlu1 %8794, %v719_v29   ;;  %v720_v55 = vld [vmem:[%s14848_s3 + $0xf0] sm:$0xff] }
 0x195   : > { %v1161_v3 = vadd.f32 %v1160_v13, %v1159_v7  ;;  %v10445_v13 = vpop.permute.xlu0 %532 }
 0x196   : > { %v1141_v9 = vrot.slane %v1140_v6, 2  ;;  %672 = vperm.xlu0 %8793, %v526_v14   ;;  %15067 = vst [vmem:[#allocation17_spill] sm:$0xff] %v10445_v13  ;;  %v10450_v14 = vpop.permute.xlu1 %542 }
 0x197   : > { %v1162_v19 = vrot.slane %v1161_v3, 2  ;;  %15068 = vst [vmem:[#allocation18_spill] sm:$0xff] %v10450_v14 }
 0x198   : > { %v1142_v41 = vadd.f32 %v1141_v9, %v1140_v6  ;;  %687 = vperm.xlu1 %8794, %v529_v34   ;;  %v8804_v6 = vld [vmem:[%s14851_s6 + $0x40] sm:$0xff]   ;;  %v8806_v9 = vld [vmem:[%s14851_s6 + $0x88] sm:$0xff]  }
 0x199   : > { %v1163_v18 = vadd.f32 %v1162_v19, %v1161_v3  ;;  %v8805_v3 = vld [vmem:[%s14851_s6] sm:$0xff]   ;;  %7776 = vmatprep.subr.bf16.mxu0 %v8804_v6  ;;  %v8807_v19 = vld [vmem:[%s14851_s6 + $0x48] sm:$0xff]   ;;  %v10464_v23 = vpop.permute.xlu0 %537 }
 0x19a   : > { %v1143_v22 = vrot.slane %v1142_v41, 1  ;;  %854 = vperm.xlu0 %8793, %v716_v32   ;;  %7777 = vmatpush3.bf16.msra.mxu0 %v8805_v3  ;;  %15069 = vst [vmem:[#allocation19_spill] sm:$0xff] %v10464_v23  ;;  %v8808_v32 = vld [vmem:[%s14851_s6 + $0x8] sm:$0xff]  }
 0x19b   : > { %v1164_v26 = vrot.slane %v1163_v18, 1  ;;  %7778 = vmatprep.subr.bf16.mxu0 %v8807_v19  ;;  %v8818_v6 = vld [vmem:[%s14851_s6 + $0xa8] sm:$0xff]  }
 0x19c   : > { %v1144_v58 = vadd.f32 %v1143_v22, %v1142_v41  ;;  %879 = vperm.xlu1 %8794, %v721_v53   ;;  %v10469_v41 = vpop.permute.xlu1 %547  ;;  %v8815_v53 = vld [vmem:[%s14851_s6 + $0xa0] sm:$0xff]   ;;  %v8820_v19 = vld [vmem:[%s14851_s6 + $0x28] sm:$0xff]  }
 0x19d   : > { %v1165_v20 = vadd.f32 %v1164_v26, %v1163_v18  ;;  %15070 = vst [vmem:[#allocation20_spill] sm:$0xff] %v10469_v41  ;;  %v10471_v18 = vpop.permute.xlu0 %552 }
 0x19e   : > { %v1166_v49 = vmul.f32 0.0078125, %v1144_v58  ;;  %864 = vperm.xlu0 %8793, %v718_v31   ;;  %7779 = vmatpush3.bf16.msra.mxu0 %v8808_v32  ;;  %15071 = vst [vmem:[#allocation21_spill] sm:$0xff] %v10471_v18 }
 0x19f   : > { %v1167_v51 = vmul.f32 0.0078125, %v1165_v20  ;;  %v8809_v20 = vld [vmem:[%s14851_s6 + $0x90] sm:$0xff]  }
 0x1a0   : > { %v1168_v38 = vpack.c.bf16 %v1166_v49, %v1166_v49  ;;  %v10473_v22 = vpop.permute.xlu1 %557  ;;  %v8810_v49 = vld [vmem:[%s14851_s6 + $0x50] sm:$0xff]  }
 0x1a1   : > { %v1169_v40 = vpack.c.bf16 %v1167_v51, %v1167_v51  ;;  %15072 = vst [vmem:[#allocation22_spill] sm:$0xff] %v10473_v22  ;;  %v10475_v26 = vpop.permute.xlu0 %562  ;;  %v8811_v51 = vld [vmem:[%s14851_s6 + $0x10] sm:$0xff]   ;;  %7780 = vmatprep.subr.bf16.mxu0 %v8810_v49 }
 0x1a2   : > { %v1172_v45 = vunpack.c.l.b16 %v1168_v38  ;;  %682 = vperm.xlu0 %8793, %v528_v36   ;;  %15073 = vst [vmem:[#allocation23_spill] sm:$0xff] %v10475_v26  ;;  %7781 = vmatpush3.bf16.msra.mxu0 %v8811_v51  ;;  %v8812_v38 = vld [vmem:[%s14851_s6 + $0x98] sm:$0xff]   ;;  %v8821_v49 = vld [vmem:[%s14851_s6 + $0xb0] sm:$0xff]  }
 0x1a3   : > { %v1173_v47 = vunpack.c.l.b16 %v1169_v40  ;;  %v8813_v40 = vld [vmem:[%s14851_s6 + $0x58] sm:$0xff]   ;;  %v8822_v51 = vld [vmem:[%s14851_s6 + $0x70] sm:$0xff]  }
 0x1a4   : > { %v10477_v29 = vpop.permute.xlu1 %567  ;;  %7782 = vmatprep.subr.bf16.mxu0 %v8813_v40 }
 0x1a5   : > { %v1174_v7 = vsel %vm934_vm1, %v1173_v47, %v1172_v45  ;;  %15074 = vst [vmem:[#allocation24_spill] sm:$0xff] %v10477_v29  ;;  %v10479_v31 = vpop.permute.xlu0 %572  ;;  %v8814_v45 = vld [vmem:[%s14851_s6 + $0x18] sm:$0xff]  }
 0x1a6   : > { %v1175_v12 = vpack.c.b16 %v1174_v7, %v1174_v7  ;;  %874 = vperm.xlu0 %8793, %v720_v55   ;;  %15075 = vst [vmem:[#allocation25_spill] sm:$0xff] %v10479_v31  ;;  %7783 = vmatpush3.bf16.msra.mxu0 %v8814_v45  ;;  %v8816_v7 = vld [vmem:[%s14851_s6 + $0x60] sm:$0xff]  }
 0x1a7   : > { %7784 = vmatprep.subr.bf16.mxu0 %v8816_v7  ;;  %v8825_v7 = vld [vmem:[%s14851_s6 + $0x78] sm:$0xff]  }
 0x1a8   : > { %8411 = vmatmul.mubr.bf16.vlgmr.msra.gmra.mrb[4].mxu1 %v1175_v12  ;;  %v10481_v58 = vpop.permute.xlu1 %577  ;;  %v8817_v12 = vld [vmem:[%s14851_s6 + $0x20] sm:$0xff]  }
 0x1a9   : > { %8415 = vmatpush3.bf16.msra.mxu1 %v8803_v10  ;;  %15076 = vst [vmem:[#allocation26_spill] sm:$0xff] %v10481_v58  ;;  %v10492_v34 = vpop.permute.xlu0 %582 }
 0x1aa   : > { %8416 = vmatprep.subr.bf16.mxu1 %v8806_v9  ;;  %15077 = vst [vmem:[#allocation27_spill] sm:$0xff] %v10492_v34  ;;  %7785 = vmatpush3.bf16.msra.mxu0 %v8817_v12  ;;  %v8826_v12 = vld [vmem:[%s14851_s6 + $0x38] sm:$0xff]  }
 0x1ac   : > { %v10494_v36 = vpop.permute.xlu1 %587 }
 0x1ad   : > { %8417 = vmatpush3.bf16.msra.mxu1 %v8806_v9  ;;  %15078 = vst [vmem:[#allocation28_spill] sm:$0xff] %v10494_v36  ;;  %v10505_v47 = vpop.permute.xlu0 %592  ;;  %v8819_v9 = vld [vmem:[%s14851_s6 + $0x68] sm:$0xff]  }
 0x1ae   : > { %8418 = vmatprep.subr.bf16.mxu1 %v8809_v20  ;;  %15079 = vst [vmem:[#allocation29_spill] sm:$0xff] %v10505_v47  ;;  %7786 = vmatprep.subr.bf16.mxu0 %v8819_v9 }
 0x1af   : > { %7787 = vmatpush3.bf16.msra.mxu0 %v8820_v19 }
 0x1b0   : > { %v10510_v55 = vpop.permute.xlu1 %597  ;;  %7788 = vmatprep.subr.bf16.mxu0 %v8822_v51 }
 0x1b1   : > { %8419 = vmatpush3.bf16.msra.mxu1 %v8809_v20  ;;  %15080 = vst [vmem:[#allocation30_spill] sm:$0xff] %v10510_v55  ;;  %v10518_v10 = vpop.permute.xlu0 %602 }
 0x1b2   : > { %8420 = vmatprep.subr.bf16.mxu1 %v8812_v38  ;;  %15081 = vst [vmem:[#allocation31_spill] sm:$0xff] %v10518_v10 }
 0x1b4   : > { %v10523_v3 = vpop.permute.xlu1 %607 }
 0x1b5   : > { %8421 = vmatpush3.bf16.msra.mxu1 %v8812_v38  ;;  %15082 = vst [vmem:[#allocation32_spill] sm:$0xff] %v10523_v3  ;;  %v10531_v32 = vpop.permute.xlu0 %724  ;;  %v8823_v38 = vld [vmem:[%s14851_s6 + $0x30] sm:$0xff]  }
 0x1b6   : > { %8422 = vmatprep.subr.bf16.mxu1 %v8815_v53  ;;  %15083 = vst [vmem:[#allocation33_spill] sm:$0xff] %v10531_v32  ;;  %7789 = vmatpush3.bf16.msra.mxu0 %v8823_v38 }
 0x1b7   : > { %7790 = vmatprep.subr.bf16.mxu0 %v8825_v7 }
 0x1b8   : > { %v10533_v20 = vpop.permute.xlu1 %729 }
 0x1b9   : > { %8423 = vmatpush3.bf16.msra.mxu1 %v8815_v53  ;;  %15084 = vst [vmem:[#allocation34_spill] sm:$0xff] %v10533_v20  ;;  %v10544_v40 = vpop.permute.xlu0 %612  ;;  %v8824_v53 = vld [vmem:[%s14851_s6 + $0xb8] sm:$0xff]  }
 0x1ba   : > { %8424 = vmatprep.subr.bf16.mxu1 %v8818_v6  ;;  %15085 = vst [vmem:[#allocation35_spill] sm:$0xff] %v10544_v40  ;;  %7791 = vmatpush3.bf16.msra.mxu0 %v8826_v12 }
 0x1bc   : > { %v10546_v45 = vpop.permute.xlu1 %617 }
 0x1bd   : > { %8425 = vmatpush3.bf16.msra.mxu1 %v8818_v6  ;;  %15086 = vst [vmem:[#allocation36_spill] sm:$0xff] %v10546_v45  ;;  %v10557_v6 = vpop.permute.xlu0 %734 }
 0x1be   : > { %8426 = vmatprep.subr.bf16.mxu1 %v8821_v49  ;;  %15087 = vst [vmem:[#allocation37_spill] sm:$0xff] %v10557_v6 }
 0x1c0   : > { %v10560_v9 = vpop.permute.xlu1 %739 }
 0x1c1   : > { %8427 = vmatpush3.bf16.msra.mxu1 %v8821_v49  ;;  %15088 = vst [vmem:[#allocation38_spill] sm:$0xff] %v10560_v9  ;;  %v10562_v19 = vpop.permute.xlu0 %744 }
 0x1c2   : > { %8428 = vmatprep.subr.bf16.mxu1 %v8824_v53  ;;  %15089 = vst [vmem:[#allocation39_spill] sm:$0xff] %v10562_v19 }
 0x1c4   : > { %v10564_v49 = vpop.permute.xlu1 %749 }
 0x1c5   : > { %8429 = vmatpush3.bf16.msra.mxu1 %v8824_v53  ;;  %15090 = vst [vmem:[#allocation40_spill] sm:$0xff] %v10564_v49  ;;  %v10566_v45 = vpop.permute.xlu0 %622 }
 0x1c6   : > { %8462 = vmatprep.subr.bf16.mxu1 %v14872_v0  ;;  %15091 = vst [vmem:[#allocation41_spill] sm:$0xff] %v10566_v45 }
 0x1c8   : > { %v10568_v3 = vpop.permute.xlu1 %627 }
 0x1c9   : > { %15092 = vst [vmem:[#allocation42_spill] sm:$0xff] %v10568_v3  ;;  %v10570_v10 = vpop.permute.xlu0 %754 }
 0x1ca   : > { %15093 = vst [vmem:[#allocation43_spill] sm:$0xff] %v10570_v10 }
 0x1cc   : > { %v10572_v55 = vpop.permute.xlu1 %759 }
 0x1cd   : > { %15094 = vst [vmem:[#allocation44_spill] sm:$0xff] %v10572_v55  ;;  %v10574_v0 = vpop.permute.xlu0 %764 }
 0x1ce   : > { %15095 = vst [vmem:[#allocation45_spill] sm:$0xff] %v10574_v0 }
 0x1d0   : > { %v10576_v47 = vpop.permute.xlu1 %769 }
 0x1d1   : > { %15096 = vst [vmem:[#allocation46_spill] sm:$0xff] %v10576_v47  ;;  %v10578_v36 = vpop.permute.xlu0 %632 }
 0x1d2   : > { %15097 = vst [vmem:[#allocation47_spill] sm:$0xff] %v10578_v36 }
 0x1d4   : > { %v10580_v34 = vpop.permute.xlu1 %637 }
 0x1d5   : > { %15098 = vst [vmem:[#allocation48_spill] sm:$0xff] %v10580_v34  ;;  %v10583_v3 = vpop.permute.xlu0 %774 }
 0x1d6   : > { %15099 = vst [vmem:[#allocation49_spill] sm:$0xff] %v10583_v3 }
 0x1d9   : > { %v10589_v45 = vpop.permute.xlu0 %784 }
 0x1da   : > { %15101 = vst [vmem:[#allocation51_spill] sm:$0xff] %v10589_v45 }
 0x27b   : > { %v1211_v51 = vpop.f32.mrb[4].mxu1 }
 0x27c   : > { %v8412_v38 = vpop.f32.mrb[5].mxu1  ;;  %v1217_v7 = vmul.f32 0.25, %v1211_v51  ;;  %v10585_v51 = vpop.permute.xlu1 %779 }
 0x27d   : > { %v1214_v40 = vpop.f32.mrb[6].mxu1  ;;  %15100 = vst [vmem:[#allocation50_spill] sm:$0xff] %v10585_v51  ;;  %v10604_v51 = vld [vmem:[%s14849_s4] ss:$0 sm:$0xff] }
 0x27e   : > { %v8413_v53 = vpop.f32.mrb[7].mxu1  ;;  %v1218_v12 = vadd.f32 1e-05, %v1217_v7 }
 0x280   : > { %8899 = vrsqrt.f32 %v1218_v12  ;;  %v10594_v36 = vpop.permute.xlu1 %789 }
 0x281   : > { %15102 = vst [vmem:[#allocation52_spill] sm:$0xff] %v10594_v36 }
 0x28a   : > { %v8900_v38 = vpop.eup %8899 }
 0x28b   : > { %v1227_v40 = vrot.slane %v8900_v38, %v10125_v2 }
 0x28d   : > { %v1228_v7 = vcombine.high %v1227_v40, %v1227_v40  ;;  %v1235_v53 = vrot.slane %v1227_v40, %v10125_v2  ;;  %v10606_v40 = vpop.permute.xlu0 %642 }
 0x28e   : > { %15103 = vst [vmem:[#allocation53_spill] sm:$0xff] %v10606_v40 }
 0x28f   : > { %v1242_v12 = vrot.slane %v1228_v7, %v10125_v2  ;;  %v10592_v58 = vrot.slane %v1235_v53, %v10148_v43  ;;  %v10608_v7 = vpop.permute.xlu1 %647 }
 0x290   : > { %15104 = vst [vmem:[#allocation54_spill] sm:$0xff] %v10608_v7 }
 0x291   : > { %v10597_v34 = vrot.slane %v1242_v12, %v10148_v43  ;;  %v1266_v38 = vmul.f32 %v10592_v58, %v10354_v46  ;;  %v10618_v46 = vld [vmem:[%s14850_s5] ss:$0 sm:$0xff]  ;;  %v1267_v43 = vmul.f32 %v10592_v58, %v10369_v50  ;;  %v1265_v7 = vmul.f32 %v10592_v58, %v10339_v42  ;;  %v10625_v3 = vpop.permute.xlu0 %794 }
 0x292   : > { %15105 = vst [vmem:[#allocation55_spill] sm:$0xff] %v10625_v3 }
 0x293   : > { %v1279_v53 = vmul.f32 %v10597_v34, %v10313_v44  ;;  %v1304_v2 = vmul.f32 %v10604_v51, %v1266_v38  ;;  %v1280_v12 = vmul.f32 %v10597_v34, %v10328_v48  ;;  %v1275_v48 = vmul.f32 %v10597_v34, %v10253_v28  ;;  %v10633_v45 = vpop.permute.xlu1 %799 }
 0x294   : > { %15106 = vst [vmem:[#allocation56_spill] sm:$0xff] %v10633_v45  ;;  %v1305_v36 = vmul.f32 %v10604_v51, %v1267_v43  ;;  %v1276_v50 = vmul.f32 %v10597_v34, %v10268_v30  ;;  %v1274_v42 = vmul.f32 %v10597_v34, %v10238_v25  ;;  %v1269_v30 = vmul.f32 %v10597_v34, %v10178_v61 }
 0x295   : > { %v1317_v40 = vmul.f32 %v10604_v51, %v1279_v53  ;;  %v1318_v44 = vmul.f32 %v10604_v51, %v1280_v12  ;;  %v10629_v38 = vadd.f32 %v10618_v46, %v1304_v2  ;;  %v1303_v12 = vmul.f32 %v10604_v51, %v1265_v7  ;;  %v10659_v45 = vpop.permute.xlu0 %804 }
 0x296   : > { %v1268_v2 = vmul.f32 %v10592_v58, %v10384_v54  ;;  %v1313_v43 = vmul.f32 %v10604_v51, %v1275_v48  ;;  %v10654_v25 = vadd.f32 %v10618_v46, %v1305_v36  ;;  %v1270_v7 = vmul.f32 %v10597_v34, %v10182_v62  ;;  %15107 = vst [vmem:[#allocation57_spill] sm:$0xff] %v10659_v45 }
 0x297   : > { %v10641_v53 = vadd.f32 %v10618_v46, %v1317_v40  ;;  %v10647_v28 = vadd.f32 %v10618_v46, %v1318_v44  ;;  %v1374_v3 = vsub.f32 0.0, %v10629_v38  ;;  %v1314_v40 = vmul.f32 %v10604_v51, %v1276_v50  ;;  %v10662_v44 = vpop.permute.xlu1 %809 }
 0x298   : > { %v1312_v54 = vmul.f32 %v10604_v51, %v1274_v42  ;;  %15108 = vst [vmem:[#allocation58_spill] sm:$0xff] %v10662_v44  ;;  %v1271_v48 = vmul.f32 %v10597_v34, %v10193_v5  ;;  %v10668_v61 = vadd.f32 %v10618_v46, %v1303_v12  ;;  %v1306_v36 = vmul.f32 %v10604_v51, %v1268_v2 }
 0x299   : > { %v1387_v31 = vsub.f32 0.0, %v10641_v53  ;;  %v1388_v50 = vsub.f32 0.0, %v10647_v28  ;;  %v1419_v29 = vmul.f32 1.442695, %v1374_v3  ;;  %v10673_v62 = vadd.f32 %v10618_v46, %v1313_v43 }
 0x29a   : > { %v1307_v42 = vmul.f32 %v10604_v51, %v1269_v30  ;;  %v1375_v45 = vsub.f32 0.0, %v10654_v25  ;;  %v10678_v44 = vadd.f32 %v10618_v46, %v1314_v40  ;;  %v1308_v5 = vmul.f32 %v10604_v51, %v1270_v7  ;;  %v10693_v40 = vpop.permute.xlu0 %652 }
 0x29b   : > { %15109 = vst [vmem:[#allocation59_spill] sm:$0xff] %v10673_v62  ;;  %v1253_v12 = vmul.f32 %v10592_v58, %v10170_v57  ;;  %v10684_v2 = vadd.f32 %v10618_v46, %v1312_v54  ;;  %v1309_v3 = vmul.f32 %v10604_v51, %v1271_v48  ;;  %v1445_v26 = vmul.f32 1.442695, %v1387_v31  ;;  %15113 = vst [vmem:[#allocation63_spill] sm:$0xff] %v10693_v40  ;;  %v10701_v31 = vpop.permute.xlu1 %657 }
 0x29c   : > { %15110 = vst [vmem:[#allocation60_spill] sm:$0xff] %v10678_v44  ;;  %v1281_v43 = vmul.f32 %v10597_v34, %v10343_v52  ;;  %v1373_v30 = vsub.f32 0.0, %v10668_v61  ;;  %v10691_v47 = vadd.f32 %v10618_v46, %v1306_v36  ;;  %v1447_v7 = vmul.f32 1.442695, %v1388_v50  ;;  %15115 = vst [vmem:[#allocation65_spill] sm:$0xff] %v10701_v31 }
 0x29d   : > { %15111 = vst [vmem:[#allocation61_spill] sm:$0xff] %v10684_v2  ;;  %v1283_v57 = vmul.f32 %v10597_v34, %v10373_v60  ;;  %8901 = vpow2.f32 %v1419_v29  ;;  %v1383_v54 = vsub.f32 0.0, %v10673_v62  ;;  %v10699_v48 = vadd.f32 %v10618_v46, %v1307_v42 }
 0x29e   : > { %15112 = vst [vmem:[#allocation62_spill] sm:$0xff] %v10691_v47  ;;  %v1284_v52 = vmul.f32 %v10597_v34, %v10388_v63  ;;  %v1421_v0 = vmul.f32 1.442695, %v1375_v45  ;;  %v1384_v36 = vsub.f32 0.0, %v10678_v44  ;;  %v10707_v40 = vadd.f32 %v10618_v46, %v1308_v5  ;;  %v10721_v55 = vpop.permute.xlu0 %814 }
 0x29f   : > { %15114 = vst [vmem:[#allocation64_spill] sm:$0xff] %v10699_v48  ;;  %v1254_v60 = vmul.f32 %v10592_v58, %v10174_v59  ;;  %v1382_v29 = vsub.f32 0.0, %v10684_v2  ;;  %v10713_v50 = vadd.f32 %v10618_v46, %v1309_v3  ;;  %8903 = vpow2.f32 %v1445_v26  ;;  %15118 = vst [vmem:[#allocation68_spill] sm:$0xff] %v10721_v55 }
 0x2a0   : > { %15116 = vst [vmem:[#allocation66_spill] sm:$0xff] %v10707_v40  ;;  %v1319_v42 = vmul.f32 %v10604_v51, %v1281_v43  ;;  %v1417_v31 = vmul.f32 1.442695, %v1373_v30  ;;  %v1376_v63 = vsub.f32 0.0, %v10691_v47  ;;  %8905 = vpow2.f32 %v1447_v7  ;;  %v10727_v7 = vpop.permute.xlu1 %819 }
 0x2a1   : > { %15117 = vst [vmem:[#allocation67_spill] sm:$0xff] %v10713_v50  ;;  %v1321_v45 = vmul.f32 %v10604_v51, %v1283_v57  ;;  %v1437_v44 = vmul.f32 1.442695, %v1383_v54  ;;  %v1377_v5 = vsub.f32 0.0, %v10699_v48  ;;  %v1322_v62 = vmul.f32 %v10604_v51, %v1284_v52  ;;  %15119 = vst [vmem:[#allocation69_spill] sm:$0xff] %v10727_v7 }
 0x2a2   : > { %v1439_v59 = vmul.f32 1.442695, %v1384_v36  ;;  %v1378_v2 = vsub.f32 0.0, %v10707_v40  ;;  %v1291_v26 = vmul.f32 %v10604_v51, %v1253_v12  ;;  %v1255_v3 = vmul.f32 %v10592_v58, %v10189_v4 }
 0x2a3   : > { %8907 = vpow2.f32 %v1421_v0  ;;  %v1435_v43 = vmul.f32 1.442695, %v1382_v29  ;;  %v1379_v30 = vsub.f32 0.0, %v10713_v50  ;;  %v10730_v57 = vadd.f32 %v10618_v46, %v1319_v42 }
 0x2a4   : > { %8909 = vpow2.f32 %v1417_v31  ;;  %v1423_v54 = vmul.f32 1.442695, %v1376_v63  ;;  %v10733_v52 = vadd.f32 %v10618_v46, %v1321_v45  ;;  %v1292_v36 = vmul.f32 %v10604_v51, %v1254_v60  ;;  %v10747_v60 = vpop.permute.xlu0 %824 }
 0x2a5   : > { %8911 = vpow2.f32 %v1437_v44  ;;  %v1425_v12 = vmul.f32 1.442695, %v1377_v5  ;;  %v10737_v4 = vadd.f32 %v10618_v46, %v1322_v62  ;;  %v1427_v0 = vmul.f32 1.442695, %v1378_v2  ;;  %15120 = vst [vmem:[#allocation70_spill] sm:$0xff] %v10747_v60 }
 0x2a6   : > { %8913 = vpow2.f32 %v1439_v59  ;;  %v1277_v29 = vmul.f32 %v10597_v34, %v10283_v35  ;;  %v10742_v42 = vadd.f32 %v10618_v46, %v1291_v26  ;;  %v1429_v63 = vmul.f32 1.442695, %v1379_v30  ;;  %v10756_v26 = vpop.permute.xlu1 %829 }
 0x2a7   : > { %v8902_v31 = vpop.eup %8901  ;;  %8915 = vpow2.f32 %v1435_v43  ;;  %v1278_v45 = vmul.f32 %v10597_v34, %v10298_v39  ;;  %v1389_v44 = vsub.f32 0.0, %v10730_v57  ;;  %v1391_v62 = vsub.f32 0.0, %v10733_v52  ;;  %15121 = vst [vmem:[#allocation71_spill] sm:$0xff] %v10756_v26 }
 0x2a8   : > { %8917 = vpow2.f32 %v1423_v54  ;;  %v10751_v2 = vadd.f32 %v10618_v46, %v1292_v36  ;;  %v1293_v35 = vmul.f32 %v10604_v51, %v1255_v3  ;;  %v1272_v59 = vmul.f32 %v10597_v34, %v10212_v1 }
 0x2a9   : > { %v8904_v5 = vpop.eup %8903  ;;  %8919 = vpow2.f32 %v1425_v12  ;;  %v1392_v39 = vsub.f32 0.0, %v10737_v4  ;;  %v1256_v43 = vmul.f32 %v10592_v58, %v10208_v17  ;;  %v1470_v54 = vadd.f32 1.0, %v8902_v31 }
 0x2aa   : > { %v8906_v30 = vpop.eup %8905  ;;  %8921 = vpow2.f32 %v1427_v0  ;;  %v1483_v60 = vadd.f32 1.0, %v8904_v5  ;;  %v1361_v36 = vsub.f32 0.0, %v10742_v42  ;;  %v1282_v12 = vmul.f32 %v10597_v34, %v10358_v56  ;;  %v10776_v50 = vpop.permute.xlu1 %667 }
 0x2ab   : > { %8923 = vpow2.f32 %v1429_v63  ;;  %v1484_v3 = vadd.f32 1.0, %v8906_v30  ;;  %v1449_v55 = vmul.f32 1.442695, %v1389_v44  ;;  %v1453_v1 = vmul.f32 1.442695, %v1391_v62  ;;  %v10772_v44 = vpop.permute.xlu0 %662  ;;  %15123 = vst [vmem:[#allocation73_spill] sm:$0xff] %v10776_v50 }
 0x2ac   : > { %8925 = vrcp.f32 %v1483_v60  ;;  %v1362_v7 = vsub.f32 0.0, %v10751_v2  ;;  %v10766_v26 = vadd.f32 %v10618_v46, %v1293_v35  ;;  %v1316_v31 = vmul.f32 %v10604_v51, %v1278_v45  ;;  %15122 = vst [vmem:[#allocation72_spill] sm:$0xff] %v10772_v44 }
 0x2ad   : > { %v8908_v17 = vpop.eup %8907  ;;  %8927 = vrcp.f32 %v1484_v3  ;;  %v1455_v0 = vmul.f32 1.442695, %v1392_v39  ;;  %v1294_v5 = vmul.f32 %v10604_v51, %v1256_v43  ;;  %v1273_v56 = vmul.f32 %v10597_v34, %v10223_v15 }
 0x2ae   : > { %v8910_v63 = vpop.eup %8909  ;;  %8929 = vrcp.f32 %v1470_v54  ;;  %v1393_v60 = vmul.f32 1.442695, %v1361_v36  ;;  %v1363_v62 = vsub.f32 0.0, %v10766_v26  ;;  %v1315_v35 = vmul.f32 %v10604_v51, %v1277_v29 }
 0x2af   : > { %v8912_v30 = vpop.eup %8911  ;;  %8931 = vpow2.f32 %v1449_v55  ;;  %v1395_v45 = vmul.f32 1.442695, %v1362_v7  ;;  %v10779_v39 = vadd.f32 %v10618_v46, %v1294_v5  ;;  %v1320_v54 = vmul.f32 %v10604_v51, %v1282_v12 }
 0x2b0   : > { %v10781_v43 = vpop.eup %8913  ;;  %8933 = vpow2.f32 %v1453_v1  ;;  %v1397_v15 = vmul.f32 1.442695, %v1363_v62  ;;  %v1257_v34 = vmul.f32 %v10592_v58, %v10219_v8  ;;  %v1471_v3 = vadd.f32 1.0, %v8908_v17 }
 0x2b1   : > { %15124 = vst [vmem:[#allocation74_spill] sm:$0xff] %v10781_v43  ;;  %v10786_v36 = vpop.eup %8915  ;;  %v10789_v29 = vadd.f32 %v10618_v46, %v1316_v31  ;;  %8935 = vpow2.f32 %v1455_v0  ;;  %v1364_v55 = vsub.f32 0.0, %v10779_v39  ;;  %v1469_v5 = vadd.f32 1.0, %v8910_v63  ;;  %v10796_v31 = vpop.permute.xlu0 %834 }
 0x2b2   : > { %v8918_v7 = vpop.eup %8917  ;;  %v1310_v40 = vmul.f32 %v10604_v51, %v1272_v59  ;;  %8937 = vpow2.f32 %v1393_v60  ;;  %v1311_v1 = vmul.f32 %v10604_v51, %v1273_v56  ;;  %v1258_v8 = vmul.f32 %v10592_v58, %v10234_v11  ;;  %15125 = vst [vmem:[#allocation75_spill] sm:$0xff] %v10796_v31  ;;  %v10808_v11 = vpop.permute.xlu1 %839 }
 0x2b3   : > { %v8920_v12 = vpop.eup %8919  ;;  %8939 = vpow2.f32 %v1395_v45  ;;  %v1399_v62 = vmul.f32 1.442695, %v1364_v55  ;;  %v1479_v44 = vadd.f32 1.0, %v8912_v30  ;;  %v10799_v0 = vadd.f32 %v10618_v46, %v1320_v54  ;;  %15127 = vst [vmem:[#allocation77_spill] sm:$0xff] %v10808_v11 }
 0x2b4   : > { %v8922_v17 = vpop.eup %8921  ;;  %8941 = vpow2.f32 %v1397_v15  ;;  %v1295_v63 = vmul.f32 %v10604_v51, %v1257_v34  ;;  %v1472_v60 = vadd.f32 1.0, %v8918_v7  ;;  %v10805_v56 = vadd.f32 %v10618_v46, %v1315_v35 }
 0x2b5   : > { %v10802_v59 = vpop.eup %8923  ;;  %8943 = vrcp.f32 %v1471_v3  ;;  %v1386_v45 = vsub.f32 0.0, %v10789_v29  ;;  %v1473_v55 = vadd.f32 1.0, %v8920_v12  ;;  %v10811_v54 = vadd.f32 %v10618_v46, %v1310_v40 }
 0x2b6   : > { %15126 = vst [vmem:[#allocation76_spill] sm:$0xff] %v10805_v56  ;;  %v8926_v30 = vpop.eup %8925  ;;  %8945 = vrcp.f32 %v1469_v5  ;;  %v1259_v15 = vmul.f32 %v10592_v58, %v10249_v16  ;;  %v1474_v3 = vadd.f32 1.0, %v8922_v17  ;;  %v1296_v35 = vmul.f32 %v10604_v51, %v1258_v8 }
 0x2b7   : > { %15128 = vst [vmem:[#allocation78_spill] sm:$0xff] %v10811_v54  ;;  %v8928_v34 = vpop.eup %8927  ;;  %v10816_v7 = vmul.f32 %v8926_v30, %v10641_v53  ;;  %8947 = vpow2.f32 %v1399_v62  ;;  %v1390_v40 = vsub.f32 0.0, %v10799_v0  ;;  %v10826_v12 = vadd.f32 %v10618_v46, %v1295_v63 }
 0x2b8   : > { %v10819_v31 = vpop.eup %8929  ;;  %8949 = vrcp.f32 %v1479_v44  ;;  %v10822_v5 = vmul.f32 %v8928_v34, %v10647_v28  ;;  %v1443_v17 = vmul.f32 1.442695, %v1386_v45  ;;  %v10830_v8 = vadd.f32 %v10618_v46, %v1311_v1  ;;  %v10833_v28 = vpop.permute.xlu0 %844 }
 0x2b9   : > { %15129 = vst [vmem:[#allocation79_spill] sm:$0xff] %v10816_v7  ;;  %v8932_v16 = vpop.eup %8931  ;;  %8951 = vrcp.f32 %v1472_v60  ;;  %15132 = vst [vmem:[#allocation82_spill] sm:$0xff] %v10833_v28  ;;  %v1297_v30 = vmul.f32 %v10604_v51, %v1259_v15  ;;  %v1385_v63 = vsub.f32 0.0, %v10805_v56  ;;  %v1380_v60 = vsub.f32 0.0, %v10811_v54  ;;  %v10838_v45 = vpop.permute.xlu1 %849 }
 0x2ba   : > { %15130 = vst [vmem:[#allocation80_spill] sm:$0xff] %v10822_v5  ;;  %v8934_v62 = vpop.eup %8933  ;;  %8953 = vrcp.f32 %v1473_v55  ;;  %15131 = vst [vmem:[#allocation81_spill] sm:$0xff] %v10830_v8  ;;  %v14923_v44 = vrot.slane %v10822_v5, 7  ;;  %v10841_v53 = vadd.f32 %v10618_v46, %v1296_v35  ;;  %v15134_v1 = vrot.slane %v10816_v7, 7 }
 0x2bb   : > { %v8936_v34 = vpop.eup %8935  ;;  %8955 = vrcp.f32 %v1474_v3  ;;  %15133 = vst [vmem:[#allocation83_spill] sm:$0xff] %v10838_v45  ;;  %v1451_v3 = vmul.f32 1.442695, %v1390_v40  ;;  %v1365_v11 = vsub.f32 0.0, %v10826_v12  ;;  %v1485_v54 = vadd.f32 1.0, %v8932_v16 }
 0x2bc   : > { %v8938_v55 = vpop.eup %8937  ;;  %v10848_v28 = vsel %vm1668_vm3, %v15134_v1, %v14923_v44  ;;  %8957 = vpow2.f32 %v1443_v17  ;;  %v1260_v35 = vmul.f32 %v10592_v58, %v10264_v21  ;;  %v1261_v45 = vmul.f32 %v10592_v58, %v10279_v24  ;;  %v10865_v21 = vpop.permute.xlu0 %672 }
 0x2bd   : > { %15135 = vst [vmem:[#allocation84_spill] sm:$0xff] %v10848_v28  ;;  %v8940_v56 = vpop.eup %8939  ;;  %v14926_v48 = vrot.slane %v10822_v5, 1  ;;  %v1487_v47 = vadd.f32 1.0, %v8934_v62  ;;  %v1488_v1 = vadd.f32 1.0, %v8936_v34  ;;  %v10858_v44 = vadd.f32 %v10618_v46, %v1297_v30  ;;  %15136 = vst [vmem:[#allocation85_spill] sm:$0xff] %v10865_v21 }
 0x2be   : > { %v8942_v50 = vpop.eup %8941  ;;  %v1441_v15 = vmul.f32 1.442695, %v1385_v63  ;;  %8959 = vrcp.f32 %v1485_v54  ;;  %v1457_v17 = vadd.f32 1.0, %v8938_v55  ;;  %v1366_v16 = vsub.f32 0.0, %v10841_v53  ;;  %v10874_v63 = vpop.permute.xlu1 %677 }
 0x2bf   : > { %v10860_v40 = vpop.eup %8943  ;;  %8961 = vpow2.f32 %v1451_v3  ;;  %v15137_v24 = vrot.slane %v10816_v7, 1  ;;  %v1458_v30 = vadd.f32 1.0, %v8940_v56  ;;  %v1401_v34 = vmul.f32 1.442695, %v1365_v11  ;;  %15138 = vst [vmem:[#allocation86_spill] sm:$0xff] %v10874_v63 }
 0x2c0   : > { %v10863_v28 = vpop.eup %8945  ;;  %8963 = vrcp.f32 %v1487_v47  ;;  %v1459_v54 = vadd.f32 1.0, %v8942_v50  ;;  %v1298_v55 = vmul.f32 %v10604_v51, %v1260_v35  ;;  %v1299_v3 = vmul.f32 %v10604_v51, %v1261_v45 }
 0x2c1   : > { %v10872_v62 = vsel %vm1860_vm2, %v15137_v24, %v14926_v48  ;;  %v8948_v43 = vpop.eup %8947  ;;  %8965 = vrcp.f32 %v1488_v1  ;;  %v1367_v21 = vsub.f32 0.0, %v10858_v44  ;;  %v1262_v24 = vmul.f32 %v10592_v58, %v10294_v27 }
 0x2c2   : > { %v10878_v10 = vpop.eup %8949  ;;  %v1263_v56 = vmul.f32 %v10592_v58, %v10309_v33  ;;  %8967 = vrcp.f32 %v1457_v17  ;;  %v1403_v47 = vmul.f32 1.442695, %v1366_v16  ;;  %v10888_v50 = vadd.f32 %v10618_v46, %v1298_v55  ;;  %v10903_v55 = vpop.permute.xlu0 %854 }
 0x2c3   : > { %15139 = vst [vmem:[#allocation87_spill] sm:$0xff] %v10878_v10  ;;  %v10885_v11 = vpop.eup %8951  ;;  %v10891_v45 = vadd.f32 %v10618_v46, %v1299_v3  ;;  %8969 = vrcp.f32 %v1458_v30  ;;  %v1460_v1 = vadd.f32 1.0, %v8948_v43  ;;  %v1300_v48 = vmul.f32 %v10604_v51, %v1262_v24  ;;  %15143 = vst [vmem:[#allocation91_spill] sm:$0xff] %v10903_v55  ;;  %v10912_v10 = vpop.permute.xlu1 %859 }
 0x2c4   : > { %15140 = vst [vmem:[#allocation88_spill] sm:$0xff] %v10885_v11  ;;  %v10893_v35 = vpop.eup %8953  ;;  %v1301_v27 = vmul.f32 %v10604_v51, %v1263_v56  ;;  %8971 = vrcp.f32 %v1459_v54  ;;  %v1368_v33 = vsub.f32 0.0, %v10888_v50  ;;  %v1264_v16 = vmul.f32 %v10592_v58, %v10324_v37  ;;  %15144 = vst [vmem:[#allocation92_spill] sm:$0xff] %v10912_v10 }
 0x2c5   : > { %15141 = vst [vmem:[#allocation89_spill] sm:$0xff] %v10893_v35  ;;  %v10897_v63 = vpop.eup %8955  ;;  %v1369_v17 = vsub.f32 0.0, %v10891_v45  ;;  %8973 = vpow2.f32 %v1401_v34  ;;  %v1405_v3 = vmul.f32 1.442695, %v1367_v21  ;;  %v10906_v43 = vadd.f32 %v10618_v46, %v1300_v48 }
 0x2c6   : > { %15142 = vst [vmem:[#allocation90_spill] sm:$0xff] %v10897_v63  ;;  %v10909_v30 = vadd.f32 %v10618_v46, %v1301_v27  ;;  %v8958_v24 = vpop.eup %8957  ;;  %8975 = vpow2.f32 %v1441_v15  ;;  %v1381_v54 = vsub.f32 0.0, %v10830_v8  ;;  %v1431_v56 = vmul.f32 1.442695, %v1380_v60  ;;  %v10923_v7 = vpop.permute.xlu0 %864 }
 0x2c7   : > { %8977 = vrcp.f32 %v1460_v1  ;;  %v1407_v63 = vmul.f32 1.442695, %v1368_v33  ;;  %v1370_v37 = vsub.f32 0.0, %v10906_v43  ;;  %v1409_v48 = vmul.f32 1.442695, %v1369_v17  ;;  %15146 = vst [vmem:[#allocation94_spill] sm:$0xff] %v10923_v7 }
 0x2c8   : > { %v1371_v58 = vsub.f32 0.0, %v10909_v30  ;;  %v8960_v21 = vpop.eup %8959  ;;  %8979 = vpow2.f32 %v1403_v47  ;;  %v1302_v34 = vmul.f32 %v10604_v51, %v1264_v16  ;;  %v1433_v11 = vmul.f32 1.442695, %v1381_v54  ;;  %v10925_v51 = vpop.permute.xlu1 %869 }
 0x2c9   : > { %v8962_v27 = vpop.eup %8961  ;;  %8981 = vpow2.f32 %v1405_v3  ;;  %v1411_v35 = vmul.f32 1.442695, %v1370_v37  ;;  %v10918_v1 = vmul.f32 %v8960_v21, %v10730_v57  ;;  %v1482_v17 = vadd.f32 1.0, %v8958_v24  ;;  %15147 = vst [vmem:[#allocation95_spill] sm:$0xff] %v10925_v51 }
 0x2ca   : > { %v8964_v15 = vpop.eup %8963  ;;  %8983 = vpow2.f32 %v1431_v56  ;;  %v1413_v8 = vmul.f32 1.442695, %v1371_v58  ;;  %v10931_v3 = vadd.f32 %v10618_v46, %v1302_v34  ;;  %v1486_v57 = vadd.f32 1.0, %v8962_v27 }
 0x2cb   : > { %v8966_v60 = vpop.eup %8965  ;;  %15145 = vst [vmem:[#allocation93_spill] sm:$0xff] %v10918_v1  ;;  %v10921_v33 = vmul.f32 %v8964_v15, %v10733_v52  ;;  %8985 = vpow2.f32 %v1407_v63  ;;  %v10936_v63 = vmul.f32 %v10819_v31, %v10629_v38  ;;  %v10939_v24 = vadd.f32 1.0, %v10802_v59 }
 0x2cc   : > { %v8968_v47 = vpop.eup %8967  ;;  %v10928_v16 = vmul.f32 %v8966_v60, %v10737_v4  ;;  %8987 = vpow2.f32 %v1409_v48  ;;  %v10944_v46 = vmul.f32 %v10860_v40, %v10654_v25  ;;  %v14939_v58 = vrot.slane %v10918_v1, 1  ;;  %v10958_v40 = vpop.permute.xlu0 %682 }
 0x2cd   : > { %v8970_v54 = vpop.eup %8969  ;;  %v14931_v56 = vrot.slane %v10921_v33, 7  ;;  %8989 = vpow2.f32 %v1411_v35  ;;  %v14935_v4 = vrot.slane %v10921_v33, 1  ;;  %v1553_v38 = vmul.f32 %v8968_v47, %v10742_v42  ;;  %15149 = vst [vmem:[#allocation97_spill] sm:$0xff] %v10958_v40  ;;  %v10968_v27 = vpop.permute.xlu1 %687 }
 0x2ce   : > { %15148 = vst [vmem:[#allocation96_spill] sm:$0xff] %v10928_v16  ;;  %v8972_v52 = vpop.eup %8971  ;;  %8991 = vpow2.f32 %v1413_v8  ;;  %v1635_v35 = vrot.slane %v10928_v16, 7  ;;  %v1922_v31 = vrot.slane %v10928_v16, 1  ;;  %v1372_v59 = vsub.f32 0.0, %v10931_v3  ;;  %15150 = vst [vmem:[#allocation98_spill] sm:$0xff] %v10968_v27 }
 0x2cf   : > { %v8974_v37 = vpop.eup %8973  ;;  %8993 = vpow2.f32 %v1433_v11  ;;  %v1554_v11 = vmul.f32 %v8970_v54, %v10751_v2  ;;  %v10962_v48 = vmul.f32 %v8972_v52, %v10766_v26  ;;  %v10966_v42 = vmul.f32 %v10872_v62, %v10903_v55 }
 0x2d0   : > { %v10948_v21 = vpop.eup %8975  ;;  %8995 = vrcp.f32 %v1482_v17  ;;  %v10956_v25 = vsel %vm1668_vm3, %v14931_v56, %v1635_v35  ;;  %v1861_v15 = vrot.slane %v1553_v38, 1  ;;  %v1923_v60 = vsel %vm1860_vm2, %v14935_v4, %v1922_v31 }
 0x2d1   : > { %v8978_v8 = vpop.eup %8977  ;;  %8997 = vrcp.f32 %v1486_v57  ;;  %v1461_v47 = vadd.f32 1.0, %v8974_v37  ;;  %v15151_v2 = vrot.slane %v10822_v5, 1  ;;  %v1670_v54 = vrot.slane %v1554_v11, 7 }
 0x2d2   : > { %v8980_v34 = vpop.eup %8979  ;;  %v1828_v57 = vpack.c.bf16 %v1554_v11, %v1553_v38  ;;  %v1862_v52 = vrot.slane %v1554_v11, 1  ;;  %v1957_v56 = vsel %vm1860_vm2, %v1922_v31, %v1861_v15  ;;  %v1864_v55 = vrot.slane %v10962_v48, 1 }
 0x2d3   : > { %v8982_v17 = vpop.eup %8981  ;;  %v1917_v26 = vsel %vm1860_vm2, %v15151_v2, %v14939_v58  ;;  %8999 = vrcp.f32 %v1461_v47  ;;  %v1415_v51 = vmul.f32 1.442695, %v1372_v59  ;;  %v10984_v7 = vmul.f32 %v8978_v8, %v10779_v39  ;;  %v10991_v59 = vpop.permute.xlu0 %874 }
 0x2d4   : > { %v10978_v62 = vpop.eup %8983  ;;  %2252 = vmatprep.mubr.bf16.mxu0 %v1828_v57  ;;  %v1863_v37 = vsel %vm1860_vm2, %v1861_v15, %v1862_v52  ;;  %v1669_v1 = vrot.slane %v1553_v38, 7  ;;  %v1462_v2 = vadd.f32 1.0, %v8980_v34  ;;  %v10987_v11 = vmul.f32 %v1917_v26, %v10912_v10  ;;  %15152 = vst [vmem:[#allocation99_spill] sm:$0xff] %v10991_v59  ;;  %v10996_v8 = vpop.permute.xlu1 %879 }
 0x2d5   : > { %v8986_v4 = vpop.eup %8985  ;;  %v1865_v16 = vsel %vm1860_vm2, %v1862_v52, %v1864_v55  ;;  %v1958_v31 = vmul.f32 %v1863_v37, %v10531_v32  ;;  %v1463_v5 = vadd.f32 1.0, %v8982_v17  ;;  %15153 = vst [vmem:[#allocation100_spill] sm:$0xff] %v10996_v8  ;;  %v10999_v34 = vmul.f32 %v1923_v60, %v10991_v59 }
 0x2d6   : > { %v8988_v58 = vpop.eup %8987  ;;  %v1959_v57 = vmul.f32 %v1865_v16, %v10533_v20  ;;  %v1671_v15 = vsel %vm1668_vm3, %v1669_v1, %v1670_v54  ;;  %v1763_v39 = vsel %vm1668_vm3, %v1635_v35, %v1669_v1  ;;  %9001 = vrcp.f32 %v1462_v2 }
 0x2d7   : > { %v8990_v47 = vpop.eup %8989  ;;  %v1764_v26 = vmul.f32 %v1763_v39, %v10445_v13  ;;  %v1765_v17 = vmul.f32 %v1671_v15, %v10464_v23  ;;  %9003 = vrcp.f32 %v1463_v5  ;;  %v11004_v37 = vmul.f32 %v1957_v56, %v10996_v8 }
 0x2d8   : > { %v8992_v38 = vpop.eup %8991  ;;  %v1990_v16 = vpack.c.bf16 %v1959_v57, %v1958_v31  ;;  %v1866_v10 = vrot.slane %v10984_v7, 1  ;;  %v1464_v1 = vadd.f32 1.0, %v8986_v4  ;;  %v1465_v20 = vadd.f32 1.0, %v8988_v58  ;;  %v15160_v58 = vld [vmem:[#allocation24_spill] sm:$0xff] }
 0x2d9   : > { %v8994_v52 = vpop.eup %8993  ;;  %v1796_v2 = vpack.c.bf16 %v1765_v17, %v1764_v26  ;;  %v1672_v32 = vrot.slane %v10962_v48, 7  ;;  %v1674_v60 = vrot.slane %v10984_v7, 7  ;;  %v1829_v5 = vpack.c.bf16 %v10984_v7, %v10962_v48 }
 0x2da   : > { %v8996_v35 = vpop.eup %8995  ;;  %8430 = vmatprep.mubr.bf16.mxu1 %v1990_v16  ;;  %9005 = vrcp.f32 %v1464_v1  ;;  %v1466_v15 = vadd.f32 1.0, %v8990_v47  ;;  %v1467_v56 = vadd.f32 1.0, %v8992_v38  ;;  %v11017_v57 = vmul.f32 %v10863_v28, %v10668_v61 }
 0x2db   : > { %v8998_v59 = vpop.eup %8997  ;;  %2253 = vmatmul.mubr.bf16.vlgmr.msra.gmra.mrb[0].mxu0 %v1796_v2  ;;  %9007 = vrcp.f32 %v1465_v20  ;;  %v1673_v31 = vsel %vm1668_vm3, %v1670_v54, %v1672_v32  ;;  %v1675_v4 = vsel %vm1668_vm3, %v1672_v32, %v1674_v60  ;;  %v1867_v54 = vsel %vm1860_vm2, %v1864_v55, %v1866_v10  ;;  %v15159_v32 = vld [vmem:[#allocation23_spill] sm:$0xff] }
 0x2dc   : > { %2260 = vmatprep.mubr.bf16.mxu0 %v1829_v5  ;;  %9009 = vrcp.f32 %v1466_v15  ;;  %v1766_v7 = vmul.f32 %v1673_v31, %v10450_v14  ;;  %v1767_v48 = vmul.f32 %v1675_v4, %v10469_v41  ;;  %v1886_v47 = vrot.slane %v10936_v63, 1  ;;  %v15190_v41 = vld [vmem:[#allocation28_spill] sm:$0xff] }
 0x2dd   : > { %v9000_v39 = vpop.eup %8999  ;;  %9011 = vrcp.f32 %v1467_v56  ;;  %v14954_v61 = vrot.slane %v10944_v46, 1  ;;  %v11028_v28 = vadd.f32 1.0, %v10786_v36  ;;  %v14955_v26 = vrot.slane %v11017_v57, 1 }
 0x2de   : > { %v1557_v20 = vmul.f32 %v9000_v39, %v10826_v12  ;;  %9013 = vpow2.f32 %v1415_v51  ;;  %v11033_v12 = vadd.f32 1.0, %v10978_v62  ;;  %v11035_v16 = vadd.f32 1.0, %v8994_v52 }
 0x2df   : > { %9015 = vrcp.f32 %v10939_v24  ;;  %v1960_v1 = vmul.f32 %v1867_v54, %v10557_v6  ;;  %v1797_v5 = vpack.c.bf16 %v1767_v48, %v1766_v7  ;;  %v11040_v36 = vmul.f32 %v8996_v35, %v10789_v29 }
 0x2e0   : > { %v9002_v38 = vpop.eup %9001  ;;  %v1868_v55 = vrot.slane %v1557_v20, 1  ;;  %v1676_v51 = vrot.slane %v1557_v20, 7  ;;  %v11047_v54 = vmul.f32 %v8998_v59, %v10799_v0  ;;  %v1692_v14 = vrot.slane %v11017_v57, 7 }
 0x2e1   : > { %v9004_v17 = vpop.eup %9003  ;;  %v1558_v2 = vmul.f32 %v9002_v38, %v10841_v53 }
 0x2e2   : > { %v1869_v24 = vsel %vm1860_vm2, %v1866_v10, %v1868_v55  ;;  %v1559_v15 = vmul.f32 %v9004_v17, %v10858_v44  ;;  %v1677_v62 = vsel %vm1668_vm3, %v1674_v60, %v1676_v51 }
 0x2e3   : > { %v1961_v56 = vmul.f32 %v1869_v24, %v10560_v9  ;;  %v1870_v31 = vrot.slane %v1558_v2, 1  ;;  %2261 = vmatmul.mubr.bf16.gmra.mrb[4].mxu0 %v1797_v5  ;;  %v1830_v52 = vpack.c.bf16 %v1558_v2, %v1557_v20  ;;  %v1678_v4 = vrot.slane %v1558_v2, 7 }
 0x2e4   : > { %v9006_v39 = vpop.eup %9005  ;;  %v1872_v53 = vrot.slane %v1559_v15, 1  ;;  %v1768_v29 = vmul.f32 %v1677_v62, %v10471_v18  ;;  %v1680_v35 = vrot.slane %v1559_v15, 7  ;;  %v15185_v18 = vld [vmem:[#allocation61_spill] sm:$0xff] }
 0x2e5   : > { %v9008_v7 = vpop.eup %9007  ;;  %v1991_v10 = vpack.c.bf16 %v1961_v56, %v1960_v1  ;;  %v1871_v44 = vsel %vm1860_vm2, %v1868_v55, %v1870_v31  ;;  %v11052_v60 = vmul.f32 %v9006_v39, %v10888_v50  ;;  %2268 = vmatprep.mubr.bf16.mxu0 %v1830_v52  ;;  %v1679_v48 = vsel %vm1668_vm3, %v1676_v51, %v1678_v4 }
 0x2e6   : > { %v9010_v20 = vpop.eup %9009  ;;  %v1873_v38 = vsel %vm1860_vm2, %v1870_v31, %v1872_v53  ;;  %v1962_v0 = vmul.f32 %v1871_v44, %v10562_v19  ;;  %v11058_v59 = vmul.f32 %v9008_v7, %v10891_v45  ;;  %v1769_v17 = vmul.f32 %v1679_v48, %v10473_v22  ;;  %v11075_v31 = vld [vmem:[%s14846_s1] sm:$0xff]  }
 0x2e7   : > { %v9012_v2 = vpop.eup %9011  ;;  %8431 = vmatmul.mubr.bf16.vlgmr.msra.gmra.mrb[8].mxu1 %v1991_v10  ;;  %v1963_v55 = vmul.f32 %v1873_v38, %v10564_v49  ;;  %v1874_v50 = vrot.slane %v11052_v60, 1  ;;  %v11064_v1 = vmul.f32 %v9010_v20, %v10906_v43  ;;  %v1831_v51 = vpack.c.bf16 %v11052_v60, %v1559_v15  ;;  %v15156_v38 = vld [vmem:[#allocation44_spill] sm:$0xff]  ;;  %v15184_v22 = vld [vmem:[#allocation87_spill] sm:$0xff]  ;;  %v15200_v49 = vld [vmem:[#allocation30_spill] sm:$0xff] }
 0x2e8   : > { %v9014_v5 = vpop.eup %9013  ;;  %v1876_v24 = vrot.slane %v11058_v59, 1  ;;  %v11069_v62 = vmul.f32 %v9012_v2, %v10909_v30  ;;  %v1798_v45 = vpack.c.bf16 %v1769_v17, %v1768_v29  ;;  %v1681_v56 = vsel %vm1668_vm3, %v1678_v4, %v1680_v35  ;;  %8463 = vmatpush3.bf16.msra.mxu1 %v11075_v31  ;;  %v15155_v29 = vld [vmem:[#allocation43_spill] sm:$0xff] }
 0x2e9   : > { %v9016_v43 = vpop.eup %9015  ;;  %v1992_v52 = vpack.c.bf16 %v1963_v55, %v1962_v0  ;;  %v1875_v15 = vsel %vm1860_vm2, %v1872_v53, %v1874_v50  ;;  %v1878_v39 = vrot.slane %v11064_v1, 1  ;;  %v1468_v7 = vadd.f32 1.0, %v9014_v5  ;;  %v15157_v55 = vld [vmem:[#allocation45_spill] sm:$0xff] }
 0x2ea   : > { %v15154_v10 = vmov 0.0   ;;  %v1877_v30 = vsel %vm1860_vm2, %v1874_v50, %v1876_v24  ;;  %v1964_v4 = vmul.f32 %v1875_v15, %v15155_v29  ;;  %v14956_v44 = vrot.slane %v11069_v62, 1  ;;  %v15158_v15 = vld [vmem:[#allocation46_spill] sm:$0xff] }
 0x2eb   : > { %8464 = vmatprep.subr.bf16.mxu1 %v15154_v10  ;;  %v1682_v48 = vrot.slane %v11052_v60, 7  ;;  %v14952_v20 = vrot.slane %v11040_v36, 7  ;;  %8434 = vmatprep.mubr.bf16.mxu1 %v1992_v52  ;;  %v1965_v0 = vmul.f32 %v1877_v30, %v15156_v38  ;;  %v1879_v53 = vsel %vm1860_vm2, %v1876_v24, %v1878_v39  ;;  %v15188_v29 = vld [vmem:[#allocation78_spill] sm:$0xff] }
 0x2ec   : > { %9017 = vrcp.f32 %v1468_v7  ;;  %2269 = vmatmul.mubr.bf16.gmra.mrb[8].mxu0 %v1798_v45  ;;  %v14953_v17 = vrot.slane %v11047_v54, 7  ;;  %v1881_v2 = vsel %vm1860_vm2, %v1878_v39, %v14956_v44  ;;  %v1966_v50 = vmul.f32 %v1879_v53, %v15157_v55  ;;  %v11100_v45 = vld [vmem:[%s14846_s1 + $0x8] sm:$0xff]   ;;  %v15161_v7 = vld [vmem:[#allocation74_spill] sm:$0xff] }
 0x2ed   : > { %2276 = vmatprep.mubr.bf16.mxu0 %v1831_v51  ;;  %v1683_v60 = vsel %vm1668_vm3, %v1680_v35, %v1682_v48  ;;  %v1993_v5 = vpack.c.bf16 %v1965_v0, %v1964_v4  ;;  %v1967_v52 = vmul.f32 %v1881_v2, %v15158_v15  ;;  %v1770_v30 = vmul.f32 %v1681_v56, %v15159_v32  ;;  %v15162_v0 = vld [vmem:[#allocation79_spill] sm:$0xff] }
 0x2ee   : > { %v1771_v24 = vmul.f32 %v1683_v60, %v15160_v58  ;;  %8465 = vmatpush3.bf16.msra.mxu1 %v11100_v45  ;;  %9019 = vrcp.f32 %v11028_v28  ;;  %v1684_v51 = vrot.slane %v11058_v59, 7  ;;  %v1686_v35 = vrot.slane %v11064_v1, 7 }
 0x2ef   : > { %8466 = vmatprep.subr.bf16.mxu1 %v15154_v10  ;;  %8435 = vmatmul.mubr.bf16.gmra.mrb[12].mxu1 %v1993_v5  ;;  %v1994_v39 = vpack.c.bf16 %v1967_v52, %v1966_v50  ;;  %v1889_v56 = vsel %vm1860_vm2, %v1886_v47, %v14954_v61  ;;  %v1480_v4 = vadd.f32 1.0, %v15161_v7  ;;  %9021 = vrcp.f32 %v11033_v12  ;;  %v15165_v5 = vld [vmem:[#allocation62_spill] sm:$0xff]  ;;  %v15166_v52 = vld [vmem:[#allocation88_spill] sm:$0xff] }
 0x2f0   : > { %v15163_v28 = vrot.slane %v15162_v0, 7  ;;  %v1887_v2 = vsel %vm1860_vm2, %v14955_v26, %v1886_v47  ;;  %9023 = vrcp.f32 %v11035_v16  ;;  %v15164_v50 = vrot.slane %v10921_v33, 7  ;;  %v11141_v16 = vld [vmem:[%s14846_s1 + $0x10] sm:$0xff]   ;;  %v15174_v26 = vld [vmem:[#allocation67_spill] sm:$0xff] }
 0x2f1   : > { %8438 = vmatprep.mubr.bf16.mxu1 %v1994_v39  ;;  %v1799_v60 = vpack.c.bf16 %v1771_v24, %v1770_v30  ;;  %v11132_v7 = vmul.f32 %v15166_v52, %v15165_v5  ;;  %v1687_v47 = vsel %vm1668_vm3, %v1684_v51, %v1686_v35  ;;  %v15167_v39 = vld [vmem:[#allocation64_spill] sm:$0xff]  ;;  %v15168_v30 = vld [vmem:[#allocation89_spill] sm:$0xff]  ;;  %9025 = vrcp.f32 %v1480_v4 }
 0x2f2   : > { %v1721_v53 = vsel %vm1668_vm3, %v14952_v20, %v15163_v28  ;;  %v1729_v12 = vsel %vm1668_vm3, %v14953_v17, %v15164_v50  ;;  %v1832_v28 = vpack.c.bf16 %v11064_v1, %v11058_v59  ;;  %v1685_v20 = vsel %vm1668_vm3, %v1682_v48, %v1684_v51  ;;  %8467 = vmatpush3.bf16.msra.mxu1 %v11141_v16  ;;  %v15169_v5 = vld [vmem:[#allocation73_spill] sm:$0xff]  ;;  %v15170_v52 = vld [vmem:[#allocation84_spill] sm:$0xff]  ;;  %v15172_v51 = vld [vmem:[#allocation66_spill] sm:$0xff] }
 0x2f3   : > { %v11146_v24 = vmul.f32 %v15168_v30, %v15167_v39  ;;  %v1481_v50 = vadd.f32 1.0, %v10948_v21  ;;  %v11151_v59 = vmul.f32 %v15170_v52, %v15169_v5  ;;  %v15171_v1 = vld [vmem:[#allocation72_spill] sm:$0xff]  ;;  %v15173_v17 = vld [vmem:[#allocation90_spill] sm:$0xff]  ;;  %v11161_v44 = vmul.f32 %v9016_v43, %v15174_v26  ;;  %8468 = vmatprep.subr.bf16.mxu1 %v15154_v10  ;;  %v15178_v43 = vld [vmem:[#allocation51_spill] sm:$0xff] }
 0x2f4   : > { %v11154_v48 = vmul.f32 %v1721_v53, %v15171_v1  ;;  %2277 = vmatmul.mubr.bf16.gmra.mrb[12].mxu0 %v1799_v60  ;;  %v11158_v61 = vmul.f32 %v15173_v17, %v15172_v51  ;;  %v11164_v39 = vmul.f32 %v1729_v12, %v10958_v40  ;;  %v11168_v30 = vmul.f32 %v10956_v25, %v10968_v27  ;;  %v15175_v53 = vld [vmem:[#allocation25_spill] sm:$0xff]  ;;  %v15176_v60 = vld [vmem:[#allocation26_spill] sm:$0xff]  ;;  %v15177_v17 = vld [vmem:[#allocation52_spill] sm:$0xff] }
 0x2f5   : > { %2284 = vmatprep.mubr.bf16.mxu0 %v1832_v28  ;;  %v1772_v52 = vmul.f32 %v1685_v20, %v15175_v53  ;;  %v1773_v4 = vmul.f32 %v1687_v47, %v15176_v60  ;;  %v1688_v5 = vrot.slane %v11069_v62, 7  ;;  %v1971_v26 = vmul.f32 %v1889_v56, %v15177_v17  ;;  %v15179_v28 = vld [vmem:[#allocation80_spill] sm:$0xff]  ;;  %v11184_v25 = vld [vmem:[%s14846_s1 + $0x18] sm:$0xff]  }
 0x2f6   : > { %v9018_v21 = vpop.eup %9017  ;;  %v1970_v51 = vmul.f32 %v1887_v2, %v15178_v43  ;;  %8469 = vmatpush3.bf16.msra.mxu1 %v11184_v25  ;;  %v1890_v20 = vrot.slane %v11132_v7, 1  ;;  %v1892_v47 = vrot.slane %v11146_v24, 1  ;;  %9027 = vrcp.f32 %v1481_v50  ;;  %v15180_v17 = vld [vmem:[#allocation96_spill] sm:$0xff]  ;;  %v15183_v50 = vld [vmem:[#allocation59_spill] sm:$0xff] }
 0x2f7   : > { %v11177_v12 = vmul.f32 %v9018_v21, %v10931_v3  ;;  %8470 = vmatprep.subr.bf16.mxu1 %v15154_v10  ;;  %v1894_v2 = vrot.slane %v11158_v61, 1  ;;  %v1896_v21 = vrot.slane %v11161_v44, 1  ;;  %v1800_v1 = vpack.c.bf16 %v1773_v4, %v1772_v52  ;;  %v11213_v4 = vld [vmem:[%s14846_s1 + $0x20] sm:$0xff]  }
 0x2f8   : > { %v9020_v3 = vpop.eup %9019  ;;  %v1689_v8 = vsel %vm1668_vm3, %v1686_v35, %v1688_v5  ;;  %v15181_v60 = vrot.slane %v11069_v62, 1  ;;  %v15182_v58 = vrot.slane %v11017_v57, 1 }
 0x2f9   : > { %v1882_v40 = vrot.slane %v11177_v12, 1  ;;  %v1690_v27 = vrot.slane %v11177_v12, 7  ;;  %v9022_v43 = vpop.eup %9021  ;;  %v1833_v52 = vpack.c.bf16 %v11177_v12, %v11069_v62  ;;  %v11221_v15 = vmul.f32 %v9020_v3, %v15185_v18  ;;  %v15187_v62 = vld [vmem:[#allocation50_spill] sm:$0xff]  ;;  %v15189_v18 = vld [vmem:[#allocation27_spill] sm:$0xff] }
 0x2fa   : > { %8471 = vmatpush3.bf16.msra.mxu1 %v11213_v4  ;;  %v9024_v56 = vpop.eup %9023  ;;  %v1897_v55 = vsel %vm1860_vm2, %v1894_v2, %v1896_v21  ;;  %v1895_v38 = vsel %vm1860_vm2, %v1892_v47, %v1894_v2  ;;  %v1774_v3 = vmul.f32 %v1689_v8, %v15189_v18  ;;  %v11242_v2 = vld [vmem:[%s14846_s1 + $0x28] sm:$0xff]  }
 0x2fb   : > { %v1883_v53 = vsel %vm1860_vm2, %v15181_v60, %v1882_v40  ;;  %v1885_v32 = vsel %vm1860_vm2, %v1882_v40, %v15182_v58  ;;  %v1691_v35 = vsel %vm1668_vm3, %v1688_v5, %v1690_v27  ;;  %v11218_v60 = vmul.f32 %v15184_v22, %v15183_v50  ;;  %v15186_v40 = vld [vmem:[#allocation49_spill] sm:$0xff]  ;;  %8472 = vmatprep.subr.bf16.mxu1 %v15154_v10  ;;  %v15192_v8 = vld [vmem:[#allocation56_spill] sm:$0xff] }
 0x2fc   : > { %v1968_v58 = vmul.f32 %v1883_v53, %v15186_v40  ;;  %v1969_v12 = vmul.f32 %v1885_v32, %v15187_v62  ;;  %2285 = vmatmul.mubr.bf16.gmra.mrb[16].mxu0 %v1800_v1  ;;  %v1893_v5 = vsel %vm1860_vm2, %v1890_v20, %v1892_v47  ;;  %v11230_v22 = vmul.f32 %v9022_v43, %v15188_v29  ;;  %v9026_v40 = vpop.eup %9025  ;;  %v15191_v32 = vld [vmem:[#allocation81_spill] sm:$0xff] }
 0x2fd   : > { %2292 = vmatprep.mubr.bf16.mxu0 %v1833_v52  ;;  %v1775_v53 = vmul.f32 %v1691_v35, %v15190_v41  ;;  %v11235_v1 = vmul.f32 %v9024_v56, %v15191_v32  ;;  %v1996_v62 = vpack.c.bf16 %v1971_v26, %v1970_v51  ;;  %v1694_v47 = vrot.slane %v10936_v63, 7  ;;  %v15194_v35 = vld [vmem:[#allocation58_spill] sm:$0xff] }
 0x2fe   : > { %v1995_v50 = vpack.c.bf16 %v1969_v12, %v1968_v58  ;;  %8473 = vmatpush3.bf16.msra.mxu1 %v11242_v2  ;;  %v1973_v29 = vmul.f32 %v1893_v5, %v15192_v8  ;;  %v15193_v43 = vrot.slane %v10944_v46, 1  ;;  %v1902_v51 = vrot.slane %v11221_v15, 1  ;;  %v15195_v12 = vld [vmem:[#allocation57_spill] sm:$0xff] }
 0x2ff   : > { %8474 = vmatprep.subr.bf16.mxu1 %v15154_v10  ;;  %v1904_v56 = vrot.slane %v11218_v60, 1  ;;  %v1975_v58 = vmul.f32 %v1897_v55, %v15194_v35  ;;  %v1974_v32 = vmul.f32 %v1895_v38, %v15195_v12  ;;  %v1801_v41 = vpack.c.bf16 %v1775_v53, %v1774_v3  ;;  %v15196_v38 = vld [vmem:[#allocation55_spill] sm:$0xff]  ;;  %v15197_v3 = vld [vmem:[#allocation60_spill] sm:$0xff]  ;;  %v15199_v12 = vld [vmem:[#allocation29_spill] sm:$0xff] }
 0x300   : > { %8439 = vmatmul.mubr.bf16.gmra.mrb[16].mxu1 %v1995_v50  ;;  %v1891_v26 = vsel %vm1860_vm2, %v15193_v43, %v1890_v20  ;;  %v9028_v52 = vpop.eup %9027  ;;  %v1898_v50 = vrot.slane %v11230_v22, 1  ;;  %v1900_v18 = vrot.slane %v11235_v1, 1  ;;  %v1834_v5 = vpack.c.bf16 %v10936_v63, %v11017_v57  ;;  %v15198_v63 = vld [vmem:[#allocation76_spill] sm:$0xff] }
 0x301   : > { %8442 = vmatprep.mubr.bf16.mxu1 %v1996_v62  ;;  %v1693_v20 = vsel %vm1668_vm3, %v1690_v27, %v1692_v14  ;;  %v1695_v43 = vsel %vm1668_vm3, %v1692_v14, %v1694_v47  ;;  %v11263_v62 = vld [vmem:[%s14846_s1 + $0x30] sm:$0xff]   ;;  %v1972_v55 = vmul.f32 %v1891_v26, %v15196_v38  ;;  %v11269_v53 = vmul.f32 %v9026_v40, %v15197_v3 }
 0x302   : > { %8475 = vmatpush3.bf16.msra.mxu1 %v11263_v62  ;;  %v11272_v57 = vmul.f32 %v9028_v52, %v15198_v63  ;;  %v1905_v14 = vsel %vm1860_vm2, %v1902_v51, %v1904_v56  ;;  %v1899_v27 = vsel %vm1860_vm2, %v1896_v21, %v1898_v50  ;;  %v1776_v8 = vmul.f32 %v1693_v20, %v15199_v12  ;;  %v11284_v52 = vld [vmem:[%s14846_s1 + $0x38] sm:$0xff]  }
 0x303   : > { %8476 = vmatprep.subr.bf16.mxu1 %v15154_v10  ;;  %v1997_v35 = vpack.c.bf16 %v1973_v29, %v1972_v55  ;;  %v1777_v19 = vmul.f32 %v1695_v43, %v15200_v49  ;;  %v1998_v26 = vpack.c.bf16 %v1975_v58, %v1974_v32  ;;  %v1696_v38 = vrot.slane %v10944_v46, 7  ;;  %v15201_v29 = vld [vmem:[#allocation71_spill] sm:$0xff]  ;;  %v15203_v43 = vld [vmem:[#allocation68_spill] sm:$0xff]  ;;  %v15204_v49 = vld [vmem:[#allocation70_spill] sm:$0xff] }
 0x304   : > { %2293 = vmatmul.mubr.bf16.gmra.mrb[20].mxu0 %v1801_v41  ;;  %v1901_v41 = vsel %vm1860_vm2, %v1898_v50, %v1900_v18  ;;  %v1698_v40 = vrot.slane %v11132_v7, 7  ;;  %v1903_v21 = vsel %vm1860_vm2, %v1900_v18, %v1902_v51  ;;  %v1906_v58 = vrot.slane %v11269_v53, 1  ;;  %v15202_v50 = vld [vmem:[#allocation69_spill] sm:$0xff] }
 0x305   : > { %2300 = vmatprep.mubr.bf16.mxu0 %v1834_v5  ;;  %v1979_v5 = vmul.f32 %v1905_v14, %v15201_v29  ;;  %v1908_v32 = vrot.slane %v11272_v57, 1  ;;  %v1977_v20 = vmul.f32 %v1901_v41, %v15202_v50  ;;  %v1976_v55 = vmul.f32 %v1899_v27, %v15203_v43  ;;  %v15207_v29 = vld [vmem:[#allocation32_spill] sm:$0xff]  ;;  %v15210_v50 = vld [vmem:[#allocation83_spill] sm:$0xff] }
 0x306   : > { %8477 = vmatpush3.bf16.msra.mxu1 %v11284_v52  ;;  %v1910_v3 = vrot.slane %v11040_v36, 1  ;;  %v1802_v63 = vpack.c.bf16 %v1777_v19, %v1776_v8  ;;  %v1978_v12 = vmul.f32 %v1903_v21, %v15204_v49  ;;  %v1835_v18 = vpack.c.bf16 %v11132_v7, %v10944_v46  ;;  %v15206_v8 = vld [vmem:[#allocation31_spill] sm:$0xff] }
 0x307   : > { %8482 = vmatprep.subr.bf16.mxu1 %v15154_v10  ;;  %v1697_v51 = vsel %vm1668_vm3, %v1694_v47, %v1696_v38  ;;  %v1909_v14 = vsel %vm1860_vm2, %v1906_v58, %v1908_v32  ;;  %v15205_v27 = vrot.slane %v15162_v0, 1  ;;  %v1999_v19 = vpack.c.bf16 %v1977_v20, %v1976_v55  ;;  %v15211_v20 = vld [vmem:[#allocation82_spill] sm:$0xff] }
 0x308   : > { %8443 = vmatmul.mubr.bf16.gmra.mrb[20].mxu1 %v1997_v35  ;;  %v1699_v35 = vsel %vm1668_vm3, %v1696_v38, %v1698_v40  ;;  %v1778_v21 = vmul.f32 %v1697_v51, %v15206_v8  ;;  %v1911_v46 = vsel %vm1860_vm2, %v1908_v32, %v1910_v3  ;;  %v2000_v7 = vpack.c.bf16 %v1979_v5, %v1978_v12 }
 0x309   : > { %8446 = vmatprep.mubr.bf16.mxu1 %v1998_v26  ;;  %v1907_v26 = vsel %vm1860_vm2, %v1904_v56, %v1906_v58  ;;  %v1913_v41 = vsel %vm1860_vm2, %v1910_v3, %v15205_v27  ;;  %v1779_v49 = vmul.f32 %v1699_v35, %v15207_v29  ;;  %v1700_v47 = vrot.slane %v11146_v24, 7  ;;  %v15209_v58 = vld [vmem:[#allocation77_spill] sm:$0xff] }
 0x30a   : > { %v1702_v38 = vrot.slane %v11158_v61, 7  ;;  %v1983_v27 = vmul.f32 %v1913_v41, %v15210_v50  ;;  %v1982_v55 = vmul.f32 %v1911_v46, %v15211_v20  ;;  %v1918_v35 = vrot.slane %v11047_v54, 1  ;;  %v15214_v41 = vld [vmem:[#allocation93_spill] sm:$0xff]  ;;  %v15220_v20 = vld [vmem:[#allocation42_spill] sm:$0xff] }
 0x30b   : > { %v1803_v51 = vpack.c.bf16 %v1779_v49, %v1778_v21  ;;  %v1836_v12 = vpack.c.bf16 %v11158_v61, %v11146_v24  ;;  %v1701_v5 = vsel %vm1668_vm3, %v1698_v40, %v1700_v47  ;;  %v15215_v50 = vrot.slane %v15214_v41, 1 }
 0x30c   : > { %2301 = vmatmul.mubr.bf16.gmra.mrb[24].mxu0 %v1802_v63  ;;  %v15208_v63 = vld [vmem:[#allocation75_spill] sm:$0xff]  ;;  %v1703_v32 = vsel %vm1668_vm3, %v1700_v47, %v1702_v38  ;;  %v2002_v21 = vpack.c.bf16 %v1983_v27, %v1982_v55  ;;  %v1704_v46 = vrot.slane %v11161_v44, 7  ;;  %v1706_v61 = vrot.slane %v11230_v22, 7  ;;  %v15217_v47 = vld [vmem:[#allocation94_spill] sm:$0xff]  ;;  %v15219_v55 = vld [vmem:[#allocation41_spill] sm:$0xff] }
 0x30d   : > { %2308 = vmatprep.mubr.bf16.mxu0 %v1835_v18  ;;  %v1980_v56 = vmul.f32 %v1907_v26, %v15208_v63  ;;  %v1981_v18 = vmul.f32 %v1909_v14, %v15209_v58  ;;  %v15212_v26 = vld [vmem:[#allocation35_spill] sm:$0xff]  ;;  %v15213_v14 = vld [vmem:[#allocation36_spill] sm:$0xff]  ;;  %v1919_v49 = vsel %vm1860_vm2, %v15215_v50, %v1918_v35  ;;  %v15216_v24 = vrot.slane %v10921_v33, 1 }
 0x30e   : > { %v1705_v50 = vsel %vm1668_vm3, %v1702_v38, %v1704_v46  ;;  %v1707_v27 = vsel %vm1668_vm3, %v1704_v46, %v1706_v61  ;;  %v15222_v46 = vld [vmem:[#allocation47_spill] sm:$0xff] }
 0x30f   : > { %v2001_v3 = vpack.c.bf16 %v1981_v18, %v1980_v56  ;;  %v1921_v40 = vsel %vm1860_vm2, %v1918_v35, %v15216_v24  ;;  %v1986_v56 = vmul.f32 %v1919_v49, %v15217_v47  ;;  %v1783_v35 = vmul.f32 %v1707_v27, %v15220_v20  ;;  %v15226_v27 = vld [vmem:[#allocation53_spill] sm:$0xff] }
 0x310   : > { %8447 = vmatmul.mubr.bf16.gmra.mrb[24].mxu1 %v1999_v19  ;;  %v1780_v19 = vmul.f32 %v1701_v5, %v15212_v26  ;;  %v1837_v5 = vpack.c.bf16 %v11230_v22, %v11161_v44  ;;  %v1838_v22 = vpack.c.bf16 %v11221_v15, %v11235_v1 }
 0x311   : > { %8450 = vmatprep.mubr.bf16.mxu1 %v2000_v7  ;;  %v1781_v7 = vmul.f32 %v1703_v32, %v15213_v14  ;;  %v1782_v32 = vmul.f32 %v1705_v50, %v15219_v55 }
 0x313   : > { %v1804_v18 = vpack.c.bf16 %v1781_v7, %v1780_v19  ;;  %v1708_v19 = vrot.slane %v11235_v1, 7  ;;  %v15221_v7 = vpack.c.bf16 %v10987_v11, %v10966_v42  ;;  %v1805_v44 = vpack.c.bf16 %v1783_v35, %v1782_v32 }
 0x314   : > { %2309 = vmatmul.mubr.bf16.gmra.mrb[28].mxu0 %v1803_v51  ;;  %v15218_v51 = vld [vmem:[#allocation95_spill] sm:$0xff]  ;;  %v1714_v42 = vrot.slane %v11269_v53, 7  ;;  %v15224_v11 = vpack.c.bf16 %v11004_v37, %v10999_v34  ;;  %v1716_v34 = vrot.slane %v11272_v57, 7  ;;  %v15227_v35 = vrot.slane %v11040_v36, 7 }
 0x315   : > { %2316 = vmatprep.mubr.bf16.mxu0 %v1836_v12  ;;  %v1987_v12 = vmul.f32 %v1921_v40, %v15218_v51  ;;  %v1709_v38 = vsel %vm1668_vm3, %v1706_v61, %v1708_v19  ;;  %v15223_v40 = vld [vmem:[#allocation48_spill] sm:$0xff] }
 0x316   : > { %v1784_v24 = vmul.f32 %v1709_v38, %v15222_v46  ;;  %v15230_v38 = vpack.c.bf16 %v15179_v28, %v15162_v0  ;;  %v15234_v0 = vld [vmem:[#allocation86_spill] sm:$0xff] }
 0x318   : > { %8451 = vmatmul.mubr.bf16.gmra.mrb[28].mxu1 %v2001_v3  ;;  %v1710_v3 = vrot.slane %v11221_v15, 7 }
 0x319   : > { %8454 = vmatprep.mubr.bf16.mxu1 %v2002_v21  ;;  %v2004_v21 = vpack.c.bf16 %v1987_v12, %v1986_v56  ;;  %v1839_v12 = vpack.c.bf16 %v11269_v53, %v11218_v60 }
 0x31a   : > { %v1711_v49 = vsel %vm1668_vm3, %v1708_v19, %v1710_v3  ;;  %v1717_v19 = vsel %vm1668_vm3, %v1714_v42, %v1716_v34 }
 0x31b   : > { %v1785_v56 = vmul.f32 %v1711_v49, %v15223_v40  ;;  %v1724_v49 = vrot.slane %v15214_v41, 7 }
 0x31c   : > { %2317 = vmatmul.mubr.bf16.gmra.mrb[32].mxu0 %v1804_v18  ;;  %v1712_v18 = vrot.slane %v11218_v60, 7  ;;  %v15228_v60 = vld [vmem:[#allocation65_spill] sm:$0xff] }
 0x31d   : > { %2324 = vmatprep.mubr.bf16.mxu0 %v1837_v5  ;;  %v1806_v15 = vpack.c.bf16 %v1785_v56, %v1784_v24  ;;  %v15225_v5 = vld [vmem:[#allocation54_spill] sm:$0xff]  ;;  %v15231_v24 = vrot.slane %v11047_v54, 7 }
 0x31e   : > { %v1715_v1 = vsel %vm1668_vm3, %v1712_v18, %v1714_v42  ;;  %v1713_v61 = vsel %vm1668_vm3, %v1710_v3, %v1712_v18  ;;  %v1840_v3 = vpack.c.bf16 %v11040_v36, %v11272_v57  ;;  %v15232_v36 = vrot.slane %v15179_v28, 7 }
 0x31f   : > { %v1787_v50 = vmul.f32 %v1715_v1, %v15225_v5  ;;  %v1786_v32 = vmul.f32 %v1713_v61, %v15226_v27  ;;  %v1727_v56 = vsel %vm1668_vm3, %v1724_v49, %v15231_v24  ;;  %v1842_v18 = vpack.c.bf16 %v11047_v54, %v15214_v41 }
 0x320   : > { %8455 = vmatmul.mubr.bf16.gmra.mrb[32].mxu1 %v15221_v7  ;;  %v15229_v7 = vld [vmem:[#allocation63_spill] sm:$0xff]  ;;  %v1725_v57 = vsel %vm1668_vm3, %v15232_v36, %v1724_v49  ;;  %v15233_v42 = vpack.c.bf16 %v11151_v59, %v11154_v48  ;;  %v15237_v28 = vpack.c.bf16 %v11168_v30, %v11164_v39 }
 0x321   : > { %8458 = vmatprep.mubr.bf16.mxu1 %v2004_v21  ;;  %v1807_v37 = vpack.c.bf16 %v1787_v50, %v1786_v32  ;;  %v1719_v21 = vsel %vm1668_vm3, %v1716_v34, %v15227_v35  ;;  %v11396_v34 = vld [vmem:[%s14852_s7] ss:$0 sm:$0xff] }
 0x322   : > { %v1789_v53 = vmul.f32 %v1719_v21, %v15228_v60 }
 0x324   : > { %2325 = vmatmul.mubr.bf16.gmra.mrb[36].mxu0 %v1805_v44  ;;  %v1788_v44 = vmul.f32 %v1717_v19, %v15229_v7 }
 0x325   : > { %2332 = vmatprep.mubr.bf16.mxu0 %v1838_v22 }
 0x326   : > { %v1808_v22 = vpack.c.bf16 %v1789_v53, %v1788_v44 }
 0x328   : > { %8459 = vmatmul.mubr.bf16.gmra.mrb[36].mxu1 %v15224_v11  ;;  %v1793_v11 = vmul.f32 %v1727_v56, %v15234_v0 }
 0x329   : > { %8478 = vmatprep.mubr.msk.bf16.mxu1 %vm9624_vm0, %v15154_v10 }
 0x32c   : > { %2333 = vmatmul.mubr.bf16.gmra.mrb[40].mxu0 %v1806_v15  ;;  %v15235_v15 = vld [vmem:[#allocation85_spill] sm:$0xff] }
 0x32d   : > { %2340 = vmatprep.mubr.bf16.mxu0 %v1839_v12  ;;  %v1792_v1 = vmul.f32 %v1725_v57, %v15235_v15  ;;  %v15236_v12 = vpack.c.bf16 %v15180_v17, %v10921_v33 }
 0x32f   : > { %v1810_v61 = vpack.c.bf16 %v1793_v11, %v1792_v1 }
 0x334   : > { %2341 = vmatmul.mubr.bf16.gmra.mrb[44].mxu0 %v1807_v37 }
 0x335   : > { %2348 = vmatprep.mubr.bf16.mxu0 %v1840_v3 }
 0x33c   : > { %2349 = vmatmul.mubr.bf16.gmra.mrb[48].mxu0 %v1808_v22 }
 0x33d   : > { %2356 = vmatprep.mubr.bf16.mxu0 %v15230_v38 }
 0x344   : > { %2357 = vmatmul.mubr.bf16.gmra.mrb[52].mxu0 %v15233_v42 }
 0x345   : > { %2364 = vmatprep.mubr.bf16.mxu0 %v1842_v18 }
 0x34c   : > { %2365 = vmatmul.mubr.bf16.gmra.mrb[56].mxu0 %v1810_v61 }
 0x34d   : > { %2372 = vmatprep.mubr.bf16.mxu0 %v15236_v12 }
 0x354   : > { %2373 = vmatmul.mubr.bf16.gmra.mrb[60].mxu0 %v15237_v28 }
 0x3ae   : > { %v7792_v54 = vpop.f32.mrb[0].mxu0 }
 0x3af   : > { %v7793_v41 = vpop.f32.mrb[1].mxu0 }
 0x3b0   : > { %v7794_v50 = vadd.f32 %v7793_v41, %v7792_v54  ;;  %v7795_v59 = vpop.f32.mrb[2].mxu0 }
 0x3b1   : > { %v7796_v48 = vpop.f32.mrb[3].mxu0 }
 0x3b2   : > { %v7797_v32 = vadd.f32 %v7796_v48, %v7795_v59  ;;  %v2255_v33 = vadd.f32 %v7794_v50, %v11396_v34 }
 0x3b4   : > { %v2258_v30 = vadd.f32 %v7797_v32, %v11396_v34 }
 0x3b6   : > { %v7798_v37 = vpop.f32.mrb[4].mxu0 }
 0x3b7   : > { %v7799_v35 = vpop.f32.mrb[5].mxu0 }
 0x3b8   : > { %v7800_v17 = vadd.f32 %v7799_v35, %v7798_v37  ;;  %v7801_v21 = vpop.f32.mrb[6].mxu0 }
 0x3b9   : > { %v7802_v19 = vpop.f32.mrb[7].mxu0 }
 0x3ba   : > { %v8432_v39 = vpop.f32.mrb[8].mxu1  ;;  %v2263_v3 = vadd.f32 %v7800_v17, %v11396_v34  ;;  %v7803_v53 = vadd.f32 %v7802_v19, %v7801_v21 }
 0x3bb   : > { %v2415_v44 = vpop.f32.mrb[9].mxu1 }
 0x3bc   : > { %v11401_v22 = vadd.f32 %v2415_v44, %v2255_v33  ;;  %v8433_v38 = vpop.f32.mrb[10].mxu1  ;;  %v11403_v49 = vadd.f32 %v8432_v39, %v2263_v3  ;;  %v2266_v24 = vadd.f32 %v7803_v53, %v11396_v34 }
 0x3bd   : > { %v2418_v56 = vpop.f32.mrb[11].mxu1 }
 0x3be   : > { %v11406_v36 = vadd.f32 %v2418_v56, %v2258_v30  ;;  %v11408_v57 = vadd.f32 %v8433_v38, %v2266_v24 }
 0x3bf   : > { %v7804_v18 = vpop.f32.mrb[8].mxu0 }
 0x3c0   : > { %v7805_v42 = vpop.f32.mrb[9].mxu0 }
 0x3c1   : > { %v7806_v11 = vadd.f32 %v7805_v42, %v7804_v18  ;;  %v7807_v1 = vpop.f32.mrb[10].mxu0 }
 0x3c2   : > { %v7808_v61 = vpop.f32.mrb[11].mxu0  ;;  %v8436_v12 = vpop.f32.mrb[12].mxu1 }
 0x3c3   : > { %v2271_v28 = vadd.f32 %v7806_v11, %v11396_v34  ;;  %v7809_v54 = vadd.f32 %v7808_v61, %v7807_v1  ;;  %v2431_v41 = vpop.f32.mrb[13].mxu1 }
 0x3c4   : > { %v8437_v50 = vpop.f32.mrb[14].mxu1 }
 0x3c5   : > { %v11411_v59 = vadd.f32 %v2431_v41, %v2271_v28  ;;  %v2274_v48 = vadd.f32 %v7809_v54, %v11396_v34  ;;  %v2434_v32 = vpop.f32.mrb[15].mxu1 }
 0x3c7   : > { %v11414_v37 = vadd.f32 %v2434_v32, %v2274_v48  ;;  %v7810_v35 = vpop.f32.mrb[12].mxu0 }
 0x3c8   : > { %v7811_v33 = vpop.f32.mrb[13].mxu0 }
 0x3c9   : > { %v7812_v17 = vadd.f32 %v7811_v33, %v7810_v35  ;;  %v7813_v21 = vpop.f32.mrb[14].mxu0 }
 0x3ca   : > { %v7814_v19 = vpop.f32.mrb[15].mxu0 }
 0x3cb   : > { %v2279_v39 = vadd.f32 %v7812_v17, %v11396_v34  ;;  %v7815_v30 = vadd.f32 %v7814_v19, %v7813_v21 }
 0x3cd   : > { %v11417_v3 = vadd.f32 %v8436_v12, %v2279_v39  ;;  %v2282_v53 = vadd.f32 %v7815_v30, %v11396_v34 }
 0x3cf   : > { %v11420_v44 = vadd.f32 %v8437_v50, %v2282_v53  ;;  %v7816_v38 = vpop.f32.mrb[16].mxu0 }
 0x3d0   : > { %v7817_v24 = vpop.f32.mrb[17].mxu0 }
 0x3d1   : > { %v7818_v56 = vadd.f32 %v7817_v24, %v7816_v38  ;;  %v7819_v18 = vpop.f32.mrb[18].mxu0 }
 0x3d2   : > { %v7820_v42 = vpop.f32.mrb[19].mxu0 }
 0x3d3   : > { %v8440_v11 = vpop.f32.mrb[16].mxu1  ;;  %v2287_v1 = vadd.f32 %v7818_v56, %v11396_v34  ;;  %v7821_v61 = vadd.f32 %v7820_v42, %v7819_v18 }
 0x3d4   : > { %v2447_v28 = vpop.f32.mrb[17].mxu1 }
 0x3d5   : > { %v8441_v54 = vpop.f32.mrb[18].mxu1  ;;  %v11423_v41 = vadd.f32 %v2447_v28, %v2287_v1  ;;  %v2290_v12 = vadd.f32 %v7821_v61, %v11396_v34 }
 0x3d6   : > { %v2450_v48 = vpop.f32.mrb[19].mxu1 }
 0x3d7   : > { %v11426_v32 = vadd.f32 %v2450_v48, %v2290_v12  ;;  %v7822_v50 = vpop.f32.mrb[20].mxu0 }
 0x3d8   : > { %v7823_v35 = vpop.f32.mrb[21].mxu0 }
 0x3d9   : > { %v7824_v33 = vadd.f32 %v7823_v35, %v7822_v50  ;;  %v7825_v17 = vpop.f32.mrb[22].mxu0 }
 0x3da   : > { %v7826_v21 = vpop.f32.mrb[23].mxu0 }
 0x3db   : > { %v8444_v19 = vpop.f32.mrb[20].mxu1  ;;  %v2295_v39 = vadd.f32 %v7824_v33, %v11396_v34  ;;  %v7827_v30 = vadd.f32 %v7826_v21, %v7825_v17 }
 0x3dc   : > { %v2463_v53 = vpop.f32.mrb[21].mxu1 }
 0x3dd   : > { %v8445_v38 = vpop.f32.mrb[22].mxu1  ;;  %v11429_v24 = vadd.f32 %v8440_v11, %v2295_v39  ;;  %v2298_v56 = vadd.f32 %v7827_v30, %v11396_v34 }
 0x3de   : > { %v2466_v18 = vpop.f32.mrb[23].mxu1 }
 0x3df   : > { %v11432_v42 = vadd.f32 %v8441_v54, %v2298_v56  ;;  %v7828_v1 = vpop.f32.mrb[24].mxu0 }
 0x3e0   : > { %v7829_v61 = vpop.f32.mrb[25].mxu0 }
 0x3e1   : > { %v7830_v28 = vadd.f32 %v7829_v61, %v7828_v1  ;;  %v7831_v12 = vpop.f32.mrb[26].mxu0 }
 0x3e2   : > { %v7832_v48 = vpop.f32.mrb[27].mxu0 }
 0x3e3   : > { %v8448_v50 = vpop.f32.mrb[24].mxu1  ;;  %v2303_v35 = vadd.f32 %v7830_v28, %v11396_v34  ;;  %v7833_v0 = vadd.f32 %v7832_v48, %v7831_v12 }
 0x3e4   : > { %v2479_v33 = vpop.f32.mrb[25].mxu1 }
 0x3e5   : > { %v8449_v17 = vpop.f32.mrb[26].mxu1  ;;  %v11435_v21 = vadd.f32 %v2463_v53, %v2303_v35  ;;  %v2306_v11 = vadd.f32 %v7833_v0, %v11396_v34 }
 0x3e6   : > { %v2482_v39 = vpop.f32.mrb[27].mxu1 }
 0x3e7   : > { %v11438_v30 = vadd.f32 %v2466_v18, %v2306_v11  ;;  %v7834_v54 = vpop.f32.mrb[28].mxu0 }
 0x3e8   : > { %v7835_v56 = vpop.f32.mrb[29].mxu0 }
 0x3e9   : > { %v7836_v15 = vadd.f32 %v7835_v56, %v7834_v54  ;;  %v7837_v60 = vpop.f32.mrb[30].mxu0 }
 0x3ea   : > { %v7838_v1 = vpop.f32.mrb[31].mxu0 }
 0x3eb   : > { %v11440_v61 = vpop.f32.mrb[28].mxu1  ;;  %v2311_v7 = vadd.f32 %v7836_v15, %v11396_v34  ;;  %v7839_v28 = vadd.f32 %v7838_v1, %v7837_v60 }
 0x3ec   : > { %v2495_v12 = vpop.f32.mrb[29].mxu1 }
 0x3ed   : > { %v11443_v48 = vpop.f32.mrb[30].mxu1  ;;  %v11445_v53 = vadd.f32 %v8444_v19, %v2311_v7  ;;  %v2314_v0 = vadd.f32 %v7839_v28, %v11396_v34  ;;  %v2544_v7 = vadd.f32 %v11406_v36, %v11401_v22 }
 0x3ee   : > { %v2498_v35 = vpop.f32.mrb[31].mxu1 }
 0x3ef   : > { %v11448_v18 = vadd.f32 %v8445_v38, %v2314_v0  ;;  %v7840_v11 = vpop.f32.mrb[32].mxu0 }
 0x3f0   : > { %v7841_v51 = vpop.f32.mrb[33].mxu0 }
 0x3f1   : > { %v7842_v54 = vadd.f32 %v7841_v51, %v7840_v11  ;;  %v7843_v56 = vpop.f32.mrb[34].mxu0  ;;  %v2545_v51 = vadd.f32 %v2544_v7, %v11403_v49 }
 0x3f2   : > { %v7844_v5 = vpop.f32.mrb[35].mxu0 }
 0x3f3   : > { %v11450_v47 = vpop.f32.mrb[32].mxu1  ;;  %v2319_v15 = vadd.f32 %v7842_v54, %v11396_v34  ;;  %v7845_v60 = vadd.f32 %v7844_v5, %v7843_v56  ;;  %v2546_v46 = vadd.f32 %v2545_v51, %v11408_v57 }
 0x3f4   : > { %v11453_v1 = vpop.f32.mrb[33].mxu1 }
 0x3f5   : > { %v11457_v19 = vpop.f32.mrb[34].mxu1  ;;  %v11459_v28 = vadd.f32 %v2479_v33, %v2319_v15  ;;  %v2322_v38 = vadd.f32 %v7845_v60, %v11396_v34  ;;  %v2547_v60 = vadd.f32 %v2546_v46, %v11411_v59 }
 0x3f6   : > { %v2514_v0 = vpop.f32.mrb[35].mxu1 }
 0x3f7   : > { %v11463_v11 = vadd.f32 %v2482_v39, %v2322_v38  ;;  %v7846_v27 = vpop.f32.mrb[36].mxu0  ;;  %v2548_v26 = vadd.f32 %v2547_v60, %v11414_v37 }
 0x3f8   : > { %v7847_v40 = vpop.f32.mrb[37].mxu0 }
 0x3f9   : > { %v7848_v54 = vadd.f32 %v7847_v40, %v7846_v27  ;;  %v7849_v5 = vpop.f32.mrb[38].mxu0  ;;  %v2549_v58 = vadd.f32 %v2548_v26, %v11417_v3 }
 0x3fa   : > { %v7850_v56 = vpop.f32.mrb[39].mxu0 }
 0x3fb   : > { %v11466_v20 = vpop.f32.mrb[36].mxu1  ;;  %v2327_v55 = vadd.f32 %v7848_v54, %v11396_v34  ;;  %v7851_v33 = vadd.f32 %v7850_v56, %v7849_v5 }
 0x3fc   : > { %v11469_v15 = vpop.f32.mrb[37].mxu1 }
 0x3fd   : > { %v11472_v14 = vpop.f32.mrb[38].mxu1  ;;  %v11474_v39 = vadd.f32 %v8448_v50, %v2327_v55  ;;  %v2330_v7 = vadd.f32 %v7851_v33, %v11396_v34  ;;  %v2550_v33 = vadd.f32 %v2549_v58, %v11420_v44 }
 0x3fe   : > { %v11477_v40 = vpop.f32.mrb[39].mxu1 }
 0x3ff   : > { %v11479_v27 = vadd.f32 %v8449_v17, %v2330_v7  ;;  %v7852_v38 = vpop.f32.mrb[40].mxu0  ;;  %v2551_v60 = vadd.f32 %v2550_v33, %v11423_v41 }
 0x400   : > { %v7853_v51 = vpop.f32.mrb[41].mxu0 }
 0x401   : > { %v7854_v54 = vadd.f32 %v7853_v51, %v7852_v38  ;;  %v7855_v5 = vpop.f32.mrb[42].mxu0  ;;  %v2565_v38 = vadd.f32 %v11463_v11, %v11459_v28 }
 0x402   : > { %v7856_v56 = vpop.f32.mrb[43].mxu0 }
 0x403   : > { %v2335_v46 = vadd.f32 %v7854_v54, %v11396_v34  ;;  %v7857_v63 = vadd.f32 %v7856_v56, %v7855_v5  ;;  %v2566_v54 = vadd.f32 %v2565_v38, %v11474_v39 }
 0x405   : > { %v11484_v55 = vadd.f32 %v2495_v12, %v2335_v46  ;;  %v2338_v50 = vadd.f32 %v7857_v63, %v11396_v34  ;;  %v2552_v63 = vadd.f32 %v2551_v60, %v11426_v32  ;;  %v2567_v46 = vadd.f32 %v2566_v54, %v11479_v27 }
 0x407   : > { %v11488_v17 = vadd.f32 %v2498_v35, %v2338_v50  ;;  %v7858_v7 = vpop.f32.mrb[44].mxu0  ;;  %v2553_v56 = vadd.f32 %v2552_v63, %v11429_v24 }
 0x408   : > { %v7859_v29 = vpop.f32.mrb[45].mxu0 }
 0x409   : > { %v7860_v51 = vadd.f32 %v7859_v29, %v7858_v7  ;;  %v7861_v26 = vpop.f32.mrb[46].mxu0  ;;  %v2568_v7 = vadd.f32 %v2567_v46, %v11484_v55  ;;  %v2554_v60 = vadd.f32 %v2553_v56, %v11432_v42 }
 0x40a   : > { %v7862_v8 = vpop.f32.mrb[47].mxu0 }
 0x40b   : > { %v2343_v12 = vadd.f32 %v7860_v51, %v11396_v34  ;;  %v7863_v5 = vadd.f32 %v7862_v8, %v7861_v26 }
 0x40d   : > { %v11497_v58 = vadd.f32 %v11440_v61, %v2343_v12  ;;  %v2346_v35 = vadd.f32 %v7863_v5, %v11396_v34  ;;  %v2555_v12 = vadd.f32 %v2554_v60, %v11435_v21  ;;  %v2569_v5 = vadd.f32 %v2568_v7, %v11488_v17 }
 0x40f   : > { %v11503_v29 = vadd.f32 %v11443_v48, %v2346_v35  ;;  %v7864_v50 = vpop.f32.mrb[48].mxu0  ;;  %v2570_v63 = vadd.f32 %v2569_v5, %v11497_v58  ;;  %v2556_v56 = vadd.f32 %v2555_v12, %v11438_v30 }
 0x410   : > { %v7865_v33 = vpop.f32.mrb[49].mxu0 }
 0x411   : > { %v7866_v38 = vadd.f32 %v7865_v33, %v7864_v50  ;;  %v7867_v8 = vpop.f32.mrb[50].mxu0  ;;  %v2571_v7 = vadd.f32 %v2570_v63, %v11503_v29 }
 0x412   : > { %v7868_v51 = vpop.f32.mrb[51].mxu0 }
 0x413   : > { %v2351_v61 = vadd.f32 %v7866_v38, %v11396_v34  ;;  %v7869_v26 = vadd.f32 %v7868_v51, %v7867_v8  ;;  %v2557_v51 = vadd.f32 %v2556_v56, %v11445_v53 }
 0x415   : > { %v11511_v54 = vadd.f32 %v11453_v1, %v2351_v61  ;;  %v2354_v48 = vadd.f32 %v7869_v26, %v11396_v34  ;;  %v2558_v5 = vadd.f32 %v2557_v51, %v11448_v18 }
 0x417   : > { %v11515_v35 = vadd.f32 %v2514_v0, %v2354_v48  ;;  %v7870_v46 = vpop.f32.mrb[52].mxu0  ;;  %v2572_v61 = vadd.f32 %v2571_v7, %v11511_v54 }
 0x418   : > { %v7871_v50 = vpop.f32.mrb[53].mxu0 }
 0x419   : > { %v7872_v33 = vadd.f32 %v7871_v50, %v7870_v46  ;;  %v7873_v38 = vpop.f32.mrb[54].mxu0  ;;  %v2573_v50 = vadd.f32 %v2572_v61, %v11515_v35 }
 0x41a   : > { %v7874_v8 = vpop.f32.mrb[55].mxu0 }
 0x41b   : > { %v2359_v1 = vadd.f32 %v7872_v33, %v11396_v34  ;;  %v7875_v60 = vadd.f32 %v7874_v8, %v7873_v38  ;;  %v2559_v38 = vrot.slane %v2558_v5, 4 }
 0x41d   : > { %v11523_v26 = vadd.f32 %v11450_v47, %v2359_v1  ;;  %v2362_v0 = vadd.f32 %v7875_v60, %v11396_v34 }
 0x41f   : > { %v11528_v12 = vadd.f32 %v11457_v19, %v2362_v0  ;;  %v7876_v48 = vpop.f32.mrb[56].mxu0  ;;  %v2574_v8 = vadd.f32 %v2573_v50, %v11523_v26  ;;  %v2560_v19 = vadd.f32 %v2559_v38, %v2558_v5 }
 0x420   : > { %v7877_v46 = vpop.f32.mrb[57].mxu0 }
 0x421   : > { %v7878_v63 = vadd.f32 %v7877_v46, %v7876_v48  ;;  %v7879_v56 = vpop.f32.mrb[58].mxu0  ;;  %v2575_v60 = vadd.f32 %v2574_v8, %v11528_v12 }
 0x422   : > { %v7880_v33 = vpop.f32.mrb[59].mxu0 }
 0x423   : > { %v2367_v47 = vadd.f32 %v7878_v63, %v11396_v34  ;;  %v7881_v7 = vadd.f32 %v7880_v33, %v7879_v56  ;;  %v2561_v63 = vrot.slane %v2560_v19, 2 }
 0x425   : > { %v11534_v1 = vadd.f32 %v11469_v15, %v2367_v47  ;;  %v2370_v51 = vadd.f32 %v7881_v7, %v11396_v34 }
 0x427   : > { %v11539_v0 = vadd.f32 %v11477_v40, %v2370_v51  ;;  %v7882_v61 = vpop.f32.mrb[60].mxu0  ;;  %v2576_v46 = vadd.f32 %v2575_v60, %v11534_v1  ;;  %v2562_v40 = vadd.f32 %v2561_v63, %v2560_v19 }
 0x428   : > { %v7883_v48 = vpop.f32.mrb[61].mxu0 }
 0x429   : > { %v7884_v43 = vadd.f32 %v7883_v48, %v7882_v61  ;;  %v7885_v50 = vpop.f32.mrb[62].mxu0  ;;  %v2577_v33 = vadd.f32 %v2576_v46, %v11539_v0  ;;  %v2563_v51 = vrot.slane %v2562_v40, 1 }
 0x42a   : > { %v7886_v13 = vpop.f32.mrb[63].mxu0 }
 0x42b   : > { %v2375_v56 = vadd.f32 %v7884_v43, %v11396_v34  ;;  %v7887_v15 = vadd.f32 %v7886_v13, %v7885_v50  ;;  %v2564_v43 = vadd.f32 %v2563_v51, %v2562_v40 }
 0x42d   : > { %v11545_v5 = vadd.f32 %v11466_v20, %v2375_v56  ;;  %v2378_v38 = vadd.f32 %v7887_v15, %v11396_v34  ;;  %v2586_v46 = vmul.f32 0.0078125, %v2564_v43 }
 0x42f   : > { %v2578_v8 = vadd.f32 %v2577_v33, %v11545_v5  ;;  %v11550_v47 = vadd.f32 %v11472_v14, %v2378_v38  ;;  %v2588_v56 = vpack.c.bf16 %v2586_v46, %v2586_v46  ;;  %v8834_v33 = vld [vmem:[#allocation6 + $0x18] sm:$0xff]  }
 0x431   : > { %v2579_v7 = vadd.f32 %v2578_v8, %v11550_v47  ;;  %v2592_v19 = vunpack.c.l.b16 %v2588_v56  ;;  %v15238_v8 = vld [vmem:[#allocation15_spill] sm:$0xff] }
 0x433   : > { %v2580_v60 = vrot.slane %v2579_v7, 4 }
 0x435   : > { %v2581_v61 = vadd.f32 %v2580_v60, %v2579_v7 }
 0x437   : > { %v2582_v13 = vrot.slane %v2581_v61, 2 }
 0x439   : > { %v2583_v48 = vadd.f32 %v2582_v13, %v2581_v61  ;;  %v15239_v13 = vld [vmem:[#allocation16_spill] sm:$0xff] }
 0x43b   : > { %v2584_v50 = vrot.slane %v2583_v48, 1 }
 0x43d   : > { %v2585_v20 = vadd.f32 %v2584_v50, %v2583_v48 }
 0x43f   : > { %v2587_v9 = vmul.f32 0.0078125, %v2585_v20 }
 0x441   : > { %v2589_v34 = vpack.c.bf16 %v2587_v9, %v2587_v9  ;;  %v8827_v9 = vld [vmem:[#allocation6 + $0x40] sm:$0xff]  }
 0x442   : > { %7930 = vmatprep.subr.bf16.mxu0 %v8827_v9 }
 0x443   : > { %v2593_v63 = vunpack.c.l.b16 %v2589_v34 }
 0x445   : > { %v2594_v15 = vsel %vm934_vm1, %v2593_v63, %v2592_v19 }
 0x446   : > { %v2595_v14 = vpack.c.b16 %v2594_v15, %v2594_v15 }
 0x448   : > { %8479 = vmatmul.mubr.bf16.vlgmr.msra.gmra.mrb[40].mxu1 %v2595_v14 }
 0x449   : > { %8483 = vmatpush3.bf16.msra.mxu1 %v11075_v31  ;;  %8498 = vmatprep.mubr.msk.bf16.mxu1 %vm9624_vm0, %v15154_v10  ;;  %v8828_v31 = vld [vmem:[#allocation6] sm:$0xff]  }
 0x44a   : > { %8484 = vmatprep.subr.bf16.mxu1 %v15154_v10  ;;  %7931 = vmatpush3.bf16.msra.mxu0 %v8828_v31 }
 0x44d   : > { %8485 = vmatpush3.bf16.msra.mxu1 %v11100_v45  ;;  %v8829_v45 = vld [vmem:[#allocation6 + $0x48] sm:$0xff]  }
 0x44e   : > { %8486 = vmatprep.subr.bf16.mxu1 %v15154_v10  ;;  %7932 = vmatprep.subr.bf16.mxu0 %v8829_v45 }
 0x451   : > { %8487 = vmatpush3.bf16.msra.mxu1 %v11141_v16  ;;  %v8830_v16 = vld [vmem:[#allocation6 + $0x8] sm:$0xff]  }
 0x452   : > { %8488 = vmatprep.subr.bf16.mxu1 %v15154_v10  ;;  %7933 = vmatpush3.bf16.msra.mxu0 %v8830_v16 }
 0x455   : > { %8489 = vmatpush3.bf16.msra.mxu1 %v11184_v25  ;;  %v8831_v25 = vld [vmem:[#allocation6 + $0x50] sm:$0xff]  }
 0x456   : > { %8490 = vmatprep.subr.bf16.mxu1 %v15154_v10  ;;  %7934 = vmatprep.subr.bf16.mxu0 %v8831_v25 }
 0x459   : > { %8491 = vmatpush3.bf16.msra.mxu1 %v11213_v4  ;;  %v8832_v4 = vld [vmem:[#allocation6 + $0x10] sm:$0xff]  }
 0x45a   : > { %8492 = vmatprep.subr.bf16.mxu1 %v15154_v10  ;;  %7935 = vmatpush3.bf16.msra.mxu0 %v8832_v4 }
 0x45d   : > { %8493 = vmatpush3.bf16.msra.mxu1 %v11242_v2  ;;  %v8833_v2 = vld [vmem:[#allocation6 + $0x58] sm:$0xff]  }
 0x45e   : > { %8494 = vmatprep.subr.bf16.mxu1 %v15154_v10  ;;  %7936 = vmatprep.subr.bf16.mxu0 %v8833_v2 }
 0x45f   : > { %7937 = vmatpush3.bf16.msra.mxu0 %v8834_v33 }
 0x461   : > { %8495 = vmatpush3.bf16.msra.mxu1 %v11263_v62 }
 0x462   : > { %8496 = vmatprep.subr.bf16.mxu1 %v15154_v10 }
 0x465   : > { %8497 = vmatpush3.bf16.msra.mxu1 %v11284_v52 }
 0x51b   : > { %v2631_v62 = vpop.f32.mrb[40].mxu1 }
 0x51c   : > { %v2637_v38 = vmul.f32 0.25, %v2631_v62  ;;  %v8480_v40 = vpop.f32.mrb[41].mxu1 }
 0x51d   : > { %v2634_v52 = vpop.f32.mrb[42].mxu1 }
 0x51e   : > { %v2645_v7 = vrot.slane %v2637_v38, %v15238_v8  ;;  %v8481_v51 = vpop.f32.mrb[43].mxu1 }
 0x520   : > { %v2646_v60 = vcombine.high %v2645_v7, %v2645_v7  ;;  %v2653_v61 = vrot.slane %v2645_v7, %v15238_v8 }
 0x522   : > { %v2660_v43 = vrot.slane %v2646_v60, %v15238_v8  ;;  %v11575_v48 = vrot.slane %v2653_v61, %v15239_v13 }
 0x524   : > { %v11578_v46 = vrot.slane %v2660_v43, %v15239_v13  ;;  %v11582_v50 = vsub.f32 %v11401_v22, %v11575_v48  ;;  %v11586_v20 = vsub.f32 %v11406_v36, %v11575_v48  ;;  %v11598_v19 = vsub.f32 %v11403_v49, %v11575_v48 }
 0x525   : > { %v11614_v49 = vsub.f32 %v11408_v57, %v11575_v48  ;;  %v11622_v15 = vsub.f32 %v11411_v59, %v11575_v48  ;;  %v11646_v2 = vsub.f32 %v11417_v3, %v11575_v48  ;;  %v11658_v40 = vsub.f32 %v11420_v44, %v11575_v48 }
 0x526   : > { %v11590_v56 = vsub.f32 %v11459_v28, %v11578_v46  ;;  %v11594_v34 = vsub.f32 %v11463_v11, %v11578_v46  ;;  %v11602_v22 = vsub.f32 %v11474_v39, %v11578_v46  ;;  %v2703_v36 = vmul.f32 %v11582_v50, %v11582_v50 }
 0x527   : > { %v2704_v63 = vmul.f32 %v11586_v20, %v11586_v20  ;;  %v11618_v39 = vsub.f32 %v11479_v27, %v11578_v46  ;;  %v11626_v14 = vsub.f32 %v11484_v55, %v11578_v46  ;;  %v2705_v9 = vmul.f32 %v11598_v19, %v11598_v19 }
 0x528   : > { %v2719_v28 = vmul.f32 %v11590_v56, %v11590_v56  ;;  %v2720_v11 = vmul.f32 %v11594_v34, %v11594_v34  ;;  %v2721_v31 = vmul.f32 %v11602_v22, %v11602_v22  ;;  %v11634_v27 = vsub.f32 %v11414_v37, %v11575_v48 }
 0x529   : > { %v2735_v57 = vadd.f32 %v2704_v63, %v2703_v36  ;;  %v11638_v59 = vsub.f32 %v11488_v17, %v11578_v46  ;;  %v2706_v55 = vmul.f32 %v11614_v49, %v11614_v49  ;;  %v2722_v16 = vmul.f32 %v11618_v39, %v11618_v39 }
 0x52a   : > { %v2756_v45 = vadd.f32 %v2720_v11, %v2719_v28  ;;  %v11650_v37 = vsub.f32 %v11497_v58, %v11578_v46  ;;  %v2707_v17 = vmul.f32 %v11622_v15, %v11622_v15  ;;  %v2723_v33 = vmul.f32 %v11626_v14, %v11626_v14 }
 0x52b   : > { %v2736_v25 = vadd.f32 %v2735_v57, %v2705_v9  ;;  %v11662_v3 = vsub.f32 %v11503_v29, %v11578_v46  ;;  %v2708_v58 = vmul.f32 %v11634_v27, %v11634_v27  ;;  %v2724_v52 = vmul.f32 %v11638_v59, %v11638_v59 }
 0x52c   : > { %v2757_v4 = vadd.f32 %v2756_v45, %v2721_v31  ;;  %v11670_v60 = vsub.f32 %v11423_v41, %v11575_v48  ;;  %v11674_v44 = vsub.f32 %v11511_v54, %v11578_v46  ;;  %v2709_v29 = vmul.f32 %v11646_v2, %v11646_v2 }
 0x52d   : > { %v2737_v62 = vadd.f32 %v2736_v25, %v2706_v55  ;;  %v2725_v61 = vmul.f32 %v11650_v37, %v11650_v37  ;;  %v11682_v63 = vsub.f32 %v11426_v32, %v11575_v48  ;;  %v11686_v41 = vsub.f32 %v11515_v35, %v11578_v46 }
 0x52e   : > { %v2758_v38 = vadd.f32 %v2757_v4, %v2722_v16  ;;  %v2710_v54 = vmul.f32 %v11658_v40, %v11658_v40  ;;  %v2726_v28 = vmul.f32 %v11662_v3, %v11662_v3  ;;  %v11694_v31 = vsub.f32 %v11429_v24, %v11575_v48 }
 0x52f   : > { %v2738_v7 = vadd.f32 %v2737_v62, %v2707_v17  ;;  %v11698_v32 = vsub.f32 %v11523_v26, %v11578_v46  ;;  %v2711_v35 = vmul.f32 %v11670_v60, %v11670_v60  ;;  %v2727_v57 = vmul.f32 %v11674_v44, %v11674_v44 }
 0x530   : > { %v2759_v51 = vadd.f32 %v2758_v38, %v2723_v33  ;;  %v11706_v16 = vsub.f32 %v11432_v42, %v11575_v48  ;;  %v11710_v24 = vsub.f32 %v11528_v12, %v11578_v46  ;;  %v2712_v26 = vmul.f32 %v11682_v63, %v11682_v63 }
 0x531   : > { %v2739_v43 = vadd.f32 %v2738_v7, %v2708_v58  ;;  %v2728_v25 = vmul.f32 %v11686_v41, %v11686_v41  ;;  %v11718_v33 = vsub.f32 %v11435_v21, %v11575_v48  ;;  %v11722_v42 = vsub.f32 %v11534_v1, %v11578_v46 }
 0x532   : > { %v2760_v36 = vadd.f32 %v2759_v51, %v2724_v52  ;;  %v2713_v12 = vmul.f32 %v11694_v31, %v11694_v31  ;;  %v2729_v62 = vmul.f32 %v11698_v32, %v11698_v32  ;;  %v11730_v52 = vsub.f32 %v11438_v30, %v11575_v48 }
 0x533   : > { %v2740_v11 = vadd.f32 %v2739_v43, %v2709_v29  ;;  %v11734_v21 = vsub.f32 %v11539_v0, %v11578_v46  ;;  %v2714_v1 = vmul.f32 %v11706_v16, %v11706_v16  ;;  %v2730_v7 = vmul.f32 %v11710_v24, %v11710_v24 }
 0x534   : > { %v2761_v9 = vadd.f32 %v2760_v36, %v2725_v61  ;;  %v11742_v61 = vsub.f32 %v11445_v53, %v11575_v48  ;;  %v11746_v30 = vsub.f32 %v11545_v5, %v11578_v46  ;;  %v2715_v0 = vmul.f32 %v11718_v33, %v11718_v33 }
 0x535   : > { %v2741_v45 = vadd.f32 %v2740_v11, %v2710_v54  ;;  %v2731_v43 = vmul.f32 %v11722_v42, %v11722_v42  ;;  %v11758_v53 = vsub.f32 %v11550_v47, %v11578_v46  ;;  %v2716_v5 = vmul.f32 %v11730_v52, %v11730_v52 }
 0x536   : > { %v2762_v55 = vadd.f32 %v2761_v9, %v2726_v28  ;;  %v11754_v28 = vsub.f32 %v11448_v18, %v11575_v48  ;;  %v2732_v11 = vmul.f32 %v11734_v21, %v11734_v21 }
 0x537   : > { %v2742_v4 = vadd.f32 %v2741_v45, %v2711_v35  ;;  %v2733_v45 = vmul.f32 %v11746_v30, %v11746_v30  ;;  %v2734_v46 = vmul.f32 %v11758_v53, %v11758_v53 }
 0x538   : > { %v2763_v17 = vadd.f32 %v2762_v55, %v2727_v57  ;;  %v2717_v57 = vmul.f32 %v11742_v61, %v11742_v61  ;;  %v2718_v47 = vmul.f32 %v11754_v28, %v11754_v28 }
 0x539   : > { %v2743_v38 = vadd.f32 %v2742_v4, %v2712_v26 }
 0x53a   : > { %v2764_v58 = vadd.f32 %v2763_v17, %v2728_v25 }
 0x53b   : > { %v2744_v51 = vadd.f32 %v2743_v38, %v2713_v12 }
 0x53c   : > { %v2765_v29 = vadd.f32 %v2764_v58, %v2729_v62 }
 0x53d   : > { %v2745_v36 = vadd.f32 %v2744_v51, %v2714_v1 }
 0x53e   : > { %v2766_v54 = vadd.f32 %v2765_v29, %v2730_v7 }
 0x53f   : > { %v2746_v9 = vadd.f32 %v2745_v36, %v2715_v0 }
 0x540   : > { %v2767_v35 = vadd.f32 %v2766_v54, %v2731_v43 }
 0x541   : > { %v2747_v18 = vadd.f32 %v2746_v9, %v2716_v5 }
 0x542   : > { %v2768_v48 = vadd.f32 %v2767_v35, %v2732_v11 }
 0x543   : > { %v2748_v55 = vadd.f32 %v2747_v18, %v2717_v57 }
 0x544   : > { %v2769_v26 = vadd.f32 %v2768_v48, %v2733_v45  ;;  %v8835_v48 = vld [vmem:[#allocation6 + $0x60] sm:$0xff]  }
 0x545   : > { %v2749_v25 = vadd.f32 %v2748_v55, %v2718_v47  ;;  %v8836_v47 = vld [vmem:[#allocation6 + $0x20] sm:$0xff]   ;;  %7938 = vmatprep.subr.bf16.mxu0 %v8835_v48 }
 0x546   : > { %v2770_v4 = vadd.f32 %v2769_v26, %v2734_v46  ;;  %v8837_v46 = vld [vmem:[#allocation6 + $0x68] sm:$0xff]   ;;  %v8840_v55 = vld [vmem:[#allocation6 + $0x80] sm:$0xff]   ;;  %7939 = vmatpush3.bf16.msra.mxu0 %v8836_v47 }
 0x547   : > { %v2750_v17 = vrot.slane %v2749_v25, 4  ;;  %v8842_v26 = vld [vmem:[#allocation6 + $0x88] sm:$0xff]   ;;  %8502 = vmatprep.subr.bf16.mxu1 %v8840_v55  ;;  %7940 = vmatprep.subr.bf16.mxu0 %v8837_v46  ;;  %v11783_v47 = vld [vmem:[%s14853_s8] ss:$0 sm:$0xff] }
 0x548   : > { %v2771_v12 = vrot.slane %v2770_v4, 4 }
 0x549   : > { %v2751_v62 = vadd.f32 %v2750_v17, %v2749_v25  ;;  %v8838_v25 = vld [vmem:[#allocation6 + $0x28] sm:$0xff]   ;;  %v8843_v17 = vld [vmem:[#allocation6 + $0x90] sm:$0xff]  }
 0x54a   : > { %v2772_v38 = vadd.f32 %v2771_v12, %v2770_v4  ;;  %v8839_v4 = vld [vmem:[#allocation6 + $0x70] sm:$0xff]   ;;  %7941 = vmatpush3.bf16.msra.mxu0 %v8838_v25 }
 0x54b   : > { %v2752_v58 = vrot.slane %v2751_v62, 2  ;;  %v8841_v12 = vld [vmem:[#allocation6 + $0x30] sm:$0xff]   ;;  %7942 = vmatprep.subr.bf16.mxu0 %v8839_v4  ;;  %v11797_v4 = vld [vmem:[%s14854_s9] ss:$0 sm:$0xff] }
 0x54c   : > { %v2773_v1 = vrot.slane %v2772_v38, 2 }
 0x54d   : > { %v2753_v7 = vadd.f32 %v2752_v58, %v2751_v62  ;;  %v8845_v62 = vld [vmem:[#allocation6 + $0x78] sm:$0xff]  }
 0x54e   : > { %v2774_v51 = vadd.f32 %v2773_v1, %v2772_v38  ;;  %v8844_v38 = vld [vmem:[#allocation6 + $0x98] sm:$0xff]   ;;  %7943 = vmatpush3.bf16.msra.mxu0 %v8841_v12  ;;  %v8846_v1 = vld [vmem:[#allocation6 + $0xa0] sm:$0xff]  }
 0x54f   : > { %v2754_v29 = vrot.slane %v2753_v7, 1  ;;  %v8847_v58 = vld [vmem:[#allocation6 + $0x38] sm:$0xff]   ;;  %7944 = vmatprep.subr.bf16.mxu0 %v8845_v62 }
 0x550   : > { %v2775_v0 = vrot.slane %v2774_v51, 1 }
 0x551   : > { %v2755_v43 = vadd.f32 %v2754_v29, %v2753_v7  ;;  %v8848_v7 = vld [vmem:[#allocation6 + $0xa8] sm:$0xff]   ;;  %v8850_v29 = vld [vmem:[#allocation6 + $0xb8] sm:$0xff]  }
 0x552   : > { %v2776_v36 = vadd.f32 %v2775_v0, %v2774_v51  ;;  %7945 = vmatpush3.bf16.msra.mxu0 %v8847_v58  ;;  %v8849_v51 = vld [vmem:[#allocation6 + $0xb0] sm:$0xff]  }
 0x553   : > { %v2777_v54 = vmul.f32 0.0078125, %v2755_v43 }
 0x554   : > { %v2778_v5 = vmul.f32 0.0078125, %v2776_v36 }
 0x555   : > { %v2779_v11 = vpack.c.bf16 %v2777_v54, %v2777_v54 }
 0x556   : > { %v2780_v9 = vpack.c.bf16 %v2778_v5, %v2778_v5 }
 0x557   : > { %v2783_v35 = vunpack.c.l.b16 %v2779_v11 }
 0x558   : > { %v2784_v57 = vunpack.c.l.b16 %v2780_v9 }
 0x55a   : > { %v2785_v45 = vsel %vm934_vm1, %v2784_v57, %v2783_v35 }
 0x55b   : > { %v2786_v18 = vpack.c.b16 %v2785_v45, %v2785_v45 }
 0x55d   : > { %8499 = vmatmul.mubr.bf16.vlgmr.msra.gmra.mrb[44].mxu1 %v2786_v18 }
 0x55e   : > { %8503 = vmatpush3.bf16.msra.mxu1 %v8840_v55 }
 0x55f   : > { %8504 = vmatprep.subr.bf16.mxu1 %v8842_v26 }
 0x562   : > { %8505 = vmatpush3.bf16.msra.mxu1 %v8842_v26 }
 0x563   : > { %8506 = vmatprep.subr.bf16.mxu1 %v8843_v17 }
 0x566   : > { %8507 = vmatpush3.bf16.msra.mxu1 %v8843_v17 }
 0x567   : > { %8508 = vmatprep.subr.bf16.mxu1 %v8844_v38 }
 0x56a   : > { %8509 = vmatpush3.bf16.msra.mxu1 %v8844_v38 }
 0x56b   : > { %8510 = vmatprep.subr.bf16.mxu1 %v8846_v1 }
 0x56e   : > { %8511 = vmatpush3.bf16.msra.mxu1 %v8846_v1 }
 0x56f   : > { %8512 = vmatprep.subr.bf16.mxu1 %v8848_v7 }
 0x572   : > { %8513 = vmatpush3.bf16.msra.mxu1 %v8848_v7 }
 0x573   : > { %8514 = vmatprep.subr.bf16.mxu1 %v8849_v51 }
 0x576   : > { %8515 = vmatpush3.bf16.msra.mxu1 %v8849_v51 }
 0x577   : > { %8516 = vmatprep.subr.bf16.mxu1 %v8850_v29 }
 0x57a   : > { %8517 = vmatpush3.bf16.msra.mxu1 %v8850_v29 }
 0x57b   : > { %8550 = vmatprep.subr.bf16.mxu1 %v15154_v10 }
 0x630   : > { %v2822_v0 = vpop.f32.mrb[44].mxu1 }
 0x631   : > { %v2828_v43 = vmul.f32 0.25, %v2822_v0  ;;  %v8500_v36 = vpop.f32.mrb[45].mxu1 }
 0x632   : > { %v2825_v54 = vpop.f32.mrb[46].mxu1 }
 0x633   : > { %v2829_v5 = vadd.f32 1e-05, %v2828_v43  ;;  %v8501_v11 = vpop.f32.mrb[47].mxu1 }
 0x635   : > { %9029 = vrsqrt.f32 %v2829_v5 }
 0x63f   : > { %v9030_v9 = vpop.eup %9029 }
 0x640   : > { %v2838_v35 = vrot.slane %v9030_v9, %v15238_v8 }
 0x642   : > { %v2839_v57 = vcombine.high %v2838_v35, %v2838_v35  ;;  %v2846_v45 = vrot.slane %v2838_v35, %v15238_v8 }
 0x644   : > { %v2853_v18 = vrot.slane %v2839_v57, %v15238_v8  ;;  %v11778_v48 = vrot.slane %v2846_v45, %v15239_v13 }
 0x646   : > { %v11786_v46 = vrot.slane %v2853_v18, %v15239_v13  ;;  %v2864_v55 = vmul.f32 %v11778_v48, %v11582_v50  ;;  %v2865_v26 = vmul.f32 %v11778_v48, %v11586_v20  ;;  %v2866_v25 = vmul.f32 %v11778_v48, %v11598_v19 }
 0x647   : > { %v2867_v17 = vmul.f32 %v11778_v48, %v11614_v49  ;;  %v2868_v12 = vmul.f32 %v11778_v48, %v11622_v15  ;;  %v2869_v50 = vmul.f32 %v11778_v48, %v11634_v27  ;;  %v2870_v20 = vmul.f32 %v11778_v48, %v11646_v2 }
 0x648   : > { %v2902_v62 = vmul.f32 %v11783_v47, %v2864_v55  ;;  %v2903_v19 = vmul.f32 %v11783_v47, %v2865_v26  ;;  %v2904_v38 = vmul.f32 %v11783_v47, %v2866_v25  ;;  %v2895_v58 = vmul.f32 %v11786_v46, %v11758_v53 }
 0x649   : > { %v2905_v49 = vmul.f32 %v11783_v47, %v2867_v17  ;;  %v2906_v1 = vmul.f32 %v11783_v47, %v2868_v12  ;;  %v2907_v15 = vmul.f32 %v11783_v47, %v2869_v50  ;;  %v2908_v27 = vmul.f32 %v11783_v47, %v2870_v20 }
 0x64a   : > { %v11817_v7 = vadd.f32 %v11797_v4, %v2902_v62  ;;  %v11820_v2 = vadd.f32 %v11797_v4, %v2903_v19  ;;  %v11823_v51 = vadd.f32 %v11797_v4, %v2904_v38  ;;  %v2933_v29 = vmul.f32 %v11783_v47, %v2895_v58 }
 0x64b   : > { %v11827_v53 = vadd.f32 %v11797_v4, %v2905_v49  ;;  %v11830_v0 = vadd.f32 %v11797_v4, %v2906_v1  ;;  %v11833_v43 = vadd.f32 %v11797_v4, %v2907_v15  ;;  %v11836_v36 = vadd.f32 %v11797_v4, %v2908_v27 }
 0x64c   : > { %v2972_v54 = vsub.f32 0.0, %v11817_v7  ;;  %v2973_v5 = vsub.f32 0.0, %v11820_v2  ;;  %v2974_v11 = vsub.f32 0.0, %v11823_v51  ;;  %v11842_v9 = vadd.f32 %v11797_v4, %v2933_v29 }
 0x64d   : > { %v2975_v35 = vsub.f32 0.0, %v11827_v53  ;;  %v2976_v57 = vsub.f32 0.0, %v11830_v0  ;;  %v2977_v45 = vsub.f32 0.0, %v11833_v43  ;;  %v2978_v18 = vsub.f32 0.0, %v11836_v36 }
 0x64e   : > { %v3004_v55 = vmul.f32 1.442695, %v2972_v54  ;;  %v3006_v26 = vmul.f32 1.442695, %v2973_v5  ;;  %v3008_v25 = vmul.f32 1.442695, %v2974_v11  ;;  %v2871_v17 = vmul.f32 %v11778_v48, %v11658_v40 }
 0x64f   : > { %v3010_v12 = vmul.f32 1.442695, %v2975_v35  ;;  %v3012_v50 = vmul.f32 1.442695, %v2976_v57  ;;  %v3003_v20 = vsub.f32 0.0, %v11842_v9  ;;  %v2872_v62 = vmul.f32 %v11778_v48, %v11670_v60 }
 0x650   : > { %9031 = vpow2.f32 %v3004_v55  ;;  %v3014_v19 = vmul.f32 1.442695, %v2977_v45  ;;  %v3016_v38 = vmul.f32 1.442695, %v2978_v18  ;;  %v2909_v58 = vmul.f32 %v11783_v47, %v2871_v17 }
 0x651   : > { %9033 = vpow2.f32 %v3006_v26  ;;  %v3066_v49 = vmul.f32 1.442695, %v3003_v20  ;;  %v2910_v1 = vmul.f32 %v11783_v47, %v2872_v62  ;;  %v2873_v15 = vmul.f32 %v11778_v48, %v11682_v63 }
 0x652   : > { %9035 = vpow2.f32 %v3008_v25  ;;  %v11858_v40 = vadd.f32 %v11797_v4, %v2909_v58  ;;  %v2874_v27 = vmul.f32 %v11778_v48, %v11694_v31  ;;  %v2875_v60 = vmul.f32 %v11778_v48, %v11706_v16 }
 0x653   : > { %9037 = vpow2.f32 %v3010_v12  ;;  %v11865_v29 = vadd.f32 %v11797_v4, %v2910_v1  ;;  %v2911_v54 = vmul.f32 %v11783_v47, %v2873_v15  ;;  %v2876_v5 = vmul.f32 %v11778_v48, %v11718_v33 }
 0x654   : > { %9039 = vpow2.f32 %v3012_v50  ;;  %v2979_v63 = vsub.f32 0.0, %v11858_v40  ;;  %v2912_v11 = vmul.f32 %v11783_v47, %v2874_v27  ;;  %v2913_v35 = vmul.f32 %v11783_v47, %v2875_v60 }
 0x655   : > { %9041 = vpow2.f32 %v3066_v49  ;;  %v2980_v31 = vsub.f32 0.0, %v11865_v29  ;;  %v11875_v16 = vadd.f32 %v11797_v4, %v2911_v54  ;;  %v2914_v57 = vmul.f32 %v11783_v47, %v2876_v5 }
 0x656   : > { %9043 = vpow2.f32 %v3014_v19  ;;  %v3018_v45 = vmul.f32 1.442695, %v2979_v63  ;;  %v11879_v18 = vadd.f32 %v11797_v4, %v2912_v11  ;;  %v11882_v33 = vadd.f32 %v11797_v4, %v2913_v35 }
 0x657   : > { %9045 = vpow2.f32 %v3016_v38  ;;  %v3020_v55 = vmul.f32 1.442695, %v2980_v31  ;;  %v2981_v26 = vsub.f32 0.0, %v11875_v16  ;;  %v11886_v25 = vadd.f32 %v11797_v4, %v2914_v57 }
 0x658   : > { %9047 = vpow2.f32 %v3018_v45  ;;  %v2982_v17 = vsub.f32 0.0, %v11879_v18  ;;  %v2983_v12 = vsub.f32 0.0, %v11882_v33  ;;  %v2877_v50 = vmul.f32 %v11778_v48, %v11730_v52 }
 0x659   : > { %9049 = vpow2.f32 %v3020_v55  ;;  %v3022_v20 = vmul.f32 1.442695, %v2981_v26  ;;  %v2984_v62 = vsub.f32 0.0, %v11886_v25  ;;  %v2878_v19 = vmul.f32 %v11778_v48, %v11742_v61 }
 0x65a   : > { %v9032_v38 = vpop.eup %9031  ;;  %v3024_v58 = vmul.f32 1.442695, %v2982_v17  ;;  %v11895_v49 = vmul.f32 1.442695, %v2983_v12  ;;  %v2915_v1 = vmul.f32 %v11783_v47, %v2877_v50  ;;  %v2879_v15 = vmul.f32 %v11778_v48, %v11754_v28 }
 0x65b   : > { %v9034_v27 = vpop.eup %9033  ;;  %v3068_v60 = vadd.f32 1.0, %v9032_v38  ;;  %9051 = vpow2.f32 %v3022_v20  ;;  %v11900_v52 = vmul.f32 1.442695, %v2984_v62  ;;  %v2916_v54 = vmul.f32 %v11783_v47, %v2878_v19 }
 0x65c   : > { %v9036_v5 = vpop.eup %9035  ;;  %v3069_v63 = vadd.f32 1.0, %v9034_v27  ;;  %9053 = vpow2.f32 %v3024_v58  ;;  %v11904_v61 = vadd.f32 %v11797_v4, %v2915_v1  ;;  %v2880_v11 = vmul.f32 %v11786_v46, %v11590_v56 }
 0x65d   : > { %v9038_v35 = vpop.eup %9037  ;;  %9055 = vrcp.f32 %v3068_v60  ;;  %v3070_v31 = vadd.f32 1.0, %v9036_v5  ;;  %v11909_v28 = vadd.f32 %v11797_v4, %v2916_v54  ;;  %v2917_v48 = vmul.f32 %v11783_v47, %v2879_v15 }
 0x65e   : > { %v9040_v57 = vpop.eup %9039  ;;  %9057 = vrcp.f32 %v3069_v63  ;;  %v3071_v45 = vadd.f32 1.0, %v9038_v35  ;;  %v2985_v55 = vsub.f32 0.0, %v11904_v61  ;;  %v2918_v26 = vmul.f32 %v11783_v47, %v2880_v11 }
 0x65f   : > { %v9042_v17 = vpop.eup %9041  ;;  %9059 = vrcp.f32 %v3070_v31  ;;  %v3072_v12 = vadd.f32 1.0, %v9040_v57  ;;  %v2986_v56 = vsub.f32 0.0, %v11909_v28  ;;  %v11916_v50 = vadd.f32 %v11797_v4, %v2917_v48 }
 0x660   : > { %v9044_v20 = vpop.eup %9043  ;;  %9061 = vrcp.f32 %v3071_v45  ;;  %v3099_v62 = vadd.f32 1.0, %v9042_v17  ;;  %v3030_v19 = vmul.f32 1.442695, %v2985_v55  ;;  %v11919_v38 = vadd.f32 %v11797_v4, %v2918_v26 }
 0x661   : > { %v9046_v58 = vpop.eup %9045  ;;  %9063 = vrcp.f32 %v3072_v12  ;;  %v3073_v1 = vadd.f32 1.0, %v9044_v20  ;;  %v11921_v15 = vmul.f32 1.442695, %v2986_v56  ;;  %v2987_v27 = vsub.f32 0.0, %v11916_v50 }
 0x662   : > { %v9048_v60 = vpop.eup %9047  ;;  %9065 = vrcp.f32 %v3099_v62  ;;  %v3074_v54 = vadd.f32 1.0, %v9046_v58  ;;  %v2988_v5 = vsub.f32 0.0, %v11919_v38  ;;  %v2881_v63 = vmul.f32 %v11786_v46, %v11594_v34 }
 0x663   : > { %v9050_v11 = vpop.eup %9049  ;;  %9067 = vrcp.f32 %v3073_v1  ;;  %v3075_v35 = vadd.f32 1.0, %v9048_v60  ;;  %v11927_v31 = vmul.f32 1.442695, %v2987_v27  ;;  %v2882_v48 = vmul.f32 %v11786_v46, %v11602_v22 }
 0x664   : > { %9069 = vrcp.f32 %v3074_v54  ;;  %v3076_v57 = vadd.f32 1.0, %v9050_v11  ;;  %v11931_v45 = vmul.f32 1.442695, %v2988_v5  ;;  %v2919_v55 = vmul.f32 %v11783_v47, %v2881_v63 }
 0x665   : > { %v9052_v26 = vpop.eup %9051  ;;  %9071 = vrcp.f32 %v3075_v35  ;;  %v2920_v17 = vmul.f32 %v11783_v47, %v2882_v48  ;;  %v2883_v34 = vmul.f32 %v11786_v46, %v11618_v39  ;;  %v2884_v12 = vmul.f32 %v11786_v46, %v11626_v14 }
 0x666   : > { %v9054_v56 = vpop.eup %9053  ;;  %9073 = vrcp.f32 %v3076_v57  ;;  %v3077_v20 = vadd.f32 1.0, %v9052_v26  ;;  %v11940_v22 = vadd.f32 %v11797_v4, %v2919_v55  ;;  %v11944_v62 = vmul.f32 %v11786_v46, %v11638_v59 }
 0x667   : > { %v9056_v58 = vpop.eup %9055  ;;  %v3078_v1 = vadd.f32 1.0, %v9054_v56  ;;  %9075 = vpow2.f32 %v11895_v49  ;;  %v11948_v27 = vadd.f32 %v11797_v4, %v2920_v17  ;;  %v2921_v39 = vmul.f32 %v11783_v47, %v2883_v34 }
 0x668   : > { %v9058_v14 = vpop.eup %9057  ;;  %v11952_v60 = vmul.f32 %v9056_v58, %v11817_v7  ;;  %9077 = vrcp.f32 %v3077_v20  ;;  %v11956_v5 = vmul.f32 %v11783_v47, %v2884_v12 }
 0x669   : > { %v9060_v59 = vpop.eup %9059  ;;  %v3165_v63 = vmul.f32 %v9058_v14, %v11820_v2  ;;  %9079 = vrcp.f32 %v3078_v1  ;;  %v11961_v11 = vadd.f32 %v11797_v4, %v2921_v39 }
 0x66a   : > { %v9062_v35 = vpop.eup %9061  ;;  %v3279_v48 = vrot.slane %v11952_v60, 7  ;;  %v11965_v7 = vmul.f32 %v9060_v59, %v11823_v51  ;;  %v14979_v57 = vrot.slane %v11952_v60, 1  ;;  %9081 = vpow2.f32 %v11900_v52  ;;  %v15240_v59 = vld [vmem:[#allocation33_spill] sm:$0xff] }
 0x66b   : > { %v9064_v55 = vpop.eup %9063  ;;  %v3280_v26 = vrot.slane %v3165_v63, 7  ;;  %v3438_v2 = vpack.c.bf16 %v3165_v63, %v11952_v60  ;;  %v3471_v17 = vrot.slane %v3165_v63, 1  ;;  %v11971_v34 = vmul.f32 %v9062_v35, %v11827_v53 }
 0x66c   : > { %v9066_v12 = vpop.eup %9065  ;;  %v3473_v56 = vrot.slane %v11965_v7, 1  ;;  %v11975_v20 = vmul.f32 %v9064_v55, %v11830_v0  ;;  %v3282_v51 = vrot.slane %v11965_v7, 7  ;;  %9083 = vpow2.f32 %v3030_v19 }
 0x66d   : > { %v9068_v58 = vpop.eup %9067  ;;  %3861 = vmatprep.mubr.bf16.mxu0 %v3438_v2  ;;  %v3472_v52 = vsel %vm1860_vm2, %v14979_v57, %v3471_v17  ;;  %v3475_v1 = vrot.slane %v11971_v34, 1  ;;  %v11983_v53 = vmul.f32 %v9066_v12, %v11842_v9  ;;  %v3281_v39 = vsel %vm1668_vm3, %v3279_v48, %v3280_v26  ;;  %v15241_v2 = vld [vmem:[#allocation34_spill] sm:$0xff] }
 0x66e   : > { %v9070_v14 = vpop.eup %9069  ;;  %v3474_v0 = vsel %vm1860_vm2, %v3471_v17, %v3473_v56  ;;  %v3567_v63 = vmul.f32 %v3472_v52, %v15240_v59  ;;  %v3477_v19 = vrot.slane %v11975_v20, 1  ;;  %v3375_v35 = vmul.f32 %v3281_v39, %v10464_v23 }
 0x66f   : > { %v9072_v55 = vpop.eup %9071  ;;  %v3568_v49 = vmul.f32 %v3474_v0, %v15241_v2  ;;  %v3476_v57 = vsel %vm1860_vm2, %v3473_v56, %v3475_v1  ;;  %v14984_v54 = vrot.slane %v11983_v53, 7  ;;  %v11994_v9 = vmul.f32 %v9068_v58, %v11833_v43  ;;  %v15242_v2 = vld [vmem:[#allocation38_spill] sm:$0xff] }
 0x670   : > { %v9074_v12 = vpop.eup %9073  ;;  %v3478_v13 = vsel %vm1860_vm2, %v3475_v1, %v3477_v19  ;;  %v3569_v17 = vmul.f32 %v3476_v57, %v10557_v6  ;;  %v11999_v52 = vmul.f32 %v9070_v14, %v11836_v36  ;;  %v3439_v39 = vpack.c.bf16 %v11971_v34, %v11965_v7  ;;  %v15243_v1 = vld [vmem:[#allocation17_spill] sm:$0xff] }
 0x671   : > { %v9076_v23 = vpop.eup %9075  ;;  %v3599_v0 = vpack.c.bf16 %v3568_v49, %v3567_v63  ;;  %v3570_v56 = vmul.f32 %v3478_v13, %v15242_v2  ;;  %v3373_v43 = vsel %vm1668_vm3, %v14984_v54, %v3279_v48  ;;  %v3479_v58 = vrot.slane %v11994_v9, 1 }
 0x672   : > { %v9078_v59 = vpop.eup %9077  ;;  %v3374_v8 = vmul.f32 %v3373_v43, %v15243_v1  ;;  %v3481_v57 = vrot.slane %v11999_v52, 1  ;;  %v12011_v36 = vmul.f32 %v9072_v55, %v11858_v40  ;;  %v12014_v7 = vmul.f32 %v9074_v12, %v11865_v29  ;;  %v15244_v1 = vld [vmem:[#allocation39_spill] sm:$0xff]  ;;  %v15245_v29 = vld [vmem:[#allocation40_spill] sm:$0xff] }
 0x673   : > { %v9080_v49 = vpop.eup %9079  ;;  %8518 = vmatprep.mubr.bf16.mxu1 %v3599_v0  ;;  %v3600_v13 = vpack.c.bf16 %v3570_v56, %v3569_v17  ;;  %v3480_v14 = vsel %vm1860_vm2, %v3477_v19, %v3479_v58  ;;  %v3283_v48 = vsel %vm1668_vm3, %v3280_v26, %v3282_v51  ;;  %v3284_v63 = vrot.slane %v11971_v34, 7  ;;  %v15246_v19 = vld [vmem:[#allocation18_spill] sm:$0xff] }
 0x674   : > { %v9082_v54 = vpop.eup %9081  ;;  %v3406_v2 = vpack.c.bf16 %v3375_v35, %v3374_v8  ;;  %v3482_v43 = vsel %vm1860_vm2, %v3479_v58, %v3481_v57  ;;  %v3571_v6 = vmul.f32 %v3480_v14, %v15244_v1  ;;  %v3483_v40 = vrot.slane %v12011_v36, 1  ;;  %v15247_v8 = vld [vmem:[#allocation20_spill] sm:$0xff] }
 0x675   : > { %8519 = vmatmul.mubr.bf16.vlgmr.msra.gmra.mrb[48].mxu1 %v3600_v13  ;;  %v3572_v55 = vmul.f32 %v3482_v43, %v15245_v29  ;;  %v3485_v12 = vrot.slane %v12014_v7, 1  ;;  %v3285_v17 = vsel %vm1668_vm3, %v3282_v51, %v3284_v63  ;;  %v3376_v0 = vmul.f32 %v3283_v48, %v15246_v19  ;;  %v15248_v43 = vld [vmem:[#allocation43_spill] sm:$0xff] }
 0x676   : > { %v9084_v26 = vpop.eup %9083  ;;  %3862 = vmatmul.mubr.bf16.vlgmr.msra.gmra.mrb[64].mxu0 %v3406_v2  ;;  %v3484_v34 = vsel %vm1860_vm2, %v3481_v57, %v3483_v40  ;;  %v3377_v35 = vmul.f32 %v3285_v17, %v15247_v8  ;;  %v12029_v56 = vmul.f32 %v9078_v59, %v11875_v16  ;;  %v12032_v58 = vmul.f32 %v9080_v49, %v11879_v18  ;;  %v15249_v2 = vld [vmem:[#allocation44_spill] sm:$0xff]  ;;  %v9427_v18 = vld [vmem:[%s14846_s1] sm:$0xff]  }
 0x677   : > { %v3601_v13 = vpack.c.bf16 %v3572_v55, %v3571_v6  ;;  %3869 = vmatprep.mubr.bf16.mxu0 %v3439_v39  ;;  %v3486_v14 = vsel %vm1860_vm2, %v3483_v40, %v3485_v12  ;;  %v3573_v51 = vmul.f32 %v3484_v34, %v15248_v43  ;;  %v3440_v48 = vpack.c.bf16 %v11994_v9, %v11975_v20  ;;  %v15250_v34 = vld [vmem:[#allocation45_spill] sm:$0xff] }
 0x678   : > { %v3574_v19 = vmul.f32 %v3486_v14, %v15249_v2  ;;  %v3407_v57 = vpack.c.bf16 %v3377_v35, %v3376_v0  ;;  %v3487_v17 = vrot.slane %v12029_v56, 1  ;;  %v3489_v16 = vrot.slane %v12032_v58, 1  ;;  %8551 = vmatpush3.bf16.msra.mxu1 %v9427_v18 }
 0x679   : > { %8522 = vmatprep.mubr.bf16.mxu1 %v3601_v13  ;;  %v3079_v6 = vadd.f32 1.0, %v9076_v23  ;;  %v3080_v59 = vadd.f32 1.0, %v9082_v54  ;;  %v3286_v39 = vrot.slane %v11975_v20, 7  ;;  %v3288_v49 = vrot.slane %v11994_v9, 7  ;;  %8552 = vmatprep.subr.bf16.mxu1 %v15154_v10  ;;  %v15251_v13 = vld [vmem:[#allocation46_spill] sm:$0xff]  ;;  %v15252_v9 = vld [vmem:[#allocation21_spill] sm:$0xff] }
 0x67a   : > { %v3602_v40 = vpack.c.bf16 %v3574_v19, %v3573_v51  ;;  %v3488_v55 = vsel %vm1860_vm2, %v3485_v12, %v3487_v17  ;;  %v3490_v0 = vsel %vm1860_vm2, %v3487_v17, %v3489_v16  ;;  %9085 = vpow2.f32 %v11921_v15  ;;  %v9428_v12 = vld [vmem:[%s14846_s1 + $0x8] sm:$0xff]   ;;  %v15253_v51 = vld [vmem:[#allocation22_spill] sm:$0xff] }
 0x67b   : > { %v3575_v35 = vmul.f32 %v3488_v55, %v15250_v34  ;;  %v3576_v23 = vmul.f32 %v3490_v0, %v15251_v13  ;;  %9087 = vrcp.f32 %v3079_v6  ;;  %v3287_v54 = vsel %vm1668_vm3, %v3284_v63, %v3286_v39 }
 0x67c   : > { %9089 = vrcp.f32 %v3080_v59  ;;  %v3289_v20 = vsel %vm1668_vm3, %v3286_v39, %v3288_v49  ;;  %v3378_v19 = vmul.f32 %v3287_v54, %v15252_v9  ;;  %v3081_v14 = vadd.f32 1.0, %v9084_v26  ;;  %8553 = vmatpush3.bf16.msra.mxu1 %v9428_v12 }
 0x67d   : > { %8523 = vmatmul.mubr.bf16.gmra.mrb[52].mxu1 %v3602_v40  ;;  %v3603_v15 = vpack.c.bf16 %v3576_v23, %v3575_v35  ;;  %v3379_v17 = vmul.f32 %v3289_v20, %v15253_v51  ;;  %v3441_v18 = vpack.c.bf16 %v12011_v36, %v11999_v52  ;;  %9091 = vpow2.f32 %v11927_v31  ;;  %8554 = vmatprep.subr.bf16.mxu1 %v15154_v10  ;;  %v15257_v35 = vld [vmem:[#allocation24_spill] sm:$0xff] }
 0x67e   : > { %3870 = vmatmul.mubr.bf16.gmra.mrb[68].mxu0 %v3407_v57  ;;  %9093 = vrcp.f32 %v3081_v14  ;;  %v3290_v63 = vrot.slane %v11999_v52, 7  ;;  %v3292_v26 = vrot.slane %v12011_v36, 7  ;;  %v15254_v6 = vsub.f32 0.0, %v11940_v22 }
 0x67f   : > { %8526 = vmatprep.mubr.bf16.mxu1 %v3603_v15  ;;  %3877 = vmatprep.mubr.bf16.mxu0 %v3440_v48  ;;  %v3408_v39 = vpack.c.bf16 %v3379_v17, %v3378_v19  ;;  %9095 = vpow2.f32 %v11931_v45  ;;  %v15255_v40 = vsub.f32 0.0, %v11948_v27  ;;  %v12078_v36 = vadd.f32 %v11797_v4, %v11956_v5  ;;  %v9429_v48 = vld [vmem:[%s14846_s1 + $0x10] sm:$0xff]   ;;  %v15256_v45 = vld [vmem:[#allocation23_spill] sm:$0xff] }
 0x680   : > { %v3038_v59 = vmul.f32 1.442695, %v15254_v6  ;;  %v3291_v57 = vsel %vm1668_vm3, %v3288_v49, %v3290_v63  ;;  %v3293_v52 = vsel %vm1668_vm3, %v3290_v63, %v3292_v26  ;;  %8555 = vmatpush3.bf16.msra.mxu1 %v9429_v48  ;;  %v2991_v49 = vsub.f32 0.0, %v11961_v11  ;;  %v15259_v48 = vld [vmem:[#allocation26_spill] sm:$0xff] }
 0x681   : > { %v3040_v55 = vmul.f32 1.442695, %v15255_v40  ;;  %v12084_v0 = vmul.f32 %v3291_v57, %v15256_v45  ;;  %v12087_v23 = vmul.f32 %v3293_v52, %v15257_v35  ;;  %8556 = vmatprep.subr.bf16.mxu1 %v15154_v10  ;;  %v2992_v54 = vsub.f32 0.0, %v12078_v36  ;;  %v15258_v52 = vld [vmem:[#allocation25_spill] sm:$0xff] }
 0x682   : > { %9097 = vpow2.f32 %v3038_v59  ;;  %v3294_v5 = vrot.slane %v12014_v7, 7  ;;  %v14987_v20 = vrot.slane %v12029_v56, 7  ;;  %v2886_v19 = vmul.f32 %v11786_v46, %v11650_v37 }
 0x683   : > { %9099 = vpow2.f32 %v3040_v55  ;;  %v3042_v12 = vmul.f32 1.442695, %v2991_v49  ;;  %v2923_v15 = vmul.f32 %v11783_v47, %v11944_v62  ;;  %v2887_v17 = vmul.f32 %v11786_v46, %v11662_v3  ;;  %v9430_v55 = vld [vmem:[%s14846_s1 + $0x18] sm:$0xff]  }
 0x684   : > { %v9086_v63 = vpop.eup %9085  ;;  %v3044_v6 = vmul.f32 1.442695, %v2992_v54  ;;  %v3295_v59 = vsel %vm1668_vm3, %v3292_v26, %v3294_v5  ;;  %v3297_v40 = vsel %vm1668_vm3, %v3294_v5, %v14987_v20  ;;  %v2924_v37 = vmul.f32 %v11783_v47, %v2886_v19  ;;  %8557 = vmatpush3.bf16.msra.mxu1 %v9430_v55 }
 0x685   : > { %v9088_v57 = vpop.eup %9087  ;;  %v3082_v62 = vadd.f32 1.0, %v9086_v63  ;;  %9101 = vpow2.f32 %v3042_v12  ;;  %v12111_v3 = vmul.f32 %v3295_v59, %v15258_v52  ;;  %v12114_v49 = vmul.f32 %v3297_v40, %v15259_v48  ;;  %8558 = vmatprep.subr.bf16.mxu1 %v15154_v10  ;;  %v15261_v48 = vld [vmem:[#allocation50_spill] sm:$0xff] }
 0x686   : > { %v9090_v26 = vpop.eup %9089  ;;  %v12118_v54 = vmul.f32 %v9088_v57, %v11882_v33  ;;  %3878 = vmatmul.mubr.bf16.gmra.mrb[72].mxu0 %v3408_v39  ;;  %9103 = vpow2.f32 %v3044_v6  ;;  %v12121_v5 = vadd.f32 %v11797_v4, %v2923_v15  ;;  %v12124_v19 = vadd.f32 %v11797_v4, %v2924_v37 }
 0x687   : > { %v9092_v12 = vpop.eup %9091  ;;  %v12127_v63 = vmul.f32 %v9090_v26, %v11886_v25  ;;  %9105 = vrcp.f32 %v3082_v62  ;;  %3885 = vmatprep.mubr.bf16.mxu0 %v3441_v18  ;;  %v2888_v33 = vmul.f32 %v11786_v46, %v11674_v44  ;;  %v9431_v25 = vld [vmem:[%s14846_s1 + $0x20] sm:$0xff]   ;;  %v2925_v62 = vmul.f32 %v11783_v47, %v2887_v17 }
 0x688   : > { %v9094_v39 = vpop.eup %9093  ;;  %v3491_v6 = vrot.slane %v12118_v54, 1  ;;  %v3083_v15 = vadd.f32 1.0, %v9092_v12  ;;  %v2993_v40 = vsub.f32 0.0, %v12121_v5  ;;  %v2994_v37 = vsub.f32 0.0, %v12124_v19  ;;  %8559 = vmatpush3.bf16.msra.mxu1 %v9431_v25 }
 0x689   : > { %v9096_v18 = vpop.eup %9095  ;;  %v3493_v55 = vrot.slane %v12127_v63, 1  ;;  %v12141_v57 = vmul.f32 %v9094_v39, %v11904_v61  ;;  %8560 = vmatprep.subr.bf16.mxu1 %v15154_v10  ;;  %v15260_v61 = vld [vmem:[#allocation49_spill] sm:$0xff] }
 0x68a   : > { %v3492_v12 = vsel %vm1860_vm2, %v3489_v16, %v3491_v6  ;;  %v3084_v59 = vadd.f32 1.0, %v9096_v18  ;;  %9107 = vrcp.f32 %v3083_v15  ;;  %v3046_v25 = vmul.f32 1.442695, %v2993_v40  ;;  %v9432_v16 = vld [vmem:[%s14846_s1 + $0x28] sm:$0xff]  }
 0x68b   : > { %v3494_v31 = vsel %vm1860_vm2, %v3491_v6, %v3493_v55  ;;  %v3577_v39 = vmul.f32 %v3492_v12, %v15260_v61  ;;  %v3495_v14 = vrot.slane %v12141_v57, 1  ;;  %v3048_v35 = vmul.f32 1.442695, %v2994_v37 }
 0x68c   : > { %v9098_v26 = vpop.eup %9097  ;;  %v3578_v17 = vmul.f32 %v3494_v31, %v15261_v48  ;;  %9109 = vrcp.f32 %v3084_v59  ;;  %8561 = vmatpush3.bf16.msra.mxu1 %v9432_v16  ;;  %v2926_v6 = vmul.f32 %v11783_v47, %v2888_v33  ;;  %v12160_v40 = vadd.f32 %v11797_v4, %v2925_v62  ;;  %v15262_v31 = vld [vmem:[#allocation51_spill] sm:$0xff] }
 0x68d   : > { %v9100_v20 = vpop.eup %9099  ;;  %v3085_v44 = vadd.f32 1.0, %v9098_v26  ;;  %v3496_v15 = vsel %vm1860_vm2, %v3493_v55, %v3495_v14  ;;  %8562 = vmatprep.subr.bf16.mxu1 %v15154_v10  ;;  %v3298_v37 = vrot.slane %v12032_v58, 7  ;;  %v15264_v33 = vpack.c.bf16 %v12029_v56, %v12014_v7 }
 0x68e   : > { %v3086_v52 = vadd.f32 1.0, %v9100_v20  ;;  %v3604_v18 = vpack.c.bf16 %v3578_v17, %v3577_v39  ;;  %v12164_v59 = vmul.f32 %v3496_v15, %v15262_v31  ;;  %v15263_v20 = vpack.c.bf16 %v12087_v23, %v12084_v0 }
 0x68f   : > { %9111 = vrcp.f32 %v3085_v44  ;;  %v9102_v55 = vpop.eup %9101  ;;  %v12174_v44 = vadd.f32 %v11797_v4, %v2926_v6  ;;  %v2995_v62 = vsub.f32 0.0, %v12160_v40  ;;  %v14988_v26 = vrot.slane %v12118_v54, 7  ;;  %v15266_v6 = vld [vmem:[#allocation27_spill] sm:$0xff] }
 0x690   : > { %3886 = vmatmul.mubr.bf16.gmra.mrb[76].mxu0 %v15263_v20  ;;  %9113 = vrcp.f32 %v3086_v52  ;;  %v9104_v12 = vpop.eup %9103  ;;  %8527 = vmatmul.mubr.bf16.gmra.mrb[56].mxu1 %v3604_v18  ;;  %v3087_v0 = vadd.f32 1.0, %v9102_v55  ;;  %v15265_v23 = vrot.slane %v12029_v56, 7  ;;  %v2889_v7 = vmul.f32 %v11786_v46, %v11686_v41  ;;  %v15267_v18 = vld [vmem:[#allocation28_spill] sm:$0xff] }
 0x691   : > { %3893 = vmatprep.mubr.bf16.mxu0 %v15264_v33  ;;  %9115 = vpow2.f32 %v3046_v25  ;;  %v9106_v39 = vpop.eup %9105  ;;  %v3088_v25 = vadd.f32 1.0, %v9104_v12  ;;  %v2996_v17 = vsub.f32 0.0, %v12174_v44  ;;  %v3050_v16 = vmul.f32 1.442695, %v2995_v62 }
 0x692   : > { %9117 = vpow2.f32 %v3048_v35  ;;  %v3299_v52 = vsel %vm1668_vm3, %v15265_v23, %v3298_v37  ;;  %v3301_v15 = vsel %vm1668_vm3, %v3298_v37, %v14988_v26  ;;  %v9433_v35 = vld [vmem:[%s14846_s1 + $0x30] sm:$0xff]   ;;  %v12191_v56 = vmul.f32 %v9106_v39, %v11909_v28 }
 0x693   : > { %8563 = vmatpush3.bf16.msra.mxu1 %v9433_v35  ;;  %9119 = vrcp.f32 %v3087_v0  ;;  %v12194_v41 = vmul.f32 %v3299_v52, %v15266_v6  ;;  %v12197_v20 = vmul.f32 %v3301_v15, %v15267_v18  ;;  %v3052_v55 = vmul.f32 1.442695, %v2996_v17  ;;  %v15272_v15 = vld [vmem:[#allocation56_spill] sm:$0xff] }
 0x694   : > { %8564 = vmatprep.subr.bf16.mxu1 %v15154_v10  ;;  %9121 = vrcp.f32 %v3088_v25  ;;  %v2890_v37 = vmul.f32 %v11786_v46, %v11698_v32  ;;  %v2927_v33 = vmul.f32 %v11783_v47, %v2889_v7  ;;  %v9108_v62 = vpop.eup %9107  ;;  %v3497_v28 = vrot.slane %v12191_v56, 1  ;;  %v9434_v7 = vld [vmem:[%s14846_s1 + $0x38] sm:$0xff]  }
 0x695   : > { %9123 = vpow2.f32 %v3050_v16  ;;  %v3411_v12 = vpack.c.bf16 %v12197_v20, %v12194_v41  ;;  %v3444_v0 = vpack.c.bf16 %v12141_v57, %v12127_v63  ;;  %v12209_v23 = vmul.f32 %v9108_v62, %v11916_v50  ;;  %v15269_v41 = vld [vmem:[#allocation52_spill] sm:$0xff] }
 0x696   : > { %9125 = vpow2.f32 %v3052_v55  ;;  %v2928_v52 = vmul.f32 %v11783_v47, %v2890_v37  ;;  %v12213_v32 = vadd.f32 %v11797_v4, %v2927_v33  ;;  %v9110_v39 = vpop.eup %9109  ;;  %v3498_v25 = vsel %vm1860_vm2, %v3495_v14, %v3497_v28 }
 0x697   : > { %8565 = vmatpush3.bf16.msra.mxu1 %v9434_v7  ;;  %v15268_v17 = vpack.c.bf16 %v12114_v49, %v12111_v3  ;;  %v2891_v50 = vmul.f32 %v11786_v46, %v11710_v24  ;;  %v2892_v16 = vmul.f32 %v11786_v46, %v11722_v42  ;;  %v3580_v20 = vmul.f32 %v3498_v25, %v15269_v41 }
 0x698   : > { %8570 = vmatprep.subr.bf16.mxu1 %v15154_v10  ;;  %v12230_v55 = vmul.f32 %v9110_v39, %v11919_v38  ;;  %v3499_v14 = vrot.slane %v12209_v23, 1  ;;  %v15270_v3 = vpack.c.bf16 %v12118_v54, %v12032_v58  ;;  %v12237_v24 = vadd.f32 %v11797_v4, %v2928_v52 }
 0x699   : > { %3894 = vmatmul.mubr.bf16.gmra.mrb[80].mxu0 %v15268_v17  ;;  %v9112_v35 = vpop.eup %9111  ;;  %v2997_v37 = vsub.f32 0.0, %v12213_v32  ;;  %v2929_v33 = vmul.f32 %v11783_v47, %v2891_v50  ;;  %v2930_v38 = vmul.f32 %v11783_v47, %v2892_v16  ;;  %v3605_v7 = vpack.c.bf16 %v3580_v20, %v12164_v59  ;;  %v15271_v17 = vld [vmem:[#allocation55_spill] sm:$0xff] }
 0x69a   : > { %3901 = vmatprep.mubr.bf16.mxu0 %v15270_v3  ;;  %v9114_v42 = vpop.eup %9113  ;;  %v12240_v49 = vmul.f32 %v9112_v35, %v11940_v22  ;;  %v3500_v39 = vsel %vm1860_vm2, %v3497_v28, %v3499_v14  ;;  %v3501_v58 = vrot.slane %v12230_v55, 1  ;;  %v2998_v50 = vsub.f32 0.0, %v12237_v24 }
 0x69b   : > { %v9116_v62 = vpop.eup %9115  ;;  %v12249_v52 = vmul.f32 %v9114_v42, %v11948_v27  ;;  %v3581_v22 = vmul.f32 %v3500_v39, %v15271_v17  ;;  %8530 = vmatprep.mubr.bf16.mxu1 %v3605_v7  ;;  %v3054_v28 = vmul.f32 1.442695, %v2997_v37 }
 0x69c   : > { %v9118_v25 = vpop.eup %9117  ;;  %v3503_v35 = vrot.slane %v12240_v49, 1  ;;  %v3089_v3 = vadd.f32 1.0, %v9116_v62  ;;  %v3502_v16 = vsel %vm1860_vm2, %v3499_v14, %v3501_v58  ;;  %v3056_v42 = vmul.f32 1.442695, %v2998_v50  ;;  %v15273_v62 = vld [vmem:[#allocation57_spill] sm:$0xff] }
 0x69d   : > { %v3505_v59 = vrot.slane %v12249_v52, 1  ;;  %v3090_v20 = vadd.f32 1.0, %v9118_v25  ;;  %v9120_v26 = vpop.eup %9119  ;;  %v3582_v41 = vmul.f32 %v3502_v16, %v15272_v15  ;;  %v15274_v25 = vld [vmem:[#allocation58_spill] sm:$0xff] }
 0x69e   : > { %v3504_v27 = vsel %vm1860_vm2, %v3501_v58, %v3503_v35  ;;  %9127 = vrcp.f32 %v3089_v3  ;;  %v9122_v39 = vpop.eup %9121  ;;  %v12261_v7 = vmul.f32 %v9120_v26, %v11961_v11 }
 0x69f   : > { %v3506_v17 = vsel %vm1860_vm2, %v3503_v35, %v3505_v59  ;;  %v3583_v18 = vmul.f32 %v3504_v27, %v15273_v62  ;;  %9129 = vrcp.f32 %v3090_v20  ;;  %v9124_v14 = vpop.eup %9123  ;;  %v3606_v6 = vpack.c.bf16 %v3582_v41, %v3581_v22  ;;  %v15278_v20 = vld [vmem:[#allocation69_spill] sm:$0xff]  ;;  %v9459_v62 = vld [vmem:[%s9832_s13 + $0x78] sm:$0xff] }
 0x6a0   : > { %v3584_v37 = vmul.f32 %v3506_v17, %v15274_v25  ;;  %v12265_v31 = vmul.f32 %v9122_v39, %v12078_v36  ;;  %9131 = vpow2.f32 %v3054_v28  ;;  %v9126_v58 = vpop.eup %9125  ;;  %v3507_v3 = vrot.slane %v12261_v7, 1  ;;  %v15279_v39 = vld [vmem:[#allocation29_spill] sm:$0xff]  ;;  %v9450_v25 = vld [vmem:[%s9832_s13 + $0xa0] sm:$0xff] }
 0x6a1   : > { %3902 = vmatmul.mubr.bf16.gmra.mrb[84].mxu0 %v3411_v12  ;;  %v3091_v50 = vadd.f32 1.0, %v9124_v14  ;;  %9133 = vpow2.f32 %v3056_v42  ;;  %v12269_v35 = vadd.f32 %v11797_v4, %v2929_v33  ;;  %8531 = vmatmul.mubr.bf16.gmra.mrb[60].mxu1 %v3606_v6  ;;  %v3092_v41 = vadd.f32 1.0, %v9126_v58 }
 0x6a2   : > { %3909 = vmatprep.mubr.bf16.mxu0 %v3444_v0  ;;  %v3607_v11 = vpack.c.bf16 %v3584_v37, %v3583_v18  ;;  %v3509_v26 = vrot.slane %v12265_v31, 1  ;;  %v12273_v17 = vadd.f32 %v11797_v4, %v2930_v38  ;;  %v3508_v36 = vsel %vm1860_vm2, %v3505_v59, %v3507_v3  ;;  %v15277_v18 = vld [vmem:[#allocation68_spill] sm:$0xff] }
 0x6a3   : > { %9135 = vrcp.f32 %v3091_v50  ;;  %v2999_v12 = vsub.f32 0.0, %v12269_v35  ;;  %v15275_v22 = vrot.slane %v12127_v63, 7  ;;  %v15276_v0 = vrot.slane %v12118_v54, 7 }
 0x6a4   : > { %8534 = vmatprep.mubr.bf16.mxu1 %v3607_v11  ;;  %v3510_v6 = vsel %vm1860_vm2, %v3507_v3, %v3509_v26  ;;  %v3585_v16 = vmul.f32 %v3508_v36, %v15277_v18  ;;  %9137 = vrcp.f32 %v3092_v41  ;;  %v3000_v38 = vsub.f32 0.0, %v12273_v17  ;;  %v15281_v41 = vld [vmem:[#allocation30_spill] sm:$0xff] }
 0x6a5   : > { %v3303_v33 = vsel %vm1668_vm3, %v15276_v0, %v15275_v22  ;;  %v3586_v28 = vmul.f32 %v3510_v6, %v15278_v20  ;;  %v3058_v59 = vmul.f32 1.442695, %v2999_v12  ;;  %v3304_v27 = vrot.slane %v12141_v57, 7 }
 0x6a6   : > { %v3060_v42 = vmul.f32 1.442695, %v3000_v38  ;;  %v3386_v14 = vmul.f32 %v3303_v33, %v15279_v39  ;;  %v2893_v54 = vmul.f32 %v11786_v46, %v11734_v21  ;;  %v2894_v37 = vmul.f32 %v11786_v46, %v11746_v30 }
 0x6a7   : > { %v3608_v58 = vpack.c.bf16 %v3586_v28, %v3585_v16  ;;  %9139 = vpow2.f32 %v3058_v59  ;;  %v15280_v3 = vmov %v15275_v22  ;;  %v3306_v30 = vrot.slane %v12191_v56, 7 }
 0x6a8   : > { %v3305_v50 = vsel %vm1668_vm3, %v15280_v3, %v3304_v27  ;;  %v9128_v11 = vpop.eup %9127  ;;  %9141 = vpow2.f32 %v3060_v42  ;;  %v2931_v57 = vmul.f32 %v11783_v47, %v2893_v54  ;;  %v2932_v12 = vmul.f32 %v11783_v47, %v2894_v37  ;;  %v15282_v3 = vld [vmem:[#allocation31_spill] sm:$0xff] }
 0x6a9   : > { %v3387_v36 = vmul.f32 %v3305_v50, %v15281_v41  ;;  %v9130_v22 = vpop.eup %9129  ;;  %v12299_v21 = vmul.f32 %v9128_v11, %v12121_v5  ;;  %v3308_v46 = vrot.slane %v12209_v23, 7  ;;  %8535 = vmatmul.mubr.bf16.gmra.mrb[64].mxu1 %v3608_v58  ;;  %v3445_v28 = vpack.c.bf16 %v12209_v23, %v12191_v56 }
 0x6aa   : > { %v9132_v0 = vpop.eup %9131  ;;  %v12304_v63 = vmul.f32 %v9130_v22, %v12124_v19  ;;  %v12307_v6 = vadd.f32 %v11797_v4, %v2931_v57  ;;  %v12310_v16 = vadd.f32 %v11797_v4, %v2932_v12  ;;  %v3307_v59 = vsel %vm1668_vm3, %v3304_v27, %v3306_v30  ;;  %v15283_v27 = vld [vmem:[#allocation70_spill] sm:$0xff]  ;;  %v15284_v57 = vld [vmem:[#allocation71_spill] sm:$0xff] }
 0x6ab   : > { %v3412_v33 = vpack.c.bf16 %v3387_v36, %v3386_v14  ;;  %v9134_v47 = vpop.eup %9133  ;;  %v3511_v5 = vrot.slane %v12299_v21, 1  ;;  %v3093_v38 = vadd.f32 1.0, %v9132_v0  ;;  %v3309_v58 = vsel %vm1668_vm3, %v3306_v30, %v3308_v46 }
 0x6ac   : > { %v3513_v42 = vrot.slane %v12304_v63, 1  ;;  %v3094_v19 = vadd.f32 1.0, %v9134_v47  ;;  %v3001_v14 = vsub.f32 0.0, %v12307_v6  ;;  %v3002_v54 = vsub.f32 0.0, %v12310_v16 }
 0x6ad   : > { %3910 = vmatmul.mubr.bf16.gmra.mrb[88].mxu0 %v3412_v33  ;;  %v9136_v37 = vpop.eup %9135  ;;  %v3512_v4 = vsel %vm1860_vm2, %v3509_v26, %v3511_v5  ;;  %9143 = vrcp.f32 %v3093_v38  ;;  %v3388_v50 = vmul.f32 %v3307_v59, %v15282_v3  ;;  %v15285_v33 = vld [vmem:[#allocation32_spill] sm:$0xff]  ;;  %v3310_v38 = vrot.slane %v12230_v55, 7  ;;  %v9443_v3 = vld [vmem:[%s9832_s13 + $0x40] sm:$0xff] }
 0x6ae   : > { %3917 = vmatprep.mubr.bf16.mxu0 %v3445_v28  ;;  %v9138_v56 = vpop.eup %9137  ;;  %v3514_v23 = vsel %vm1860_vm2, %v3511_v5, %v3513_v42  ;;  %v3587_v11 = vmul.f32 %v3512_v4, %v15283_v27  ;;  %v12325_v36 = vmul.f32 %v9136_v37, %v12160_v40  ;;  %9145 = vrcp.f32 %v3094_v19 }
 0x6af   : > { %v3588_v12 = vmul.f32 %v3514_v23, %v15284_v57  ;;  %v12329_v22 = vmul.f32 %v9138_v56, %v12174_v44  ;;  %v3062_v26 = vmul.f32 1.442695, %v3001_v14  ;;  %v3064_v0 = vmul.f32 1.442695, %v3002_v54 }
 0x6b0   : > { %v3515_v30 = vrot.slane %v12325_v36, 1  ;;  %v3389_v47 = vmul.f32 %v3309_v58, %v15285_v33  ;;  %v3446_v5 = vpack.c.bf16 %v12240_v49, %v12230_v55  ;;  %v3312_v19 = vrot.slane %v12240_v49, 7  ;;  %v15286_v58 = vld [vmem:[#allocation75_spill] sm:$0xff] }
 0x6b1   : > { %v9140_v28 = vpop.eup %9139  ;;  %v3609_v40 = vpack.c.bf16 %v3588_v12, %v3587_v11  ;;  %v3517_v59 = vrot.slane %v12329_v22, 1  ;;  %9147 = vpow2.f32 %v3062_v26  ;;  %v3311_v55 = vsel %vm1668_vm3, %v3308_v46, %v3310_v38  ;;  %v15287_v11 = vld [vmem:[#allocation77_spill] sm:$0xff]  ;;  %v15288_v26 = vld [vmem:[#allocation35_spill] sm:$0xff] }
 0x6b2   : > { %v9142_v44 = vpop.eup %9141  ;;  %v3516_v14 = vsel %vm1860_vm2, %v3513_v42, %v3515_v30  ;;  %v3095_v54 = vadd.f32 1.0, %v9140_v28  ;;  %9149 = vpow2.f32 %v3064_v0  ;;  %v3413_v37 = vpack.c.bf16 %v3389_v47, %v3388_v50  ;;  %v15289_v50 = vld [vmem:[#allocation36_spill] sm:$0xff] }
 0x6b3   : > { %8538 = vmatprep.mubr.bf16.mxu1 %v3609_v40  ;;  %v3518_v4 = vsel %vm1860_vm2, %v3515_v30, %v3517_v59  ;;  %v3589_v56 = vmul.f32 %v3516_v14, %v15286_v58  ;;  %v3096_v23 = vadd.f32 1.0, %v9142_v44  ;;  %v3313_v49 = vsel %vm1668_vm3, %v3310_v38, %v3312_v19 }
 0x6b4   : > { %v3590_v12 = vmul.f32 %v3518_v4, %v15287_v11  ;;  %9151 = vrcp.f32 %v3095_v54  ;;  %v3390_v0 = vmul.f32 %v3311_v55, %v15288_v26  ;;  %v3391_v47 = vmul.f32 %v3313_v49, %v15289_v50  ;;  %v15290_v49 = vld [vmem:[#allocation82_spill] sm:$0xff] }
 0x6b5   : > { %3918 = vmatmul.mubr.bf16.gmra.mrb[92].mxu0 %v3413_v37  ;;  %9153 = vrcp.f32 %v3096_v23  ;;  %v3314_v30 = vrot.slane %v12249_v52, 7  ;;  %v3316_v40 = vrot.slane %v12261_v7, 7  ;;  %v3447_v4 = vpack.c.bf16 %v12261_v7, %v12249_v52  ;;  %v15292_v52 = vld [vmem:[#allocation41_spill] sm:$0xff] }
 0x6b6   : > { %3925 = vmatprep.mubr.bf16.mxu0 %v3446_v5  ;;  %v3610_v42 = vpack.c.bf16 %v3590_v12, %v3589_v56  ;;  %v3414_v38 = vpack.c.bf16 %v3391_v47, %v3390_v0 }
 0x6b7   : > { %v9144_v28 = vpop.eup %9143  ;;  %v3315_v56 = vsel %vm1668_vm3, %v3312_v19, %v3314_v30  ;;  %v3317_v23 = vsel %vm1668_vm3, %v3314_v30, %v3316_v40  ;;  %v15293_v19 = vld [vmem:[#allocation42_spill] sm:$0xff] }
 0x6b8   : > { %v9146_v44 = vpop.eup %9145  ;;  %8539 = vmatmul.mubr.bf16.gmra.mrb[68].mxu1 %v3610_v42  ;;  %v12349_v46 = vmul.f32 %v9144_v28, %v12213_v32  ;;  %v15291_v28 = vld [vmem:[#allocation83_spill] sm:$0xff]  ;;  %v3392_v7 = vmul.f32 %v3315_v56, %v15292_v52  ;;  %v3393_v50 = vmul.f32 %v3317_v23, %v15293_v19 }
 0x6b9   : > { %v12352_v14 = vmul.f32 %v9146_v44, %v12237_v24 }
 0x6ba   : > { %v3519_v5 = vrot.slane %v12349_v46, 1 }
 0x6bb   : > { %v9148_v54 = vpop.eup %9147  ;;  %v3521_v37 = vrot.slane %v12352_v14, 1 }
 0x6bc   : > { %v9150_v55 = vpop.eup %9149  ;;  %v3520_v32 = vsel %vm1860_vm2, %v3517_v59, %v3519_v5  ;;  %v3097_v12 = vadd.f32 1.0, %v9148_v54  ;;  %v3318_v59 = vrot.slane %v12265_v31, 7 }
 0x6bd   : > { %3926 = vmatmul.mubr.bf16.gmra.mrb[96].mxu0 %v3414_v38  ;;  %v3522_v24 = vsel %vm1860_vm2, %v3519_v5, %v3521_v37  ;;  %v3591_v42 = vmul.f32 %v3520_v32, %v15290_v49  ;;  %v3098_v0 = vadd.f32 1.0, %v9150_v55  ;;  %v3320_v5 = vrot.slane %v12299_v21, 7  ;;  %v9435_v49 = vld [vmem:[%s9832_s13 + $0x8] sm:$0xff] }
 0x6be   : > { %3933 = vmatprep.mubr.bf16.mxu0 %v3447_v4  ;;  %v9152_v47 = vpop.eup %9151  ;;  %v3592_v44 = vmul.f32 %v3522_v24, %v15291_v28  ;;  %9155 = vrcp.f32 %v3097_v12  ;;  %v3415_v55 = vpack.c.bf16 %v3393_v50, %v3392_v7  ;;  %v3319_v32 = vsel %vm1668_vm3, %v3316_v40, %v3318_v59  ;;  %v15296_v50 = vld [vmem:[#allocation47_spill] sm:$0xff] }
 0x6bf   : > { %v9154_v30 = vpop.eup %9153  ;;  %v12367_v26 = vmul.f32 %v9152_v47, %v12269_v35  ;;  %9157 = vrcp.f32 %v3098_v0  ;;  %v3448_v35 = vpack.c.bf16 %v12299_v21, %v12265_v31  ;;  %v3321_v12 = vsel %vm1668_vm3, %v3318_v59, %v3320_v5  ;;  %v15295_v0 = vld [vmem:[#allocation92_spill] sm:$0xff] }
 0x6c0   : > { %v3611_v38 = vpack.c.bf16 %v3592_v44, %v3591_v42  ;;  %v12372_v54 = vmul.f32 %v9154_v30, %v12273_v17  ;;  %v15294_v42 = vld [vmem:[#allocation91_spill] sm:$0xff]  ;;  %v3531_v44 = vrot.slane %v11983_v53, 1  ;;  %v3394_v7 = vmul.f32 %v3319_v32, %v15296_v50 }
 0x6c1   : > { %v3523_v4 = vrot.slane %v12367_v26, 1  ;;  %v3322_v31 = vrot.slane %v12304_v63, 7  ;;  %v3324_v40 = vrot.slane %v12325_v36, 7 }
 0x6c2   : > { %8542 = vmatprep.mubr.bf16.mxu1 %v3611_v38  ;;  %v3525_v56 = vrot.slane %v12372_v54, 1 }
 0x6c3   : > { %v3524_v23 = vsel %vm1860_vm2, %v3521_v37, %v3523_v4  ;;  %v15297_v37 = vld [vmem:[#allocation48_spill] sm:$0xff]  ;;  %v3323_v32 = vsel %vm1668_vm3, %v3320_v5, %v3322_v31 }
 0x6c4   : > { %v3526_v24 = vsel %vm1860_vm2, %v3523_v4, %v3525_v56  ;;  %v3593_v17 = vmul.f32 %v3524_v23, %v15294_v42  ;;  %v3395_v30 = vmul.f32 %v3321_v12, %v15297_v37  ;;  %v15298_v23 = vrot.slane %v11952_v60, 1 }
 0x6c5   : > { %3934 = vmatmul.mubr.bf16.gmra.mrb[100].mxu0 %v3415_v55  ;;  %v3594_v47 = vmul.f32 %v3526_v24, %v15295_v0 }
 0x6c6   : > { %3941 = vmatprep.mubr.bf16.mxu0 %v3448_v35  ;;  %v3566_v35 = vsel %vm1860_vm2, %v3531_v44, %v15298_v23  ;;  %v3416_v24 = vpack.c.bf16 %v3395_v30, %v3394_v7  ;;  %v15301_v7 = vld [vmem:[#allocation94_spill] sm:$0xff] }
 0x6c7   : > { %v3612_v21 = vpack.c.bf16 %v3594_v47, %v3593_v17  ;;  %v3449_v17 = vpack.c.bf16 %v12325_v36, %v12304_v63  ;;  %v3325_v47 = vsel %vm1668_vm3, %v3322_v31, %v3324_v40  ;;  %v15302_v23 = vld [vmem:[#allocation54_spill] sm:$0xff]  ;;  %v15303_v63 = vld [vmem:[#allocation95_spill] sm:$0xff] }
 0x6c8   : > { %v9156_v59 = vpop.eup %9155  ;;  %v3397_v50 = vmul.f32 %v3325_v47, %v15302_v23  ;;  %v15304_v31 = vld [vmem:[#allocation99_spill] sm:$0xff] }
 0x6c9   : > { %v9158_v38 = vpop.eup %9157  ;;  %8543 = vmatmul.mubr.bf16.gmra.mrb[72].mxu1 %v3612_v21  ;;  %v3193_v4 = vmul.f32 %v9156_v59, %v12307_v6  ;;  %v15299_v6 = vld [vmem:[#allocation100_spill] sm:$0xff] }
 0x6ca   : > { %v3194_v55 = vmul.f32 %v9158_v38, %v12310_v16  ;;  %v3598_v59 = vmul.f32 %v3566_v35, %v15299_v6  ;;  %v15300_v16 = vld [vmem:[#allocation53_spill] sm:$0xff] }
 0x6cb   : > { %v3527_v12 = vrot.slane %v3193_v4, 1  ;;  %v3396_v60 = vmul.f32 %v3323_v32, %v15300_v16  ;;  %v3450_v32 = vpack.c.bf16 %v12349_v46, %v12329_v22 }
 0x6cc   : > { %v3529_v37 = vrot.slane %v3194_v55, 1 }
 0x6cd   : > { %3942 = vmatmul.mubr.bf16.gmra.mrb[104].mxu0 %v3416_v24  ;;  %v3528_v21 = vsel %vm1860_vm2, %v3525_v56, %v3527_v12  ;;  %v3326_v24 = vrot.slane %v12329_v22, 7  ;;  %v3328_v56 = vrot.slane %v12349_v46, 7  ;;  %v3417_v6 = vpack.c.bf16 %v3397_v50, %v3396_v60 }
 0x6ce   : > { %3949 = vmatprep.mubr.bf16.mxu0 %v3449_v17  ;;  %v3530_v38 = vsel %vm1860_vm2, %v3527_v12, %v3529_v37  ;;  %v3595_v30 = vmul.f32 %v3528_v21, %v15301_v7  ;;  %v3532_v5 = vsel %vm1860_vm2, %v3529_v37, %v3531_v44  ;;  %v15305_v37 = vld [vmem:[#allocation63_spill] sm:$0xff]  ;;  %v15306_v21 = vld [vmem:[#allocation65_spill] sm:$0xff]  ;;  %v3332_v50 = vrot.slane %v12367_v26, 7 }
 0x6cf   : > { %v3596_v36 = vmul.f32 %v3530_v38, %v15303_v63  ;;  %v3597_v0 = vmul.f32 %v3532_v5, %v15304_v31  ;;  %v3327_v12 = vsel %vm1668_vm3, %v3324_v40, %v3326_v24  ;;  %v3329_v44 = vsel %vm1668_vm3, %v3326_v24, %v3328_v56 }
 0x6d0   : > { %v3398_v47 = vmul.f32 %v3327_v12, %v15305_v37  ;;  %v3399_v38 = vmul.f32 %v3329_v44, %v15306_v21  ;;  %v3451_v22 = vpack.c.bf16 %v12367_v26, %v12352_v14  ;;  %v3336_v24 = vrot.slane %v3193_v4, 7  ;;  %v15310_v12 = vld [vmem:[#allocation86_spill] sm:$0xff] }
 0x6d1   : > { %v3613_v35 = vpack.c.bf16 %v3596_v36, %v3595_v30  ;;  %v3614_v17 = vpack.c.bf16 %v3598_v59, %v3597_v0  ;;  %v3330_v0 = vrot.slane %v12352_v14, 7  ;;  %v15308_v30 = vld [vmem:[#allocation73_spill] sm:$0xff]  ;;  %v3334_v36 = vrot.slane %v12372_v54, 7 }
 0x6d2   : > { %v3418_v59 = vpack.c.bf16 %v3399_v38, %v3398_v47  ;;  %v15309_v14 = vld [vmem:[#allocation85_spill] sm:$0xff]  ;;  %v3338_v47 = vrot.slane %v3194_v55, 7 }
 0x6d3   : > { %8546 = vmatprep.mubr.bf16.mxu1 %v3613_v35  ;;  %v3331_v46 = vsel %vm1668_vm3, %v3328_v56, %v3330_v0  ;;  %v3333_v40 = vsel %vm1668_vm3, %v3330_v0, %v3332_v50  ;;  %v3337_v26 = vsel %vm1668_vm3, %v3334_v36, %v3336_v24  ;;  %v3453_v0 = vpack.c.bf16 %v11983_v53, %v3194_v55  ;;  %v12441_v55 = vld [vmem:[%s15314_s18] ss:$0 sm:$0xff] }
 0x6d4   : > { %8547 = vmatmul.mubr.bf16.gmra.mrb[76].mxu1 %v3614_v17  ;;  %v3401_v5 = vmul.f32 %v3333_v40, %v15308_v30  ;;  %v3452_v17 = vpack.c.bf16 %v3193_v4, %v12372_v54  ;;  %v3403_v44 = vmul.f32 %v3337_v26, %v15310_v12  ;;  %v15312_v4 = vld [vmem:[#allocation97_spill] sm:$0xff] }
 0x6d5   : > { %3950 = vmatmul.mubr.bf16.gmra.mrb[108].mxu0 %v3417_v6  ;;  %8566 = vmatprep.mubr.msk.bf16.mxu1 %vm9624_vm0, %v15154_v10  ;;  %v15307_v6 = vld [vmem:[#allocation72_spill] sm:$0xff] }
 0x6d6   : > { %3957 = vmatprep.mubr.bf16.mxu0 %v3450_v32  ;;  %v3400_v60 = vmul.f32 %v3331_v46, %v15307_v6  ;;  %v3335_v32 = vsel %vm1668_vm3, %v3332_v50, %v3334_v36  ;;  %v15313_v46 = vld [vmem:[#allocation98_spill] sm:$0xff] }
 0x6d7   : > { %v3402_v56 = vmul.f32 %v3335_v32, %v15309_v14 }
 0x6d8   : > { %v3419_v35 = vpack.c.bf16 %v3401_v5, %v3400_v60 }
 0x6d9   : > { %v3420_v38 = vpack.c.bf16 %v3403_v44, %v3402_v56 }
 0x6dd   : > { %3958 = vmatmul.mubr.bf16.gmra.mrb[112].mxu0 %v3418_v59  ;;  %v3339_v59 = vsel %vm1668_vm3, %v3336_v24, %v3338_v47 }
 0x6de   : > { %3965 = vmatprep.mubr.bf16.mxu0 %v3451_v22  ;;  %v15311_v22 = vrot.slane %v11983_v53, 7  ;;  %v3404_v50 = vmul.f32 %v3339_v59, %v15312_v4 }
 0x6e0   : > { %v3340_v54 = vsel %vm1668_vm3, %v3338_v47, %v15311_v22 }
 0x6e1   : > { %v3405_v40 = vmul.f32 %v3340_v54, %v15313_v46 }
 0x6e3   : > { %v3421_v60 = vpack.c.bf16 %v3405_v40, %v3404_v50 }
 0x6e5   : > { %3966 = vmatmul.mubr.bf16.gmra.mrb[116].mxu0 %v3419_v35 }
 0x6e6   : > { %3973 = vmatprep.mubr.bf16.mxu0 %v3452_v17 }
 0x6ed   : > { %3974 = vmatmul.mubr.bf16.gmra.mrb[120].mxu0 %v3420_v38 }
 0x6ee   : > { %3981 = vmatprep.mubr.bf16.mxu0 %v3453_v0 }
 0x6f5   : > { %3982 = vmatmul.mubr.bf16.gmra.mrb[124].mxu0 %v3421_v60 }
 0x748   : > { %v8520_v5 = vpop.f32.mrb[48].mxu1 }
 0x749   : > { %v7946_v36 = vpop.f32.mrb[64].mxu0  ;;  %v4024_v35 = vpop.f32.mrb[49].mxu1 }
 0x74a   : > { %v7947_v24 = vpop.f32.mrb[65].mxu0  ;;  %v8521_v53 = vpop.f32.mrb[50].mxu1 }
 0x74b   : > { %v7948_v17 = vadd.f32 %v7947_v24, %v7946_v36  ;;  %v7949_v32 = vpop.f32.mrb[66].mxu0  ;;  %v4027_v26 = vpop.f32.mrb[51].mxu1 }
 0x74c   : > { %v7950_v56 = vpop.f32.mrb[67].mxu0 }
 0x74d   : > { %v3864_v44 = vadd.f32 %v7948_v17, %v12441_v55  ;;  %v7951_v47 = vadd.f32 %v7950_v56, %v7949_v32 }
 0x74f   : > { %v12444_v38 = vadd.f32 %v4024_v35, %v3864_v44  ;;  %v3867_v0 = vadd.f32 %v7951_v47, %v12441_v55 }
 0x750   : > { %v8524_v59 = vpop.f32.mrb[52].mxu1 }
 0x751   : > { %v12447_v22 = vadd.f32 %v4027_v26, %v3867_v0  ;;  %v7952_v54 = vpop.f32.mrb[68].mxu0  ;;  %v4040_v50 = vpop.f32.mrb[53].mxu1 }
 0x752   : > { %v7953_v40 = vpop.f32.mrb[69].mxu0  ;;  %v8525_v60 = vpop.f32.mrb[54].mxu1 }
 0x753   : > { %v7954_v46 = vadd.f32 %v7953_v40, %v7952_v54  ;;  %v7955_v4 = vpop.f32.mrb[70].mxu0  ;;  %v4043_v36 = vpop.f32.mrb[55].mxu1 }
 0x754   : > { %v7956_v24 = vpop.f32.mrb[71].mxu0 }
 0x755   : > { %v3872_v12 = vadd.f32 %v7954_v46, %v12441_v55  ;;  %v7957_v14 = vadd.f32 %v7956_v24, %v7955_v4 }
 0x757   : > { %v12450_v17 = vadd.f32 %v8520_v5, %v3872_v12  ;;  %v3875_v35 = vadd.f32 %v7957_v14, %v12441_v55 }
 0x759   : > { %v12453_v32 = vadd.f32 %v8521_v53, %v3875_v35  ;;  %v7958_v56 = vpop.f32.mrb[72].mxu0 }
 0x75a   : > { %v7959_v26 = vpop.f32.mrb[73].mxu0 }
 0x75b   : > { %v7960_v44 = vadd.f32 %v7959_v26, %v7958_v56  ;;  %v7961_v47 = vpop.f32.mrb[74].mxu0 }
 0x75c   : > { %v7962_v0 = vpop.f32.mrb[75].mxu0 }
 0x75d   : > { %v3880_v30 = vadd.f32 %v7960_v44, %v12441_v55  ;;  %v7963_v54 = vadd.f32 %v7962_v0, %v7961_v47 }
 0x75f   : > { %v12456_v40 = vadd.f32 %v4040_v50, %v3880_v30  ;;  %v3883_v6 = vadd.f32 %v7963_v54, %v12441_v55 }
 0x761   : > { %v12459_v46 = vadd.f32 %v4043_v36, %v3883_v6 }
 0x763   : > { %v7964_v12 = vpop.f32.mrb[76].mxu0  ;;  %v8528_v5 = vpop.f32.mrb[56].mxu1 }
 0x764   : > { %v7965_v4 = vpop.f32.mrb[77].mxu0  ;;  %v4056_v24 = vpop.f32.mrb[57].mxu1 }
 0x765   : > { %v7966_v14 = vadd.f32 %v7965_v4, %v7964_v12  ;;  %v7967_v53 = vpop.f32.mrb[78].mxu0  ;;  %v8529_v21 = vpop.f32.mrb[58].mxu1 }
 0x766   : > { %v7968_v35 = vpop.f32.mrb[79].mxu0  ;;  %v4059_v37 = vpop.f32.mrb[59].mxu1 }
 0x767   : > { %v3888_v56 = vadd.f32 %v7966_v14, %v12441_v55  ;;  %v7969_v26 = vadd.f32 %v7968_v35, %v7967_v53 }
 0x769   : > { %v12462_v44 = vadd.f32 %v8524_v59, %v3888_v56  ;;  %v3891_v30 = vadd.f32 %v7969_v26, %v12441_v55 }
 0x76b   : > { %v12465_v50 = vadd.f32 %v8525_v60, %v3891_v30 }
 0x76c   : > { %v7970_v6 = vpop.f32.mrb[80].mxu0 }
 0x76d   : > { %v7971_v36 = vpop.f32.mrb[81].mxu0 }
 0x76e   : > { %v7972_v47 = vadd.f32 %v7971_v36, %v7970_v6  ;;  %v7973_v0 = vpop.f32.mrb[82].mxu0 }
 0x76f   : > { %v7974_v54 = vpop.f32.mrb[83].mxu0 }
 0x770   : > { %v3896_v12 = vadd.f32 %v7972_v47, %v12441_v55  ;;  %v7975_v4 = vadd.f32 %v7974_v54, %v7973_v0 }
 0x772   : > { %v12468_v31 = vadd.f32 %v4056_v24, %v3896_v12  ;;  %v3899_v14 = vadd.f32 %v7975_v4, %v12441_v55 }
 0x774   : > { %v12471_v53 = vadd.f32 %v4059_v37, %v3899_v14  ;;  %v7976_v59 = vpop.f32.mrb[84].mxu0  ;;  %v8532_v56 = vpop.f32.mrb[60].mxu1 }
 0x775   : > { %v7977_v35 = vpop.f32.mrb[85].mxu0  ;;  %v4072_v30 = vpop.f32.mrb[61].mxu1 }
 0x776   : > { %v7978_v26 = vadd.f32 %v7977_v35, %v7976_v59  ;;  %v7979_v60 = vpop.f32.mrb[86].mxu0  ;;  %v8533_v23 = vpop.f32.mrb[62].mxu1 }
 0x777   : > { %v7980_v63 = vpop.f32.mrb[87].mxu0  ;;  %v4075_v7 = vpop.f32.mrb[63].mxu1 }
 0x778   : > { %v3904_v6 = vadd.f32 %v7978_v26, %v12441_v55  ;;  %v7981_v36 = vadd.f32 %v7980_v63, %v7979_v60 }
 0x77a   : > { %v12474_v47 = vadd.f32 %v8528_v5, %v3904_v6  ;;  %v3907_v24 = vadd.f32 %v7981_v36, %v12441_v55 }
 0x77c   : > { %v12477_v0 = vadd.f32 %v8529_v21, %v3907_v24  ;;  %v8536_v37 = vpop.f32.mrb[64].mxu1 }
 0x77d   : > { %v4088_v54 = vpop.f32.mrb[65].mxu1 }
 0x77e   : > { %v12479_v12 = vpop.f32.mrb[66].mxu1 }
 0x77f   : > { %v4091_v14 = vpop.f32.mrb[67].mxu1 }
 0x780   : > { %v7982_v4 = vpop.f32.mrb[88].mxu0 }
 0x781   : > { %v7983_v59 = vpop.f32.mrb[89].mxu0 }
 0x782   : > { %v7984_v35 = vadd.f32 %v7983_v59, %v7982_v4  ;;  %v7985_v16 = vpop.f32.mrb[90].mxu0 }
 0x783   : > { %v7986_v42 = vpop.f32.mrb[91].mxu0 }
 0x784   : > { %v3912_v26 = vadd.f32 %v7984_v35, %v12441_v55  ;;  %v7987_v63 = vadd.f32 %v7986_v42, %v7985_v16 }
 0x786   : > { %v12482_v60 = vadd.f32 %v4072_v30, %v3912_v26  ;;  %v3915_v5 = vadd.f32 %v7987_v63, %v12441_v55 }
 0x788   : > { %v12485_v6 = vadd.f32 %v4075_v7, %v3915_v5  ;;  %v7988_v21 = vpop.f32.mrb[92].mxu0 }
 0x789   : > { %v7989_v36 = vpop.f32.mrb[93].mxu0 }
 0x78a   : > { %v7990_v24 = vadd.f32 %v7989_v36, %v7988_v21  ;;  %v7991_v19 = vpop.f32.mrb[94].mxu0 }
 0x78b   : > { %v7992_v52 = vpop.f32.mrb[95].mxu0  ;;  %v12487_v28 = vpop.f32.mrb[68].mxu1 }
 0x78c   : > { %v3920_v4 = vadd.f32 %v7990_v24, %v12441_v55  ;;  %v7993_v59 = vadd.f32 %v7992_v52, %v7991_v19  ;;  %v4104_v35 = vpop.f32.mrb[69].mxu1  ;;  %v12499_v52 = vadd.f32 %v9435_v49, %v12447_v22 }
 0x78d   : > { %v12490_v42 = vpop.f32.mrb[70].mxu1 }
 0x78e   : > { %v12492_v16 = vadd.f32 %v8532_v56, %v3920_v4  ;;  %v3923_v7 = vadd.f32 %v7993_v59, %v12441_v55  ;;  %v4107_v30 = vpop.f32.mrb[71].mxu1  ;;  %15315 = vst [vmem:[#allocation74_spill] sm:$0xff] %v12499_v52  ;;  %v9436_v56 = vld [vmem:[%s9832_s13] sm:$0xff] }
 0x78f   : > { %v12504_v4 = vadd.f32 %v9436_v56, %v12444_v38 }
 0x790   : > { %v12495_v26 = vadd.f32 %v8533_v23, %v3923_v7  ;;  %v7994_v63 = vpop.f32.mrb[96].mxu0  ;;  %v9437_v23 = vld [vmem:[%s9832_s13 + $0x10] sm:$0xff] }
 0x791   : > { %v7995_v5 = vpop.f32.mrb[97].mxu0  ;;  %15316 = vst [vmem:[#allocation79_spill] sm:$0xff] %v12504_v4  ;;  %v12508_v59 = vadd.f32 %v9437_v23, %v12450_v17  ;;  %v4187_v49 = vadd.f32 %v12499_v52, %v12504_v4  ;;  %v9439_v17 = vld [vmem:[%s9832_s13 + $0x20] sm:$0xff] }
 0x792   : > { %v7996_v21 = vadd.f32 %v7995_v5, %v7994_v63  ;;  %v7997_v36 = vpop.f32.mrb[98].mxu0 }
 0x793   : > { %v7998_v19 = vpop.f32.mrb[99].mxu0  ;;  %15317 = vst [vmem:[#allocation62_spill] sm:$0xff] %v12508_v59 }
 0x794   : > { %v3928_v24 = vadd.f32 %v7996_v21, %v12441_v55  ;;  %v7999_v11 = vadd.f32 %v7998_v19, %v7997_v36  ;;  %v4188_v21 = vadd.f32 %v4187_v49, %v12508_v59  ;;  %v9438_v36 = vld [vmem:[%s9832_s13 + $0x18] sm:$0xff] }
 0x795   : > { %v12516_v19 = vadd.f32 %v9438_v36, %v12453_v32 }
 0x796   : > { %v4089_v7 = vadd.f32 %v4088_v54, %v3928_v24  ;;  %v3931_v63 = vadd.f32 %v7999_v11, %v12441_v55  ;;  %v12520_v54 = vadd.f32 %v9439_v17, %v12456_v40 }
 0x797   : > { %15318 = vst [vmem:[#allocation88_spill] sm:$0xff] %v12516_v19  ;;  %v4189_v23 = vadd.f32 %v4188_v21, %v12516_v19 }
 0x798   : > { %v4092_v22 = vadd.f32 %v4091_v14, %v3931_v63  ;;  %v8000_v5 = vpop.f32.mrb[100].mxu0  ;;  %15319 = vst [vmem:[#allocation64_spill] sm:$0xff] %v12520_v54 }
 0x799   : > { %v8001_v38 = vpop.f32.mrb[101].mxu0 }
 0x79a   : > { %v8002_v56 = vadd.f32 %v8001_v38, %v8000_v5  ;;  %v8003_v58 = vpop.f32.mrb[102].mxu0  ;;  %v4190_v5 = vadd.f32 %v4189_v23, %v12520_v54  ;;  %v9440_v38 = vld [vmem:[%s9832_s13 + $0x28] sm:$0xff] }
 0x79b   : > { %v8004_v11 = vpop.f32.mrb[103].mxu0  ;;  %v12532_v40 = vadd.f32 %v9440_v38, %v12459_v46 }
 0x79c   : > { %v3936_v24 = vadd.f32 %v8002_v56, %v12441_v55  ;;  %v8005_v14 = vadd.f32 %v8004_v11, %v8003_v58  ;;  %v12524_v63 = vpop.f32.mrb[72].mxu1  ;;  %v9441_v11 = vld [vmem:[%s9832_s13 + $0x30] sm:$0xff] }
 0x79d   : > { %v12526_v49 = vpop.f32.mrb[73].mxu1  ;;  %15320 = vst [vmem:[#allocation89_spill] sm:$0xff] %v12532_v40  ;;  %v4191_v33 = vadd.f32 %v4190_v5, %v12532_v40 }
 0x79e   : > { %v4097_v32 = vadd.f32 %v8536_v37, %v3936_v24  ;;  %v3939_v36 = vadd.f32 %v8005_v14, %v12441_v55  ;;  %v12534_v17 = vpop.f32.mrb[74].mxu1  ;;  %v12541_v37 = vadd.f32 %v9441_v11, %v12462_v44 }
 0x79f   : > { %v12536_v56 = vpop.f32.mrb[75].mxu1 }
 0x7a0   : > { %v4100_v58 = vadd.f32 %v12479_v12, %v3939_v36  ;;  %v8006_v21 = vpop.f32.mrb[104].mxu0  ;;  %15321 = vst [vmem:[#allocation84_spill] sm:$0xff] %v12541_v37  ;;  %v4192_v27 = vadd.f32 %v4191_v33, %v12541_v37  ;;  %v9442_v12 = vld [vmem:[%s9832_s13 + $0x38] sm:$0xff] }
 0x7a1   : > { %v8007_v24 = vpop.f32.mrb[105].mxu0  ;;  %v12548_v36 = vadd.f32 %v9442_v12, %v12465_v50 }
 0x7a2   : > { %v8008_v14 = vadd.f32 %v8007_v24, %v8006_v21  ;;  %v8009_v23 = vpop.f32.mrb[106].mxu0  ;;  %v12553_v21 = vadd.f32 %v9443_v3, %v12468_v31  ;;  %v9444_v24 = vld [vmem:[%s9832_s13 + $0x88] sm:$0xff]  ;;  %v9446_v3 = vld [vmem:[%s9832_s13 + $0x90] sm:$0xff] }
 0x7a3   : > { %v8010_v46 = vpop.f32.mrb[107].mxu0  ;;  %15322 = vst [vmem:[#allocation66_spill] sm:$0xff] %v12548_v36  ;;  %v12569_v31 = vadd.f32 %v9446_v3, %v4097_v32  ;;  %v9448_v3 = vld [vmem:[%s9832_s13 + $0x50] sm:$0xff] }
 0x7a4   : > { %v3944_v38 = vadd.f32 %v8008_v14, %v12441_v55  ;;  %v8011_v57 = vadd.f32 %v8010_v46, %v8009_v23  ;;  %15323 = vst [vmem:[#allocation90_spill] sm:$0xff] %v12553_v21  ;;  %v12558_v14 = vadd.f32 %v9444_v24, %v4092_v22  ;;  %v4193_v46 = vadd.f32 %v4192_v27, %v12548_v36 }
 0x7a5   : > { %15326 = vst [vmem:[#allocation96_spill] sm:$0xff] %v12569_v31 }
 0x7a6   : > { %v4105_v44 = vadd.f32 %v4104_v35, %v3944_v38  ;;  %v3947_v11 = vadd.f32 %v8011_v57, %v12441_v55  ;;  %15324 = vst [vmem:[#allocation67_spill] sm:$0xff] %v12558_v14  ;;  %v9445_v57 = vld [vmem:[%s9832_s13 + $0x80] sm:$0xff] }
 0x7a7   : > { %v12555_v5 = vpop.f32.mrb[76].mxu1  ;;  %v12566_v38 = vadd.f32 %v9445_v57, %v4089_v7 }
 0x7a8   : > { %v4108_v33 = vadd.f32 %v4107_v30, %v3947_v11  ;;  %v8012_v23 = vpop.f32.mrb[108].mxu0  ;;  %v12561_v50 = vpop.f32.mrb[77].mxu1  ;;  %v4194_v30 = vadd.f32 %v4193_v46, %v12553_v21  ;;  %v9447_v11 = vld [vmem:[%s9832_s13 + $0x48] sm:$0xff] }
 0x7a9   : > { %v8013_v12 = vpop.f32.mrb[109].mxu0  ;;  %v12563_v35 = vpop.f32.mrb[78].mxu1  ;;  %15325 = vst [vmem:[#allocation80_spill] sm:$0xff] %v12566_v38  ;;  %v12574_v27 = vadd.f32 %v9447_v11, %v12471_v53  ;;  %v4208_v7 = vadd.f32 %v12558_v14, %v12566_v38 }
 0x7aa   : > { %v8014_v41 = vadd.f32 %v8013_v12, %v8012_v23  ;;  %v8015_v22 = vpop.f32.mrb[110].mxu0  ;;  %v12576_v24 = vpop.f32.mrb[79].mxu1  ;;  %v12583_v23 = vadd.f32 %v9448_v3, %v12474_v47  ;;  %v9449_v12 = vld [vmem:[%s9832_s13 + $0x98] sm:$0xff] }
 0x7ab   : > { %15327 = vst [vmem:[#allocation59_spill] sm:$0xff] %v12574_v27  ;;  %v8016_v39 = vpop.f32.mrb[111].mxu0  ;;  %v4209_v46 = vadd.f32 %v4208_v7, %v12569_v31  ;;  %v12587_v53 = vadd.f32 %v9449_v12, %v4100_v58  ;;  %v4195_v18 = vadd.f32 %v4194_v30, %v12574_v27  ;;  %v9451_v7 = vld [vmem:[%s9832_s13 + $0x58] sm:$0xff] }
 0x7ac   : > { %v3952_v57 = vadd.f32 %v8014_v41, %v12441_v55  ;;  %v8017_v32 = vadd.f32 %v8016_v39, %v8015_v22  ;;  %15328 = vst [vmem:[#allocation87_spill] sm:$0xff] %v12583_v23  ;;  %v12593_v41 = vadd.f32 %v9450_v25, %v4105_v44  ;;  %v12599_v58 = vadd.f32 %v9451_v7, %v12477_v0 }
 0x7ad   : > { %15329 = vst [vmem:[#allocation61_spill] sm:$0xff] %v12587_v53  ;;  %v4196_v22 = vadd.f32 %v4195_v18, %v12583_v23  ;;  %v9453_v18 = vld [vmem:[%s9832_s13 + $0xa8] sm:$0xff] }
 0x7ae   : > { %v4113_v11 = vadd.f32 %v12487_v28, %v3952_v57  ;;  %v3955_v20 = vadd.f32 %v8017_v32, %v12441_v55  ;;  %15330 = vst [vmem:[#allocation78_spill] sm:$0xff] %v12593_v41  ;;  %15331 = vst [vmem:[#allocation81_spill] sm:$0xff] %v12599_v58  ;;  %v4210_v28 = vadd.f32 %v4209_v46, %v12587_v53  ;;  %v9452_v32 = vld [vmem:[%s9832_s13 + $0x60] sm:$0xff] }
 0x7af   : > { %v12604_v25 = vadd.f32 %v9452_v32, %v12482_v60  ;;  %v4197_v46 = vadd.f32 %v4196_v22, %v12599_v58  ;;  %v9456_v22 = vld [vmem:[%s9832_s13 + $0x70] sm:$0xff] }
 0x7b0   : > { %v4116_v39 = vadd.f32 %v12490_v42, %v3955_v20  ;;  %v8018_v47 = vpop.f32.mrb[112].mxu0  ;;  %v4211_v20 = vadd.f32 %v4210_v28, %v12593_v41  ;;  %v12608_v42 = vadd.f32 %v9453_v18, %v4108_v33  ;;  %v9455_v28 = vld [vmem:[%s9832_s13 + $0x68] sm:$0xff] }
 0x7b1   : > { %v8019_v3 = vpop.f32.mrb[113].mxu0  ;;  %15332 = vst [vmem:[#allocation60_spill] sm:$0xff] %v12604_v25  ;;  %v4198_v32 = vadd.f32 %v4197_v46, %v12604_v25  ;;  %v12620_v33 = vadd.f32 %v9455_v28, %v12485_v6  ;;  %v9458_v28 = vld [vmem:[%s9832_s13 + $0xc0] sm:$0xff] }
 0x7b2   : > { %v8020_v57 = vadd.f32 %v8019_v3, %v8018_v47  ;;  %v8021_v30 = vpop.f32.mrb[114].mxu0  ;;  %15333 = vst [vmem:[#allocation76_spill] sm:$0xff] %v12608_v42  ;;  %v9454_v47 = vld [vmem:[%s9832_s13 + $0xb0] sm:$0xff] }
 0x7b3   : > { %v8022_v44 = vpop.f32.mrb[115].mxu0  ;;  %v12613_v7 = vadd.f32 %v9454_v47, %v4113_v11  ;;  %15335 = vst [vmem:[#allocation39_spill] sm:$0xff] %v12620_v33  ;;  %v12626_v11 = vadd.f32 %v9456_v22, %v12492_v16  ;;  %v4199_v47 = vadd.f32 %v4198_v32, %v12620_v33 }
 0x7b4   : > { %v3960_v0 = vadd.f32 %v8020_v57, %v12441_v55  ;;  %v8023_v12 = vadd.f32 %v8022_v44, %v8021_v30  ;;  %v4212_v57 = vadd.f32 %v4211_v20, %v12608_v42 }
 0x7b5   : > { %15334 = vst [vmem:[#allocation93_spill] sm:$0xff] %v12613_v7  ;;  %15336 = vst [vmem:[#allocation40_spill] sm:$0xff] %v12626_v11  ;;  %v4200_v22 = vadd.f32 %v4199_v47, %v12626_v11 }
 0x7b6   : > { %v4121_v3 = vadd.f32 %v12526_v49, %v3960_v0  ;;  %v3963_v60 = vadd.f32 %v8023_v12, %v12441_v55  ;;  %v4213_v18 = vadd.f32 %v4212_v57, %v12613_v7  ;;  %v9457_v0 = vld [vmem:[%s9832_s13 + $0xb8] sm:$0xff]  ;;  %v12640_v57 = vadd.f32 %v9459_v62, %v12495_v26  ;;  %v9461_v26 = vld [vmem:[%s9832_s13 + $0xd0] sm:$0xff] }
 0x7b7   : > { %v12630_v12 = vadd.f32 %v9457_v0, %v4116_v39 }
 0x7b8   : > { %v4124_v30 = vadd.f32 %v12536_v56, %v3963_v60  ;;  %v8024_v44 = vpop.f32.mrb[116].mxu0  ;;  %v12634_v56 = vadd.f32 %v9458_v28, %v4121_v3  ;;  %15339 = vst [vmem:[#allocation44_spill] sm:$0xff] %v12640_v57  ;;  %v9460_v3 = vld [vmem:[%s9832_s13 + $0xc8] sm:$0xff]  ;;  %v4201_v47 = vadd.f32 %v4200_v22, %v12640_v57 }
 0x7b9   : > { %v8025_v49 = vpop.f32.mrb[117].mxu0  ;;  %15337 = vst [vmem:[#allocation20_spill] sm:$0xff] %v12630_v12  ;;  %v4214_v39 = vadd.f32 %v4213_v18, %v12630_v12 }
 0x7ba   : > { %v8026_v46 = vadd.f32 %v8025_v49, %v8024_v44  ;;  %v8027_v6 = vpop.f32.mrb[118].mxu0  ;;  %15338 = vst [vmem:[#allocation43_spill] sm:$0xff] %v12634_v56  ;;  %v12647_v0 = vadd.f32 %v9460_v3, %v4124_v30  ;;  %v4202_v30 = vrot.slane %v4201_v47, 4 }
 0x7bb   : > { %v8028_v20 = vpop.f32.mrb[119].mxu0  ;;  %v4215_v49 = vadd.f32 %v4214_v39, %v12634_v56 }
 0x7bc   : > { %v3968_v60 = vadd.f32 %v8026_v46, %v12441_v55  ;;  %v8029_v16 = vadd.f32 %v8028_v20, %v8027_v6  ;;  %15340 = vst [vmem:[#allocation45_spill] sm:$0xff] %v12647_v0 }
 0x7be   : > { %v4129_v44 = vadd.f32 %v12524_v63, %v3968_v60  ;;  %v3971_v32 = vadd.f32 %v8029_v16, %v12441_v55  ;;  %v4216_v60 = vadd.f32 %v4215_v49, %v12647_v0 }
 0x7c0   : > { %v4132_v46 = vadd.f32 %v12534_v17, %v3971_v32  ;;  %v8030_v6 = vpop.f32.mrb[120].mxu0  ;;  %v12652_v20 = vadd.f32 %v9461_v26, %v4129_v44  ;;  %v9462_v17 = vld [vmem:[%s9832_s13 + $0xd8] sm:$0xff]  ;;  %v9463_v26 = vld [vmem:[%s9832_s13 + $0xe0] sm:$0xff] }
 0x7c1   : > { %v8031_v62 = vpop.f32.mrb[121].mxu0 }
 0x7c2   : > { %15341 = vst [vmem:[#allocation46_spill] sm:$0xff] %v12652_v20  ;;  %v8032_v18 = vadd.f32 %v8031_v62, %v8030_v6  ;;  %v8033_v63 = vpop.f32.mrb[122].mxu0  ;;  %v4217_v3 = vadd.f32 %v4216_v60, %v12652_v20  ;;  %v12658_v32 = vadd.f32 %v9462_v17, %v4132_v46 }
 0x7c3   : > { %v8034_v28 = vpop.f32.mrb[123].mxu0 }
 0x7c4   : > { %v3976_v16 = vadd.f32 %v8032_v18, %v12441_v55  ;;  %v8035_v39 = vadd.f32 %v8034_v28, %v8033_v63  ;;  %15342 = vst [vmem:[#allocation21_spill] sm:$0xff] %v12658_v32  ;;  %v4203_v63 = vadd.f32 %v4202_v30, %v4201_v47  ;;  %v4218_v28 = vadd.f32 %v4217_v3, %v12658_v32  ;;  %v9465_v30 = vld [vmem:[%s9832_s13 + $0xf0] sm:$0xff] }
 0x7c6   : > { %v4137_v22 = vadd.f32 %v12561_v50, %v3976_v16  ;;  %v3979_v44 = vadd.f32 %v8035_v39, %v12441_v55  ;;  %v9464_v50 = vld [vmem:[%s9832_s13 + $0xe8] sm:$0xff] }
 0x7c8   : > { %v12663_v6 = vadd.f32 %v9463_v26, %v4137_v22  ;;  %v4140_v62 = vadd.f32 %v12576_v24, %v3979_v44  ;;  %v8036_v49 = vpop.f32.mrb[124].mxu0  ;;  %v4204_v26 = vrot.slane %v4203_v63, 2 }
 0x7c9   : > { %v8037_v18 = vpop.f32.mrb[125].mxu0 }
 0x7ca   : > { %15343 = vst [vmem:[#allocation101_spill] sm:$0xff] %v12663_v6  ;;  %v8038_v60 = vadd.f32 %v8037_v18, %v8036_v49  ;;  %v8039_v15 = vpop.f32.mrb[126].mxu0  ;;  %v4219_v17 = vadd.f32 %v4218_v28, %v12663_v6  ;;  %v12669_v16 = vadd.f32 %v9464_v50, %v4140_v62  ;;  %v4205_v18 = vadd.f32 %v4204_v26, %v4203_v63  ;;  %v9466_v62 = vld [vmem:[%s9832_s13 + $0xf8] sm:$0xff] }
 0x7cb   : > { %v8040_v46 = vpop.f32.mrb[127].mxu0 }
 0x7cc   : > { %15344 = vst [vmem:[#allocation102_spill] sm:$0xff] %v12669_v16  ;;  %v3984_v39 = vadd.f32 %v8038_v60, %v12441_v55  ;;  %v8041_v22 = vadd.f32 %v8040_v46, %v8039_v15  ;;  %v4220_v47 = vadd.f32 %v4219_v17, %v12669_v16  ;;  %v4206_v60 = vrot.slane %v4205_v18, 1 }
 0x7ce   : > { %v4145_v24 = vadd.f32 %v12555_v5, %v3984_v39  ;;  %v3987_v44 = vadd.f32 %v8041_v22, %v12441_v55  ;;  %v4207_v39 = vadd.f32 %v4206_v60, %v4205_v18  ;;  %v12711_v18 = vld [vmem:[%s14846_s1 + $0x18] sm:$0xff]  }
 0x7cf   : > { %15347 = vst [vmem:[#allocation105_spill] sm:$0xff] %v12711_v18  ;;  %v9474_v60 = vld [vmem:[%s14846_s1 + $0x38] sm:$0xff]  }
 0x7d0   : > { %v12676_v3 = vadd.f32 %v9465_v30, %v4145_v24  ;;  %v4148_v49 = vadd.f32 %v12563_v35, %v3987_v44  ;;  %v4229_v17 = vmul.f32 0.0078125, %v4207_v39  ;;  %v8853_v39 = vld [vmem:[%s14851_s6 + $0x108] sm:$0xff]  }
 0x7d2   : > { %15345 = vst [vmem:[#allocation103_spill] sm:$0xff] %v12676_v3  ;;  %v4221_v28 = vadd.f32 %v4220_v47, %v12676_v3  ;;  %v12681_v50 = vadd.f32 %v9466_v62, %v4148_v49  ;;  %v4231_v61 = vpack.c.bf16 %v4229_v17, %v4229_v17  ;;  %v12688_v49 = vld [vmem:[%s14846_s1] sm:$0xff]   ;;  %v9472_v62 = vld [vmem:[%s14846_s1 + $0x28] sm:$0xff]   ;;  %v8856_v17 = vld [vmem:[%s14851_s6 + $0xd0] sm:$0xff]  }
 0x7d4   : > { %15346 = vst [vmem:[#allocation104_spill] sm:$0xff] %v12681_v50  ;;  %v4222_v15 = vadd.f32 %v4221_v28, %v12681_v50  ;;  %v4235_v63 = vunpack.c.l.b16 %v4231_v61  ;;  %v12704_v61 = vld [vmem:[%s14846_s1 + $0x10] sm:$0xff]   ;;  %v9471_v28 = vld [vmem:[%s14846_s1 + $0x20] sm:$0xff]  }
 0x7d6   : > { %v4223_v46 = vrot.slane %v4222_v15, 4 }
 0x7d8   : > { %v4224_v5 = vadd.f32 %v4223_v46, %v4222_v15  ;;  %v9473_v15 = vld [vmem:[%s14846_s1 + $0x30] sm:$0xff]   ;;  %v8851_v46 = vld [vmem:[%s14851_s6 + $0x100] sm:$0xff]  }
 0x7d9   : > { %8084 = vmatprep.subr.bf16.mxu0 %v8851_v46 }
 0x7da   : > { %v4225_v55 = vrot.slane %v4224_v5, 2 }
 0x7dc   : > { %v4226_v22 = vadd.f32 %v4225_v55, %v4224_v5  ;;  %v8852_v5 = vld [vmem:[%s14851_s6 + $0xc0] sm:$0xff]   ;;  %v8854_v55 = vld [vmem:[%s14851_s6 + $0xc8] sm:$0xff]  }
 0x7dd   : > { %8085 = vmatpush3.bf16.msra.mxu0 %v8852_v5  ;;  %v15349_v5 = vld [vmem:[#allocation16_spill] sm:$0xff] }
 0x7de   : > { %v4227_v48 = vrot.slane %v4226_v22, 1  ;;  %8086 = vmatprep.subr.bf16.mxu0 %v8853_v39 }
 0x7e0   : > { %v4228_v24 = vadd.f32 %v4227_v48, %v4226_v22  ;;  %v12697_v48 = vld [vmem:[%s14846_s1 + $0x8] sm:$0xff]   ;;  %v8855_v22 = vld [vmem:[%s14851_s6 + $0x110] sm:$0xff]  }
 0x7e1   : > { %8087 = vmatpush3.bf16.msra.mxu0 %v8854_v55 }
 0x7e2   : > { %v4230_v30 = vmul.f32 0.0078125, %v4228_v24  ;;  %8088 = vmatprep.subr.bf16.mxu0 %v8855_v22  ;;  %v8857_v24 = vld [vmem:[%s14851_s6 + $0x118] sm:$0xff]  }
 0x7e4   : > { %v4232_v35 = vpack.c.bf16 %v4230_v30, %v4230_v30  ;;  %v8858_v30 = vld [vmem:[%s14851_s6 + $0xd8] sm:$0xff]  }
 0x7e5   : > { %8089 = vmatpush3.bf16.msra.mxu0 %v8856_v17 }
 0x7e6   : > { %v4236_v26 = vunpack.c.l.b16 %v4232_v35  ;;  %8090 = vmatprep.subr.bf16.mxu0 %v8857_v24 }
 0x7e8   : > { %v4237_v44 = vsel %vm934_vm1, %v4236_v26, %v4235_v63 }
 0x7e9   : > { %v4238_v47 = vpack.c.b16 %v4237_v44, %v4237_v44  ;;  %8091 = vmatpush3.bf16.msra.mxu0 %v8858_v30 }
 0x7eb   : > { %8567 = vmatmul.mubr.bf16.vlgmr.msra.gmra.mrb[80].mxu1 %v4238_v47  ;;  %v15348_v47 = vld [vmem:[#allocation15_spill] sm:$0xff] }
 0x7ec   : > { %8571 = vmatpush3.bf16.msra.mxu1 %v12688_v49  ;;  %8586 = vmatprep.mubr.msk.bf16.mxu1 %vm9624_vm0, %v15154_v10 }
 0x7ed   : > { %8572 = vmatprep.subr.bf16.mxu1 %v15154_v10 }
 0x7f0   : > { %8573 = vmatpush3.bf16.msra.mxu1 %v12697_v48 }
 0x7f1   : > { %8574 = vmatprep.subr.bf16.mxu1 %v15154_v10 }
 0x7f4   : > { %8575 = vmatpush3.bf16.msra.mxu1 %v12704_v61 }
 0x7f5   : > { %8576 = vmatprep.subr.bf16.mxu1 %v15154_v10 }
 0x7f8   : > { %8577 = vmatpush3.bf16.msra.mxu1 %v12711_v18 }
 0x7f9   : > { %8578 = vmatprep.subr.bf16.mxu1 %v15154_v10 }
 0x7fc   : > { %8579 = vmatpush3.bf16.msra.mxu1 %v9471_v28 }
 0x7fd   : > { %8580 = vmatprep.subr.bf16.mxu1 %v15154_v10 }
 0x800   : > { %8581 = vmatpush3.bf16.msra.mxu1 %v9472_v62 }
 0x801   : > { %8582 = vmatprep.subr.bf16.mxu1 %v15154_v10 }
 0x804   : > { %8583 = vmatpush3.bf16.msra.mxu1 %v9473_v15 }
 0x805   : > { %8584 = vmatprep.subr.bf16.mxu1 %v15154_v10 }
 0x808   : > { %8585 = vmatpush3.bf16.msra.mxu1 %v9474_v60 }
 0x8be   : > { %v4274_v35 = vpop.f32.mrb[80].mxu1 }
 0x8bf   : > { %v4280_v63 = vmul.f32 0.25, %v4274_v35  ;;  %v8568_v26 = vpop.f32.mrb[81].mxu1 }
 0x8c0   : > { %v4277_v44 = vpop.f32.mrb[82].mxu1 }
 0x8c1   : > { %v4288_v28 = vrot.slane %v4280_v63, %v15348_v47  ;;  %v8569_v62 = vpop.f32.mrb[83].mxu1 }
 0x8c3   : > { %v4289_v15 = vcombine.high %v4288_v28, %v4288_v28  ;;  %v4296_v60 = vrot.slane %v4288_v28, %v15348_v47 }
 0x8c5   : > { %v4303_v46 = vrot.slane %v4289_v15, %v15348_v47  ;;  %v12758_v39 = vrot.slane %v4296_v60, %v15349_v5 }
 0x8c7   : > { %v12761_v55 = vrot.slane %v4303_v46, %v15349_v5  ;;  %v12765_v22 = vsub.f32 %v12504_v4, %v12758_v39  ;;  %v12769_v17 = vsub.f32 %v12499_v52, %v12758_v39  ;;  %v12781_v35 = vsub.f32 %v12508_v59, %v12758_v39 }
 0x8c8   : > { %v12797_v15 = vsub.f32 %v12516_v19, %v12758_v39  ;;  %v12805_v46 = vsub.f32 %v12520_v54, %v12758_v39 }
 0x8c9   : > { %v12773_v24 = vsub.f32 %v12566_v38, %v12761_v55  ;;  %v12777_v30 = vsub.f32 %v12558_v14, %v12761_v55  ;;  %v12785_v63 = vsub.f32 %v12569_v31, %v12761_v55  ;;  %v4346_v26 = vmul.f32 %v12765_v22, %v12765_v22 }
 0x8ca   : > { %v4347_v44 = vmul.f32 %v12769_v17, %v12769_v17  ;;  %v12801_v60 = vsub.f32 %v12587_v53, %v12761_v55  ;;  %v12809_v31 = vsub.f32 %v12593_v41, %v12761_v55  ;;  %v4348_v14 = vmul.f32 %v12781_v35, %v12781_v35 }
 0x8cb   : > { %v4362_v28 = vmul.f32 %v12773_v24, %v12773_v24  ;;  %v4363_v62 = vmul.f32 %v12777_v30, %v12777_v30  ;;  %v4364_v38 = vmul.f32 %v12785_v63, %v12785_v63  ;;  %v12817_v53 = vsub.f32 %v12532_v40, %v12758_v39 }
 0x8cc   : > { %v4378_v19 = vadd.f32 %v4347_v44, %v4346_v26  ;;  %v12821_v54 = vsub.f32 %v12608_v42, %v12761_v55  ;;  %v4349_v41 = vmul.f32 %v12797_v15, %v12797_v15  ;;  %v4365_v52 = vmul.f32 %v12801_v60, %v12801_v60 }
 0x8cd   : > { %v4399_v59 = vadd.f32 %v4363_v62, %v4362_v28  ;;  %v12829_v26 = vsub.f32 %v12541_v37, %v12758_v39  ;;  %v12833_v44 = vsub.f32 %v12613_v7, %v12761_v55  ;;  %v4350_v28 = vmul.f32 %v12805_v46, %v12805_v46 }
 0x8ce   : > { %v4379_v4 = vadd.f32 %v4378_v19, %v4348_v14  ;;  %v4366_v62 = vmul.f32 %v12809_v31, %v12809_v31  ;;  %v12841_v19 = vsub.f32 %v12548_v36, %v12758_v39  ;;  %v4351_v14 = vmul.f32 %v12817_v53, %v12817_v53 }
 0x8cf   : > { %v4400_v18 = vadd.f32 %v4399_v59, %v4364_v38  ;;  %15350 = vst [vmem:[#allocation106_spill] sm:$0xff] %v12833_v44  ;;  %v12845_v59 = vsub.f32 %v12630_v12, %v12761_v55  ;;  %v4367_v38 = vmul.f32 %v12821_v54, %v12821_v54 }
 0x8d0   : > { %v4380_v42 = vadd.f32 %v4379_v4, %v4349_v41  ;;  %v12853_v4 = vsub.f32 %v12553_v21, %v12758_v39  ;;  %v4352_v41 = vmul.f32 %v12829_v26, %v12829_v26 }
 0x8d1   : > { %v4401_v40 = vadd.f32 %v4400_v18, %v4365_v52  ;;  %15351 = vst [vmem:[#allocation107_spill] sm:$0xff] %v12845_v59  ;;  %v12857_v52 = vsub.f32 %v12634_v56, %v12761_v55  ;;  %v4368_v18 = vmul.f32 %v12833_v44, %v12833_v44 }
 0x8d2   : > { %v4381_v7 = vadd.f32 %v4380_v42, %v4350_v28  ;;  %v12865_v42 = vsub.f32 %v12574_v27, %v12758_v39  ;;  %v4353_v28 = vmul.f32 %v12841_v19, %v12841_v19 }
 0x8d3   : > { %v4402_v37 = vadd.f32 %v4401_v40, %v4366_v62  ;;  %15352 = vst [vmem:[#allocation108_spill] sm:$0xff] %v12857_v52  ;;  %v12869_v40 = vsub.f32 %v12647_v0, %v12761_v55  ;;  %v4369_v62 = vmul.f32 %v12845_v59, %v12845_v59 }
 0x8d4   : > { %v4382_v12 = vadd.f32 %v4381_v7, %v4351_v14  ;;  %v12877_v7 = vsub.f32 %v12583_v23, %v12758_v39  ;;  %v4354_v14 = vmul.f32 %v12853_v4, %v12853_v4 }
 0x8d5   : > { %v4403_v36 = vadd.f32 %v4402_v37, %v4367_v38  ;;  %15353 = vst [vmem:[#allocation109_spill] sm:$0xff] %v12869_v40  ;;  %v12881_v37 = vsub.f32 %v12652_v20, %v12761_v55  ;;  %v4370_v38 = vmul.f32 %v12857_v52, %v12857_v52 }
 0x8d6   : > { %v4383_v56 = vadd.f32 %v4382_v12, %v4352_v41  ;;  %v12889_v12 = vsub.f32 %v12599_v58, %v12758_v39  ;;  %v4355_v41 = vmul.f32 %v12865_v42, %v12865_v42 }
 0x8d7   : > { %v4404_v21 = vadd.f32 %v4403_v36, %v4368_v18  ;;  %15354 = vst [vmem:[#allocation110_spill] sm:$0xff] %v12881_v37  ;;  %v12893_v36 = vsub.f32 %v12658_v32, %v12761_v55  ;;  %v4371_v18 = vmul.f32 %v12869_v40, %v12869_v40 }
 0x8d8   : > { %v4384_v0 = vadd.f32 %v4383_v56, %v4353_v28  ;;  %v12901_v56 = vsub.f32 %v12604_v25, %v12758_v39  ;;  %v4356_v28 = vmul.f32 %v12877_v7, %v12877_v7 }
 0x8d9   : > { %v4405_v27 = vadd.f32 %v4404_v21, %v4369_v62  ;;  %15355 = vst [vmem:[#allocation111_spill] sm:$0xff] %v12893_v36  ;;  %v12905_v21 = vsub.f32 %v12663_v6, %v12761_v55  ;;  %v4372_v62 = vmul.f32 %v12881_v37, %v12881_v37 }
 0x8da   : > { %v4385_v20 = vadd.f32 %v4384_v0, %v4354_v14  ;;  %v12913_v0 = vsub.f32 %v12620_v33, %v12758_v39  ;;  %v4357_v14 = vmul.f32 %v12889_v12, %v12889_v12 }
 0x8db   : > { %v4406_v23 = vadd.f32 %v4405_v27, %v4370_v38  ;;  %15356 = vst [vmem:[#allocation112_spill] sm:$0xff] %v12905_v21  ;;  %v12917_v27 = vsub.f32 %v12669_v16, %v12761_v55  ;;  %v4373_v38 = vmul.f32 %v12893_v36, %v12893_v36 }
 0x8dc   : > { %v4386_v32 = vadd.f32 %v4385_v20, %v4355_v41  ;;  %v12925_v20 = vsub.f32 %v12626_v11, %v12758_v39  ;;  %v4358_v41 = vmul.f32 %v12901_v56, %v12901_v56 }
 0x8dd   : > { %v4407_v58 = vadd.f32 %v4406_v23, %v4371_v18  ;;  %15357 = vst [vmem:[#allocation113_spill] sm:$0xff] %v12917_v27  ;;  %v12929_v23 = vsub.f32 %v12676_v3, %v12761_v55  ;;  %v4374_v18 = vmul.f32 %v12905_v21, %v12905_v21 }
 0x8de   : > { %v4387_v6 = vadd.f32 %v4386_v32, %v4356_v28  ;;  %v12937_v32 = vsub.f32 %v12640_v57, %v12758_v39  ;;  %v4359_v28 = vmul.f32 %v12913_v0, %v12913_v0 }
 0x8df   : > { %v4408_v25 = vadd.f32 %v4407_v58, %v4372_v62  ;;  %15358 = vst [vmem:[#allocation114_spill] sm:$0xff] %v12929_v23  ;;  %v12941_v58 = vsub.f32 %v12681_v50, %v12761_v55  ;;  %v4375_v62 = vmul.f32 %v12917_v27, %v12917_v27 }
 0x8e0   : > { %v4388_v16 = vadd.f32 %v4387_v6, %v4357_v14  ;;  %v4360_v6 = vmul.f32 %v12925_v20, %v12925_v20  ;;  %v4361_v55 = vmul.f32 %v12937_v32, %v12937_v32 }
 0x8e1   : > { %v4409_v33 = vadd.f32 %v4408_v25, %v4373_v38  ;;  %v4376_v25 = vmul.f32 %v12929_v23, %v12929_v23  ;;  %v4377_v38 = vmul.f32 %v12941_v58, %v12941_v58 }
 0x8e2   : > { %v4389_v3 = vadd.f32 %v4388_v16, %v4358_v41 }
 0x8e3   : > { %v4410_v11 = vadd.f32 %v4409_v33, %v4374_v18 }
 0x8e4   : > { %v4390_v39 = vadd.f32 %v4389_v3, %v4359_v28 }
 0x8e5   : > { %v4411_v14 = vadd.f32 %v4410_v11, %v4375_v62 }
 0x8e6   : > { %v4391_v50 = vadd.f32 %v4390_v39, %v4360_v6  ;;  %v8868_v39 = vld [vmem:[%s14851_s6 + $0x158] sm:$0xff]  }
 0x8e7   : > { %v4412_v57 = vadd.f32 %v4411_v14, %v4376_v25  ;;  %v8871_v14 = vld [vmem:[%s14851_s6 + $0xf8] sm:$0xff]  }
 0x8e8   : > { %v4392_v21 = vadd.f32 %v4391_v50, %v4361_v55  ;;  %v8870_v55 = vld [vmem:[%s14851_s6 + $0x160] sm:$0xff]  }
 0x8e9   : > { %v4413_v27 = vadd.f32 %v4412_v57, %v4377_v38  ;;  %v8872_v38 = vld [vmem:[%s14851_s6 + $0x168] sm:$0xff]  }
 0x8ea   : > { %v4393_v16 = vrot.slane %v4392_v21, 4 }
 0x8eb   : > { %v4414_v33 = vrot.slane %v4413_v27, 4 }
 0x8ec   : > { %v4394_v41 = vadd.f32 %v4393_v16, %v4392_v21  ;;  %v8859_v21 = vld [vmem:[%s14851_s6 + $0x120] sm:$0xff]   ;;  %v8873_v16 = vld [vmem:[%s14851_s6 + $0x170] sm:$0xff]  }
 0x8ed   : > { %v4415_v18 = vadd.f32 %v4414_v33, %v4413_v27  ;;  %8092 = vmatprep.subr.bf16.mxu0 %v8859_v21  ;;  %v8865_v27 = vld [vmem:[%s14851_s6 + $0xf0] sm:$0xff]   ;;  %v8874_v33 = vld [vmem:[%s14851_s6 + $0x178] sm:$0xff]  }
 0x8ee   : > { %v4395_v36 = vrot.slane %v4394_v41, 2 }
 0x8ef   : > { %v4416_v37 = vrot.slane %v4415_v18, 2 }
 0x8f0   : > { %v4396_v40 = vadd.f32 %v4395_v36, %v4394_v41  ;;  %v8867_v36 = vld [vmem:[%s14851_s6 + $0x150] sm:$0xff]  }
 0x8f1   : > { %v4417_v23 = vadd.f32 %v4416_v37, %v4415_v18  ;;  %v8860_v37 = vld [vmem:[%s14851_s6 + $0xe0] sm:$0xff]  }
 0x8f2   : > { %v4397_v3 = vrot.slane %v4396_v40, 1  ;;  %8093 = vmatpush3.bf16.msra.mxu0 %v8860_v37 }
 0x8f3   : > { %v4418_v11 = vrot.slane %v4417_v23, 1 }
 0x8f4   : > { %v4398_v28 = vadd.f32 %v4397_v3, %v4396_v40  ;;  %v8861_v40 = vld [vmem:[%s14851_s6 + $0x128] sm:$0xff]  }
 0x8f5   : > { %v4419_v62 = vadd.f32 %v4418_v11, %v4417_v23  ;;  %8094 = vmatprep.subr.bf16.mxu0 %v8861_v40  ;;  %v8869_v23 = vld [vmem:[%s14851_s6 + $0x138] sm:$0xff]   ;;  %v13014_v40 = vld [vmem:[%s14849_s4 + $0x1] ss:$0 sm:$0xff] }
 0x8f6   : > { %v4420_v52 = vmul.f32 0.0078125, %v4398_v28 }
 0x8f7   : > { %v4421_v59 = vmul.f32 0.0078125, %v4419_v62 }
 0x8f8   : > { %v4422_v44 = vpack.c.bf16 %v4420_v52, %v4420_v52  ;;  %v8863_v52 = vld [vmem:[%s14851_s6 + $0x130] sm:$0xff]  }
 0x8f9   : > { %v4423_v45 = vpack.c.bf16 %v4421_v59, %v4421_v59  ;;  %v8862_v59 = vld [vmem:[%s14851_s6 + $0xe8] sm:$0xff]  }
 0x8fa   : > { %v4426_v6 = vunpack.c.l.b16 %v4422_v44  ;;  %v8866_v44 = vld [vmem:[%s14851_s6 + $0x148] sm:$0xff]   ;;  %8095 = vmatpush3.bf16.msra.mxu0 %v8862_v59 }
 0x8fb   : > { %v4427_v25 = vunpack.c.l.b16 %v4423_v45  ;;  %v8864_v45 = vld [vmem:[%s14851_s6 + $0x140] sm:$0xff]   ;;  %8096 = vmatprep.subr.bf16.mxu0 %v8863_v52 }
 0x8fc   : > { %8590 = vmatprep.subr.bf16.mxu1 %v8864_v45 }
 0x8fd   : > { %v4428_v57 = vsel %vm934_vm1, %v4427_v25, %v4426_v6 }
 0x8fe   : > { %v4429_v50 = vpack.c.b16 %v4428_v57, %v4428_v57  ;;  %8097 = vmatpush3.bf16.msra.mxu0 %v8865_v27 }
 0x8ff   : > { %8098 = vmatprep.subr.bf16.mxu0 %v8869_v23 }
 0x900   : > { %8587 = vmatmul.mubr.bf16.vlgmr.msra.gmra.mrb[84].mxu1 %v4429_v50 }
 0x901   : > { %8591 = vmatpush3.bf16.msra.mxu1 %v8864_v45 }
 0x902   : > { %8592 = vmatprep.subr.bf16.mxu1 %v8866_v44  ;;  %8099 = vmatpush3.bf16.msra.mxu0 %v8871_v14 }
 0x905   : > { %8593 = vmatpush3.bf16.msra.mxu1 %v8866_v44 }
 0x906   : > { %8594 = vmatprep.subr.bf16.mxu1 %v8867_v36 }
 0x909   : > { %8595 = vmatpush3.bf16.msra.mxu1 %v8867_v36  ;;  %v13028_v36 = vld [vmem:[%s14850_s5 + $0x1] ss:$0 sm:$0xff] }
 0x90a   : > { %8596 = vmatprep.subr.bf16.mxu1 %v8868_v39 }
 0x90d   : > { %8597 = vmatpush3.bf16.msra.mxu1 %v8868_v39 }
 0x90e   : > { %8598 = vmatprep.subr.bf16.mxu1 %v8870_v55 }
 0x911   : > { %8599 = vmatpush3.bf16.msra.mxu1 %v8870_v55 }
 0x912   : > { %8600 = vmatprep.subr.bf16.mxu1 %v8872_v38 }
 0x915   : > { %8601 = vmatpush3.bf16.msra.mxu1 %v8872_v38 }
 0x916   : > { %8602 = vmatprep.subr.bf16.mxu1 %v8873_v16 }
 0x919   : > { %8603 = vmatpush3.bf16.msra.mxu1 %v8873_v16 }
 0x91a   : > { %8604 = vmatprep.subr.bf16.mxu1 %v8874_v33 }
 0x91d   : > { %8605 = vmatpush3.bf16.msra.mxu1 %v8874_v33 }
 0x91e   : > { %8638 = vmatprep.subr.bf16.mxu1 %v15154_v10 }
 0x9d3   : > { %v4465_v41 = vpop.f32.mrb[84].mxu1 }
 0x9d4   : > { %v4471_v18 = vmul.f32 0.25, %v4465_v41  ;;  %v8588_v3 = vpop.f32.mrb[85].mxu1 }
 0x9d5   : > { %v4468_v11 = vpop.f32.mrb[86].mxu1 }
 0x9d6   : > { %v4472_v28 = vadd.f32 1e-05, %v4471_v18  ;;  %v8589_v62 = vpop.f32.mrb[87].mxu1 }
 0x9d8   : > { %9159 = vrsqrt.f32 %v4472_v28 }
 0x9e2   : > { %v9160_v6 = vpop.eup %9159 }
 0x9e3   : > { %v4481_v25 = vrot.slane %v9160_v6, %v15348_v47 }
 0x9e5   : > { %v4482_v57 = vcombine.high %v4481_v25, %v4481_v25  ;;  %v4489_v50 = vrot.slane %v4481_v25, %v15348_v47 }
 0x9e7   : > { %v4496_v21 = vrot.slane %v4482_v57, %v15348_v47  ;;  %v13009_v37 = vrot.slane %v4489_v50, %v15349_v5 }
 0x9e9   : > { %v13017_v45 = vrot.slane %v4496_v21, %v15349_v5  ;;  %v4507_v44 = vmul.f32 %v13009_v37, %v12765_v22  ;;  %v4508_v59 = vmul.f32 %v13009_v37, %v12769_v17  ;;  %v4509_v52 = vmul.f32 %v13009_v37, %v12781_v35 }
 0x9ea   : > { %v4510_v27 = vmul.f32 %v13009_v37, %v12797_v15  ;;  %v4511_v23 = vmul.f32 %v13009_v37, %v12805_v46  ;;  %v4512_v22 = vmul.f32 %v13009_v37, %v12817_v53  ;;  %v4513_v17 = vmul.f32 %v13009_v37, %v12829_v26 }
 0x9eb   : > { %v4545_v39 = vmul.f32 %v13014_v40, %v4507_v44  ;;  %v4546_v35 = vmul.f32 %v13014_v40, %v4508_v59  ;;  %v4547_v14 = vmul.f32 %v13014_v40, %v4509_v52  ;;  %v4538_v55 = vmul.f32 %v13017_v45, %v12941_v58 }
 0x9ec   : > { %v4548_v15 = vmul.f32 %v13014_v40, %v4510_v27  ;;  %v4549_v38 = vmul.f32 %v13014_v40, %v4511_v23  ;;  %v4550_v46 = vmul.f32 %v13014_v40, %v4512_v22  ;;  %v4551_v53 = vmul.f32 %v13014_v40, %v4513_v17 }
 0x9ed   : > { %v13048_v16 = vadd.f32 %v13028_v36, %v4545_v39  ;;  %v13051_v26 = vadd.f32 %v13028_v36, %v4546_v35  ;;  %v13054_v33 = vadd.f32 %v13028_v36, %v4547_v14  ;;  %v4576_v41 = vmul.f32 %v13014_v40, %v4538_v55 }
 0x9ee   : > { %v13058_v58 = vadd.f32 %v13028_v36, %v4548_v15  ;;  %v13061_v18 = vadd.f32 %v13028_v36, %v4549_v38  ;;  %v13064_v3 = vadd.f32 %v13028_v36, %v4550_v46  ;;  %v13067_v11 = vadd.f32 %v13028_v36, %v4551_v53 }
 0x9ef   : > { %v4615_v28 = vsub.f32 0.0, %v13048_v16  ;;  %v4616_v62 = vsub.f32 0.0, %v13051_v26  ;;  %v4617_v6 = vsub.f32 0.0, %v13054_v33  ;;  %v13073_v25 = vadd.f32 %v13028_v36, %v4576_v41 }
 0x9f0   : > { %v4618_v57 = vsub.f32 0.0, %v13058_v58  ;;  %v4619_v50 = vsub.f32 0.0, %v13061_v18  ;;  %v4620_v21 = vsub.f32 0.0, %v13064_v3  ;;  %v4621_v44 = vsub.f32 0.0, %v13067_v11 }
 0x9f1   : > { %v4647_v59 = vmul.f32 1.442695, %v4615_v28  ;;  %v4649_v52 = vmul.f32 1.442695, %v4616_v62  ;;  %v4651_v27 = vmul.f32 1.442695, %v4617_v6  ;;  %v4514_v23 = vmul.f32 %v13009_v37, %v12841_v19 }
 0x9f2   : > { %v4653_v22 = vmul.f32 1.442695, %v4618_v57  ;;  %v4655_v17 = vmul.f32 1.442695, %v4619_v50  ;;  %v4646_v39 = vsub.f32 0.0, %v13073_v25  ;;  %v4515_v35 = vmul.f32 %v13009_v37, %v12853_v4 }
 0x9f3   : > { %9161 = vpow2.f32 %v4647_v59  ;;  %v4657_v14 = vmul.f32 1.442695, %v4620_v21  ;;  %v4659_v55 = vmul.f32 1.442695, %v4621_v44  ;;  %v4552_v15 = vmul.f32 %v13014_v40, %v4514_v23 }
 0x9f4   : > { %9163 = vpow2.f32 %v4649_v52  ;;  %v4709_v38 = vmul.f32 1.442695, %v4646_v39  ;;  %v4553_v46 = vmul.f32 %v13014_v40, %v4515_v35  ;;  %v4516_v53 = vmul.f32 %v13009_v37, %v12865_v42 }
 0x9f5   : > { %9165 = vpow2.f32 %v4651_v27  ;;  %v13089_v19 = vadd.f32 %v13028_v36, %v4552_v15  ;;  %v4517_v41 = vmul.f32 %v13009_v37, %v12877_v7  ;;  %v4518_v4 = vmul.f32 %v13009_v37, %v12889_v12 }
 0x9f6   : > { %9167 = vpow2.f32 %v4653_v22  ;;  %v13096_v28 = vadd.f32 %v13028_v36, %v4553_v46  ;;  %v4554_v62 = vmul.f32 %v13014_v40, %v4516_v53  ;;  %v4519_v6 = vmul.f32 %v13009_v37, %v12901_v56 }
 0x9f7   : > { %9169 = vpow2.f32 %v4655_v17  ;;  %v4622_v42 = vsub.f32 0.0, %v13089_v19  ;;  %v4555_v57 = vmul.f32 %v13014_v40, %v4517_v41  ;;  %v4556_v50 = vmul.f32 %v13014_v40, %v4518_v4 }
 0x9f8   : > { %9171 = vpow2.f32 %v4709_v38  ;;  %v4623_v7 = vsub.f32 0.0, %v13096_v28  ;;  %v13106_v12 = vadd.f32 %v13028_v36, %v4554_v62  ;;  %v4557_v21 = vmul.f32 %v13014_v40, %v4519_v6 }
 0x9f9   : > { %9173 = vpow2.f32 %v4657_v14  ;;  %v4661_v44 = vmul.f32 1.442695, %v4622_v42  ;;  %v13110_v59 = vadd.f32 %v13028_v36, %v4555_v57  ;;  %v13113_v56 = vadd.f32 %v13028_v36, %v4556_v50 }
 0x9fa   : > { %9175 = vpow2.f32 %v4659_v55  ;;  %v4663_v52 = vmul.f32 1.442695, %v4623_v7  ;;  %v4624_v27 = vsub.f32 0.0, %v13106_v12  ;;  %v13117_v23 = vadd.f32 %v13028_v36, %v4557_v21 }
 0x9fb   : > { %9177 = vpow2.f32 %v4661_v44  ;;  %v4625_v22 = vsub.f32 0.0, %v13110_v59  ;;  %v4626_v17 = vsub.f32 0.0, %v13113_v56  ;;  %v4520_v39 = vmul.f32 %v13009_v37, %v12913_v0 }
 0x9fc   : > { %9179 = vpow2.f32 %v4663_v52  ;;  %v4665_v35 = vmul.f32 1.442695, %v4624_v27  ;;  %v4627_v14 = vsub.f32 0.0, %v13117_v23  ;;  %v4521_v55 = vmul.f32 %v13009_v37, %v12925_v20 }
 0x9fd   : > { %v9162_v15 = vpop.eup %9161  ;;  %v4667_v38 = vmul.f32 1.442695, %v4625_v22  ;;  %v13126_v46 = vmul.f32 1.442695, %v4626_v17  ;;  %v4558_v53 = vmul.f32 %v13014_v40, %v4520_v39  ;;  %v4522_v41 = vmul.f32 %v13009_v37, %v12937_v32 }
 0x9fe   : > { %v9164_v4 = vpop.eup %9163  ;;  %v4711_v62 = vadd.f32 1.0, %v9162_v15  ;;  %9181 = vpow2.f32 %v4665_v35  ;;  %v13131_v0 = vmul.f32 1.442695, %v4627_v14  ;;  %v4559_v6 = vmul.f32 %v13014_v40, %v4521_v55 }
 0x9ff   : > { %v9166_v42 = vpop.eup %9165  ;;  %v4712_v57 = vadd.f32 1.0, %v9164_v4  ;;  %9183 = vpow2.f32 %v4667_v38  ;;  %v13135_v20 = vadd.f32 %v13028_v36, %v4558_v53  ;;  %v4523_v50 = vmul.f32 %v13017_v45, %v12773_v24 }
 0xa00   : > { %v9168_v7 = vpop.eup %9167  ;;  %9185 = vrcp.f32 %v4711_v62  ;;  %v4713_v21 = vadd.f32 1.0, %v9166_v42  ;;  %v13140_v32 = vadd.f32 %v13028_v36, %v4559_v6  ;;  %v4560_v37 = vmul.f32 %v13014_v40, %v4522_v41 }
 0xa01   : > { %v9170_v44 = vpop.eup %9169  ;;  %9187 = vrcp.f32 %v4712_v57  ;;  %v4714_v52 = vadd.f32 1.0, %v9168_v7  ;;  %v4628_v27 = vsub.f32 0.0, %v13135_v20  ;;  %v4561_v22 = vmul.f32 %v13014_v40, %v4523_v50 }
 0xa02   : > { %v9172_v17 = vpop.eup %9171  ;;  %9189 = vrcp.f32 %v4713_v21  ;;  %v4715_v39 = vadd.f32 1.0, %v9170_v44  ;;  %v4629_v24 = vsub.f32 0.0, %v13140_v32  ;;  %v13147_v35 = vadd.f32 %v13028_v36, %v4560_v37 }
 0xa03   : > { %v9174_v14 = vpop.eup %9173  ;;  %9191 = vrcp.f32 %v4714_v52  ;;  %v4742_v55 = vadd.f32 1.0, %v9172_v17  ;;  %v4673_v15 = vmul.f32 1.442695, %v4628_v27  ;;  %v13150_v38 = vadd.f32 %v13028_v36, %v4561_v22 }
 0xa04   : > { %15359 = vst [vmem:[#allocation115_spill] sm:$0xff] %v13147_v35  ;;  %v9176_v53 = vpop.eup %9175  ;;  %9193 = vrcp.f32 %v4715_v39  ;;  %v4716_v41 = vadd.f32 1.0, %v9174_v14  ;;  %v13152_v4 = vmul.f32 1.442695, %v4629_v24  ;;  %v4630_v62 = vsub.f32 0.0, %v13147_v35 }
 0xa05   : > { %15360 = vst [vmem:[#allocation116_spill] sm:$0xff] %v13150_v38  ;;  %v9178_v6 = vpop.eup %9177  ;;  %9195 = vrcp.f32 %v4742_v55  ;;  %v4717_v42 = vadd.f32 1.0, %v9176_v53  ;;  %v4631_v57 = vsub.f32 0.0, %v13150_v38  ;;  %v4524_v50 = vmul.f32 %v13017_v45, %v12777_v30 }
 0xa06   : > { %v9180_v7 = vpop.eup %9179  ;;  %9197 = vrcp.f32 %v4716_v41  ;;  %v4718_v21 = vadd.f32 1.0, %v9178_v6  ;;  %v13158_v37 = vmul.f32 1.442695, %v4630_v62  ;;  %v4525_v44 = vmul.f32 %v13017_v45, %v12785_v63 }
 0xa07   : > { %9199 = vrcp.f32 %v4717_v42  ;;  %v4719_v52 = vadd.f32 1.0, %v9180_v7  ;;  %v13162_v27 = vmul.f32 1.442695, %v4631_v57  ;;  %v4562_v22 = vmul.f32 %v13014_v40, %v4524_v50  ;;  %v15364_v57 = vld [vmem:[#allocation34_spill] sm:$0xff] }
 0xa08   : > { %v9182_v17 = vpop.eup %9181  ;;  %9201 = vrcp.f32 %v4718_v21  ;;  %v4563_v39 = vmul.f32 %v13014_v40, %v4525_v44  ;;  %v4526_v30 = vmul.f32 %v13017_v45, %v12801_v60  ;;  %v4527_v24 = vmul.f32 %v13017_v45, %v12809_v31 }
 0xa09   : > { %v9184_v14 = vpop.eup %9183  ;;  %9203 = vrcp.f32 %v4719_v52  ;;  %v4720_v55 = vadd.f32 1.0, %v9182_v17  ;;  %v13171_v63 = vadd.f32 %v13028_v36, %v4562_v22  ;;  %v13175_v53 = vmul.f32 %v13017_v45, %v12821_v54 }
 0xa0a   : > { %v9186_v41 = vpop.eup %9185  ;;  %v4721_v62 = vadd.f32 1.0, %v9184_v14  ;;  %9205 = vpow2.f32 %v13126_v46  ;;  %v13179_v6 = vadd.f32 %v13028_v36, %v4563_v39  ;;  %v4564_v60 = vmul.f32 %v13014_v40, %v4526_v30 }
 0xa0b   : > { %v9188_v31 = vpop.eup %9187  ;;  %v13183_v42 = vmul.f32 %v9186_v41, %v13048_v16  ;;  %9207 = vrcp.f32 %v4720_v55  ;;  %v13187_v50 = vmul.f32 %v13014_v40, %v4527_v24 }
 0xa0c   : > { %v9190_v54 = vpop.eup %9189  ;;  %v4808_v7 = vmul.f32 %v9188_v31, %v13051_v26  ;;  %9209 = vrcp.f32 %v4721_v62  ;;  %v13192_v21 = vadd.f32 %v13028_v36, %v4564_v60 }
 0xa0d   : > { %15361 = vst [vmem:[#allocation117_spill] sm:$0xff] %v13183_v42  ;;  %v9192_v44 = vpop.eup %9191  ;;  %v4924_v52 = vrot.slane %v13183_v42, 7  ;;  %v13196_v16 = vmul.f32 %v9190_v54, %v13054_v33  ;;  %v15032_v22 = vrot.slane %v13183_v42, 1  ;;  %9211 = vpow2.f32 %v13131_v0 }
 0xa0e   : > { %v9194_v17 = vpop.eup %9193  ;;  %v4925_v39 = vrot.slane %v4808_v7, 7  ;;  %v5083_v26 = vpack.c.bf16 %v4808_v7, %v13183_v42  ;;  %v5116_v30 = vrot.slane %v4808_v7, 1  ;;  %v13202_v24 = vmul.f32 %v9192_v44, %v13058_v58  ;;  %v15362_v7 = vld [vmem:[#allocation33_spill] sm:$0xff] }
 0xa0f   : > { %v9196_v14 = vpop.eup %9195  ;;  %v5118_v55 = vrot.slane %v13196_v16, 1  ;;  %v13206_v41 = vmul.f32 %v9194_v17, %v13061_v18  ;;  %v4927_v33 = vrot.slane %v13196_v16, 7  ;;  %9213 = vpow2.f32 %v4673_v15  ;;  %v15363_v17 = vld [vmem:[#allocation19_spill] sm:$0xff] }
 0xa10   : > { %v9198_v62 = vpop.eup %9197  ;;  %5506 = vmatprep.mubr.bf16.mxu0 %v5083_v26  ;;  %v5117_v0 = vsel %vm1860_vm2, %v15032_v22, %v5116_v30  ;;  %v5120_v60 = vrot.slane %v13202_v24, 1  ;;  %v13214_v58 = vmul.f32 %v9196_v14, %v13073_v25  ;;  %v4926_v31 = vsel %vm1668_vm3, %v4924_v52, %v4925_v39 }
 0xa11   : > { %v9200_v54 = vpop.eup %9199  ;;  %v5119_v18 = vsel %vm1860_vm2, %v5116_v30, %v5118_v55  ;;  %v5212_v44 = vmul.f32 %v5117_v0, %v15362_v7  ;;  %v5122_v15 = vrot.slane %v13206_v41, 1  ;;  %v5020_v26 = vmul.f32 %v4926_v31, %v15363_v17  ;;  %v15365_v30 = vld [vmem:[#allocation37_spill] sm:$0xff] }
 0xa12   : > { %v9202_v46 = vpop.eup %9201  ;;  %v5213_v5 = vmul.f32 %v5119_v18, %v15364_v57  ;;  %v5121_v22 = vsel %vm1860_vm2, %v5118_v55, %v5120_v60  ;;  %v15037_v47 = vrot.slane %v13214_v58, 7  ;;  %v13225_v25 = vmul.f32 %v9198_v62, %v13064_v3  ;;  %v15366_v57 = vld [vmem:[#allocation38_spill] sm:$0xff] }
 0xa13   : > { %v9204_v14 = vpop.eup %9203  ;;  %v5123_v42 = vsel %vm1860_vm2, %v5120_v60, %v5122_v15  ;;  %v5214_v38 = vmul.f32 %v5121_v22, %v15365_v30  ;;  %v13230_v0 = vmul.f32 %v9200_v54, %v13067_v11  ;;  %v5084_v31 = vpack.c.bf16 %v13202_v24, %v13196_v16  ;;  %v15367_v60 = vld [vmem:[#allocation17_spill] sm:$0xff] }
 0xa14   : > { %v9206_v17 = vpop.eup %9205  ;;  %v5244_v18 = vpack.c.bf16 %v5213_v5, %v5212_v44  ;;  %v5215_v55 = vmul.f32 %v5123_v42, %v15366_v57  ;;  %v5018_v3 = vsel %vm1668_vm3, %v15037_v47, %v4924_v52  ;;  %v5124_v62 = vrot.slane %v13225_v25, 1 }
 0xa15   : > { %v9208_v7 = vpop.eup %9207  ;;  %v5019_v35 = vmul.f32 %v5018_v3, %v15367_v60  ;;  %v5126_v22 = vrot.slane %v13230_v0, 1  ;;  %v13242_v11 = vmul.f32 %v9202_v46, %v13089_v19  ;;  %v13245_v16 = vmul.f32 %v9204_v14, %v13096_v28 }
 0xa16   : > { %v9210_v5 = vpop.eup %9209  ;;  %8606 = vmatprep.mubr.bf16.mxu1 %v5244_v18  ;;  %v5245_v42 = vpack.c.bf16 %v5215_v55, %v5214_v38  ;;  %v5125_v54 = vsel %vm1860_vm2, %v5122_v15, %v5124_v62  ;;  %v4928_v52 = vsel %vm1668_vm3, %v4925_v39, %v4927_v33  ;;  %v4929_v44 = vrot.slane %v13202_v24, 7  ;;  %v15368_v15 = vld [vmem:[#allocation18_spill] sm:$0xff] }
 0xa17   : > { %v9212_v47 = vpop.eup %9211  ;;  %v5051_v57 = vpack.c.bf16 %v5020_v26, %v5019_v35  ;;  %v5127_v3 = vsel %vm1860_vm2, %v5124_v62, %v5126_v22  ;;  %v5216_v60 = vmul.f32 %v5125_v54, %v15244_v1  ;;  %v5128_v19 = vrot.slane %v13242_v11, 1 }
 0xa18   : > { %8607 = vmatmul.mubr.bf16.vlgmr.msra.gmra.mrb[88].mxu1 %v5245_v42  ;;  %v5217_v28 = vmul.f32 %v5127_v3, %v15245_v29  ;;  %v5130_v46 = vrot.slane %v13245_v16, 1  ;;  %v4930_v38 = vsel %vm1668_vm3, %v4927_v33, %v4929_v44  ;;  %v5021_v14 = vmul.f32 %v4928_v52, %v15368_v15 }
 0xa19   : > { %v9214_v39 = vpop.eup %9213  ;;  %5507 = vmatmul.mubr.bf16.vlgmr.msra.gmra.mrb[128].mxu0 %v5051_v57  ;;  %v5129_v24 = vsel %vm1860_vm2, %v5126_v22, %v5128_v19  ;;  %v5022_v35 = vmul.f32 %v4930_v38, %v15247_v8  ;;  %v13260_v26 = vmul.f32 %v9208_v7, %v13106_v12  ;;  %v13263_v18 = vmul.f32 %v9210_v5, %v13110_v59 }
 0xa1a   : > { %v5246_v55 = vpack.c.bf16 %v5217_v28, %v5216_v60  ;;  %5514 = vmatprep.mubr.bf16.mxu0 %v5084_v31  ;;  %v5131_v62 = vsel %vm1860_vm2, %v5128_v19, %v5130_v46  ;;  %v5218_v33 = vmul.f32 %v5129_v24, %v15248_v43  ;;  %v5085_v42 = vpack.c.bf16 %v13225_v25, %v13206_v41 }
 0xa1b   : > { %v5219_v57 = vmul.f32 %v5131_v62, %v15249_v2  ;;  %v5052_v22 = vpack.c.bf16 %v5022_v35, %v5021_v14  ;;  %v5132_v54 = vrot.slane %v13260_v26, 1  ;;  %v5134_v12 = vrot.slane %v13263_v18, 1  ;;  %8639 = vmatpush3.bf16.msra.mxu1 %v12688_v49  ;;  %v15371_v62 = vld [vmem:[#allocation23_spill] sm:$0xff] }
 0xa1c   : > { %8610 = vmatprep.mubr.bf16.mxu1 %v5246_v55  ;;  %v4722_v59 = vadd.f32 1.0, %v9206_v17  ;;  %v4723_v7 = vadd.f32 1.0, %v9212_v47  ;;  %v4931_v31 = vrot.slane %v13206_v41, 7  ;;  %v4933_v60 = vrot.slane %v13225_v25, 7  ;;  %8640 = vmatprep.subr.bf16.mxu1 %v15154_v10 }
 0xa1d   : > { %v5247_v5 = vpack.c.bf16 %v5219_v57, %v5218_v33  ;;  %v5133_v52 = vsel %vm1860_vm2, %v5130_v46, %v5132_v54  ;;  %v5135_v3 = vsel %vm1860_vm2, %v5132_v54, %v5134_v12  ;;  %9215 = vpow2.f32 %v13152_v4 }
 0xa1e   : > { %v5220_v49 = vmul.f32 %v5133_v52, %v15250_v34  ;;  %v5221_v17 = vmul.f32 %v5135_v3, %v15251_v13  ;;  %9217 = vrcp.f32 %v4722_v59  ;;  %v4932_v47 = vsel %vm1668_vm3, %v4929_v44, %v4931_v31  ;;  %v15373_v59 = vld [vmem:[#allocation106_spill] sm:$0xff] }
 0xa1f   : > { %9219 = vrcp.f32 %v4723_v7  ;;  %v4934_v41 = vsel %vm1668_vm3, %v4931_v31, %v4933_v60  ;;  %v5023_v25 = vmul.f32 %v4932_v47, %v15252_v9  ;;  %v4724_v19 = vadd.f32 1.0, %v9214_v39  ;;  %8641 = vmatpush3.bf16.msra.mxu1 %v12697_v48 }
 0xa20   : > { %8611 = vmatmul.mubr.bf16.gmra.mrb[92].mxu1 %v5247_v5  ;;  %v5248_v28 = vpack.c.bf16 %v5221_v17, %v5220_v49  ;;  %v5024_v46 = vmul.f32 %v4934_v41, %v15253_v51  ;;  %v5086_v4 = vpack.c.bf16 %v13242_v11, %v13230_v0  ;;  %9221 = vpow2.f32 %v13158_v37  ;;  %8642 = vmatprep.subr.bf16.mxu1 %v15154_v10  ;;  %v15374_v5 = vld [vmem:[#allocation107_spill] sm:$0xff] }
 0xa21   : > { %5515 = vmatmul.mubr.bf16.gmra.mrb[132].mxu0 %v5052_v22  ;;  %9223 = vrcp.f32 %v4724_v19  ;;  %v4935_v44 = vrot.slane %v13230_v0, 7  ;;  %v4937_v38 = vrot.slane %v13242_v11, 7  ;;  %v15369_v14 = vsub.f32 0.0, %v13171_v63 }
 0xa22   : > { %8614 = vmatprep.mubr.bf16.mxu1 %v5248_v28  ;;  %5522 = vmatprep.mubr.bf16.mxu0 %v5085_v42  ;;  %v5053_v39 = vpack.c.bf16 %v5024_v46, %v5023_v25  ;;  %9225 = vpow2.f32 %v13162_v27  ;;  %v15370_v24 = vsub.f32 0.0, %v13179_v6  ;;  %v5087_v37 = vpack.c.bf16 %v13260_v26, %v13245_v16  ;;  %v15372_v27 = vld [vmem:[#allocation24_spill] sm:$0xff]  ;;  %v15375_v25 = vld [vmem:[#allocation105_spill] sm:$0xff] }
 0xa23   : > { %v4681_v48 = vmul.f32 1.442695, %v15369_v14  ;;  %v4936_v55 = vsel %vm1668_vm3, %v4933_v60, %v4935_v44  ;;  %v4938_v0 = vsel %vm1668_vm3, %v4935_v44, %v4937_v38  ;;  %v13305_v11 = vadd.f32 %v13028_v36, %v13187_v50  ;;  %8643 = vmatpush3.bf16.msra.mxu1 %v12704_v61  ;;  %v15376_v46 = vld [vmem:[#allocation25_spill] sm:$0xff]  ;;  %v15377_v44 = vld [vmem:[#allocation26_spill] sm:$0xff] }
 0xa24   : > { %v4683_v35 = vmul.f32 1.442695, %v15370_v24  ;;  %v13309_v33 = vmul.f32 %v4936_v55, %v15371_v62  ;;  %v13312_v42 = vmul.f32 %v4938_v0, %v15372_v27  ;;  %v4634_v57 = vsub.f32 0.0, %v13192_v21  ;;  %8644 = vmatprep.subr.bf16.mxu1 %v15154_v10 }
 0xa25   : > { %9227 = vpow2.f32 %v4681_v48  ;;  %v4635_v22 = vsub.f32 0.0, %v13305_v11  ;;  %v4939_v54 = vrot.slane %v13245_v16, 7  ;;  %v4941_v50 = vrot.slane %v13260_v26, 7 }
 0xa26   : > { %9229 = vpow2.f32 %v4683_v35  ;;  %v4529_v61 = vmul.f32 %v13017_v45, %v15373_v59  ;;  %v5054_v7 = vpack.c.bf16 %v13312_v42, %v13309_v33  ;;  %v4685_v31 = vmul.f32 1.442695, %v4634_v57 }
 0xa27   : > { %v4566_v60 = vmul.f32 %v13014_v40, %v13175_v53  ;;  %v4530_v52 = vmul.f32 %v13017_v45, %v15374_v5  ;;  %v9216_v3 = vpop.eup %9215  ;;  %v4687_v49 = vmul.f32 1.442695, %v4635_v22  ;;  %v4940_v17 = vsel %vm1668_vm3, %v4937_v38, %v4939_v54  ;;  %8645 = vmatpush3.bf16.msra.mxu1 %v15375_v25  ;;  %v15378_v22 = vld [vmem:[#allocation108_spill] sm:$0xff] }
 0xa28   : > { %v4942_v47 = vsel %vm1668_vm3, %v4939_v54, %v4941_v50  ;;  %v4567_v41 = vmul.f32 %v13014_v40, %v4529_v61  ;;  %v9218_v19 = vpop.eup %9217  ;;  %v4725_v28 = vadd.f32 1.0, %v9216_v3  ;;  %9231 = vpow2.f32 %v4685_v31  ;;  %8646 = vmatprep.subr.bf16.mxu1 %v15154_v10 }
 0xa29   : > { %v13334_v53 = vmul.f32 %v4940_v17, %v15376_v46  ;;  %v13337_v14 = vmul.f32 %v4942_v47, %v15377_v44  ;;  %v9220_v38 = vpop.eup %9219  ;;  %v13341_v48 = vmul.f32 %v9218_v19, %v13113_v56  ;;  %5523 = vmatmul.mubr.bf16.gmra.mrb[136].mxu0 %v5053_v39  ;;  %9233 = vpow2.f32 %v4687_v49 }
 0xa2a   : > { %v13344_v24 = vadd.f32 %v13028_v36, %v4566_v60  ;;  %v13347_v35 = vadd.f32 %v13028_v36, %v4567_v41  ;;  %v9222_v55 = vpop.eup %9221  ;;  %v13350_v0 = vmul.f32 %v9220_v38, %v13117_v23  ;;  %9235 = vrcp.f32 %v4725_v28  ;;  %5530 = vmatprep.mubr.bf16.mxu0 %v5086_v4  ;;  %v9475_v23 = vld [vmem:[%s14846_s1 + $0x20] sm:$0xff]  }
 0xa2b   : > { %v5055_v57 = vpack.c.bf16 %v13337_v14, %v13334_v53  ;;  %v4531_v56 = vmul.f32 %v13017_v45, %v15378_v22  ;;  %v9224_v39 = vpop.eup %9223  ;;  %v5136_v54 = vrot.slane %v13341_v48, 1  ;;  %v4726_v59 = vadd.f32 1.0, %v9222_v55  ;;  %8647 = vmatpush3.bf16.msra.mxu1 %v9475_v23 }
 0xa2c   : > { %v4636_v61 = vsub.f32 0.0, %v13344_v24  ;;  %v4637_v31 = vsub.f32 0.0, %v13347_v35  ;;  %v9226_v4 = vpop.eup %9225  ;;  %v5138_v60 = vrot.slane %v13350_v0, 1  ;;  %v13364_v5 = vmul.f32 %v9224_v39, %v13135_v20  ;;  %8648 = vmatprep.subr.bf16.mxu1 %v15154_v10  ;;  %v15379_v20 = vld [vmem:[#allocation49_spill] sm:$0xff]  ;;  %v15380_v39 = vld [vmem:[#allocation50_spill] sm:$0xff] }
 0xa2d   : > { %v4568_v49 = vmul.f32 %v13014_v40, %v4530_v52  ;;  %v5137_v47 = vsel %vm1860_vm2, %v5134_v12, %v5136_v54  ;;  %v4727_v41 = vadd.f32 1.0, %v9226_v4  ;;  %9237 = vrcp.f32 %v4726_v59  ;;  %v9476_v12 = vld [vmem:[%s14846_s1 + $0x28] sm:$0xff]  }
 0xa2e   : > { %v4689_v25 = vmul.f32 1.442695, %v4636_v61  ;;  %v5139_v28 = vsel %vm1860_vm2, %v5136_v54, %v5138_v60  ;;  %v5222_v38 = vmul.f32 %v5137_v47, %v15379_v20  ;;  %v5140_v55 = vrot.slane %v13364_v5, 1 }
 0xa2f   : > { %v9228_v17 = vpop.eup %9227  ;;  %v5223_v52 = vmul.f32 %v5139_v28, %v15380_v39  ;;  %9239 = vrcp.f32 %v4727_v41  ;;  %v4691_v3 = vmul.f32 1.442695, %v4637_v31  ;;  %8649 = vmatpush3.bf16.msra.mxu1 %v9476_v12  ;;  %v4569_v54 = vmul.f32 %v13014_v40, %v4531_v56 }
 0xa30   : > { %v9230_v19 = vpop.eup %9229  ;;  %v4728_v22 = vadd.f32 1.0, %v9228_v17  ;;  %v5141_v59 = vsel %vm1860_vm2, %v5138_v60, %v5140_v55  ;;  %v13383_v61 = vadd.f32 %v13028_v36, %v4568_v49  ;;  %8650 = vmatprep.subr.bf16.mxu1 %v15154_v10  ;;  %v15381_v17 = vld [vmem:[#allocation51_spill] sm:$0xff]  ;;  %v4943_v31 = vrot.slane %v13263_v18, 7 }
 0xa31   : > { %v4729_v23 = vadd.f32 1.0, %v9230_v19  ;;  %v5249_v4 = vpack.c.bf16 %v5223_v52, %v5222_v38  ;;  %v13387_v47 = vmul.f32 %v5141_v59, %v15381_v17  ;;  %5531 = vmatmul.mubr.bf16.gmra.mrb[140].mxu0 %v5054_v7  ;;  %v13397_v56 = vadd.f32 %v13028_v36, %v4569_v54  ;;  %v15382_v7 = vld [vmem:[#allocation109_spill] sm:$0xff]  ;;  %v15385_v54 = vld [vmem:[#allocation110_spill] sm:$0xff] }
 0xa32   : > { %9241 = vrcp.f32 %v4728_v22  ;;  %v9232_v60 = vpop.eup %9231  ;;  %5538 = vmatprep.mubr.bf16.mxu0 %v5087_v37  ;;  %v4638_v49 = vsub.f32 0.0, %v13383_v61  ;;  %v15038_v41 = vrot.slane %v13341_v48, 7  ;;  %v4944_v42 = vsel %vm1668_vm3, %v4941_v50, %v4943_v31  ;;  %v15383_v50 = vld [vmem:[#allocation27_spill] sm:$0xff] }
 0xa33   : > { %9243 = vrcp.f32 %v4729_v23  ;;  %v9234_v19 = vpop.eup %9233  ;;  %8615 = vmatmul.mubr.bf16.gmra.mrb[96].mxu1 %v5249_v4  ;;  %v4730_v33 = vadd.f32 1.0, %v9232_v60  ;;  %v4532_v16 = vmul.f32 %v13017_v45, %v15382_v7  ;;  %v4639_v28 = vsub.f32 0.0, %v13397_v56  ;;  %v15384_v23 = vld [vmem:[#allocation28_spill] sm:$0xff] }
 0xa34   : > { %9245 = vpow2.f32 %v4689_v25  ;;  %v9236_v37 = vpop.eup %9235  ;;  %v4731_v25 = vadd.f32 1.0, %v9234_v19  ;;  %v4693_v38 = vmul.f32 1.442695, %v4638_v49  ;;  %v4946_v22 = vsel %vm1668_vm3, %v4943_v31, %v15038_v41  ;;  %v15392_v41 = vld [vmem:[#allocation55_spill] sm:$0xff] }
 0xa35   : > { %9247 = vpow2.f32 %v4691_v3  ;;  %v9477_v3 = vld [vmem:[%s14846_s1 + $0x30] sm:$0xff]   ;;  %v13414_v26 = vmul.f32 %v9236_v37, %v13140_v32  ;;  %v13417_v52 = vmul.f32 %v4944_v42, %v15383_v50  ;;  %v13420_v12 = vmul.f32 %v4946_v22, %v15384_v23  ;;  %v15393_v23 = vld [vmem:[#allocation56_spill] sm:$0xff] }
 0xa36   : > { %8651 = vmatpush3.bf16.msra.mxu1 %v9477_v3  ;;  %9249 = vrcp.f32 %v4730_v33  ;;  %v4695_v59 = vmul.f32 1.442695, %v4639_v28  ;;  %v4533_v4 = vmul.f32 %v13017_v45, %v15385_v54  ;;  %v4570_v31 = vmul.f32 %v13014_v40, %v4532_v16  ;;  %v15386_v33 = vld [vmem:[#allocation115_spill] sm:$0xff]  ;;  %v9478_v16 = vld [vmem:[%s14846_s1 + $0x38] sm:$0xff]   ;;  %v15388_v3 = vld [vmem:[#allocation112_spill] sm:$0xff] }
 0xa37   : > { %8652 = vmatprep.subr.bf16.mxu1 %v15154_v10  ;;  %9251 = vrcp.f32 %v4731_v25  ;;  %v9238_v60 = vpop.eup %9237  ;;  %v5142_v32 = vrot.slane %v13414_v26, 1  ;;  %v5056_v49 = vpack.c.bf16 %v13420_v12, %v13417_v52  ;;  %v5089_v19 = vpack.c.bf16 %v13364_v5, %v13350_v0  ;;  %v15389_v54 = vld [vmem:[#allocation52_spill] sm:$0xff] }
 0xa38   : > { %9253 = vpow2.f32 %v4693_v38  ;;  %v13432_v42 = vmul.f32 %v9238_v60, %v15386_v33  ;;  %v4571_v7 = vmul.f32 %v13014_v40, %v4533_v4  ;;  %v13436_v37 = vadd.f32 %v13028_v36, %v4570_v31  ;;  %v15387_v38 = vld [vmem:[#allocation111_spill] sm:$0xff]  ;;  %v15390_v31 = vld [vmem:[#allocation116_spill] sm:$0xff] }
 0xa39   : > { %9255 = vpow2.f32 %v4695_v59  ;;  %v9240_v25 = vpop.eup %9239  ;;  %v5143_v28 = vsel %vm1860_vm2, %v5140_v55, %v5142_v32  ;;  %5539 = vmatmul.mubr.bf16.gmra.mrb[144].mxu0 %v5055_v57  ;;  %v4534_v22 = vmul.f32 %v13017_v45, %v15387_v38  ;;  %v4535_v52 = vmul.f32 %v13017_v45, %v15388_v3 }
 0xa3a   : > { %8653 = vmatpush3.bf16.msra.mxu1 %v9478_v16  ;;  %v5225_v4 = vmul.f32 %v5143_v28, %v15389_v54  ;;  %v13453_v60 = vmul.f32 %v9240_v25, %v15390_v31  ;;  %v5144_v55 = vrot.slane %v13432_v42, 1  ;;  %v15391_v53 = vpack.c.bf16 %v13341_v48, %v13263_v18 }
 0xa3b   : > { %8658 = vmatprep.subr.bf16.mxu1 %v15154_v10  ;;  %v13460_v14 = vadd.f32 %v13028_v36, %v4571_v7  ;;  %v4640_v16 = vsub.f32 0.0, %v13436_v37  ;;  %v4572_v28 = vmul.f32 %v13014_v40, %v4534_v22  ;;  %v4573_v25 = vmul.f32 %v13014_v40, %v4535_v52 }
 0xa3c   : > { %v9242_v59 = vpop.eup %9241  ;;  %5546 = vmatprep.mubr.bf16.mxu0 %v15391_v53  ;;  %v5250_v3 = vpack.c.bf16 %v5225_v4, %v13387_v47  ;;  %v5145_v31 = vsel %vm1860_vm2, %v5142_v32, %v5144_v55  ;;  %v5146_v18 = vrot.slane %v13453_v60, 1 }
 0xa3d   : > { %v9244_v57 = vpop.eup %9243  ;;  %v13463_v33 = vmul.f32 %v9242_v59, %v13171_v63  ;;  %v5226_v63 = vmul.f32 %v5145_v31, %v15392_v41  ;;  %v4641_v22 = vsub.f32 0.0, %v13460_v14  ;;  %v4697_v32 = vmul.f32 1.442695, %v4640_v16 }
 0xa3e   : > { %v9246_v38 = vpop.eup %9245  ;;  %v13472_v7 = vmul.f32 %v9244_v57, %v13179_v6  ;;  %8618 = vmatprep.mubr.bf16.mxu1 %v5250_v3  ;;  %v5147_v52 = vsel %vm1860_vm2, %v5144_v55, %v5146_v18 }
 0xa3f   : > { %v9248_v53 = vpop.eup %9247  ;;  %v5148_v59 = vrot.slane %v13463_v33, 1  ;;  %v4732_v12 = vadd.f32 1.0, %v9246_v38  ;;  %v5227_v50 = vmul.f32 %v5147_v52, %v15393_v23  ;;  %v4699_v57 = vmul.f32 1.442695, %v4641_v22  ;;  %v15394_v38 = vld [vmem:[#allocation57_spill] sm:$0xff] }
 0xa40   : > { %v5150_v47 = vrot.slane %v13472_v7, 1  ;;  %v4733_v4 = vadd.f32 1.0, %v9248_v53  ;;  %v9250_v54 = vpop.eup %9249  ;;  %v15395_v53 = vld [vmem:[#allocation58_spill] sm:$0xff] }
 0xa41   : > { %v5149_v6 = vsel %vm1860_vm2, %v5146_v18, %v5148_v59  ;;  %9257 = vrcp.f32 %v4732_v12  ;;  %v9252_v31 = vpop.eup %9251  ;;  %v13484_v3 = vmul.f32 %v9250_v54, %v13192_v21  ;;  %v5251_v39 = vpack.c.bf16 %v5227_v50, %v5226_v63  ;;  %5547 = vmatmul.mubr.bf16.gmra.mrb[148].mxu0 %v5056_v49 }
 0xa42   : > { %v5151_v41 = vsel %vm1860_vm2, %v5148_v59, %v5150_v47  ;;  %v5228_v17 = vmul.f32 %v5149_v6, %v15394_v38  ;;  %9259 = vrcp.f32 %v4733_v4  ;;  %v9254_v55 = vpop.eup %9253  ;;  %v13488_v20 = vmul.f32 %v9252_v31, %v13305_v11  ;;  %5554 = vmatprep.mubr.bf16.mxu0 %v5089_v19  ;;  %v15399_v4 = vld [vmem:[#allocation69_spill] sm:$0xff] }
 0xa43   : > { %v5229_v16 = vmul.f32 %v5151_v41, %v15395_v53  ;;  %9261 = vpow2.f32 %v4697_v32  ;;  %v9256_v12 = vpop.eup %9255  ;;  %v5152_v18 = vrot.slane %v13484_v3, 1  ;;  %v4734_v22 = vadd.f32 1.0, %v9254_v55  ;;  %8619 = vmatmul.mubr.bf16.gmra.mrb[100].mxu1 %v5251_v39  ;;  %v15400_v31 = vld [vmem:[#allocation29_spill] sm:$0xff] }
 0xa44   : > { %9263 = vpow2.f32 %v4699_v57  ;;  %v13492_v59 = vadd.f32 %v13028_v36, %v4572_v28  ;;  %v5154_v50 = vrot.slane %v13488_v20, 1  ;;  %v4735_v54 = vadd.f32 1.0, %v9256_v12  ;;  %v15402_v12 = vld [vmem:[#allocation114_spill] sm:$0xff] }
 0xa45   : > { %v5252_v21 = vpack.c.bf16 %v5229_v16, %v5228_v17  ;;  %v13496_v41 = vadd.f32 %v13028_v36, %v4573_v25  ;;  %v5153_v11 = vsel %vm1860_vm2, %v5150_v47, %v5152_v18  ;;  %9265 = vrcp.f32 %v4734_v22  ;;  %v15398_v17 = vld [vmem:[#allocation68_spill] sm:$0xff]  ;;  %v15401_v16 = vld [vmem:[#allocation113_spill] sm:$0xff] }
 0xa46   : > { %v4642_v49 = vsub.f32 0.0, %v13492_v59  ;;  %v15396_v63 = vrot.slane %v13350_v0, 7  ;;  %v15397_v19 = vrot.slane %v13341_v48, 7  ;;  %v5155_v39 = vsel %vm1860_vm2, %v5152_v18, %v5154_v50 }
 0xa47   : > { %8622 = vmatprep.mubr.bf16.mxu1 %v5252_v21  ;;  %v5230_v52 = vmul.f32 %v5153_v11, %v15398_v17  ;;  %9267 = vrcp.f32 %v4735_v54  ;;  %v4643_v25 = vsub.f32 0.0, %v13496_v41  ;;  %v5231_v32 = vmul.f32 %v5155_v39, %v15399_v4 }
 0xa48   : > { %v4948_v28 = vsel %vm1668_vm3, %v15397_v19, %v15396_v63  ;;  %v4701_v47 = vmul.f32 1.442695, %v4642_v49  ;;  %v4949_v6 = vrot.slane %v13364_v5, 7  ;;  %v4536_v48 = vmul.f32 %v13017_v45, %v15401_v16  ;;  %v15404_v49 = vld [vmem:[#allocation30_spill] sm:$0xff] }
 0xa49   : > { %v4703_v57 = vmul.f32 1.442695, %v4643_v25  ;;  %v5031_v55 = vmul.f32 %v4948_v28, %v15400_v31  ;;  %v4537_v22 = vmul.f32 %v13017_v45, %v15402_v12  ;;  %v5253_v18 = vpack.c.bf16 %v5231_v32, %v5230_v52 }
 0xa4a   : > { %9269 = vpow2.f32 %v4701_v47  ;;  %v15403_v21 = vmov %v15396_v63  ;;  %v4574_v5 = vmul.f32 %v13014_v40, %v4536_v48  ;;  %v4951_v45 = vrot.slane %v13414_v26, 7 }
 0xa4b   : > { %v4950_v54 = vsel %vm1668_vm3, %v15403_v21, %v4949_v6  ;;  %v9258_v11 = vpop.eup %9257  ;;  %9271 = vpow2.f32 %v4703_v57  ;;  %v4575_v19 = vmul.f32 %v13014_v40, %v4537_v22  ;;  %v4953_v52 = vrot.slane %v13432_v42, 7  ;;  %8623 = vmatmul.mubr.bf16.gmra.mrb[104].mxu1 %v5253_v18 }
 0xa4c   : > { %v5032_v63 = vmul.f32 %v4950_v54, %v15404_v49  ;;  %v9260_v28 = vpop.eup %9259  ;;  %v13522_v39 = vmul.f32 %v9258_v11, %v13344_v24  ;;  %v13530_v47 = vadd.f32 %v13028_v36, %v4574_v5  ;;  %v5090_v48 = vpack.c.bf16 %v13432_v42, %v13414_v26  ;;  %v15405_v11 = vld [vmem:[#allocation31_spill] sm:$0xff] }
 0xa4d   : > { %v9262_v25 = vpop.eup %9261  ;;  %v13527_v0 = vmul.f32 %v9260_v28, %v13347_v35  ;;  %v13533_v57 = vadd.f32 %v13028_v36, %v4575_v19  ;;  %v4952_v12 = vsel %vm1668_vm3, %v4949_v6, %v4951_v45  ;;  %v4954_v54 = vsel %vm1668_vm3, %v4951_v45, %v4953_v52  ;;  %v15406_v6 = vld [vmem:[#allocation70_spill] sm:$0xff]  ;;  %v15407_v28 = vld [vmem:[#allocation71_spill] sm:$0xff] }
 0xa4e   : > { %v5057_v32 = vpack.c.bf16 %v5032_v63, %v5031_v55  ;;  %v9264_v40 = vpop.eup %9263  ;;  %v5156_v24 = vrot.slane %v13522_v39, 1  ;;  %v4736_v16 = vadd.f32 1.0, %v9262_v25  ;;  %v4644_v55 = vsub.f32 0.0, %v13530_v47 }
 0xa4f   : > { %v5158_v22 = vrot.slane %v13527_v0, 1  ;;  %v4737_v35 = vadd.f32 1.0, %v9264_v40  ;;  %v4645_v18 = vsub.f32 0.0, %v13533_v57  ;;  %v9266_v21 = vpop.eup %9265  ;;  %v5033_v63 = vmul.f32 %v4952_v12, %v15405_v11 }
 0xa50   : > { %5555 = vmatmul.mubr.bf16.gmra.mrb[152].mxu0 %v5057_v32  ;;  %v5157_v36 = vsel %vm1860_vm2, %v5154_v50, %v5156_v24  ;;  %9273 = vrcp.f32 %v4736_v16  ;;  %v13548_v19 = vmul.f32 %v9266_v21, %v13383_v61  ;;  %v4705_v50 = vmul.f32 1.442695, %v4644_v55  ;;  %v15408_v16 = vld [vmem:[#allocation32_spill] sm:$0xff] }
 0xa51   : > { %5562 = vmatprep.mubr.bf16.mxu0 %v5090_v48  ;;  %v9268_v26 = vpop.eup %9267  ;;  %v5159_v42 = vsel %vm1860_vm2, %v5156_v24, %v5158_v22  ;;  %v5232_v5 = vmul.f32 %v5157_v36, %v15406_v6  ;;  %9275 = vrcp.f32 %v4737_v35  ;;  %v4707_v40 = vmul.f32 1.442695, %v4645_v18 }
 0xa52   : > { %v5233_v25 = vmul.f32 %v5159_v42, %v15407_v28  ;;  %v13552_v32 = vmul.f32 %v9268_v26, %v13397_v56  ;;  %v5160_v45 = vrot.slane %v13548_v19, 1  ;;  %v5034_v48 = vmul.f32 %v4954_v54, %v15408_v16  ;;  %v15409_v42 = vld [vmem:[#allocation75_spill] sm:$0xff] }
 0xa53   : > { %v5091_v24 = vpack.c.bf16 %v13463_v33, %v13453_v60  ;;  %v4955_v12 = vrot.slane %v13453_v60, 7  ;;  %9277 = vpow2.f32 %v4705_v50  ;;  %v4957_v21 = vrot.slane %v13463_v33, 7  ;;  %v15411_v50 = vld [vmem:[#allocation35_spill] sm:$0xff] }
 0xa54   : > { %v9270_v36 = vpop.eup %9269  ;;  %v5254_v61 = vpack.c.bf16 %v5233_v25, %v5232_v5  ;;  %v5162_v35 = vrot.slane %v13552_v32, 1  ;;  %v5161_v55 = vsel %vm1860_vm2, %v5158_v22, %v5160_v45  ;;  %9279 = vpow2.f32 %v4707_v40  ;;  %v15410_v5 = vld [vmem:[#allocation77_spill] sm:$0xff] }
 0xa55   : > { %v9272_v56 = vpop.eup %9271  ;;  %v4738_v18 = vadd.f32 1.0, %v9270_v36  ;;  %v5058_v26 = vpack.c.bf16 %v5034_v48, %v5033_v63  ;;  %v5234_v16 = vmul.f32 %v5161_v55, %v15409_v42  ;;  %v4956_v60 = vsel %vm1668_vm3, %v4953_v52, %v4955_v12  ;;  %v15412_v63 = vld [vmem:[#allocation36_spill] sm:$0xff] }
 0xa56   : > { %8626 = vmatprep.mubr.bf16.mxu1 %v5254_v61  ;;  %v5163_v54 = vsel %vm1860_vm2, %v5160_v45, %v5162_v35  ;;  %v4739_v28 = vadd.f32 1.0, %v9272_v56  ;;  %v4958_v33 = vsel %vm1668_vm3, %v4955_v12, %v4957_v21  ;;  %v5035_v40 = vmul.f32 %v4956_v60, %v15411_v50 }
 0xa57   : > { %v5235_v25 = vmul.f32 %v5163_v54, %v15410_v5  ;;  %9281 = vrcp.f32 %v4738_v18  ;;  %v5036_v48 = vmul.f32 %v4958_v33, %v15412_v63  ;;  %v4959_v45 = vrot.slane %v13472_v7, 7  ;;  %v15413_v33 = vld [vmem:[#allocation82_spill] sm:$0xff] }
 0xa58   : > { %5563 = vmatmul.mubr.bf16.gmra.mrb[156].mxu0 %v5058_v26  ;;  %9283 = vrcp.f32 %v4739_v28  ;;  %v4961_v61 = vrot.slane %v13484_v3, 7  ;;  %v5092_v18 = vpack.c.bf16 %v13484_v3, %v13472_v7  ;;  %v15415_v7 = vld [vmem:[#allocation41_spill] sm:$0xff] }
 0xa59   : > { %5570 = vmatprep.mubr.bf16.mxu0 %v5091_v24  ;;  %v5255_v22 = vpack.c.bf16 %v5235_v25, %v5234_v16  ;;  %v5059_v16 = vpack.c.bf16 %v5036_v48, %v5035_v40  ;;  %v4960_v26 = vsel %vm1668_vm3, %v4957_v21, %v4959_v45  ;;  %v15416_v21 = vld [vmem:[#allocation42_spill] sm:$0xff] }
 0xa5a   : > { %v9274_v36 = vpop.eup %9273  ;;  %v4962_v54 = vsel %vm1668_vm3, %v4959_v45, %v4961_v61  ;;  %v5037_v3 = vmul.f32 %v4960_v26, %v15415_v7 }
 0xa5b   : > { %v9276_v56 = vpop.eup %9275  ;;  %8627 = vmatmul.mubr.bf16.gmra.mrb[108].mxu1 %v5255_v22  ;;  %v13572_v52 = vmul.f32 %v9274_v36, %v13436_v37  ;;  %v15414_v36 = vld [vmem:[#allocation83_spill] sm:$0xff]  ;;  %v5038_v63 = vmul.f32 %v4962_v54, %v15416_v21 }
 0xa5c   : > { %v13575_v55 = vmul.f32 %v9276_v56, %v13460_v14 }
 0xa5d   : > { %v5164_v28 = vrot.slane %v13572_v52, 1  ;;  %v9278_v24 = vpop.eup %9277 }
 0xa5e   : > { %v5166_v12 = vrot.slane %v13575_v55, 1  ;;  %v9280_v60 = vpop.eup %9279  ;;  %v4740_v25 = vadd.f32 1.0, %v9278_v24 }
 0xa5f   : > { %v5165_v37 = vsel %vm1860_vm2, %v5162_v35, %v5164_v28  ;;  %v4741_v40 = vadd.f32 1.0, %v9280_v60  ;;  %v4963_v35 = vrot.slane %v13488_v20, 7  ;;  %v5060_v60 = vpack.c.bf16 %v5038_v63, %v5037_v3  ;;  %v15419_v63 = vld [vmem:[#allocation47_spill] sm:$0xff] }
 0xa60   : > { %5571 = vmatmul.mubr.bf16.gmra.mrb[160].mxu0 %v5059_v16  ;;  %v5167_v14 = vsel %vm1860_vm2, %v5164_v28, %v5166_v12  ;;  %v5236_v22 = vmul.f32 %v5165_v37, %v15413_v33  ;;  %9285 = vrcp.f32 %v4740_v25  ;;  %v4965_v28 = vrot.slane %v13522_v39, 7 }
 0xa61   : > { %5578 = vmatprep.mubr.bf16.mxu0 %v5092_v18  ;;  %v9282_v48 = vpop.eup %9281  ;;  %v5237_v56 = vmul.f32 %v5167_v14, %v15414_v36  ;;  %9287 = vrcp.f32 %v4741_v40  ;;  %v4964_v37 = vsel %vm1668_vm3, %v4961_v61, %v4963_v35  ;;  %v15418_v40 = vld [vmem:[#allocation92_spill] sm:$0xff]  ;;  %v4969_v61 = vrot.slane %v13548_v19, 7 }
 0xa62   : > { %v9284_v45 = vpop.eup %9283  ;;  %v13590_v50 = vmul.f32 %v9282_v48, %v13492_v59  ;;  %v5093_v59 = vpack.c.bf16 %v13522_v39, %v13488_v20  ;;  %v4966_v25 = vsel %vm1668_vm3, %v4963_v35, %v4965_v28  ;;  %v5039_v3 = vmul.f32 %v4964_v37, %v15419_v63 }
 0xa63   : > { %v5256_v16 = vpack.c.bf16 %v5237_v56, %v5236_v22  ;;  %v13595_v24 = vmul.f32 %v9284_v45, %v13496_v41  ;;  %v15417_v22 = vld [vmem:[#allocation91_spill] sm:$0xff]  ;;  %v5176_v56 = vrot.slane %v13214_v58, 1  ;;  %v4967_v20 = vrot.slane %v13527_v0, 7 }
 0xa64   : > { %v5168_v18 = vrot.slane %v13590_v50, 1 }
 0xa65   : > { %8630 = vmatprep.mubr.bf16.mxu1 %v5256_v16  ;;  %v5170_v26 = vrot.slane %v13595_v24, 1  ;;  %v4968_v37 = vsel %vm1668_vm3, %v4965_v28, %v4967_v20 }
 0xa66   : > { %v5169_v54 = vsel %vm1860_vm2, %v5166_v12, %v5168_v18  ;;  %v15420_v12 = vld [vmem:[#allocation48_spill] sm:$0xff] }
 0xa67   : > { %v5171_v14 = vsel %vm1860_vm2, %v5168_v18, %v5170_v26  ;;  %v5238_v41 = vmul.f32 %v5169_v54, %v15417_v22  ;;  %v5040_v45 = vmul.f32 %v4966_v25, %v15420_v12  ;;  %v15421_v54 = vld [vmem:[#allocation117_spill] sm:$0xff] }
 0xa68   : > { %5579 = vmatmul.mubr.bf16.gmra.mrb[164].mxu0 %v5060_v60  ;;  %v5239_v48 = vmul.f32 %v5171_v14, %v15418_v40 }
 0xa69   : > { %5586 = vmatprep.mubr.bf16.mxu0 %v5093_v59  ;;  %v15422_v59 = vrot.slane %v15421_v54, 1  ;;  %v5061_v40 = vpack.c.bf16 %v5040_v45, %v5039_v3  ;;  %v15425_v3 = vld [vmem:[#allocation94_spill] sm:$0xff] }
 0xa6a   : > { %v5257_v39 = vpack.c.bf16 %v5239_v48, %v5238_v41  ;;  %v9286_v35 = vpop.eup %9285  ;;  %v5094_v41 = vpack.c.bf16 %v13548_v19, %v13527_v0  ;;  %v4970_v48 = vsel %vm1668_vm3, %v4967_v20, %v4969_v61  ;;  %v15427_v0 = vld [vmem:[#allocation95_spill] sm:$0xff] }
 0xa6b   : > { %v9288_v16 = vpop.eup %9287  ;;  %v4836_v18 = vmul.f32 %v9286_v35, %v13530_v47  ;;  %v5211_v14 = vsel %vm1860_vm2, %v5176_v56, %v15422_v59  ;;  %v15423_v47 = vld [vmem:[#allocation100_spill] sm:$0xff]  ;;  %v15426_v59 = vld [vmem:[#allocation54_spill] sm:$0xff]  ;;  %v15428_v20 = vld [vmem:[#allocation99_spill] sm:$0xff] }
 0xa6c   : > { %8631 = vmatmul.mubr.bf16.gmra.mrb[112].mxu1 %v5257_v39  ;;  %v4837_v60 = vmul.f32 %v9288_v16, %v13533_v57  ;;  %v5243_v35 = vmul.f32 %v5211_v14, %v15423_v47  ;;  %v15424_v57 = vld [vmem:[#allocation53_spill] sm:$0xff]  ;;  %v5042_v63 = vmul.f32 %v4970_v48, %v15426_v59 }
 0xa6d   : > { %v5172_v25 = vrot.slane %v4836_v18, 1  ;;  %v5041_v16 = vmul.f32 %v4968_v37, %v15424_v57  ;;  %v5095_v37 = vpack.c.bf16 %v13572_v52, %v13552_v32 }
 0xa6e   : > { %v5174_v12 = vrot.slane %v4837_v60, 1 }
 0xa6f   : > { %v5173_v39 = vsel %vm1860_vm2, %v5170_v26, %v5172_v25  ;;  %v4973_v26 = vrot.slane %v13572_v52, 7  ;;  %v5062_v47 = vpack.c.bf16 %v5042_v63, %v5041_v16  ;;  %v4977_v63 = vrot.slane %v13590_v50, 7 }
 0xa70   : > { %5587 = vmatmul.mubr.bf16.gmra.mrb[168].mxu0 %v5061_v40  ;;  %v5175_v54 = vsel %vm1860_vm2, %v5172_v25, %v5174_v12  ;;  %v5240_v45 = vmul.f32 %v5173_v39, %v15425_v3  ;;  %v5177_v28 = vsel %vm1860_vm2, %v5174_v12, %v5176_v56  ;;  %v4971_v40 = vrot.slane %v13552_v32, 7  ;;  %v15429_v12 = vld [vmem:[#allocation63_spill] sm:$0xff]  ;;  %v15430_v39 = vld [vmem:[#allocation65_spill] sm:$0xff] }
 0xa71   : > { %5594 = vmatprep.mubr.bf16.mxu0 %v5094_v41  ;;  %v5241_v19 = vmul.f32 %v5175_v54, %v15427_v0  ;;  %v5242_v22 = vmul.f32 %v5177_v28, %v15428_v20  ;;  %v5096_v32 = vpack.c.bf16 %v13590_v50, %v13575_v55 }
 0xa72   : > { %v4972_v25 = vsel %vm1668_vm3, %v4969_v61, %v4971_v40  ;;  %v4974_v56 = vsel %vm1668_vm3, %v4971_v40, %v4973_v26  ;;  %v4981_v40 = vrot.slane %v4836_v18, 7 }
 0xa73   : > { %v5258_v14 = vpack.c.bf16 %v5241_v19, %v5240_v45  ;;  %v5259_v41 = vpack.c.bf16 %v5243_v35, %v5242_v22  ;;  %v5043_v48 = vmul.f32 %v4972_v25, %v15429_v12  ;;  %v5044_v54 = vmul.f32 %v4974_v56, %v15430_v39  ;;  %v15432_v45 = vld [vmem:[#allocation73_spill] sm:$0xff]  ;;  %v15434_v25 = vld [vmem:[#allocation86_spill] sm:$0xff] }
 0xa74   : > { %v4975_v22 = vrot.slane %v13575_v55, 7  ;;  %v4979_v19 = vrot.slane %v13595_v24, 7  ;;  %v15433_v55 = vld [vmem:[#allocation85_spill] sm:$0xff] }
 0xa75   : > { %8634 = vmatprep.mubr.bf16.mxu1 %v5258_v14  ;;  %v5063_v35 = vpack.c.bf16 %v5044_v54, %v5043_v48  ;;  %v4983_v48 = vrot.slane %v4837_v60, 7 }
 0xa76   : > { %8635 = vmatmul.mubr.bf16.gmra.mrb[116].mxu1 %v5259_v41  ;;  %v4976_v52 = vsel %vm1668_vm3, %v4973_v26, %v4975_v22  ;;  %v4978_v61 = vsel %vm1668_vm3, %v4975_v22, %v4977_v63  ;;  %v5097_v41 = vpack.c.bf16 %v4836_v18, %v13595_v24  ;;  %v4982_v50 = vsel %vm1668_vm3, %v4979_v19, %v4981_v40  ;;  %v15436_v18 = vld [vmem:[#allocation97_spill] sm:$0xff] }
 0xa77   : > { %8654 = vmatprep.mubr.msk.bf16.mxu1 %vm9624_vm0, %v15154_v10  ;;  %v5046_v28 = vmul.f32 %v4978_v61, %v15432_v45  ;;  %v5048_v56 = vmul.f32 %v4982_v50, %v15434_v25  ;;  %v5098_v22 = vpack.c.bf16 %v13214_v58, %v4837_v60  ;;  %v13664_v60 = vld [vmem:[%s14852_s7 + $0x1] ss:$0 sm:$0xff] }
 0xa78   : > { %5595 = vmatmul.mubr.bf16.gmra.mrb[172].mxu0 %v5062_v47  ;;  %v15431_v47 = vld [vmem:[#allocation72_spill] sm:$0xff] }
 0xa79   : > { %5602 = vmatprep.mubr.bf16.mxu0 %v5095_v37  ;;  %v5045_v16 = vmul.f32 %v4976_v52, %v15431_v47  ;;  %v4980_v37 = vsel %vm1668_vm3, %v4977_v63, %v4979_v19  ;;  %v15437_v52 = vld [vmem:[#allocation98_spill] sm:$0xff] }
 0xa7a   : > { %v5047_v26 = vmul.f32 %v4980_v37, %v15433_v55 }
 0xa7b   : > { %v5064_v14 = vpack.c.bf16 %v5046_v28, %v5045_v16 }
 0xa7c   : > { %v5065_v54 = vpack.c.bf16 %v5048_v56, %v5047_v26 }
 0xa80   : > { %5603 = vmatmul.mubr.bf16.gmra.mrb[176].mxu0 %v5063_v35  ;;  %v4984_v35 = vsel %vm1668_vm3, %v4981_v40, %v4983_v48 }
 0xa81   : > { %5610 = vmatprep.mubr.bf16.mxu0 %v5096_v32  ;;  %v15435_v32 = vrot.slane %v13214_v58, 7  ;;  %v5049_v63 = vmul.f32 %v4984_v35, %v15436_v18 }
 0xa83   : > { %v4985_v24 = vsel %vm1668_vm3, %v4983_v48, %v15435_v32 }
 0xa84   : > { %v5050_v61 = vmul.f32 %v4985_v24, %v15437_v52 }
 0xa86   : > { %v5066_v16 = vpack.c.bf16 %v5050_v61, %v5049_v63 }
 0xa88   : > { %5611 = vmatmul.mubr.bf16.gmra.mrb[180].mxu0 %v5064_v14 }
 0xa89   : > { %5618 = vmatprep.mubr.bf16.mxu0 %v5097_v41 }
 0xa90   : > { %5619 = vmatmul.mubr.bf16.gmra.mrb[184].mxu0 %v5065_v54 }
 0xa91   : > { %5626 = vmatprep.mubr.bf16.mxu0 %v5098_v22 }
 0xa98   : > { %5627 = vmatmul.mubr.bf16.gmra.mrb[188].mxu0 %v5066_v16 }
 0xaeb   : > { %v8608_v28 = vpop.f32.mrb[88].mxu1 }
 0xaec   : > { %v8100_v19 = vpop.f32.mrb[128].mxu0  ;;  %v5669_v14 = vpop.f32.mrb[89].mxu1 }
 0xaed   : > { %v8101_v40 = vpop.f32.mrb[129].mxu0  ;;  %v8609_v58 = vpop.f32.mrb[90].mxu1 }
 0xaee   : > { %v8102_v41 = vadd.f32 %v8101_v40, %v8100_v19  ;;  %v8103_v37 = vpop.f32.mrb[130].mxu0  ;;  %v5672_v50 = vpop.f32.mrb[91].mxu1 }
 0xaef   : > { %v8104_v26 = vpop.f32.mrb[131].mxu0 }
 0xaf0   : > { %v5509_v56 = vadd.f32 %v8102_v41, %v13664_v60  ;;  %v8105_v48 = vadd.f32 %v8104_v26, %v8103_v37 }
 0xaf2   : > { %v13667_v54 = vadd.f32 %v5669_v14, %v5509_v56  ;;  %v5512_v22 = vadd.f32 %v8105_v48, %v13664_v60 }
 0xaf3   : > { %v8612_v35 = vpop.f32.mrb[92].mxu1 }
 0xaf4   : > { %v13670_v32 = vadd.f32 %v5672_v50, %v5512_v22  ;;  %v8106_v24 = vpop.f32.mrb[132].mxu0  ;;  %v5685_v63 = vpop.f32.mrb[93].mxu1 }
 0xaf5   : > { %v8107_v61 = vpop.f32.mrb[133].mxu0  ;;  %v8613_v16 = vpop.f32.mrb[94].mxu1 }
 0xaf6   : > { %v8108_v52 = vadd.f32 %v8107_v61, %v8106_v24  ;;  %v8109_v18 = vpop.f32.mrb[134].mxu0  ;;  %v5688_v19 = vpop.f32.mrb[95].mxu1 }
 0xaf7   : > { %v8110_v40 = vpop.f32.mrb[135].mxu0 }
 0xaf8   : > { %v5517_v25 = vadd.f32 %v8108_v52, %v13664_v60  ;;  %v8111_v55 = vadd.f32 %v8110_v40, %v8109_v18 }
 0xafa   : > { %v13673_v41 = vadd.f32 %v8608_v28, %v5517_v25  ;;  %v5520_v14 = vadd.f32 %v8111_v55, %v13664_v60 }
 0xafc   : > { %v13676_v37 = vadd.f32 %v8609_v58, %v5520_v14  ;;  %v8112_v26 = vpop.f32.mrb[136].mxu0 }
 0xafd   : > { %v8113_v50 = vpop.f32.mrb[137].mxu0 }
 0xafe   : > { %v8114_v56 = vadd.f32 %v8113_v50, %v8112_v26  ;;  %v8115_v48 = vpop.f32.mrb[138].mxu0 }
 0xaff   : > { %v8116_v22 = vpop.f32.mrb[139].mxu0 }
 0xb00   : > { %v5525_v45 = vadd.f32 %v8114_v56, %v13664_v60  ;;  %v8117_v24 = vadd.f32 %v8116_v22, %v8115_v48 }
 0xb02   : > { %v13679_v61 = vadd.f32 %v5685_v63, %v5525_v45  ;;  %v5528_v47 = vadd.f32 %v8117_v24, %v13664_v60 }
 0xb04   : > { %v13682_v52 = vadd.f32 %v5688_v19, %v5528_v47  ;;  %v8118_v25 = vpop.f32.mrb[140].mxu0 }
 0xb05   : > { %v8119_v18 = vpop.f32.mrb[141].mxu0 }
 0xb06   : > { %v8616_v28 = vpop.f32.mrb[96].mxu1  ;;  %v8120_v55 = vadd.f32 %v8119_v18, %v8118_v25  ;;  %v8121_v58 = vpop.f32.mrb[142].mxu0 }
 0xb07   : > { %v5701_v40 = vpop.f32.mrb[97].mxu1  ;;  %v8122_v14 = vpop.f32.mrb[143].mxu0 }
 0xb08   : > { %v8617_v39 = vpop.f32.mrb[98].mxu1  ;;  %v5533_v26 = vadd.f32 %v8120_v55, %v13664_v60  ;;  %v8123_v50 = vadd.f32 %v8122_v14, %v8121_v58 }
 0xb09   : > { %v5704_v12 = vpop.f32.mrb[99].mxu1 }
 0xb0a   : > { %v13685_v56 = vadd.f32 %v8612_v35, %v5533_v26  ;;  %v5536_v45 = vadd.f32 %v8123_v50, %v13664_v60 }
 0xb0c   : > { %v13688_v63 = vadd.f32 %v8613_v16, %v5536_v45  ;;  %v8124_v47 = vpop.f32.mrb[144].mxu0 }
 0xb0d   : > { %v8125_v19 = vpop.f32.mrb[145].mxu0 }
 0xb0e   : > { %v8126_v48 = vadd.f32 %v8125_v19, %v8124_v47  ;;  %v8127_v22 = vpop.f32.mrb[146].mxu0 }
 0xb0f   : > { %v8128_v24 = vpop.f32.mrb[147].mxu0 }
 0xb10   : > { %v5541_v25 = vadd.f32 %v8126_v48, %v13664_v60  ;;  %v8129_v18 = vadd.f32 %v8128_v24, %v8127_v22 }
 0xb12   : > { %v13691_v20 = vadd.f32 %v5701_v40, %v5541_v25  ;;  %v5544_v55 = vadd.f32 %v8129_v18, %v13664_v60 }
 0xb14   : > { %v13694_v58 = vadd.f32 %v5704_v12, %v5544_v55  ;;  %v8130_v35 = vpop.f32.mrb[148].mxu0 }
 0xb15   : > { %v8131_v14 = vpop.f32.mrb[149].mxu0 }
 0xb16   : > { %v8620_v26 = vpop.f32.mrb[100].mxu1  ;;  %v8132_v50 = vadd.f32 %v8131_v14, %v8130_v35  ;;  %v8133_v16 = vpop.f32.mrb[150].mxu0 }
 0xb17   : > { %v5717_v45 = vpop.f32.mrb[101].mxu1  ;;  %v8134_v0 = vpop.f32.mrb[151].mxu0 }
 0xb18   : > { %v8621_v59 = vpop.f32.mrb[102].mxu1  ;;  %v5549_v47 = vadd.f32 %v8132_v50, %v13664_v60  ;;  %v8135_v19 = vadd.f32 %v8134_v0, %v8133_v16 }
 0xb19   : > { %v5720_v3 = vpop.f32.mrb[103].mxu1 }
 0xb1a   : > { %v13697_v48 = vadd.f32 %v8616_v28, %v5549_v47  ;;  %v5552_v40 = vadd.f32 %v8135_v19, %v13664_v60 }
 0xb1c   : > { %v13700_v22 = vadd.f32 %v8617_v39, %v5552_v40 }
 0xb1e   : > { %v8624_v12 = vpop.f32.mrb[104].mxu1 }
 0xb1f   : > { %v5733_v24 = vpop.f32.mrb[105].mxu1 }
 0xb20   : > { %v8625_v25 = vpop.f32.mrb[106].mxu1 }
 0xb21   : > { %v5736_v55 = vpop.f32.mrb[107].mxu1 }
 0xb23   : > { %v8136_v18 = vpop.f32.mrb[152].mxu0 }
 0xb24   : > { %v8137_v35 = vpop.f32.mrb[153].mxu0 }
 0xb25   : > { %v8138_v14 = vadd.f32 %v8137_v35, %v8136_v18  ;;  %v8139_v57 = vpop.f32.mrb[154].mxu0 }
 0xb26   : > { %v8140_v21 = vpop.f32.mrb[155].mxu0 }
 0xb27   : > { %v5557_v7 = vadd.f32 %v8138_v14, %v13664_v60  ;;  %v8141_v50 = vadd.f32 %v8140_v21, %v8139_v57 }
 0xb29   : > { %v13703_v0 = vadd.f32 %v5717_v45, %v5557_v7  ;;  %v5560_v28 = vadd.f32 %v8141_v50, %v13664_v60 }
 0xb2b   : > { %v13706_v16 = vadd.f32 %v5720_v3, %v5560_v28  ;;  %v8142_v39 = vpop.f32.mrb[156].mxu0 }
 0xb2c   : > { %v8143_v47 = vpop.f32.mrb[157].mxu0 }
 0xb2d   : > { %v8144_v19 = vadd.f32 %v8143_v47, %v8142_v39  ;;  %v8145_v40 = vpop.f32.mrb[158].mxu0 }
 0xb2e   : > { %v8146_v36 = vpop.f32.mrb[159].mxu0  ;;  %v13708_v33 = vpop.f32.mrb[108].mxu1 }
 0xb2f   : > { %v5565_v18 = vadd.f32 %v8144_v19, %v13664_v60  ;;  %v8147_v35 = vadd.f32 %v8146_v36, %v8145_v40  ;;  %v5749_v5 = vpop.f32.mrb[109].mxu1  ;;  %v5800_v36 = vadd.f32 %v13670_v32, %v13667_v54 }
 0xb30   : > { %v13711_v42 = vpop.f32.mrb[110].mxu1 }
 0xb31   : > { %v13713_v21 = vadd.f32 %v8620_v26, %v5565_v18  ;;  %v5568_v7 = vadd.f32 %v8147_v35, %v13664_v60  ;;  %v5752_v57 = vpop.f32.mrb[111].mxu1  ;;  %v5801_v40 = vadd.f32 %v5800_v36, %v13673_v41 }
 0xb33   : > { %v13716_v3 = vadd.f32 %v8621_v59, %v5568_v7  ;;  %v8148_v45 = vpop.f32.mrb[160].mxu0  ;;  %v5802_v11 = vadd.f32 %v5801_v40, %v13676_v37 }
 0xb34   : > { %v8149_v14 = vpop.f32.mrb[161].mxu0 }
 0xb35   : > { %v8150_v50 = vadd.f32 %v8149_v14, %v8148_v45  ;;  %v8151_v28 = vpop.f32.mrb[162].mxu0 }
 0xb36   : > { %v8152_v39 = vpop.f32.mrb[163].mxu0 }
 0xb37   : > { %v5573_v47 = vadd.f32 %v8150_v50, %v13664_v60  ;;  %v8153_v6 = vadd.f32 %v8152_v39, %v8151_v28 }
 0xb39   : > { %v13721_v19 = vadd.f32 %v5733_v24, %v5573_v47  ;;  %v5576_v26 = vadd.f32 %v8153_v6, %v13664_v60  ;;  %v5803_v24 = vadd.f32 %v5802_v11, %v13679_v61 }
 0xb3b   : > { %v13725_v18 = vadd.f32 %v5736_v55, %v5576_v26  ;;  %v8154_v59 = vpop.f32.mrb[164].mxu0  ;;  %v5804_v40 = vadd.f32 %v5803_v24, %v13682_v52 }
 0xb3c   : > { %v8155_v35 = vpop.f32.mrb[165].mxu0 }
 0xb3d   : > { %v8156_v7 = vadd.f32 %v8155_v35, %v8154_v59  ;;  %v8157_v45 = vpop.f32.mrb[166].mxu0  ;;  %v5805_v31 = vadd.f32 %v5804_v40, %v13685_v56  ;;  %v5821_v40 = vadd.f32 %v13725_v18, %v13721_v19 }
 0xb3e   : > { %v8158_v14 = vpop.f32.mrb[167].mxu0 }
 0xb3f   : > { %v5581_v50 = vadd.f32 %v8156_v7, %v13664_v60  ;;  %v8159_v28 = vadd.f32 %v8158_v14, %v8157_v45  ;;  %v13729_v39 = vpop.f32.mrb[112].mxu1  ;;  %v5806_v4 = vadd.f32 %v5805_v31, %v13688_v63 }
 0xb40   : > { %v5765_v47 = vpop.f32.mrb[113].mxu1 }
 0xb41   : > { %v13732_v6 = vadd.f32 %v8624_v12, %v5581_v50  ;;  %v5584_v55 = vadd.f32 %v8159_v28, %v13664_v60  ;;  %v13735_v36 = vpop.f32.mrb[114].mxu1 }
 0xb42   : > { %v5768_v26 = vpop.f32.mrb[115].mxu1 }
 0xb43   : > { %v13737_v59 = vadd.f32 %v8625_v25, %v5584_v55  ;;  %v8160_v35 = vpop.f32.mrb[168].mxu0  ;;  %v5822_v31 = vadd.f32 %v5821_v40, %v13732_v6 }
 0xb44   : > { %v8161_v49 = vpop.f32.mrb[169].mxu0 }
 0xb45   : > { %v8162_v7 = vadd.f32 %v8161_v49, %v8160_v35  ;;  %v8163_v45 = vpop.f32.mrb[170].mxu0  ;;  %v5807_v35 = vadd.f32 %v5806_v4, %v13691_v20  ;;  %v5823_v23 = vadd.f32 %v5822_v31, %v13737_v59 }
 0xb46   : > { %v8164_v14 = vpop.f32.mrb[171].mxu0 }
 0xb47   : > { %v5589_v11 = vadd.f32 %v8162_v7, %v13664_v60  ;;  %v8165_v12 = vadd.f32 %v8164_v14, %v8163_v45 }
 0xb49   : > { %v13742_v50 = vadd.f32 %v5749_v5, %v5589_v11  ;;  %v5592_v28 = vadd.f32 %v8165_v12, %v13664_v60  ;;  %v13746_v25 = vpop.f32.mrb[116].mxu1  ;;  %v5808_v12 = vadd.f32 %v5807_v35, %v13694_v58 }
 0xb4a   : > { %v5781_v24 = vpop.f32.mrb[117].mxu1 }
 0xb4b   : > { %v13748_v55 = vadd.f32 %v5752_v57, %v5592_v28  ;;  %v8166_v17 = vpop.f32.mrb[172].mxu0  ;;  %v13751_v53 = vpop.f32.mrb[118].mxu1  ;;  %v5809_v38 = vadd.f32 %v5808_v12, %v13697_v48  ;;  %v5824_v40 = vadd.f32 %v5823_v23, %v13742_v50 }
 0xb4c   : > { %v8167_v49 = vpop.f32.mrb[173].mxu0  ;;  %v5784_v45 = vpop.f32.mrb[119].mxu1 }
 0xb4d   : > { %v8168_v5 = vadd.f32 %v8167_v49, %v8166_v17  ;;  %v8169_v7 = vpop.f32.mrb[174].mxu0  ;;  %v5810_v35 = vadd.f32 %v5809_v38, %v13700_v22  ;;  %v5825_v12 = vadd.f32 %v5824_v40, %v13748_v55 }
 0xb4e   : > { %v8170_v14 = vpop.f32.mrb[175].mxu0 }
 0xb4f   : > { %v5597_v11 = vadd.f32 %v8168_v5, %v13664_v60  ;;  %v8171_v57 = vadd.f32 %v8170_v14, %v8169_v7 }
 0xb51   : > { %v13759_v28 = vadd.f32 %v13708_v33, %v5597_v11  ;;  %v5600_v4 = vadd.f32 %v8171_v57, %v13664_v60  ;;  %v5811_v57 = vadd.f32 %v5810_v35, %v13703_v0 }
 0xb53   : > { %v13765_v17 = vadd.f32 %v13711_v42, %v5600_v4  ;;  %v8172_v49 = vpop.f32.mrb[176].mxu0  ;;  %v5826_v4 = vadd.f32 %v5825_v12, %v13759_v28 }
 0xb54   : > { %v8173_v44 = vpop.f32.mrb[177].mxu0 }
 0xb55   : > { %v8174_v5 = vadd.f32 %v8173_v44, %v8172_v49  ;;  %v8175_v7 = vpop.f32.mrb[178].mxu0  ;;  %v5812_v49 = vadd.f32 %v5811_v57, %v13706_v16 }
 0xb56   : > { %v8176_v14 = vpop.f32.mrb[179].mxu0 }
 0xb57   : > { %v5605_v33 = vadd.f32 %v8174_v5, %v13664_v60  ;;  %v8177_v11 = vadd.f32 %v8176_v14, %v8175_v7  ;;  %v5813_v7 = vadd.f32 %v5812_v49, %v13713_v21  ;;  %v5827_v14 = vadd.f32 %v5826_v4, %v13765_v17 }
 0xb59   : > { %v13772_v31 = vadd.f32 %v5765_v47, %v5605_v33  ;;  %v5608_v42 = vadd.f32 %v8177_v11, %v13664_v60  ;;  %v5814_v11 = vadd.f32 %v5813_v7, %v13716_v3 }
 0xb5b   : > { %v13776_v46 = vadd.f32 %v5768_v26, %v5608_v42  ;;  %v8178_v44 = vpop.f32.mrb[180].mxu0  ;;  %v5828_v35 = vadd.f32 %v5827_v14, %v13772_v31 }
 0xb5c   : > { %v8179_v23 = vpop.f32.mrb[181].mxu0 }
 0xb5d   : > { %v8180_v38 = vadd.f32 %v8179_v23, %v8178_v44  ;;  %v8181_v27 = vpop.f32.mrb[182].mxu0  ;;  %v5829_v44 = vadd.f32 %v5828_v35, %v13776_v46 }
 0xb5e   : > { %v8182_v5 = vpop.f32.mrb[183].mxu0 }
 0xb5f   : > { %v5613_v47 = vadd.f32 %v8180_v38, %v13664_v60  ;;  %v8183_v40 = vadd.f32 %v8182_v5, %v8181_v27  ;;  %v5815_v27 = vrot.slane %v5814_v11, 4 }
 0xb61   : > { %v13784_v33 = vadd.f32 %v13729_v39, %v5613_v47  ;;  %v5616_v26 = vadd.f32 %v8183_v40, %v13664_v60  ;;  %v5816_v47 = vadd.f32 %v5815_v27, %v5814_v11 }
 0xb63   : > { %v13789_v57 = vadd.f32 %v13735_v36, %v5616_v26  ;;  %v8184_v12 = vpop.f32.mrb[184].mxu0  ;;  %v5830_v38 = vadd.f32 %v5829_v44, %v13784_v33  ;;  %v5817_v44 = vrot.slane %v5816_v47, 2 }
 0xb64   : > { %v8185_v42 = vpop.f32.mrb[185].mxu0 }
 0xb65   : > { %v8186_v4 = vadd.f32 %v8185_v42, %v8184_v12  ;;  %v8187_v23 = vpop.f32.mrb[186].mxu0  ;;  %v5831_v36 = vadd.f32 %v5830_v38, %v13789_v57 }
 0xb66   : > { %v8188_v49 = vpop.f32.mrb[187].mxu0 }
 0xb67   : > { %v5621_v39 = vadd.f32 %v8186_v4, %v13664_v60  ;;  %v8189_v5 = vadd.f32 %v8188_v49, %v8187_v23 }
 0xb69   : > { %v13794_v14 = vadd.f32 %v5781_v24, %v5621_v39  ;;  %v5624_v7 = vadd.f32 %v8189_v5, %v13664_v60 }
 0xb6b   : > { %v13798_v40 = vadd.f32 %v5784_v45, %v5624_v7  ;;  %v8190_v26 = vpop.f32.mrb[188].mxu0  ;;  %v5832_v12 = vadd.f32 %v5831_v36, %v13794_v14  ;;  %v5818_v45 = vadd.f32 %v5817_v44, %v5816_v47 }
 0xb6c   : > { %v8191_v35 = vpop.f32.mrb[189].mxu0 }
 0xb6d   : > { %v8192_v42 = vadd.f32 %v8191_v35, %v8190_v26  ;;  %v8193_v62 = vpop.f32.mrb[190].mxu0  ;;  %v5833_v24 = vadd.f32 %v5832_v12, %v13798_v40  ;;  %v5819_v5 = vrot.slane %v5818_v45, 1 }
 0xb6e   : > { %v8194_v51 = vpop.f32.mrb[191].mxu0 }
 0xb6f   : > { %v5629_v4 = vadd.f32 %v8192_v42, %v13664_v60  ;;  %v8195_v23 = vadd.f32 %v8194_v51, %v8193_v62  ;;  %v5820_v26 = vadd.f32 %v5819_v5, %v5818_v45  ;;  %v9481_v45 = vld [vmem:[%s14846_s1 + $0x10] sm:$0xff]   ;;  %v9484_v5 = vld [vmem:[%s14846_s1 + $0x28] sm:$0xff]  }
 0xb71   : > { %v13804_v49 = vadd.f32 %v13746_v25, %v5629_v4  ;;  %v5632_v11 = vadd.f32 %v8195_v23, %v13664_v60  ;;  %v5842_v35 = vmul.f32 0.0078125, %v5820_v26  ;;  %v8875_v26 = vld [vmem:[#allocation6 + $0x100] sm:$0xff]  }
 0xb72   : > { %8238 = vmatprep.subr.bf16.mxu0 %v8875_v26 }
 0xb73   : > { %v5834_v27 = vadd.f32 %v5833_v24, %v13804_v49  ;;  %v13809_v38 = vadd.f32 %v13751_v53, %v5632_v11  ;;  %v5844_v42 = vpack.c.bf16 %v5842_v35, %v5842_v35  ;;  %v9479_v24 = vld [vmem:[%s14846_s1] sm:$0xff]   ;;  %v9480_v11 = vld [vmem:[%s14846_s1 + $0x8] sm:$0xff]  }
 0xb74   : > { %v8878_v35 = vld [vmem:[#allocation6 + $0xc8] sm:$0xff]  }
 0xb75   : > { %v5835_v39 = vadd.f32 %v5834_v27, %v13809_v38  ;;  %v5848_v47 = vunpack.c.l.b16 %v5844_v42  ;;  %v9482_v27 = vld [vmem:[%s14846_s1 + $0x18] sm:$0xff]  }
 0xb76   : > { %v8881_v42 = vld [vmem:[#allocation6 + $0x118] sm:$0xff]  }
 0xb77   : > { %v5836_v7 = vrot.slane %v5835_v39, 4 }
 0xb79   : > { %v5837_v36 = vadd.f32 %v5836_v7, %v5835_v39  ;;  %v9483_v39 = vld [vmem:[%s14846_s1 + $0x20] sm:$0xff]   ;;  %v9485_v7 = vld [vmem:[%s14846_s1 + $0x30] sm:$0xff]  }
 0xb7b   : > { %v5838_v51 = vrot.slane %v5837_v36, 2 }
 0xb7d   : > { %v5839_v62 = vadd.f32 %v5838_v51, %v5837_v36  ;;  %v9486_v36 = vld [vmem:[%s14846_s1 + $0x38] sm:$0xff]   ;;  %v8876_v51 = vld [vmem:[#allocation6 + $0xc0] sm:$0xff]  }
 0xb7e   : > { %8239 = vmatpush3.bf16.msra.mxu0 %v8876_v51 }
 0xb7f   : > { %v5840_v12 = vrot.slane %v5839_v62, 1 }
 0xb81   : > { %v5841_v25 = vadd.f32 %v5840_v12, %v5839_v62  ;;  %v8877_v62 = vld [vmem:[#allocation6 + $0x108] sm:$0xff]   ;;  %v8879_v12 = vld [vmem:[#allocation6 + $0x110] sm:$0xff]  }
 0xb82   : > { %8240 = vmatprep.subr.bf16.mxu0 %v8877_v62 }
 0xb83   : > { %v5843_v4 = vmul.f32 0.0078125, %v5841_v25  ;;  %8241 = vmatpush3.bf16.msra.mxu0 %v8878_v35  ;;  %v8880_v25 = vld [vmem:[#allocation6 + $0xd0] sm:$0xff]  }
 0xb84   : > { %8242 = vmatprep.subr.bf16.mxu0 %v8879_v12 }
 0xb85   : > { %v5845_v60 = vpack.c.bf16 %v5843_v4, %v5843_v4  ;;  %v8882_v4 = vld [vmem:[#allocation6 + $0xd8] sm:$0xff]  }
 0xb87   : > { %v5849_v44 = vunpack.c.l.b16 %v5845_v60  ;;  %8243 = vmatpush3.bf16.msra.mxu0 %v8880_v25 }
 0xb88   : > { %8244 = vmatprep.subr.bf16.mxu0 %v8881_v42 }
 0xb89   : > { %v5850_v23 = vsel %vm934_vm1, %v5849_v44, %v5848_v47 }
 0xb8a   : > { %v5851_v53 = vpack.c.b16 %v5850_v23, %v5850_v23  ;;  %v15438_v23 = vld [vmem:[#allocation15_spill] sm:$0xff] }
 0xb8b   : > { %8245 = vmatpush3.bf16.msra.mxu0 %v8882_v4 }
 0xb8c   : > { %8655 = vmatmul.mubr.bf16.vlgmr.msra.gmra.mrb[120].mxu1 %v5851_v53 }
 0xb8d   : > { %8659 = vmatpush3.bf16.msra.mxu1 %v9479_v24  ;;  %8674 = vmatprep.mubr.msk.bf16.mxu1 %vm9624_vm0, %v15154_v10 }
 0xb8e   : > { %8660 = vmatprep.subr.bf16.mxu1 %v15154_v10 }
 0xb91   : > { %8661 = vmatpush3.bf16.msra.mxu1 %v9480_v11 }
 0xb92   : > { %8662 = vmatprep.subr.bf16.mxu1 %v15154_v10 }
 0xb95   : > { %8663 = vmatpush3.bf16.msra.mxu1 %v9481_v45 }
 0xb96   : > { %8664 = vmatprep.subr.bf16.mxu1 %v15154_v10 }
 0xb99   : > { %8665 = vmatpush3.bf16.msra.mxu1 %v9482_v27 }
 0xb9a   : > { %8666 = vmatprep.subr.bf16.mxu1 %v15154_v10 }
 0xb9d   : > { %8667 = vmatpush3.bf16.msra.mxu1 %v9483_v39  ;;  %v15439_v39 = vld [vmem:[#allocation16_spill] sm:$0xff] }
 0xb9e   : > { %8668 = vmatprep.subr.bf16.mxu1 %v15154_v10 }
 0xba1   : > { %8669 = vmatpush3.bf16.msra.mxu1 %v9484_v5 }
 0xba2   : > { %8670 = vmatprep.subr.bf16.mxu1 %v15154_v10 }
 0xba5   : > { %8671 = vmatpush3.bf16.msra.mxu1 %v9485_v7 }
 0xba6   : > { %8672 = vmatprep.subr.bf16.mxu1 %v15154_v10 }
 0xba9   : > { %8673 = vmatpush3.bf16.msra.mxu1 %v9486_v36 }
 0xc5f   : > { %v5887_v10 = vpop.f32.mrb[120].mxu1 }
 0xc60   : > { %v5893_v60 = vmul.f32 0.25, %v5887_v10  ;;  %v8656_v47 = vpop.f32.mrb[121].mxu1 }
 0xc61   : > { %v5890_v44 = vpop.f32.mrb[122].mxu1 }
 0xc62   : > { %v5901_v53 = vrot.slane %v5893_v60, %v15438_v23  ;;  %v8657_v24 = vpop.f32.mrb[123].mxu1 }
 0xc64   : > { %v5902_v11 = vcombine.high %v5901_v53, %v5901_v53  ;;  %v5909_v45 = vrot.slane %v5901_v53, %v15438_v23 }
 0xc66   : > { %v5916_v27 = vrot.slane %v5902_v11, %v15438_v23  ;;  %v13850_v5 = vrot.slane %v5909_v45, %v15439_v39 }
 0xc68   : > { %v13853_v7 = vrot.slane %v5916_v27, %v15439_v39  ;;  %v13857_v36 = vsub.f32 %v13667_v54, %v13850_v5  ;;  %v13861_v26 = vsub.f32 %v13670_v32, %v13850_v5  ;;  %v13873_v35 = vsub.f32 %v13673_v41, %v13850_v5 }
 0xc69   : > { %v13889_v41 = vsub.f32 %v13676_v37, %v13850_v5  ;;  %v13897_v25 = vsub.f32 %v13679_v61, %v13850_v5  ;;  %v13921_v24 = vsub.f32 %v13685_v56, %v13850_v5 }
 0xc6a   : > { %v13865_v51 = vsub.f32 %v13721_v19, %v13853_v7  ;;  %v13869_v62 = vsub.f32 %v13725_v18, %v13853_v7  ;;  %v13877_v54 = vsub.f32 %v13732_v6, %v13853_v7  ;;  %v5959_v32 = vmul.f32 %v13857_v36, %v13857_v36 }
 0xc6b   : > { %v5960_v12 = vmul.f32 %v13861_v26, %v13861_v26  ;;  %v13893_v6 = vsub.f32 %v13737_v59, %v13853_v7  ;;  %v13901_v42 = vsub.f32 %v13742_v50, %v13853_v7  ;;  %v5961_v4 = vmul.f32 %v13873_v35, %v13873_v35 }
 0xc6c   : > { %v5975_v19 = vmul.f32 %v13865_v51, %v13865_v51  ;;  %v5976_v18 = vmul.f32 %v13869_v62, %v13869_v62  ;;  %v5977_v10 = vmul.f32 %v13877_v54, %v13877_v54  ;;  %v13909_v59 = vsub.f32 %v13682_v52, %v13850_v5 }
 0xc6d   : > { %v5991_v37 = vadd.f32 %v5960_v12, %v5959_v32  ;;  %v13913_v61 = vsub.f32 %v13748_v55, %v13853_v7  ;;  %v5962_v50 = vmul.f32 %v13889_v41, %v13889_v41  ;;  %v5978_v47 = vmul.f32 %v13893_v6, %v13893_v6 }
 0xc6e   : > { %v6012_v60 = vadd.f32 %v5976_v18, %v5975_v19  ;;  %v13925_v52 = vsub.f32 %v13759_v28, %v13853_v7  ;;  %v5963_v55 = vmul.f32 %v13897_v25, %v13897_v25  ;;  %v5979_v11 = vmul.f32 %v13901_v42, %v13901_v42 }
 0xc6f   : > { %v5992_v44 = vadd.f32 %v5991_v37, %v5961_v4  ;;  %v13933_v32 = vsub.f32 %v13688_v63, %v13850_v5  ;;  %v13937_v56 = vsub.f32 %v13765_v17, %v13853_v7  ;;  %v5964_v28 = vmul.f32 %v13909_v59, %v13909_v59 }
 0xc70   : > { %v6013_v53 = vadd.f32 %v6012_v60, %v5977_v10  ;;  %v5980_v12 = vmul.f32 %v13913_v61, %v13913_v61  ;;  %v13945_v4 = vsub.f32 %v13691_v20, %v13850_v5  ;;  %v13949_v63 = vsub.f32 %v13772_v31, %v13853_v7 }
 0xc71   : > { %v5993_v45 = vadd.f32 %v5992_v44, %v5962_v50  ;;  %v5965_v17 = vmul.f32 %v13921_v24, %v13921_v24  ;;  %v5981_v10 = vmul.f32 %v13925_v52, %v13925_v52  ;;  %v13957_v50 = vsub.f32 %v13694_v58, %v13850_v5 }
 0xc72   : > { %v6014_v27 = vadd.f32 %v6013_v53, %v5978_v47  ;;  %v13961_v20 = vsub.f32 %v13776_v46, %v13853_v7  ;;  %v5966_v31 = vmul.f32 %v13933_v32, %v13933_v32  ;;  %v5982_v47 = vmul.f32 %v13937_v56, %v13937_v56 }
 0xc73   : > { %v5994_v19 = vadd.f32 %v5993_v45, %v5963_v55  ;;  %v13969_v55 = vsub.f32 %v13697_v48, %v13850_v5  ;;  %v13973_v58 = vsub.f32 %v13784_v33, %v13853_v7  ;;  %v5967_v46 = vmul.f32 %v13945_v4, %v13945_v4 }
 0xc74   : > { %v6015_v18 = vadd.f32 %v6014_v27, %v5979_v11  ;;  %15440 = vst [vmem:[#allocation37_spill] sm:$0xff] %v13961_v20  ;;  %v5983_v11 = vmul.f32 %v13949_v63, %v13949_v63  ;;  %v13985_v48 = vsub.f32 %v13789_v57, %v13853_v7  ;;  %v5968_v33 = vmul.f32 %v13957_v50, %v13957_v50 }
 0xc75   : > { %v5995_v37 = vadd.f32 %v5994_v19, %v5964_v28  ;;  %15441 = vst [vmem:[#allocation18_spill] sm:$0xff] %v13973_v58  ;;  %v13981_v28 = vsub.f32 %v13700_v22, %v13850_v5  ;;  %v13997_v22 = vsub.f32 %v13794_v14, %v13853_v7  ;;  %v5969_v57 = vmul.f32 %v13969_v55, %v13969_v55 }
 0xc76   : > { %v6016_v60 = vadd.f32 %v6015_v18, %v5980_v12  ;;  %15442 = vst [vmem:[#allocation106_spill] sm:$0xff] %v13985_v48  ;;  %v5984_v12 = vmul.f32 %v13961_v20, %v13961_v20 }
 0xc77   : > { %v5996_v44 = vadd.f32 %v5995_v37, %v5965_v17  ;;  %v13993_v17 = vsub.f32 %v13703_v0, %v13850_v5  ;;  %15443 = vst [vmem:[#allocation107_spill] sm:$0xff] %v13997_v22  ;;  %v14009_v0 = vsub.f32 %v13798_v40, %v13853_v7  ;;  %v5970_v14 = vmul.f32 %v13981_v28, %v13981_v28 }
 0xc78   : > { %v6017_v53 = vadd.f32 %v6016_v60, %v5981_v10  ;;  %v5985_v10 = vmul.f32 %v13973_v58, %v13973_v58 }
 0xc79   : > { %v5997_v45 = vadd.f32 %v5996_v44, %v5966_v31  ;;  %v14005_v31 = vsub.f32 %v13706_v16, %v13850_v5  ;;  %15444 = vst [vmem:[#allocation105_spill] sm:$0xff] %v14009_v0  ;;  %v14021_v16 = vsub.f32 %v13804_v49, %v13853_v7  ;;  %v5971_v40 = vmul.f32 %v13993_v17, %v13993_v17 }
 0xc7a   : > { %v6018_v27 = vadd.f32 %v6017_v53, %v5982_v47  ;;  %v5986_v47 = vmul.f32 %v13985_v48, %v13985_v48 }
 0xc7b   : > { %v5998_v19 = vadd.f32 %v5997_v45, %v5967_v46  ;;  %v14017_v46 = vsub.f32 %v13713_v21, %v13850_v5  ;;  %15445 = vst [vmem:[#allocation108_spill] sm:$0xff] %v14021_v16  ;;  %v14033_v21 = vsub.f32 %v13809_v38, %v13853_v7  ;;  %v5972_v49 = vmul.f32 %v14005_v31, %v14005_v31 }
 0xc7c   : > { %v6019_v18 = vadd.f32 %v6018_v27, %v5983_v11  ;;  %v5987_v11 = vmul.f32 %v13997_v22, %v13997_v22 }
 0xc7d   : > { %v5999_v37 = vadd.f32 %v5998_v19, %v5968_v33  ;;  %v14029_v33 = vsub.f32 %v13716_v3, %v13850_v5  ;;  %v5990_v7 = vmul.f32 %v14033_v21, %v14033_v21 }
 0xc7e   : > { %v6020_v60 = vadd.f32 %v6019_v18, %v5984_v12  ;;  %v5988_v12 = vmul.f32 %v14009_v0, %v14009_v0 }
 0xc7f   : > { %v6000_v44 = vadd.f32 %v5999_v37, %v5969_v57  ;;  %v5973_v57 = vmul.f32 %v14017_v46, %v14017_v46  ;;  %v5974_v38 = vmul.f32 %v14029_v33, %v14029_v33 }
 0xc80   : > { %v6021_v53 = vadd.f32 %v6020_v60, %v5985_v10  ;;  %v5989_v10 = vmul.f32 %v14021_v16, %v14021_v16 }
 0xc81   : > { %v6001_v45 = vadd.f32 %v6000_v44, %v5970_v14 }
 0xc82   : > { %v6022_v27 = vadd.f32 %v6021_v53, %v5986_v47 }
 0xc83   : > { %v6002_v19 = vadd.f32 %v6001_v45, %v5971_v40 }
 0xc84   : > { %v6023_v18 = vadd.f32 %v6022_v27, %v5987_v11 }
 0xc85   : > { %v6003_v3 = vadd.f32 %v6002_v19, %v5972_v49 }
 0xc86   : > { %v6024_v5 = vadd.f32 %v6023_v18, %v5988_v12 }
 0xc87   : > { %v6004_v37 = vadd.f32 %v6003_v3, %v5973_v57 }
 0xc88   : > { %v6025_v60 = vadd.f32 %v6024_v5, %v5989_v10 }
 0xc89   : > { %v6005_v14 = vadd.f32 %v6004_v37, %v5974_v38  ;;  %v8883_v38 = vld [vmem:[#allocation6 + $0x120] sm:$0xff]   ;;  %v8885_v37 = vld [vmem:[#allocation6 + $0x128] sm:$0xff]  }
 0xc8a   : > { %v6026_v47 = vadd.f32 %v6025_v60, %v5990_v7  ;;  %v8884_v7 = vld [vmem:[#allocation6 + $0xe0] sm:$0xff]   ;;  %8246 = vmatprep.subr.bf16.mxu0 %v8883_v38 }
 0xc8b   : > { %v6006_v44 = vrot.slane %v6005_v14, 4  ;;  %v8888_v60 = vld [vmem:[#allocation6 + $0x140] sm:$0xff]   ;;  %8247 = vmatpush3.bf16.msra.mxu0 %v8884_v7 }
 0xc8c   : > { %v6027_v53 = vrot.slane %v6026_v47, 4  ;;  %8678 = vmatprep.subr.bf16.mxu1 %v8888_v60  ;;  %8248 = vmatprep.subr.bf16.mxu0 %v8885_v37  ;;  %v14057_v37 = vld [vmem:[%s14853_s8 + $0x1] ss:$0 sm:$0xff] }
 0xc8d   : > { %v6007_v40 = vadd.f32 %v6006_v44, %v6005_v14  ;;  %v8890_v14 = vld [vmem:[#allocation6 + $0x148] sm:$0xff]   ;;  %v8894_v44 = vld [vmem:[#allocation6 + $0x160] sm:$0xff]  }
 0xc8e   : > { %v6028_v11 = vadd.f32 %v6027_v53, %v6026_v47  ;;  %v8886_v47 = vld [vmem:[#allocation6 + $0xe8] sm:$0xff]  }
 0xc8f   : > { %v6008_v45 = vrot.slane %v6007_v40, 2  ;;  %8249 = vmatpush3.bf16.msra.mxu0 %v8886_v47  ;;  %v8896_v53 = vld [vmem:[#allocation6 + $0x168] sm:$0xff]  }
 0xc90   : > { %v6029_v27 = vrot.slane %v6028_v11, 2 }
 0xc91   : > { %v6009_v0 = vadd.f32 %v6008_v45, %v6007_v40  ;;  %v8897_v40 = vld [vmem:[#allocation6 + $0x170] sm:$0xff]  }
 0xc92   : > { %v6030_v16 = vadd.f32 %v6029_v27, %v6028_v11  ;;  %v8898_v11 = vld [vmem:[#allocation6 + $0x178] sm:$0xff]  }
 0xc93   : > { %v6010_v49 = vrot.slane %v6009_v0, 1 }
 0xc94   : > { %v6031_v12 = vrot.slane %v6030_v16, 1 }
 0xc95   : > { %v6011_v19 = vadd.f32 %v6010_v49, %v6009_v0  ;;  %v8887_v0 = vld [vmem:[#allocation6 + $0x130] sm:$0xff]  }
 0xc96   : > { %v6032_v18 = vadd.f32 %v6031_v12, %v6030_v16  ;;  %8250 = vmatprep.subr.bf16.mxu0 %v8887_v0  ;;  %v8895_v16 = vld [vmem:[#allocation6 + $0xf8] sm:$0xff]   ;;  %v14071_v0 = vld [vmem:[%s14854_s9 + $0x1] ss:$0 sm:$0xff] }
 0xc97   : > { %v6033_v22 = vmul.f32 0.0078125, %v6011_v19 }
 0xc98   : > { %v6034_v48 = vmul.f32 0.0078125, %v6032_v18 }
 0xc99   : > { %v6035_v58 = vpack.c.bf16 %v6033_v22, %v6033_v22  ;;  %v8892_v22 = vld [vmem:[#allocation6 + $0x158] sm:$0xff]  }
 0xc9a   : > { %v6036_v20 = vpack.c.bf16 %v6034_v48, %v6034_v48  ;;  %v8891_v48 = vld [vmem:[#allocation6 + $0x150] sm:$0xff]  }
 0xc9b   : > { %v6039_v57 = vunpack.c.l.b16 %v6035_v58  ;;  %v8893_v58 = vld [vmem:[#allocation6 + $0x138] sm:$0xff]  }
 0xc9c   : > { %v6040_v10 = vunpack.c.l.b16 %v6036_v20  ;;  %v8889_v20 = vld [vmem:[#allocation6 + $0xf0] sm:$0xff]  }
 0xc9d   : > { %8251 = vmatpush3.bf16.msra.mxu0 %v8889_v20 }
 0xc9e   : > { %v6041_v3 = vsel %vm934_vm1, %v6040_v10, %v6039_v57  ;;  %8252 = vmatprep.subr.bf16.mxu0 %v8893_v58 }
 0xc9f   : > { %v6042_v5 = vpack.c.b16 %v6041_v3, %v6041_v3 }
 0xca1   : > { %8675 = vmatmul.mubr.bf16.vlgmr.msra.gmra.mrb[124].mxu1 %v6042_v5  ;;  %8253 = vmatpush3.bf16.msra.mxu0 %v8895_v16 }
 0xca2   : > { %8679 = vmatpush3.bf16.msra.mxu1 %v8888_v60 }
 0xca3   : > { %8680 = vmatprep.subr.bf16.mxu1 %v8890_v14 }
 0xca6   : > { %8681 = vmatpush3.bf16.msra.mxu1 %v8890_v14 }
 0xca7   : > { %8682 = vmatprep.subr.bf16.mxu1 %v8891_v48 }
 0xcaa   : > { %8683 = vmatpush3.bf16.msra.mxu1 %v8891_v48 }
 0xcab   : > { %8684 = vmatprep.subr.bf16.mxu1 %v8892_v22 }
 0xcae   : > { %8685 = vmatpush3.bf16.msra.mxu1 %v8892_v22 }
 0xcaf   : > { %8686 = vmatprep.subr.bf16.mxu1 %v8894_v44 }
 0xcb2   : > { %8687 = vmatpush3.bf16.msra.mxu1 %v8894_v44 }
 0xcb3   : > { %8688 = vmatprep.subr.bf16.mxu1 %v8896_v53 }
 0xcb6   : > { %8689 = vmatpush3.bf16.msra.mxu1 %v8896_v53 }
 0xcb7   : > { %8690 = vmatprep.subr.bf16.mxu1 %v8897_v40 }
 0xcba   : > { %8691 = vmatpush3.bf16.msra.mxu1 %v8897_v40 }
 0xcbb   : > { %8692 = vmatprep.subr.bf16.mxu1 %v8898_v11 }
 0xcbe   : > { %8693 = vmatpush3.bf16.msra.mxu1 %v8898_v11 }
 0xd74   : > { %v6078_v45 = vpop.f32.mrb[124].mxu1 }
 0xd75   : > { %v6084_v27 = vmul.f32 0.25, %v6078_v45  ;;  %v8676_v49 = vpop.f32.mrb[125].mxu1 }
 0xd76   : > { %v6081_v12 = vpop.f32.mrb[126].mxu1 }
 0xd77   : > { %v6085_v19 = vadd.f32 1e-05, %v6084_v27  ;;  %v8677_v18 = vpop.f32.mrb[127].mxu1 }
 0xd79   : > { %9289 = vrsqrt.f32 %v6085_v19 }
 0xd83   : > { %v9290_v57 = vpop.eup %9289 }
 0xd84   : > { %v6094_v10 = vrot.slane %v9290_v57, %v15438_v23 }
 0xd86   : > { %v6095_v3 = vcombine.high %v6094_v10, %v6094_v10  ;;  %v6102_v5 = vrot.slane %v6094_v10, %v15438_v23 }
 0xd88   : > { %v6109_v38 = vrot.slane %v6095_v3, %v15438_v23  ;;  %v14052_v7 = vrot.slane %v6102_v5, %v15439_v39 }
 0xd8a   : > { %v14060_v60 = vrot.slane %v6109_v38, %v15439_v39  ;;  %v6120_v14 = vmul.f32 %v14052_v7, %v13857_v36  ;;  %v6121_v47 = vmul.f32 %v14052_v7, %v13861_v26  ;;  %v6122_v23 = vmul.f32 %v14052_v7, %v13873_v35 }
 0xd8b   : > { %v6123_v48 = vmul.f32 %v14052_v7, %v13889_v41  ;;  %v6124_v39 = vmul.f32 %v14052_v7, %v13897_v25  ;;  %v6125_v36 = vmul.f32 %v14052_v7, %v13909_v59  ;;  %v6126_v26 = vmul.f32 %v14052_v7, %v13921_v24 }
 0xd8c   : > { %v6158_v20 = vmul.f32 %v14057_v37, %v6120_v14  ;;  %v6159_v35 = vmul.f32 %v14057_v37, %v6121_v47  ;;  %v6160_v58 = vmul.f32 %v14057_v37, %v6122_v23  ;;  %v6151_v22 = vmul.f32 %v14060_v60, %v14033_v21 }
 0xd8d   : > { %v6161_v41 = vmul.f32 %v14057_v37, %v6123_v48  ;;  %v6162_v16 = vmul.f32 %v14057_v37, %v6124_v39  ;;  %v6163_v25 = vmul.f32 %v14057_v37, %v6125_v36  ;;  %v6164_v59 = vmul.f32 %v14057_v37, %v6126_v26 }
 0xd8e   : > { %v14091_v44 = vadd.f32 %v14071_v0, %v6158_v20  ;;  %v14094_v24 = vadd.f32 %v14071_v0, %v6159_v35  ;;  %v14097_v53 = vadd.f32 %v14071_v0, %v6160_v58  ;;  %v6189_v40 = vmul.f32 %v14057_v37, %v6151_v22 }
 0xd8f   : > { %v14101_v21 = vadd.f32 %v14071_v0, %v6161_v41  ;;  %v14104_v11 = vadd.f32 %v14071_v0, %v6162_v16  ;;  %v14107_v45 = vadd.f32 %v14071_v0, %v6163_v25  ;;  %v14110_v27 = vadd.f32 %v14071_v0, %v6164_v59 }
 0xd90   : > { %v6228_v49 = vsub.f32 0.0, %v14091_v44  ;;  %v6229_v12 = vsub.f32 0.0, %v14094_v24  ;;  %v6230_v19 = vsub.f32 0.0, %v14097_v53  ;;  %v14116_v18 = vadd.f32 %v14071_v0, %v6189_v40 }
 0xd91   : > { %v6231_v57 = vsub.f32 0.0, %v14101_v21  ;;  %v6232_v10 = vsub.f32 0.0, %v14104_v11  ;;  %v6233_v3 = vsub.f32 0.0, %v14107_v45  ;;  %v6234_v5 = vsub.f32 0.0, %v14110_v27 }
 0xd92   : > { %v6260_v38 = vmul.f32 1.442695, %v6228_v49  ;;  %v6262_v14 = vmul.f32 1.442695, %v6229_v12  ;;  %v6264_v47 = vmul.f32 1.442695, %v6230_v19  ;;  %v6127_v23 = vmul.f32 %v14052_v7, %v13933_v32 }
 0xd93   : > { %v6266_v48 = vmul.f32 1.442695, %v6231_v57  ;;  %v6268_v39 = vmul.f32 1.442695, %v6232_v10  ;;  %v6259_v36 = vsub.f32 0.0, %v14116_v18  ;;  %v6128_v26 = vmul.f32 %v14052_v7, %v13945_v4 }
 0xd94   : > { %9291 = vpow2.f32 %v6260_v38  ;;  %v6270_v20 = vmul.f32 1.442695, %v6233_v3  ;;  %v6272_v35 = vmul.f32 1.442695, %v6234_v5  ;;  %v6165_v58 = vmul.f32 %v14057_v37, %v6127_v23 }
 0xd95   : > { %9293 = vpow2.f32 %v6262_v14  ;;  %v6322_v22 = vmul.f32 1.442695, %v6259_v36  ;;  %v6166_v41 = vmul.f32 %v14057_v37, %v6128_v26  ;;  %v6129_v16 = vmul.f32 %v14052_v7, %v13957_v50 }
 0xd96   : > { %9295 = vpow2.f32 %v6264_v47  ;;  %v14132_v32 = vadd.f32 %v14071_v0, %v6165_v58  ;;  %v6130_v25 = vmul.f32 %v14052_v7, %v13969_v55  ;;  %v6131_v4 = vmul.f32 %v14052_v7, %v13981_v28 }
 0xd97   : > { %9297 = vpow2.f32 %v6266_v48  ;;  %v14139_v59 = vadd.f32 %v14071_v0, %v6166_v41  ;;  %v6167_v40 = vmul.f32 %v14057_v37, %v6129_v16  ;;  %v6132_v49 = vmul.f32 %v14052_v7, %v13993_v17 }
 0xd98   : > { %9299 = vpow2.f32 %v6268_v39  ;;  %v6235_v50 = vsub.f32 0.0, %v14132_v32  ;;  %v6168_v12 = vmul.f32 %v14057_v37, %v6130_v25  ;;  %v6169_v19 = vmul.f32 %v14057_v37, %v6131_v4 }
 0xd99   : > { %9301 = vpow2.f32 %v6322_v22  ;;  %v6236_v55 = vsub.f32 0.0, %v14139_v59  ;;  %v14149_v28 = vadd.f32 %v14071_v0, %v6167_v40  ;;  %v6170_v57 = vmul.f32 %v14057_v37, %v6132_v49 }
 0xd9a   : > { %9303 = vpow2.f32 %v6270_v20  ;;  %v6274_v10 = vmul.f32 1.442695, %v6235_v50  ;;  %v14153_v3 = vadd.f32 %v14071_v0, %v6168_v12  ;;  %v14156_v17 = vadd.f32 %v14071_v0, %v6169_v19 }
 0xd9b   : > { %9305 = vpow2.f32 %v6272_v35  ;;  %v6276_v5 = vmul.f32 1.442695, %v6236_v55  ;;  %v6237_v38 = vsub.f32 0.0, %v14149_v28  ;;  %v14160_v14 = vadd.f32 %v14071_v0, %v6170_v57 }
 0xd9c   : > { %9307 = vpow2.f32 %v6274_v10  ;;  %v6238_v47 = vsub.f32 0.0, %v14153_v3  ;;  %v6239_v23 = vsub.f32 0.0, %v14156_v17  ;;  %v6133_v48 = vmul.f32 %v14052_v7, %v14005_v31 }
 0xd9d   : > { %9309 = vpow2.f32 %v6276_v5  ;;  %v6278_v39 = vmul.f32 1.442695, %v6237_v38  ;;  %v6240_v36 = vsub.f32 0.0, %v14160_v14  ;;  %v6134_v26 = vmul.f32 %v14052_v7, %v14017_v46 }
 0xd9e   : > { %v9292_v20 = vpop.eup %9291  ;;  %v6280_v35 = vmul.f32 1.442695, %v6238_v47  ;;  %v14169_v58 = vmul.f32 1.442695, %v6239_v23  ;;  %v6171_v22 = vmul.f32 %v14057_v37, %v6133_v48  ;;  %v6135_v41 = vmul.f32 %v14052_v7, %v14029_v33 }
 0xd9f   : > { %v9294_v16 = vpop.eup %9293  ;;  %v6324_v25 = vadd.f32 1.0, %v9292_v20  ;;  %9311 = vpow2.f32 %v6278_v39  ;;  %v14174_v31 = vmul.f32 1.442695, %v6240_v36  ;;  %v6172_v4 = vmul.f32 %v14057_v37, %v6134_v26 }
 0xda0   : > { %v9296_v40 = vpop.eup %9295  ;;  %v6325_v49 = vadd.f32 1.0, %v9294_v16  ;;  %9313 = vpow2.f32 %v6280_v35  ;;  %v14178_v46 = vadd.f32 %v14071_v0, %v6171_v22  ;;  %v6136_v50 = vmul.f32 %v14060_v60, %v13865_v51 }
 0xda1   : > { %v9298_v12 = vpop.eup %9297  ;;  %9315 = vrcp.f32 %v6324_v25  ;;  %v6326_v19 = vadd.f32 1.0, %v9296_v40  ;;  %v14183_v33 = vadd.f32 %v14071_v0, %v6172_v4  ;;  %v6173_v7 = vmul.f32 %v14057_v37, %v6135_v41 }
 0xda2   : > { %v9300_v55 = vpop.eup %9299  ;;  %9317 = vrcp.f32 %v6325_v49  ;;  %v6327_v57 = vadd.f32 1.0, %v9298_v12  ;;  %v6241_v10 = vsub.f32 0.0, %v14178_v46  ;;  %v6174_v5 = vmul.f32 %v14057_v37, %v6136_v50 }
 0xda3   : > { %v9302_v38 = vpop.eup %9301  ;;  %9319 = vrcp.f32 %v6326_v19  ;;  %v6328_v47 = vadd.f32 1.0, %v9300_v55  ;;  %v6242_v51 = vsub.f32 0.0, %v14183_v33  ;;  %v14190_v23 = vadd.f32 %v14071_v0, %v6173_v7 }
 0xda4   : > { %v9304_v48 = vpop.eup %9303  ;;  %9321 = vrcp.f32 %v6327_v57  ;;  %v6355_v39 = vadd.f32 1.0, %v9302_v38  ;;  %v6286_v36 = vmul.f32 1.442695, %v6241_v10  ;;  %v14193_v26 = vadd.f32 %v14071_v0, %v6174_v5 }
 0xda5   : > { %v9306_v20 = vpop.eup %9305  ;;  %9323 = vrcp.f32 %v6328_v47  ;;  %v6329_v35 = vadd.f32 1.0, %v9304_v48  ;;  %v14195_v22 = vmul.f32 1.442695, %v6242_v51  ;;  %v6243_v41 = vsub.f32 0.0, %v14190_v23 }
 0xda6   : > { %15446 = vst [vmem:[#allocation109_spill] sm:$0xff] %v14193_v26  ;;  %v9308_v16 = vpop.eup %9307  ;;  %9325 = vrcp.f32 %v6355_v39  ;;  %v6330_v25 = vadd.f32 1.0, %v9306_v20  ;;  %v6244_v4 = vsub.f32 0.0, %v14193_v26  ;;  %v6137_v40 = vmul.f32 %v14060_v60, %v13869_v62 }
 0xda7   : > { %v9310_v49 = vpop.eup %9309  ;;  %9327 = vrcp.f32 %v6329_v35  ;;  %v6331_v50 = vadd.f32 1.0, %v9308_v16  ;;  %v14201_v12 = vmul.f32 1.442695, %v6243_v41  ;;  %v6138_v19 = vmul.f32 %v14060_v60, %v13877_v54 }
 0xda8   : > { %9329 = vrcp.f32 %v6330_v25  ;;  %v6332_v7 = vadd.f32 1.0, %v9310_v49  ;;  %v14205_v55 = vmul.f32 1.442695, %v6244_v4  ;;  %v6175_v57 = vmul.f32 %v14057_v37, %v6137_v40 }
 0xda9   : > { %v9312_v10 = vpop.eup %9311  ;;  %9331 = vrcp.f32 %v6331_v50  ;;  %v6176_v5 = vmul.f32 %v14057_v37, %v6138_v19  ;;  %v6139_v62 = vmul.f32 %v14060_v60, %v13893_v6  ;;  %v6140_v38 = vmul.f32 %v14060_v60, %v13901_v42 }
 0xdaa   : > { %v9314_v47 = vpop.eup %9313  ;;  %9333 = vrcp.f32 %v6332_v7  ;;  %v6333_v51 = vadd.f32 1.0, %v9312_v10  ;;  %v14214_v54 = vadd.f32 %v14071_v0, %v6175_v57  ;;  %v14218_v48 = vmul.f32 %v14060_v60, %v13913_v61 }
 0xdab   : > { %v9316_v39 = vpop.eup %9315  ;;  %v6334_v20 = vadd.f32 1.0, %v9314_v47  ;;  %9335 = vpow2.f32 %v14169_v58  ;;  %v14222_v35 = vadd.f32 %v14071_v0, %v6176_v5  ;;  %v6177_v6 = vmul.f32 %v14057_v37, %v6139_v62 }
 0xdac   : > { %v9318_v42 = vpop.eup %9317  ;;  %v14226_v41 = vmul.f32 %v9316_v39, %v14091_v44  ;;  %9337 = vrcp.f32 %v6333_v51  ;;  %v14230_v25 = vmul.f32 %v14057_v37, %v6140_v38 }
 0xdad   : > { %v9320_v61 = vpop.eup %9319  ;;  %v6421_v4 = vmul.f32 %v9318_v42, %v14094_v24  ;;  %9339 = vrcp.f32 %v6334_v20  ;;  %v14235_v40 = vadd.f32 %v14071_v0, %v6177_v6  ;;  %v15448_v42 = vld [vmem:[#allocation33_spill] sm:$0xff] }
 0xdae   : > { %15447 = vst [vmem:[#allocation110_spill] sm:$0xff] %v14226_v41  ;;  %v9322_v49 = vpop.eup %9321  ;;  %v6537_v50 = vrot.slane %v14226_v41, 7  ;;  %v14239_v44 = vmul.f32 %v9320_v61, %v14097_v53  ;;  %v15046_v19 = vrot.slane %v14226_v41, 1  ;;  %9341 = vpow2.f32 %v14174_v31 }
 0xdaf   : > { %v9324_v7 = vpop.eup %9323  ;;  %v6538_v57 = vrot.slane %v6421_v4, 7  ;;  %v6696_v24 = vpack.c.bf16 %v6421_v4, %v14226_v41  ;;  %v6729_v10 = vrot.slane %v6421_v4, 1  ;;  %v14245_v5 = vmul.f32 %v9322_v49, %v14101_v21  ;;  %v15449_v4 = vld [vmem:[#allocation19_spill] sm:$0xff] }
 0xdb0   : > { %v9326_v62 = vpop.eup %9325  ;;  %v6731_v38 = vrot.slane %v14239_v44, 1  ;;  %v14249_v47 = vmul.f32 %v9324_v7, %v14104_v11  ;;  %v6540_v53 = vrot.slane %v14239_v44, 7  ;;  %9343 = vpow2.f32 %v6286_v36 }
 0xdb1   : > { %v9328_v51 = vpop.eup %9327  ;;  %7119 = vmatprep.mubr.bf16.mxu0 %v6696_v24  ;;  %v6730_v31 = vsel %vm1860_vm2, %v15046_v19, %v6729_v10  ;;  %v6733_v39 = vrot.slane %v14245_v5, 1  ;;  %v14257_v21 = vmul.f32 %v9326_v62, %v14116_v18  ;;  %v6539_v20 = vsel %vm1668_vm3, %v6537_v50, %v6538_v57  ;;  %v15450_v24 = vld [vmem:[#allocation34_spill] sm:$0xff] }
 0xdb2   : > { %v9330_v6 = vpop.eup %9329  ;;  %v6732_v11 = vsel %vm1860_vm2, %v6729_v10, %v6731_v38  ;;  %v6825_v61 = vmul.f32 %v6730_v31, %v15448_v42  ;;  %v6735_v36 = vrot.slane %v14249_v47, 1  ;;  %v6633_v49 = vmul.f32 %v6539_v20, %v15449_v4  ;;  %v15451_v4 = vld [vmem:[#allocation38_spill] sm:$0xff] }
 0xdb3   : > { %v9332_v7 = vpop.eup %9331  ;;  %v6826_v58 = vmul.f32 %v6732_v11, %v15450_v24  ;;  %v6734_v19 = vsel %vm1860_vm2, %v6731_v38, %v6733_v39  ;;  %v6504_v16 = vrot.slane %v14257_v21, 7  ;;  %v14268_v18 = vmul.f32 %v9328_v51, %v14107_v45 }
 0xdb4   : > { %v9334_v62 = vpop.eup %9333  ;;  %v6736_v41 = vsel %vm1860_vm2, %v6733_v39, %v6735_v36  ;;  %v6827_v10 = vmul.f32 %v6734_v19, %v15365_v30  ;;  %v14273_v31 = vmul.f32 %v9330_v6, %v14110_v27  ;;  %v6697_v20 = vpack.c.bf16 %v14245_v5, %v14239_v44  ;;  %v15452_v39 = vld [vmem:[#allocation17_spill] sm:$0xff] }
 0xdb5   : > { %v9336_v42 = vpop.eup %9335  ;;  %v6857_v11 = vpack.c.bf16 %v6826_v58, %v6825_v61  ;;  %v6828_v38 = vmul.f32 %v6736_v41, %v15451_v4  ;;  %v6631_v45 = vsel %vm1668_vm3, %v6504_v16, %v6537_v50  ;;  %v6737_v51 = vrot.slane %v14268_v18, 1 }
 0xdb6   : > { %v9338_v24 = vpop.eup %9337  ;;  %v6632_v26 = vmul.f32 %v6631_v45, %v15452_v39  ;;  %v6739_v30 = vrot.slane %v14273_v31, 1  ;;  %v14285_v27 = vmul.f32 %v9332_v7, %v14132_v32  ;;  %v14288_v44 = vmul.f32 %v9334_v62, %v14139_v59 }
 0xdb7   : > { %v9340_v58 = vpop.eup %9339  ;;  %8694 = vmatprep.mubr.bf16.mxu1 %v6857_v11  ;;  %v6858_v41 = vpack.c.bf16 %v6828_v38, %v6827_v10  ;;  %v6738_v19 = vsel %vm1860_vm2, %v6735_v36, %v6737_v51  ;;  %v6541_v50 = vsel %vm1668_vm3, %v6538_v57, %v6540_v53  ;;  %v6542_v6 = vrot.slane %v14245_v5, 7 }
 0xdb8   : > { %v9342_v61 = vpop.eup %9341  ;;  %v6664_v4 = vpack.c.bf16 %v6633_v49, %v6632_v26  ;;  %v6740_v45 = vsel %vm1860_vm2, %v6737_v51, %v6739_v30  ;;  %v6829_v39 = vmul.f32 %v6738_v19, %v15244_v1  ;;  %v6741_v32 = vrot.slane %v14285_v27, 1 }
 0xdb9   : > { %8695 = vmatmul.mubr.bf16.vlgmr.msra.gmra.mrb[128].mxu1 %v6858_v41  ;;  %v6830_v59 = vmul.f32 %v6740_v45, %v15245_v29  ;;  %v6743_v7 = vrot.slane %v14288_v44, 1  ;;  %v6543_v62 = vsel %vm1668_vm3, %v6540_v53, %v6542_v6  ;;  %v6634_v36 = vmul.f32 %v6541_v50, %v15368_v15 }
 0xdba   : > { %v9344_v57 = vpop.eup %9343  ;;  %7120 = vmatmul.mubr.bf16.vlgmr.msra.gmra.mrb[192].mxu0 %v6664_v4  ;;  %v6742_v5 = vsel %vm1860_vm2, %v6739_v30, %v6741_v32  ;;  %v6635_v26 = vmul.f32 %v6543_v62, %v15247_v8  ;;  %v14303_v49 = vmul.f32 %v9338_v24, %v14149_v28  ;;  %v14306_v1 = vmul.f32 %v9340_v58, %v14153_v3 }
 0xdbb   : > { %v6859_v10 = vpack.c.bf16 %v6830_v59, %v6829_v39  ;;  %7127 = vmatprep.mubr.bf16.mxu0 %v6697_v20  ;;  %v6744_v29 = vsel %vm1860_vm2, %v6741_v32, %v6743_v7  ;;  %v6831_v53 = vmul.f32 %v6742_v5, %v15248_v43  ;;  %v6698_v15 = vpack.c.bf16 %v14268_v18, %v14249_v47 }
 0xdbc   : > { %v6832_v11 = vmul.f32 %v6744_v29, %v15249_v2  ;;  %v6665_v38 = vpack.c.bf16 %v6635_v26, %v6634_v36  ;;  %v6745_v8 = vrot.slane %v14303_v49, 1  ;;  %v6747_v28 = vrot.slane %v14306_v1, 1  ;;  %v15457_v36 = vld [vmem:[#allocation24_spill] sm:$0xff] }
 0xdbd   : > { %8698 = vmatprep.mubr.bf16.mxu1 %v6859_v10  ;;  %v6335_v51 = vadd.f32 1.0, %v9336_v42  ;;  %v6336_v3 = vadd.f32 1.0, %v9342_v61  ;;  %v6544_v24 = vrot.slane %v14249_v47, 7  ;;  %v6546_v20 = vrot.slane %v14268_v18, 7  ;;  %v15453_v61 = vld [vmem:[#allocation22_spill] sm:$0xff] }
 0xdbe   : > { %v6860_v30 = vpack.c.bf16 %v6832_v11, %v6831_v53  ;;  %v6746_v43 = vsel %vm1860_vm2, %v6743_v7, %v6745_v8  ;;  %v6748_v58 = vsel %vm1860_vm2, %v6745_v8, %v6747_v28  ;;  %9345 = vpow2.f32 %v14195_v22  ;;  %v15456_v7 = vld [vmem:[#allocation23_spill] sm:$0xff] }
 0xdbf   : > { %v6833_v2 = vmul.f32 %v6746_v43, %v15250_v34  ;;  %v6834_v41 = vmul.f32 %v6748_v58, %v15251_v13  ;;  %9347 = vrcp.f32 %v6335_v51  ;;  %v6545_v42 = vsel %vm1668_vm3, %v6542_v6, %v6544_v24 }
 0xdc0   : > { %9349 = vrcp.f32 %v6336_v3  ;;  %v6547_v47 = vsel %vm1668_vm3, %v6544_v24, %v6546_v20  ;;  %v6636_v18 = vmul.f32 %v6545_v42, %v15252_v9  ;;  %v6337_v19 = vadd.f32 1.0, %v9344_v57 }
 0xdc1   : > { %8699 = vmatmul.mubr.bf16.gmra.mrb[132].mxu1 %v6860_v30  ;;  %v6861_v50 = vpack.c.bf16 %v6834_v41, %v6833_v2  ;;  %v6637_v4 = vmul.f32 %v6547_v47, %v15453_v61  ;;  %v6699_v22 = vpack.c.bf16 %v14285_v27, %v14273_v31  ;;  %9351 = vpow2.f32 %v14201_v12  ;;  %v15458_v30 = vld [vmem:[#allocation25_spill] sm:$0xff] }
 0xdc2   : > { %7128 = vmatmul.mubr.bf16.gmra.mrb[196].mxu0 %v6665_v38  ;;  %9353 = vrcp.f32 %v6337_v19  ;;  %v6548_v34 = vrot.slane %v14273_v31, 7  ;;  %v6550_v13 = vrot.slane %v14285_v27, 7  ;;  %v15454_v6 = vsub.f32 0.0, %v14214_v54 }
 0xdc3   : > { %8702 = vmatprep.mubr.bf16.mxu1 %v6861_v50  ;;  %7135 = vmatprep.mubr.bf16.mxu0 %v6698_v15  ;;  %v6666_v9 = vpack.c.bf16 %v6637_v4, %v6636_v18  ;;  %9355 = vpow2.f32 %v14205_v55  ;;  %v15455_v39 = vsub.f32 0.0, %v14222_v35  ;;  %v6700_v12 = vpack.c.bf16 %v14303_v49, %v14288_v44 }
 0xdc4   : > { %v6294_v45 = vmul.f32 1.442695, %v15454_v6  ;;  %v6549_v59 = vsel %vm1668_vm3, %v6546_v20, %v6548_v34  ;;  %v6551_v31 = vsel %vm1668_vm3, %v6548_v34, %v6550_v13  ;;  %v14344_v27 = vadd.f32 %v14071_v0, %v14230_v25 }
 0xdc5   : > { %v6296_v32 = vmul.f32 1.442695, %v15455_v39  ;;  %v14347_v62 = vmul.f32 %v6549_v59, %v15456_v7  ;;  %v14350_v55 = vmul.f32 %v6551_v31, %v15457_v36  ;;  %v6247_v57 = vsub.f32 0.0, %v14235_v40 }
 0xdc6   : > { %9357 = vpow2.f32 %v6294_v45  ;;  %v6248_v5 = vsub.f32 0.0, %v14344_v27  ;;  %v6552_v26 = vrot.slane %v14288_v44, 7  ;;  %v6554_v10 = vrot.slane %v14303_v49, 7 }
 0xdc7   : > { %9359 = vpow2.f32 %v6296_v32  ;;  %v6142_v29 = vmul.f32 %v14060_v60, %v13925_v52  ;;  %v6667_v25 = vpack.c.bf16 %v14350_v55, %v14347_v62  ;;  %v6298_v53 = vmul.f32 1.442695, %v6247_v57  ;;  %v15460_v62 = vld [vmem:[#allocation49_spill] sm:$0xff]  ;;  %v15461_v57 = vld [vmem:[#allocation50_spill] sm:$0xff] }
 0xdc8   : > { %v6179_v15 = vmul.f32 %v14057_v37, %v14218_v48  ;;  %v6143_v11 = vmul.f32 %v14060_v60, %v13937_v56  ;;  %v9346_v38 = vpop.eup %9345  ;;  %v6300_v8 = vmul.f32 1.442695, %v6248_v5  ;;  %v6553_v51 = vsel %vm1668_vm3, %v6550_v13, %v6552_v26  ;;  %v15459_v48 = vld [vmem:[#allocation26_spill] sm:$0xff] }
 0xdc9   : > { %v6555_v3 = vsel %vm1668_vm3, %v6552_v26, %v6554_v10  ;;  %v6180_v52 = vmul.f32 %v14057_v37, %v6142_v29  ;;  %v9348_v24 = vpop.eup %9347  ;;  %v6338_v20 = vadd.f32 1.0, %v9346_v38  ;;  %9361 = vpow2.f32 %v6298_v53  ;;  %v15462_v38 = vld [vmem:[#allocation51_spill] sm:$0xff] }
 0xdca   : > { %v14370_v43 = vmul.f32 %v6553_v51, %v15458_v30  ;;  %v14373_v58 = vmul.f32 %v6555_v3, %v15459_v48  ;;  %v9350_v56 = vpop.eup %9349  ;;  %v14376_v2 = vmul.f32 %v9348_v24, %v14156_v17  ;;  %7136 = vmatmul.mubr.bf16.gmra.mrb[200].mxu0 %v6666_v9  ;;  %9363 = vpow2.f32 %v6300_v8 }
 0xdcb   : > { %v14379_v41 = vadd.f32 %v14071_v0, %v6179_v15  ;;  %v14382_v42 = vadd.f32 %v14071_v0, %v6180_v52  ;;  %v9352_v47 = vpop.eup %9351  ;;  %v14385_v18 = vmul.f32 %v9350_v56, %v14160_v14  ;;  %9365 = vrcp.f32 %v6338_v20  ;;  %7143 = vmatprep.mubr.bf16.mxu0 %v6699_v22  ;;  %v15463_v56 = vld [vmem:[#allocation37_spill] sm:$0xff] }
 0xdcc   : > { %v6668_v19 = vpack.c.bf16 %v14373_v58, %v14370_v43  ;;  %v6144_v17 = vmul.f32 %v14060_v60, %v13949_v63  ;;  %v9354_v50 = vpop.eup %9353  ;;  %v6749_v61 = vrot.slane %v14376_v2, 1  ;;  %v6339_v4 = vadd.f32 1.0, %v9352_v47 }
 0xdcd   : > { %v6249_v34 = vsub.f32 0.0, %v14379_v41  ;;  %v6250_v13 = vsub.f32 0.0, %v14382_v42  ;;  %v9356_v6 = vpop.eup %9355  ;;  %v6751_v14 = vrot.slane %v14385_v18, 1  ;;  %v14396_v45 = vmul.f32 %v9354_v50, %v14178_v46 }
 0xdce   : > { %v6701_v22 = vpack.c.bf16 %v14376_v2, %v14306_v1  ;;  %v6181_v9 = vmul.f32 %v14057_v37, %v6143_v11  ;;  %v6750_v39 = vsel %vm1860_vm2, %v6747_v28, %v6749_v61  ;;  %v6340_v32 = vadd.f32 1.0, %v9356_v6 }
 0xdcf   : > { %9367 = vrcp.f32 %v6339_v4  ;;  %v6302_v59 = vmul.f32 1.442695, %v6249_v34  ;;  %v6752_v7 = vsel %vm1860_vm2, %v6749_v61, %v6751_v14  ;;  %v6835_v36 = vmul.f32 %v6750_v39, %v15460_v62  ;;  %v15464_v34 = vld [vmem:[#allocation27_spill] sm:$0xff] }
 0xdd0   : > { %v9358_v63 = vpop.eup %9357  ;;  %v6753_v46 = vrot.slane %v14396_v45, 1  ;;  %v6836_v5 = vmul.f32 %v6752_v7, %v15461_v57  ;;  %9369 = vrcp.f32 %v6340_v32  ;;  %v6304_v29 = vmul.f32 1.442695, %v6250_v13  ;;  %v15465_v13 = vld [vmem:[#allocation28_spill] sm:$0xff]  ;;  %v15467_v57 = vld [vmem:[#allocation106_spill] sm:$0xff] }
 0xdd1   : > { %v9360_v31 = vpop.eup %9359  ;;  %v6341_v55 = vadd.f32 1.0, %v9358_v63  ;;  %v6182_v28 = vmul.f32 %v14057_v37, %v6144_v17  ;;  %v14411_v15 = vadd.f32 %v14071_v0, %v6181_v9  ;;  %v6556_v51 = vrot.slane %v14306_v1, 7 }
 0xdd2   : > { %v6342_v26 = vadd.f32 1.0, %v9360_v31  ;;  %v6754_v53 = vsel %vm1860_vm2, %v6751_v14, %v6753_v46  ;;  %v6862_v11 = vpack.c.bf16 %v6836_v5, %v6835_v36  ;;  %7144 = vmatmul.mubr.bf16.gmra.mrb[204].mxu0 %v6667_v25  ;;  %v6558_v20 = vrot.slane %v14376_v2, 7  ;;  %v15466_v14 = vld [vmem:[#allocation18_spill] sm:$0xff] }
 0xdd3   : > { %9371 = vrcp.f32 %v6341_v55  ;;  %v14414_v8 = vmul.f32 %v6754_v53, %v15462_v38  ;;  %v9362_v3 = vpop.eup %9361  ;;  %7151 = vmatprep.mubr.bf16.mxu0 %v6700_v12  ;;  %v14421_v52 = vadd.f32 %v14071_v0, %v6182_v28  ;;  %v6251_v24 = vsub.f32 0.0, %v14411_v15  ;;  %v15469_v28 = vld [vmem:[#allocation52_spill] sm:$0xff]  ;;  %v15470_v38 = vld [vmem:[#allocation109_spill] sm:$0xff] }
 0xdd4   : > { %9373 = vrcp.f32 %v6342_v26  ;;  %v9364_v30 = vpop.eup %9363  ;;  %8703 = vmatmul.mubr.bf16.gmra.mrb[136].mxu1 %v6862_v11  ;;  %v6343_v48 = vadd.f32 1.0, %v9362_v3  ;;  %v6557_v25 = vsel %vm1668_vm3, %v6554_v10, %v6556_v51  ;;  %v6145_v44 = vmul.f32 %v14060_v60, %v15463_v56  ;;  %v15468_v26 = vld [vmem:[#allocation107_spill] sm:$0xff] }
 0xdd5   : > { %9375 = vpow2.f32 %v6302_v59  ;;  %v9366_v12 = vpop.eup %9365  ;;  %v6344_v47 = vadd.f32 1.0, %v9364_v30  ;;  %v6252_v17 = vsub.f32 0.0, %v14421_v52  ;;  %v6306_v50 = vmul.f32 1.442695, %v6251_v24 }
 0xdd6   : > { %9377 = vpow2.f32 %v6304_v29  ;;  %v6559_v61 = vsel %vm1668_vm3, %v6556_v51, %v6558_v20  ;;  %v14435_v4 = vmul.f32 %v9366_v12, %v14183_v33  ;;  %v6642_v49 = vmul.f32 %v6557_v25, %v15464_v34  ;;  %v15471_v12 = vld [vmem:[#allocation55_spill] sm:$0xff] }
 0xdd7   : > { %9379 = vrcp.f32 %v6343_v48  ;;  %v6643_v10 = vmul.f32 %v6559_v61, %v15465_v13  ;;  %v6308_v6 = vmul.f32 1.442695, %v6252_v17  ;;  %v6146_v9 = vmul.f32 %v14060_v60, %v15466_v14 }
 0xdd8   : > { %9381 = vrcp.f32 %v6344_v47  ;;  %v6183_v63 = vmul.f32 %v14057_v37, %v6145_v44  ;;  %v6755_v32 = vrot.slane %v14435_v4, 1  ;;  %v6702_v33 = vpack.c.bf16 %v14396_v45, %v14385_v18 }
 0xdd9   : > { %v9368_v39 = vpop.eup %9367  ;;  %9383 = vpow2.f32 %v6306_v50  ;;  %v6669_v59 = vpack.c.bf16 %v6643_v10, %v6642_v49  ;;  %v6184_v7 = vmul.f32 %v14057_v37, %v6146_v9  ;;  %v6147_v5 = vmul.f32 %v14060_v60, %v15467_v57  ;;  %v15472_v10 = vld [vmem:[#allocation56_spill] sm:$0xff]  ;;  %v15474_v57 = vld [vmem:[#allocation58_spill] sm:$0xff] }
 0xdda   : > { %v14446_v31 = vmul.f32 %v9368_v39, %v14190_v23  ;;  %9385 = vpow2.f32 %v6308_v6  ;;  %v14450_v62 = vadd.f32 %v14071_v0, %v6183_v63  ;;  %v9370_v36 = vpop.eup %9369  ;;  %v6756_v55 = vsel %vm1860_vm2, %v6753_v46, %v6755_v32  ;;  %7152 = vmatmul.mubr.bf16.gmra.mrb[208].mxu0 %v6668_v19  ;;  %v15473_v39 = vld [vmem:[#allocation57_spill] sm:$0xff] }
 0xddb   : > { %v6148_v23 = vmul.f32 %v14060_v60, %v15468_v26  ;;  %v6560_v29 = vrot.slane %v14385_v18, 7  ;;  %v6838_v11 = vmul.f32 %v6756_v55, %v15469_v28  ;;  %v14463_v51 = vmul.f32 %v9370_v36, %v15470_v38  ;;  %7159 = vmatprep.mubr.bf16.mxu0 %v6701_v22 }
 0xddc   : > { %v6757_v46 = vrot.slane %v14446_v31, 1  ;;  %v14470_v43 = vadd.f32 %v14071_v0, %v6184_v7  ;;  %v6253_v3 = vsub.f32 0.0, %v14450_v62  ;;  %v6185_v24 = vmul.f32 %v14057_v37, %v6147_v5 }
 0xddd   : > { %v9372_v53 = vpop.eup %9371  ;;  %v6186_v30 = vmul.f32 %v14057_v37, %v6148_v23  ;;  %v6863_v25 = vpack.c.bf16 %v6838_v11, %v14414_v8  ;;  %v6759_v1 = vrot.slane %v14463_v51, 1 }
 0xdde   : > { %v9374_v58 = vpop.eup %9373  ;;  %v14473_v19 = vmul.f32 %v9372_v53, %v14214_v54  ;;  %v6758_v56 = vsel %vm1860_vm2, %v6755_v32, %v6757_v46  ;;  %v6254_v50 = vsub.f32 0.0, %v14470_v43  ;;  %v6310_v49 = vmul.f32 1.442695, %v6253_v3 }
 0xddf   : > { %v9376_v48 = vpop.eup %9375  ;;  %v14482_v22 = vmul.f32 %v9374_v58, %v14222_v35  ;;  %v6839_v54 = vmul.f32 %v6758_v56, %v15471_v12  ;;  %8706 = vmatprep.mubr.bf16.mxu1 %v6863_v25  ;;  %v6760_v61 = vsel %vm1860_vm2, %v6757_v46, %v6759_v1  ;;  %v14502_v11 = vadd.f32 %v14071_v0, %v6185_v24  ;;  %v15475_v24 = vld [vmem:[#allocation68_spill] sm:$0xff]  ;;  %v15476_v25 = vld [vmem:[#allocation69_spill] sm:$0xff] }
 0xde0   : > { %v9378_v44 = vpop.eup %9377  ;;  %v6761_v47 = vrot.slane %v14473_v19, 1  ;;  %v6345_v17 = vadd.f32 1.0, %v9376_v48  ;;  %v6840_v6 = vmul.f32 %v6760_v61, %v15472_v10  ;;  %v6312_v14 = vmul.f32 1.442695, %v6254_v50 }
 0xde1   : > { %v6763_v8 = vrot.slane %v14482_v22, 1  ;;  %v6346_v34 = vadd.f32 1.0, %v9378_v44  ;;  %v9380_v13 = vpop.eup %9379  ;;  %v14506_v58 = vadd.f32 %v14071_v0, %v6186_v30  ;;  %v6562_v44 = vrot.slane %v14396_v45, 7 }
 0xde2   : > { %v6762_v35 = vsel %vm1860_vm2, %v6759_v1, %v6761_v47  ;;  %9387 = vrcp.f32 %v6345_v17  ;;  %v9382_v9 = vpop.eup %9381  ;;  %v14494_v7 = vmul.f32 %v9380_v13, %v14235_v40  ;;  %v6864_v55 = vpack.c.bf16 %v6840_v6, %v6839_v54  ;;  %7160 = vmatmul.mubr.bf16.gmra.mrb[212].mxu0 %v6669_v59  ;;  %v15477_v54 = vld [vmem:[#allocation29_spill] sm:$0xff] }
 0xde3   : > { %v6764_v63 = vsel %vm1860_vm2, %v6761_v47, %v6763_v8  ;;  %v6841_v32 = vmul.f32 %v6762_v35, %v15473_v39  ;;  %9389 = vrcp.f32 %v6346_v34  ;;  %v9384_v36 = vpop.eup %9383  ;;  %v14498_v26 = vmul.f32 %v9382_v9, %v14344_v27  ;;  %7167 = vmatprep.mubr.bf16.mxu0 %v6702_v33  ;;  %v15478_v17 = vld [vmem:[#allocation105_spill] sm:$0xff] }
 0xde4   : > { %v6842_v5 = vmul.f32 %v6764_v63, %v15474_v57  ;;  %9391 = vpow2.f32 %v6310_v49  ;;  %v9386_v23 = vpop.eup %9385  ;;  %v6765_v53 = vrot.slane %v14494_v7, 1  ;;  %v6347_v28 = vadd.f32 1.0, %v9384_v36  ;;  %8707 = vmatmul.mubr.bf16.gmra.mrb[140].mxu1 %v6864_v55  ;;  %v15480_v49 = vld [vmem:[#allocation30_spill] sm:$0xff] }
 0xde5   : > { %9393 = vpow2.f32 %v6312_v14  ;;  %v6767_v38 = vrot.slane %v14498_v26, 1  ;;  %v6348_v46 = vadd.f32 1.0, %v9386_v23  ;;  %v6255_v59 = vsub.f32 0.0, %v14502_v11 }
 0xde6   : > { %v6865_v40 = vpack.c.bf16 %v6842_v5, %v6841_v32  ;;  %v6766_v27 = vsel %vm1860_vm2, %v6763_v8, %v6765_v53  ;;  %9395 = vrcp.f32 %v6347_v28  ;;  %v6561_v33 = vsel %vm1668_vm3, %v6558_v20, %v6560_v29  ;;  %v15479_v20 = vld [vmem:[#allocation108_spill] sm:$0xff] }
 0xde7   : > { %v6768_v3 = vsel %vm1860_vm2, %v6765_v53, %v6767_v38  ;;  %v6843_v48 = vmul.f32 %v6766_v27, %v15475_v24  ;;  %9397 = vrcp.f32 %v6348_v46  ;;  %v6256_v30 = vsub.f32 0.0, %v14506_v58  ;;  %v15482_v27 = vld [vmem:[#allocation70_spill] sm:$0xff] }
 0xde8   : > { %8710 = vmatprep.mubr.bf16.mxu1 %v6865_v40  ;;  %v6844_v56 = vmul.f32 %v6768_v3, %v15476_v25  ;;  %v6314_v1 = vmul.f32 1.442695, %v6255_v59  ;;  %v6644_v47 = vmul.f32 %v6561_v33, %v15477_v54  ;;  %v6149_v2 = vmul.f32 %v14060_v60, %v15478_v17  ;;  %v15481_v40 = vld [vmem:[#allocation31_spill] sm:$0xff] }
 0xde9   : > { %v6316_v12 = vmul.f32 1.442695, %v6256_v30  ;;  %v6150_v50 = vmul.f32 %v14060_v60, %v15479_v20  ;;  %v6563_v8 = vsel %vm1668_vm3, %v6560_v29, %v6562_v44  ;;  %v6564_v60 = vrot.slane %v14435_v4, 7  ;;  %v15483_v3 = vld [vmem:[#allocation71_spill] sm:$0xff] }
 0xdea   : > { %v6866_v61 = vpack.c.bf16 %v6844_v56, %v6843_v48  ;;  %9399 = vpow2.f32 %v6314_v1  ;;  %v6645_v13 = vmul.f32 %v6563_v8, %v15480_v49  ;;  %v6187_v45 = vmul.f32 %v14057_v37, %v6149_v2  ;;  %v15484_v56 = vld [vmem:[#allocation32_spill] sm:$0xff]  ;;  %v15485_v8 = vld [vmem:[#allocation75_spill] sm:$0xff] }
 0xdeb   : > { %9401 = vpow2.f32 %v6316_v12  ;;  %v6188_v10 = vmul.f32 %v14057_v37, %v6150_v50  ;;  %v6566_v14 = vrot.slane %v14446_v31, 7  ;;  %v6703_v36 = vpack.c.bf16 %v14446_v31, %v14435_v4 }
 0xdec   : > { %v9388_v34 = vpop.eup %9387  ;;  %8711 = vmatmul.mubr.bf16.gmra.mrb[144].mxu1 %v6866_v61  ;;  %v6670_v29 = vpack.c.bf16 %v6645_v13, %v6644_v47  ;;  %v14540_v63 = vadd.f32 %v14071_v0, %v6187_v45  ;;  %v6565_v55 = vsel %vm1668_vm3, %v6562_v44, %v6564_v60  ;;  %v6704_v44 = vpack.c.bf16 %v14473_v19, %v14463_v51  ;;  %v15486_v13 = vld [vmem:[#allocation77_spill] sm:$0xff] }
 0xded   : > { %v9390_v6 = vpop.eup %9389  ;;  %v14532_v35 = vmul.f32 %v9388_v34, %v14379_v41  ;;  %v14543_v39 = vadd.f32 %v14071_v0, %v6188_v10  ;;  %v6567_v28 = vsel %vm1668_vm3, %v6564_v60, %v6566_v14  ;;  %v6646_v46 = vmul.f32 %v6565_v55, %v15481_v40 }
 0xdee   : > { %v9392_v9 = vpop.eup %9391  ;;  %v14537_v18 = vmul.f32 %v9390_v6, %v14382_v42  ;;  %7168 = vmatmul.mubr.bf16.gmra.mrb[216].mxu0 %v6670_v29  ;;  %v6257_v5 = vsub.f32 0.0, %v14540_v63  ;;  %v6647_v1 = vmul.f32 %v6567_v28, %v15484_v56  ;;  %v6568_v12 = vrot.slane %v14463_v51, 7  ;;  %v15487_v6 = vld [vmem:[#allocation35_spill] sm:$0xff] }
 0xdef   : > { %v9394_v37 = vpop.eup %9393  ;;  %v6769_v41 = vrot.slane %v14532_v35, 1  ;;  %v6349_v32 = vadd.f32 1.0, %v9392_v9  ;;  %v6258_v23 = vsub.f32 0.0, %v14543_v39  ;;  %7175 = vmatprep.mubr.bf16.mxu0 %v6703_v36  ;;  %v6570_v17 = vrot.slane %v14473_v19, 7  ;;  %v15488_v9 = vld [vmem:[#allocation36_spill] sm:$0xff] }
 0xdf0   : > { %v6771_v57 = vrot.slane %v14537_v18, 1  ;;  %v6350_v42 = vadd.f32 1.0, %v9394_v37  ;;  %v9396_v53 = vpop.eup %9395  ;;  %v6671_v50 = vpack.c.bf16 %v6647_v1, %v6646_v46  ;;  %v6569_v51 = vsel %vm1668_vm3, %v6566_v14, %v6568_v12 }
 0xdf1   : > { %v6770_v0 = vsel %vm1860_vm2, %v6767_v38, %v6769_v41  ;;  %9403 = vrcp.f32 %v6349_v32  ;;  %v9398_v4 = vpop.eup %9397  ;;  %v14558_v33 = vmul.f32 %v9396_v53, %v14411_v15  ;;  %v6318_v38 = vmul.f32 1.442695, %v6257_v5 }
 0xdf2   : > { %v6772_v31 = vsel %vm1860_vm2, %v6769_v41, %v6771_v57  ;;  %v6845_v59 = vmul.f32 %v6770_v0, %v15482_v27  ;;  %9405 = vrcp.f32 %v6350_v42  ;;  %v14562_v48 = vmul.f32 %v9398_v4, %v14421_v52  ;;  %v15489_v4 = vld [vmem:[#allocation82_spill] sm:$0xff] }
 0xdf3   : > { %v6846_v24 = vmul.f32 %v6772_v31, %v15483_v3  ;;  %v6320_v30 = vmul.f32 1.442695, %v6258_v23  ;;  %v6773_v25 = vrot.slane %v14558_v33, 1  ;;  %9407 = vpow2.f32 %v6318_v38  ;;  %v15490_v3 = vld [vmem:[#allocation83_spill] sm:$0xff]  ;;  %v15492_v38 = vld [vmem:[#allocation42_spill] sm:$0xff] }
 0xdf4   : > { %v9400_v54 = vpop.eup %9399  ;;  %v6775_v47 = vrot.slane %v14562_v48, 1  ;;  %v6571_v19 = vsel %vm1668_vm3, %v6568_v12, %v6570_v17  ;;  %v6648_v60 = vmul.f32 %v6569_v51, %v15487_v6  ;;  %v6572_v41 = vrot.slane %v14482_v22, 7  ;;  %v15495_v51 = vld [vmem:[#allocation47_spill] sm:$0xff] }
 0xdf5   : > { %v6867_v15 = vpack.c.bf16 %v6846_v24, %v6845_v59  ;;  %v9402_v52 = vpop.eup %9401  ;;  %v6774_v2 = vsel %vm1860_vm2, %v6771_v57, %v6773_v25  ;;  %v6351_v20 = vadd.f32 1.0, %v9400_v54  ;;  %9409 = vpow2.f32 %v6320_v30 }
 0xdf6   : > { %v6776_v61 = vsel %vm1860_vm2, %v6773_v25, %v6775_v47  ;;  %v6847_v34 = vmul.f32 %v6774_v2, %v15485_v8  ;;  %v6352_v49 = vadd.f32 1.0, %v9402_v52  ;;  %7176 = vmatmul.mubr.bf16.gmra.mrb[220].mxu0 %v6671_v50  ;;  %v6649_v29 = vmul.f32 %v6571_v19, %v15488_v9  ;;  %v15494_v8 = vld [vmem:[#allocation92_spill] sm:$0xff] }
 0xdf7   : > { %8714 = vmatprep.mubr.bf16.mxu1 %v6867_v15  ;;  %v6848_v45 = vmul.f32 %v6776_v61, %v15486_v13  ;;  %9411 = vrcp.f32 %v6351_v20  ;;  %7183 = vmatprep.mubr.bf16.mxu0 %v6704_v44  ;;  %v6574_v32 = vrot.slane %v14494_v7, 7  ;;  %v6705_v53 = vpack.c.bf16 %v14494_v7, %v14482_v22  ;;  %v15491_v22 = vld [vmem:[#allocation41_spill] sm:$0xff]  ;;  %v15493_v61 = vld [vmem:[#allocation91_spill] sm:$0xff] }
 0xdf8   : > { %9413 = vrcp.f32 %v6352_v49  ;;  %v6672_v42 = vpack.c.bf16 %v6649_v29, %v6648_v60  ;;  %v6573_v0 = vsel %vm1668_vm3, %v6570_v17, %v6572_v41  ;;  %v6576_v1 = vrot.slane %v14498_v26, 7 }
 0xdf9   : > { %v6868_v10 = vpack.c.bf16 %v6848_v45, %v6847_v34  ;;  %v6575_v28 = vsel %vm1668_vm3, %v6572_v41, %v6574_v32  ;;  %v6650_v7 = vmul.f32 %v6573_v0, %v15491_v22  ;;  %v6578_v44 = vrot.slane %v14532_v35, 7  ;;  %v15496_v45 = vld [vmem:[#allocation48_spill] sm:$0xff] }
 0xdfa   : > { %v6651_v30 = vmul.f32 %v6575_v28, %v15492_v38  ;;  %v6577_v2 = vsel %vm1668_vm3, %v6574_v32, %v6576_v1  ;;  %v6789_v49 = vrot.slane %v14257_v21, 1 }
 0xdfb   : > { %v9404_v37 = vpop.eup %9403  ;;  %8715 = vmatmul.mubr.bf16.gmra.mrb[148].mxu1 %v6868_v10  ;;  %v6579_v20 = vsel %vm1668_vm3, %v6576_v1, %v6578_v44  ;;  %v6652_v13 = vmul.f32 %v6577_v2, %v15495_v51  ;;  %v6582_v10 = vrot.slane %v14558_v33, 7 }
 0xdfc   : > { %v9406_v36 = vpop.eup %9405  ;;  %v14582_v14 = vmul.f32 %v9404_v37, %v14450_v62  ;;  %v6673_v17 = vpack.c.bf16 %v6651_v30, %v6650_v7  ;;  %v6653_v19 = vmul.f32 %v6579_v20, %v15496_v45  ;;  %v15497_v37 = vld [vmem:[#allocation110_spill] sm:$0xff] }
 0xdfd   : > { %v14585_v55 = vmul.f32 %v9406_v36, %v14470_v43  ;;  %v9408_v5 = vpop.eup %9407  ;;  %v15498_v41 = vrot.slane %v15497_v37, 1 }
 0xdfe   : > { %v6777_v57 = vrot.slane %v14582_v14, 1  ;;  %v6353_v46 = vadd.f32 1.0, %v9408_v5  ;;  %7184 = vmatmul.mubr.bf16.gmra.mrb[224].mxu0 %v6672_v42  ;;  %v6674_v36 = vpack.c.bf16 %v6653_v19, %v6652_v13  ;;  %v6707_v5 = vpack.c.bf16 %v14558_v33, %v14537_v18 }
 0xdff   : > { %v6779_v23 = vrot.slane %v14585_v55, 1  ;;  %v9410_v40 = vpop.eup %9409  ;;  %7191 = vmatprep.mubr.bf16.mxu0 %v6705_v53  ;;  %v6824_v32 = vsel %vm1860_vm2, %v6789_v49, %v15498_v41  ;;  %v6586_v22 = vrot.slane %v14582_v14, 7 }
 0xe00   : > { %v6778_v62 = vsel %vm1860_vm2, %v6775_v47, %v6777_v57  ;;  %v6354_v27 = vadd.f32 1.0, %v9410_v40  ;;  %9415 = vrcp.f32 %v6353_v46  ;;  %v15501_v46 = vld [vmem:[#allocation94_spill] sm:$0xff] }
 0xe01   : > { %v6780_v43 = vsel %vm1860_vm2, %v6777_v57, %v6779_v23  ;;  %v6849_v31 = vmul.f32 %v6778_v62, %v15489_v4  ;;  %v9412_v59 = vpop.eup %9411 }
 0xe02   : > { %v6850_v24 = vmul.f32 %v6780_v43, %v15490_v3  ;;  %v9414_v25 = vpop.eup %9413  ;;  %v14600_v56 = vmul.f32 %v9412_v59, %v14502_v11  ;;  %9417 = vrcp.f32 %v6354_v27  ;;  %v6706_v11 = vpack.c.bf16 %v14532_v35, %v14498_v26  ;;  %v15504_v59 = vld [vmem:[#allocation99_spill] sm:$0xff] }
 0xe03   : > { %v14605_v54 = vmul.f32 %v9414_v25, %v14506_v58  ;;  %v6580_v26 = vrot.slane %v14537_v18, 7  ;;  %v15503_v18 = vld [vmem:[#allocation95_spill] sm:$0xff]  ;;  %v6708_v25 = vpack.c.bf16 %v14582_v14, %v14562_v48 }
 0xe04   : > { %v6869_v12 = vpack.c.bf16 %v6850_v24, %v6849_v31  ;;  %v6781_v15 = vrot.slane %v14600_v56, 1  ;;  %v15502_v31 = vld [vmem:[#allocation54_spill] sm:$0xff]  ;;  %v6584_v24 = vrot.slane %v14562_v48, 7  ;;  %v6709_v20 = vpack.c.bf16 %v14600_v56, %v14585_v55 }
 0xe05   : > { %v6783_v47 = vrot.slane %v14605_v54, 1  ;;  %v6581_v57 = vsel %vm1668_vm3, %v6578_v44, %v6580_v26 }
 0xe06   : > { %8718 = vmatprep.mubr.bf16.mxu1 %v6869_v12  ;;  %v6782_v52 = vsel %vm1860_vm2, %v6779_v23, %v6781_v15  ;;  %7192 = vmatmul.mubr.bf16.gmra.mrb[228].mxu0 %v6673_v17  ;;  %v6583_v23 = vsel %vm1668_vm3, %v6580_v26, %v6582_v10  ;;  %v6585_v1 = vsel %vm1668_vm3, %v6582_v10, %v6584_v24  ;;  %v15505_v12 = vld [vmem:[#allocation63_spill] sm:$0xff]  ;;  %v15510_v26 = vld [vmem:[#allocation86_spill] sm:$0xff] }
 0xe07   : > { %v6784_v50 = vsel %vm1860_vm2, %v6781_v15, %v6783_v47  ;;  %v6851_v58 = vmul.f32 %v6782_v52, %v15493_v61  ;;  %7199 = vmatprep.mubr.bf16.mxu0 %v6706_v11  ;;  %v6655_v27 = vmul.f32 %v6583_v23, %v15502_v31  ;;  %v6587_v44 = vsel %vm1668_vm3, %v6584_v24, %v6586_v22  ;;  %v15514_v24 = vld [vmem:[#allocation74_spill] sm:$0xff] }
 0xe08   : > { %v6852_v34 = vmul.f32 %v6784_v50, %v15494_v8  ;;  %v6656_v15 = vmul.f32 %v6585_v1, %v15505_v12  ;;  %v6588_v52 = vrot.slane %v14585_v55, 7  ;;  %v6590_v11 = vrot.slane %v14600_v56, 7  ;;  %v15507_v50 = vld [vmem:[#allocation72_spill] sm:$0xff]  ;;  %v15509_v56 = vld [vmem:[#allocation85_spill] sm:$0xff] }
 0xe0a   : > { %v6870_v35 = vpack.c.bf16 %v6852_v34, %v6851_v58  ;;  %v9416_v6 = vpop.eup %9415  ;;  %v6589_v48 = vsel %vm1668_vm3, %v6586_v22, %v6588_v52  ;;  %v6591_v14 = vsel %vm1668_vm3, %v6588_v52, %v6590_v11  ;;  %v15508_v58 = vld [vmem:[#allocation73_spill] sm:$0xff]  ;;  %v6592_v34 = vrot.slane %v14605_v54, 7 }
 0xe0b   : > { %v6449_v9 = vmul.f32 %v9416_v6, %v14540_v63  ;;  %v15499_v63 = vld [vmem:[#allocation100_spill] sm:$0xff]  ;;  %v6658_v61 = vmul.f32 %v6589_v48, %v15507_v50  ;;  %v6659_v8 = vmul.f32 %v6591_v14, %v15508_v58 }
 0xe0c   : > { %v9418_v60 = vpop.eup %9417  ;;  %8719 = vmatmul.mubr.bf16.gmra.mrb[152].mxu1 %v6870_v35  ;;  %v6856_v28 = vmul.f32 %v6824_v32, %v15499_v63  ;;  %v6593_v45 = vsel %vm1668_vm3, %v6590_v11, %v6592_v34  ;;  %v15512_v32 = vld [vmem:[#allocation98_spill] sm:$0xff] }
 0xe0d   : > { %v6450_v29 = vmul.f32 %v9418_v60, %v14543_v39  ;;  %v6785_v42 = vrot.slane %v6449_v9, 1  ;;  %v15500_v39 = vld [vmem:[#allocation53_spill] sm:$0xff]  ;;  %v6677_v51 = vpack.c.bf16 %v6659_v8, %v6658_v61  ;;  %v6710_v13 = vpack.c.bf16 %v6449_v9, %v14605_v54 }
 0xe0e   : > { %7200 = vmatmul.mubr.bf16.gmra.mrb[232].mxu0 %v6674_v36  ;;  %v6654_v40 = vmul.f32 %v6581_v57, %v15500_v39  ;;  %v6660_v19 = vmul.f32 %v6593_v45, %v15509_v56 }
 0xe0f   : > { %v6787_v53 = vrot.slane %v6450_v29, 1  ;;  %v6786_v0 = vsel %vm1860_vm2, %v6783_v47, %v6785_v42  ;;  %7207 = vmatprep.mubr.bf16.mxu0 %v6707_v5  ;;  %v15506_v47 = vld [vmem:[#allocation65_spill] sm:$0xff]  ;;  %v6596_v10 = vrot.slane %v6450_v29, 7  ;;  %v6711_v60 = vpack.c.bf16 %v14257_v21, %v6450_v29  ;;  %v14672_v29 = vld [vmem:[%s15314_s18 + $0x1] ss:$0 sm:$0xff] }
 0xe10   : > { %v6853_v43 = vmul.f32 %v6786_v0, %v15501_v46  ;;  %v6675_v30 = vpack.c.bf16 %v6655_v27, %v6654_v40  ;;  %v6657_v17 = vmul.f32 %v6587_v44, %v15506_v47  ;;  %v15515_v47 = vld [vmem:[#allocation62_spill] sm:$0xff] }
 0xe11   : > { %v6788_v62 = vsel %vm1860_vm2, %v6785_v42, %v6787_v53  ;;  %v6790_v4 = vsel %vm1860_vm2, %v6787_v53, %v6789_v49  ;;  %v6594_v49 = vrot.slane %v6449_v9, 7  ;;  %v6598_v54 = vsel %vm1668_vm3, %v6596_v10, %v6504_v16  ;;  %v15511_v9 = vld [vmem:[#allocation97_spill] sm:$0xff] }
 0xe12   : > { %v6854_v33 = vmul.f32 %v6788_v62, %v15503_v18  ;;  %v6855_v3 = vmul.f32 %v6790_v4, %v15504_v59  ;;  %v6676_v2 = vpack.c.bf16 %v6657_v17, %v6656_v15  ;;  %v6663_v36 = vmul.f32 %v6598_v54, %v15512_v32  ;;  %v15513_v4 = vld [vmem:[#allocation79_spill] sm:$0xff] }
 0xe13   : > { %v6595_v55 = vsel %vm1668_vm3, %v6592_v34, %v6594_v49  ;;  %v6597_v37 = vsel %vm1668_vm3, %v6594_v49, %v6596_v10 }
 0xe14   : > { %v6871_v7 = vpack.c.bf16 %v6854_v33, %v6853_v43  ;;  %v6872_v38 = vpack.c.bf16 %v6856_v28, %v6855_v3  ;;  %v6661_v35 = vmul.f32 %v6595_v55, %v15510_v26  ;;  %v6662_v41 = vmul.f32 %v6597_v37, %v15511_v9  ;;  %v15518_v26 = vld [vmem:[#allocation89_spill] sm:$0xff] }
 0xe16   : > { %8722 = vmatprep.mubr.bf16.mxu1 %v6871_v7  ;;  %7208 = vmatmul.mubr.bf16.gmra.mrb[236].mxu0 %v6675_v30  ;;  %v6678_v6 = vpack.c.bf16 %v6661_v35, %v6660_v19  ;;  %v6679_v57 = vpack.c.bf16 %v6663_v36, %v6662_v41 }
 0xe17   : > { %8723 = vmatmul.mubr.bf16.gmra.mrb[156].mxu1 %v6872_v38  ;;  %7215 = vmatprep.mubr.bf16.mxu0 %v6708_v25 }
 0xe1e   : > { %7216 = vmatmul.mubr.bf16.gmra.mrb[240].mxu0 %v6676_v2 }
 0xe1f   : > { %7223 = vmatprep.mubr.bf16.mxu0 %v6709_v20  ;;  %v15516_v20 = vld [vmem:[#allocation88_spill] sm:$0xff] }
 0xe26   : > { %7224 = vmatmul.mubr.bf16.gmra.mrb[244].mxu0 %v6677_v51  ;;  %v15517_v51 = vld [vmem:[#allocation64_spill] sm:$0xff] }
 0xe27   : > { %7231 = vmatprep.mubr.bf16.mxu0 %v6710_v13 }
 0xe2e   : > { %7232 = vmatmul.mubr.bf16.gmra.mrb[248].mxu0 %v6678_v6 }
 0xe2f   : > { %7239 = vmatprep.mubr.bf16.mxu0 %v6711_v60 }
 0xe36   : > { %7240 = vmatmul.mubr.bf16.gmra.mrb[252].mxu0 %v6679_v57 }
 0xe8c   : > { %v8696_v42 = vpop.f32.mrb[128].mxu1 }
 0xe8d   : > { %v8254_v5 = vpop.f32.mrb[192].mxu0  ;;  %v7282_v23 = vpop.f32.mrb[129].mxu1 }
 0xe8e   : > { %v8255_v53 = vpop.f32.mrb[193].mxu0  ;;  %v8697_v21 = vpop.f32.mrb[130].mxu1 }
 0xe8f   : > { %v8256_v16 = vadd.f32 %v8255_v53, %v8254_v5  ;;  %v8257_v0 = vpop.f32.mrb[194].mxu0  ;;  %v7285_v63 = vpop.f32.mrb[131].mxu1 }
 0xe90   : > { %v8258_v28 = vpop.f32.mrb[195].mxu0 }
 0xe91   : > { %v7122_v39 = vadd.f32 %v8256_v16, %v14672_v29  ;;  %v8259_v40 = vadd.f32 %v8258_v28, %v8257_v0  ;;  %v15520_v16 = vld [vmem:[#allocation66_spill] sm:$0xff] }
 0xe93   : > { %v7283_v62 = vadd.f32 %v7282_v23, %v7122_v39  ;;  %v7125_v46 = vadd.f32 %v8259_v40, %v14672_v29 }
 0xe94   : > { %v8700_v43 = vpop.f32.mrb[132].mxu1 }
 0xe95   : > { %v7409_v31 = vadd.f32 %v7283_v62, %v15513_v4  ;;  %v7286_v27 = vadd.f32 %v7285_v63, %v7125_v46  ;;  %v8260_v18 = vpop.f32.mrb[196].mxu0  ;;  %v7298_v33 = vpop.f32.mrb[133].mxu1  ;;  %v15521_v4 = vld [vmem:[#allocation90_spill] sm:$0xff] }
 0xe96   : > { %v8261_v59 = vpop.f32.mrb[197].mxu0  ;;  %v8701_v3 = vpop.f32.mrb[134].mxu1 }
 0xe97   : > { %7441 = vst [vmem:[%s14679_s11] sm:$0xff] %v7409_v31  ;;  %v7410_v22 = vadd.f32 %v7286_v27, %v15514_v24  ;;  %v8262_v7 = vadd.f32 %v8261_v59, %v8260_v18  ;;  %v8263_v38 = vpop.f32.mrb[198].mxu0  ;;  %v7301_v30 = vpop.f32.mrb[135].mxu1 }
 0xe98   : > { %v8264_v25 = vpop.f32.mrb[199].mxu0 }
 0xe99   : > { %7442 = vst [vmem:[%s14679_s11 + $0x8] sm:$0xff] %v7410_v22  ;;  %v7130_v1 = vadd.f32 %v8262_v7, %v14672_v29  ;;  %v8265_v44 = vadd.f32 %v8264_v25, %v8263_v38 }
 0xe9b   : > { %v7291_v12 = vadd.f32 %v8696_v42, %v7130_v1  ;;  %v7133_v15 = vadd.f32 %v8265_v44, %v14672_v29  ;;  %v15519_v42 = vld [vmem:[#allocation84_spill] sm:$0xff] }
 0xe9d   : > { %v7411_v17 = vadd.f32 %v7291_v12, %v15515_v47  ;;  %v7294_v52 = vadd.f32 %v8697_v21, %v7133_v15  ;;  %v8266_v11 = vpop.f32.mrb[200].mxu0 }
 0xe9e   : > { %v8267_v2 = vpop.f32.mrb[201].mxu0 }
 0xe9f   : > { %7443 = vst [vmem:[%s14679_s11 + $0x10] sm:$0xff] %v7411_v17  ;;  %v7412_v48 = vadd.f32 %v7294_v52, %v15516_v20  ;;  %v8268_v14 = vadd.f32 %v8267_v2, %v8266_v11  ;;  %v8269_v50 = vpop.f32.mrb[202].mxu0  ;;  %v15523_v17 = vld [vmem:[#allocation87_spill] sm:$0xff]  ;;  %v15524_v20 = vld [vmem:[#allocation81_spill] sm:$0xff] }
 0xea0   : > { %v8270_v61 = vpop.f32.mrb[203].mxu0 }
 0xea1   : > { %7444 = vst [vmem:[%s14679_s11 + $0x18] sm:$0xff] %v7412_v48  ;;  %v7138_v58 = vadd.f32 %v8268_v14, %v14672_v29  ;;  %v8271_v8 = vadd.f32 %v8270_v61, %v8269_v50 }
 0xea3   : > { %v7299_v34 = vadd.f32 %v7298_v33, %v7138_v58  ;;  %v7141_v49 = vadd.f32 %v8271_v8, %v14672_v29 }
 0xea5   : > { %v7413_v13 = vadd.f32 %v7299_v34, %v15517_v51  ;;  %v7302_v45 = vadd.f32 %v7301_v30, %v7141_v49  ;;  %v8272_v55 = vpop.f32.mrb[204].mxu0 }
 0xea6   : > { %v8273_v56 = vpop.f32.mrb[205].mxu0 }
 0xea7   : > { %v8704_v19 = vpop.f32.mrb[136].mxu1  ;;  %7445 = vst [vmem:[%s14679_s11 + $0x20] sm:$0xff] %v7413_v13  ;;  %v7414_v35 = vadd.f32 %v7302_v45, %v15518_v26  ;;  %v8274_v10 = vadd.f32 %v8273_v56, %v8272_v55  ;;  %v8275_v6 = vpop.f32.mrb[206].mxu0 }
 0xea8   : > { %v7314_v60 = vpop.f32.mrb[137].mxu1  ;;  %v8276_v37 = vpop.f32.mrb[207].mxu0 }
 0xea9   : > { %v8705_v54 = vpop.f32.mrb[138].mxu1  ;;  %7446 = vst [vmem:[%s14679_s11 + $0x28] sm:$0xff] %v7414_v35  ;;  %v7146_v9 = vadd.f32 %v8274_v10, %v14672_v29  ;;  %v8277_v41 = vadd.f32 %v8276_v37, %v8275_v6 }
 0xeaa   : > { %v7317_v32 = vpop.f32.mrb[139].mxu1 }
 0xeab   : > { %v7307_v36 = vadd.f32 %v8700_v43, %v7146_v9  ;;  %v7149_v57 = vadd.f32 %v8277_v41, %v14672_v29 }
 0xead   : > { %v7415_v5 = vadd.f32 %v7307_v36, %v15519_v42  ;;  %v7310_v23 = vadd.f32 %v8701_v3, %v7149_v57  ;;  %v8278_v53 = vpop.f32.mrb[208].mxu0  ;;  %v15522_v3 = vld [vmem:[#allocation59_spill] sm:$0xff] }
 0xeae   : > { %v8279_v21 = vpop.f32.mrb[209].mxu0 }
 0xeaf   : > { %7447 = vst [vmem:[%s14679_s11 + $0x30] sm:$0xff] %v7415_v5  ;;  %v7416_v0 = vadd.f32 %v7310_v23, %v15520_v16  ;;  %v8280_v63 = vadd.f32 %v8279_v21, %v8278_v53  ;;  %v8281_v28 = vpop.f32.mrb[210].mxu0  ;;  %v15527_v16 = vld [vmem:[#allocation40_spill] sm:$0xff] }
 0xeb0   : > { %v8282_v39 = vpop.f32.mrb[211].mxu0 }
 0xeb1   : > { %7448 = vst [vmem:[%s14679_s11 + $0x38] sm:$0xff] %v7416_v0  ;;  %v7154_v40 = vadd.f32 %v8280_v63, %v14672_v29  ;;  %v8283_v62 = vadd.f32 %v8282_v39, %v8281_v28 }
 0xeb3   : > { %v7315_v46 = vadd.f32 %v7314_v60, %v7154_v40  ;;  %v7157_v43 = vadd.f32 %v8283_v62, %v14672_v29  ;;  %v15526_v60 = vld [vmem:[#allocation39_spill] sm:$0xff]  ;;  %v15528_v40 = vld [vmem:[#allocation44_spill] sm:$0xff] }
 0xeb5   : > { %v7417_v31 = vadd.f32 %v7315_v46, %v15521_v4  ;;  %v7318_v27 = vadd.f32 %v7317_v32, %v7157_v43  ;;  %v8284_v18 = vpop.f32.mrb[212].mxu0 }
 0xeb6   : > { %v8285_v33 = vpop.f32.mrb[213].mxu0 }
 0xeb7   : > { %v8708_v59 = vpop.f32.mrb[140].mxu1  ;;  %7449 = vst [vmem:[%s14679_s11 + $0x40] sm:$0xff] %v7417_v31  ;;  %v7418_v24 = vadd.f32 %v7318_v27, %v15522_v3  ;;  %v8286_v22 = vadd.f32 %v8285_v33, %v8284_v18  ;;  %v8287_v7 = vpop.f32.mrb[214].mxu0 }
 0xeb8   : > { %v7330_v38 = vpop.f32.mrb[141].mxu1  ;;  %v8288_v30 = vpop.f32.mrb[215].mxu0 }
 0xeb9   : > { %v8709_v25 = vpop.f32.mrb[142].mxu1  ;;  %7450 = vst [vmem:[%s14679_s11 + $0x48] sm:$0xff] %v7418_v24  ;;  %v7162_v1 = vadd.f32 %v8286_v22, %v14672_v29  ;;  %v8289_v44 = vadd.f32 %v8288_v30, %v8287_v7 }
 0xeba   : > { %v7333_v12 = vpop.f32.mrb[143].mxu1 }
 0xebb   : > { %v7323_v15 = vadd.f32 %v8704_v19, %v7162_v1  ;;  %v7165_v47 = vadd.f32 %v8289_v44, %v14672_v29  ;;  %v15525_v19 = vld [vmem:[#allocation60_spill] sm:$0xff] }
 0xebd   : > { %v7419_v52 = vadd.f32 %v7323_v15, %v15523_v17  ;;  %v7326_v11 = vadd.f32 %v8705_v54, %v7165_v47 }
 0xebf   : > { %v8712_v2 = vpop.f32.mrb[144].mxu1  ;;  %7451 = vst [vmem:[%s14679_s11 + $0x50] sm:$0xff] %v7419_v52  ;;  %v7420_v48 = vadd.f32 %v7326_v11, %v15524_v20 }
 0xec0   : > { %v7346_v14 = vpop.f32.mrb[145].mxu1 }
 0xec1   : > { %v14713_v50 = vpop.f32.mrb[146].mxu1  ;;  %7452 = vst [vmem:[%s14679_s11 + $0x58] sm:$0xff] %v7420_v48  ;;  %v8290_v61 = vpop.f32.mrb[216].mxu0 }
 0xec2   : > { %v7349_v58 = vpop.f32.mrb[147].mxu1  ;;  %v8291_v8 = vpop.f32.mrb[217].mxu0 }
 0xec3   : > { %v8292_v34 = vadd.f32 %v8291_v8, %v8290_v61  ;;  %v8293_v49 = vpop.f32.mrb[218].mxu0 }
 0xec4   : > { %v8294_v51 = vpop.f32.mrb[219].mxu0 }
 0xec5   : > { %v7170_v13 = vadd.f32 %v8292_v34, %v14672_v29  ;;  %v8295_v45 = vadd.f32 %v8294_v51, %v8293_v49  ;;  %v15532_v49 = vld [vmem:[#allocation61_spill] sm:$0xff] }
 0xec7   : > { %v7331_v55 = vadd.f32 %v7330_v38, %v7170_v13  ;;  %v7173_v56 = vadd.f32 %v8295_v45, %v14672_v29  ;;  %v15530_v38 = vld [vmem:[#allocation67_spill] sm:$0xff] }
 0xec9   : > { %v7421_v26 = vadd.f32 %v7331_v55, %v15525_v19  ;;  %v7334_v35 = vadd.f32 %v7333_v12, %v7173_v56  ;;  %v8296_v10 = vpop.f32.mrb[220].mxu0 }
 0xeca   : > { %v8297_v6 = vpop.f32.mrb[221].mxu0 }
 0xecb   : > { %7453 = vst [vmem:[%s14679_s11 + $0x60] sm:$0xff] %v7421_v26  ;;  %v7422_v37 = vadd.f32 %v7334_v35, %v15526_v60  ;;  %v8298_v54 = vadd.f32 %v8297_v6, %v8296_v10  ;;  %v8299_v9 = vpop.f32.mrb[222].mxu0 }
 0xecc   : > { %v8300_v41 = vpop.f32.mrb[223].mxu0 }
 0xecd   : > { %7454 = vst [vmem:[%s14679_s11 + $0x68] sm:$0xff] %v7422_v37  ;;  %v7178_v36 = vadd.f32 %v8298_v54, %v14672_v29  ;;  %v8301_v57 = vadd.f32 %v8300_v41, %v8299_v9  ;;  %v15534_v41 = vld [vmem:[#allocation76_spill] sm:$0xff] }
 0xece   : > { %v14721_v32 = vpop.f32.mrb[148].mxu1 }
 0xecf   : > { %v7362_v42 = vpop.f32.mrb[149].mxu1  ;;  %v7339_v23 = vadd.f32 %v8708_v59, %v7178_v36  ;;  %v7181_v53 = vadd.f32 %v8301_v57, %v14672_v29  ;;  %v15529_v59 = vld [vmem:[#allocation80_spill] sm:$0xff] }
 0xed0   : > { %v14725_v5 = vpop.f32.mrb[150].mxu1 }
 0xed1   : > { %v7365_v21 = vpop.f32.mrb[151].mxu1  ;;  %v7423_v0 = vadd.f32 %v7339_v23, %v15527_v16  ;;  %v7342_v63 = vadd.f32 %v8709_v25, %v7181_v53  ;;  %v8302_v28 = vpop.f32.mrb[224].mxu0 }
 0xed2   : > { %v8303_v39 = vpop.f32.mrb[225].mxu0 }
 0xed3   : > { %7455 = vst [vmem:[%s14679_s11 + $0x70] sm:$0xff] %v7423_v0  ;;  %v7424_v62 = vadd.f32 %v7342_v63, %v15528_v40  ;;  %v8304_v46 = vadd.f32 %v8303_v39, %v8302_v28  ;;  %v8305_v43 = vpop.f32.mrb[226].mxu0  ;;  %v15535_v28 = vld [vmem:[#allocation93_spill] sm:$0xff] }
 0xed4   : > { %v8306_v4 = vpop.f32.mrb[227].mxu0 }
 0xed5   : > { %7456 = vst [vmem:[%s14679_s11 + $0x78] sm:$0xff] %v7424_v62  ;;  %v7186_v31 = vadd.f32 %v8304_v46, %v14672_v29  ;;  %v8307_v27 = vadd.f32 %v8306_v4, %v8305_v43  ;;  %v15536_v43 = vld [vmem:[#allocation20_spill] sm:$0xff] }
 0xed7   : > { %v7347_v18 = vadd.f32 %v7346_v14, %v7186_v31  ;;  %v7189_v33 = vadd.f32 %v8307_v27, %v14672_v29  ;;  %v15531_v14 = vld [vmem:[#allocation96_spill] sm:$0xff] }
 0xed9   : > { %v7425_v3 = vadd.f32 %v7347_v18, %v15529_v59  ;;  %v7350_v24 = vadd.f32 %v7349_v58, %v7189_v33  ;;  %v8308_v22 = vpop.f32.mrb[228].mxu0 }
 0xeda   : > { %v8309_v7 = vpop.f32.mrb[229].mxu0 }
 0xedb   : > { %7457 = vst [vmem:[%s14679_s11 + $0x80] sm:$0xff] %v7425_v3  ;;  %v7426_v30 = vadd.f32 %v7350_v24, %v15530_v38  ;;  %v8310_v25 = vadd.f32 %v8309_v7, %v8308_v22  ;;  %v8311_v1 = vpop.f32.mrb[230].mxu0  ;;  %v15537_v24 = vld [vmem:[#allocation43_spill] sm:$0xff] }
 0xedc   : > { %v8312_v44 = vpop.f32.mrb[231].mxu0 }
 0xedd   : > { %7458 = vst [vmem:[%s14679_s11 + $0x88] sm:$0xff] %v7426_v30  ;;  %v7194_v12 = vadd.f32 %v8310_v25, %v14672_v29  ;;  %v8313_v15 = vadd.f32 %v8312_v44, %v8311_v1  ;;  %v15538_v30 = vld [vmem:[#allocation45_spill] sm:$0xff] }
 0xedf   : > { %v14739_v47 = vpop.f32.mrb[152].mxu1  ;;  %v7355_v52 = vadd.f32 %v8712_v2, %v7194_v12  ;;  %v7197_v11 = vadd.f32 %v8313_v15, %v14672_v29 }
 0xee0   : > { %v7378_v17 = vpop.f32.mrb[153].mxu1 }
 0xee1   : > { %v14742_v20 = vpop.f32.mrb[154].mxu1  ;;  %v7427_v61 = vadd.f32 %v7355_v52, %v15531_v14  ;;  %v7358_v58 = vadd.f32 %v14713_v50, %v7197_v11  ;;  %v8314_v8 = vpop.f32.mrb[232].mxu0  ;;  %v15533_v50 = vld [vmem:[#allocation78_spill] sm:$0xff] }
 0xee2   : > { %v7381_v48 = vpop.f32.mrb[155].mxu1  ;;  %v8315_v34 = vpop.f32.mrb[233].mxu0  ;;  %v15539_v14 = vld [vmem:[#allocation46_spill] sm:$0xff] }
 0xee3   : > { %7459 = vst [vmem:[%s14679_s11 + $0x90] sm:$0xff] %v7427_v61  ;;  %v7428_v51 = vadd.f32 %v7358_v58, %v15532_v49  ;;  %v8316_v13 = vadd.f32 %v8315_v34, %v8314_v8  ;;  %v8317_v45 = vpop.f32.mrb[234].mxu0  ;;  %v15540_v34 = vld [vmem:[#allocation21_spill] sm:$0xff] }
 0xee4   : > { %v8318_v55 = vpop.f32.mrb[235].mxu0 }
 0xee5   : > { %7460 = vst [vmem:[%s14679_s11 + $0x98] sm:$0xff] %v7428_v51  ;;  %v7202_v2 = vadd.f32 %v8316_v13, %v14672_v29  ;;  %v8319_v56 = vadd.f32 %v8318_v55, %v8317_v45 }
 0xee7   : > { %v7363_v19 = vadd.f32 %v7362_v42, %v7202_v2  ;;  %v7205_v26 = vadd.f32 %v8319_v56, %v14672_v29 }
 0xee9   : > { %v7429_v10 = vadd.f32 %v7363_v19, %v15533_v50  ;;  %v7366_v6 = vadd.f32 %v7365_v21, %v7205_v26  ;;  %v8320_v60 = vpop.f32.mrb[236].mxu0  ;;  %v15541_v19 = vld [vmem:[#allocation101_spill] sm:$0xff] }
 0xeea   : > { %v14751_v35 = vpop.f32.mrb[156].mxu1  ;;  %v8321_v54 = vpop.f32.mrb[237].mxu0 }
 0xeeb   : > { %v7394_v37 = vpop.f32.mrb[157].mxu1  ;;  %7461 = vst [vmem:[%s14679_s11 + $0xa0] sm:$0xff] %v7429_v10  ;;  %v7430_v36 = vadd.f32 %v7366_v6, %v15534_v41  ;;  %v8322_v57 = vadd.f32 %v8321_v54, %v8320_v60  ;;  %v8323_v23 = vpop.f32.mrb[238].mxu0  ;;  %v15542_v6 = vld [vmem:[#allocation102_spill] sm:$0xff] }
 0xeec   : > { %v14754_v9 = vpop.f32.mrb[158].mxu1  ;;  %v8324_v42 = vpop.f32.mrb[239].mxu0 }
 0xeed   : > { %v7397_v53 = vpop.f32.mrb[159].mxu1  ;;  %7462 = vst [vmem:[%s14679_s11 + $0xa8] sm:$0xff] %v7430_v36  ;;  %v7210_v16 = vadd.f32 %v8322_v57, %v14672_v29  ;;  %v8325_v0 = vadd.f32 %v8324_v42, %v8323_v23  ;;  %v15543_v42 = vld [vmem:[#allocation103_spill] sm:$0xff] }
 0xeef   : > { %v7371_v21 = vadd.f32 %v14721_v32, %v7210_v16  ;;  %v7213_v63 = vadd.f32 %v8325_v0, %v14672_v29 }
 0xef1   : > { %v7431_v39 = vadd.f32 %v7371_v21, %v15535_v28  ;;  %v7374_v40 = vadd.f32 %v14725_v5, %v7213_v63  ;;  %v8326_v62 = vpop.f32.mrb[240].mxu0 }
 0xef2   : > { %v8327_v46 = vpop.f32.mrb[241].mxu0 }
 0xef3   : > { %7463 = vst [vmem:[%s14679_s11 + $0xb0] sm:$0xff] %v7431_v39  ;;  %v7432_v4 = vadd.f32 %v7374_v40, %v15536_v43  ;;  %v8328_v31 = vadd.f32 %v8327_v46, %v8326_v62  ;;  %v8329_v27 = vpop.f32.mrb[242].mxu0 }
 0xef4   : > { %v8330_v18 = vpop.f32.mrb[243].mxu0 }
 0xef5   : > { %7464 = vst [vmem:[%s14679_s11 + $0xb8] sm:$0xff] %v7432_v4  ;;  %v7218_v33 = vadd.f32 %v8328_v31, %v14672_v29  ;;  %v8331_v32 = vadd.f32 %v8330_v18, %v8329_v27 }
 0xef7   : > { %v7379_v59 = vadd.f32 %v7378_v17, %v7218_v33  ;;  %v7221_v3 = vadd.f32 %v8331_v32, %v14672_v29 }
 0xef9   : > { %v7433_v22 = vadd.f32 %v7379_v59, %v15537_v24  ;;  %v7382_v5 = vadd.f32 %v7381_v48, %v7221_v3  ;;  %v8332_v7 = vpop.f32.mrb[244].mxu0 }
 0xefa   : > { %v8333_v38 = vpop.f32.mrb[245].mxu0 }
 0xefb   : > { %7465 = vst [vmem:[%s14679_s11 + $0xc0] sm:$0xff] %v7433_v22  ;;  %v7434_v25 = vadd.f32 %v7382_v5, %v15538_v30  ;;  %v8334_v1 = vadd.f32 %v8333_v38, %v8332_v7  ;;  %v8335_v44 = vpop.f32.mrb[246].mxu0 }
 0xefc   : > { %v8336_v12 = vpop.f32.mrb[247].mxu0 }
 0xefd   : > { %7466 = vst [vmem:[%s14679_s11 + $0xc8] sm:$0xff] %v7434_v25  ;;  %v7226_v15 = vadd.f32 %v8334_v1, %v14672_v29  ;;  %v8337_v52 = vadd.f32 %v8336_v12, %v8335_v44 }
 0xeff   : > { %v7387_v17 = vadd.f32 %v14739_v47, %v7226_v15  ;;  %v7229_v11 = vadd.f32 %v8337_v52, %v14672_v29 }
 0xf01   : > { %v7435_v48 = vadd.f32 %v7387_v17, %v15539_v14  ;;  %v7390_v61 = vadd.f32 %v14742_v20, %v7229_v11  ;;  %v8338_v58 = vpop.f32.mrb[248].mxu0 }
 0xf02   : > { %v8339_v8 = vpop.f32.mrb[249].mxu0 }
 0xf03   : > { %7467 = vst [vmem:[%s14679_s11 + $0xd0] sm:$0xff] %v7435_v48  ;;  %v7436_v49 = vadd.f32 %v7390_v61, %v15540_v34  ;;  %v8340_v51 = vadd.f32 %v8339_v8, %v8338_v58  ;;  %v8341_v13 = vpop.f32.mrb[250].mxu0 }
 0xf04   : > { %v8342_v45 = vpop.f32.mrb[251].mxu0 }
 0xf05   : > { %7468 = vst [vmem:[%s14679_s11 + $0xd8] sm:$0xff] %v7436_v49  ;;  %v7234_v55 = vadd.f32 %v8340_v51, %v14672_v29  ;;  %v8343_v47 = vadd.f32 %v8342_v45, %v8341_v13 }
 0xf07   : > { %v7395_v2 = vadd.f32 %v7394_v37, %v7234_v55  ;;  %v7237_v56 = vadd.f32 %v8343_v47, %v14672_v29 }
 0xf09   : > { %v7437_v20 = vadd.f32 %v7395_v2, %v15541_v19  ;;  %v7398_v26 = vadd.f32 %v7397_v53, %v7237_v56  ;;  %v8344_v50 = vpop.f32.mrb[252].mxu0 }
 0xf0a   : > { %v8345_v10 = vpop.f32.mrb[253].mxu0 }
 0xf0b   : > { %7469 = vst [vmem:[%s14679_s11 + $0xe0] sm:$0xff] %v7437_v20  ;;  %v7438_v60 = vadd.f32 %v7398_v26, %v15542_v6  ;;  %v8346_v54 = vadd.f32 %v8345_v10, %v8344_v50  ;;  %v8347_v41 = vpop.f32.mrb[254].mxu0 }
 0xf0c   : > { %v8348_v36 = vpop.f32.mrb[255].mxu0 }
 0xf0d   : > { %7470 = vst [vmem:[%s14679_s11 + $0xe8] sm:$0xff] %v7438_v60  ;;  %v7242_v37 = vadd.f32 %v8346_v54, %v14672_v29  ;;  %v8349_v57 = vadd.f32 %v8348_v36, %v8347_v41 }
 0xf0f   : > { %v7403_v23 = vadd.f32 %v14751_v35, %v7242_v37  ;;  %v7245_v53 = vadd.f32 %v8349_v57, %v14672_v29  ;;  %v15545_v35 = vld [vmem:[#allocation104_spill] sm:$0xff] }
 0xf11   : > { %v7439_v16 = vadd.f32 %v7403_v23, %v15543_v42  ;;  %v7406_v0 = vadd.f32 %v14754_v9, %v7245_v53 }
 0xf13   : > { %7471 = vst [vmem:[%s14679_s11 + $0xf0] sm:$0xff] %v7439_v16  ;;  %v7440_v21 = vadd.f32 %v7406_v0, %v15545_v35 }
 0xf15   : > { %7472 = vst [vmem:[%s14679_s11 + $0xf8] sm:$0xff] %v7440_v21 }
 0xf16   : > { %9558 = shalt.err (!%p9555_p7)
}
 0xf17   : > { %s9559_s13 = scalar_lea.hbm %s14797_s29, 4096  ;;  %s9563_s21 = scalar_lea.hbm %s15544_s26, 16384 }
 0xf18   : > { %p9560_p9 = scmp.ne.s32.totalorder %s14797_s29, %s9559_s13  ;;  %p9564_p5 = scmp.lt.u32.totalorder %s14797_s29, %s15544_s26 }
 0xf19   : > { %p9565_p10 = scmp.lt.u32.totalorder %s9563_s21, %s9559_s13  ;;  %p9567_p1 = scmp.lt.u32.totalorder %s9559_s13, %s14797_s29 }
 0xf1a   : > { %p9561_p11 = pnand %p9560_p9, %p9778_p12 }
 0xf1b   : > { %p9566_p2 = por %p9565_p10, %p9564_p5 }
 0xf1c   : > { %p9562_p0 = pneg %p9561_p11 }
 0xf1d   : > { %p9568_p4 = por %p9567_p1, %p9566_p2 }
 0xf1f   : > { %p9569_p6 = pnand %p9568_p4, %p9562_p0 }
 0xf21   : > { %9572 = shalt.err (!%p9569_p6)
}
 0xf22   : > { %s9628_s27 = smov 128   ;;  %s9629_s16 = smov 8  }
 0xf23   : > { %8732 = dma.vmem_to_hbm [thread:$0]  (%p9778_p12), %s14799_s15, 4096, %s14797_s29, %s7474_s25, %s9628_s27, %s9628_s27, %s9629_s16  }
 0xf24 PF: > { %s15546_s17 = sld [smem:[#allocation12_spill]]  ;;  %s15547_s11 = sld [smem:[#allocation13_spill]] }
 0xf25   : > { %p8749_p8 = scmp.ge.s32.totalorder %s9615_s24, 2 }
 0xf2a   : > { %s7502_s14 = sand.u32 1, %s15546_s17   ;;  %p15548_p13 = scmp.ne.s32.totalorder %s15547_s11, 0 }
 0xf2b   : > { %s7503_s13 = scalar_lea.sflag [#allocation5], %s7502_s14 }
 0xf2c   : > { %p8743_p3 = pnand %p8749_p8, %p15548_p13 }
 0xf2e   : > { %9598 = dma.done.wait (!%p8743_p3), %s7503_s13, 4096  }
 0xf2f   : > { %9600 = vsyncadd (!%p8743_p3), %s7503_s13, 4294963200  ;;  %s15549_s24 = sld [smem:[#allocation14_spill]]  ;;  %s15550_s21 = smov %s9607_s22 }
 0xf30   : > { %s15551_s22 = smov %s9611_s23  ;;  %s15552_s23 = smov %s9774_s12 }
 0xf35   : > { %p26_p7 = scmp.ge.s32.totalorder %s15549_s24, 6  }
 0xf37   :  { %28 = sbr.rel (!%p26_p7) target bundleno = 9 (0x9), region = 125 }
 0xf3e   :  { %7508 = vsyncpa [#allocation4], 1 }
 0xf3f   :  { %7510 = vsyncpa [#allocation4 + $0x1], 1 }
 0xf40   :  { %7511 = vsyncpa [#allocation7], 1 }
 0xf41   :  { %7512 = vsyncpa [#allocation5], 1 }
 0xf42   :  { %7514 = vsyncpa [#allocation5 + $0x1], 1 }

</bundles_post_ra>
